<compile_context>
chip_gen: v7x
topology: tpu7x:2x2x1
jax: 0.10.0
libtpu: 0.0.40
codegen_flags: <defaults>
</compile_context>

<pallas_src>
import functools

import jax
import jax.numpy as jnp
from jax.experimental import pallas as pl
from jax.experimental.pallas import tpu as pltpu


# vmem_limit kept well below v7x's 64 MiB physical per-TC VMEM (worst stage here needs <5 MiB).
_DECONV_COMPILER_PARAMS = pltpu.CompilerParams(
    dimension_semantics=("parallel", "arbitrary"),   # (M tiles, K reduction innermost)
    vmem_limit_bytes=32 * 1024 * 1024,
)
_TAIL_COMPILER_PARAMS = pltpu.CompilerParams(
    dimension_semantics=("parallel",),
    vmem_limit_bytes=32 * 1024 * 1024,
)


# ----------------------------- Pallas kernels ------------------------------

def _deconv_skip_kernel(x_ref, w_ref, b_ref, scale_ref, shift_ref, skip_ref,
                        o_ref, acc_ref):
    """K-tiled GEMM (bf16 -> f32 acc) + bias -> ReLU -> BN affine -> +skip."""
    k = pl.program_id(1)

    @pl.when(k == 0)
    def _():
        acc_ref[...] = jnp.zeros_like(acc_ref)

    acc_ref[...] += jnp.dot(x_ref[...], w_ref[...],
                            preferred_element_type=jnp.float32)

    @pl.when(k == pl.num_programs(1) - 1)
    def _():
        a = acc_ref[...] + b_ref[...]
        a = jnp.maximum(a, 0.0)
        a = a * scale_ref[...] + shift_ref[...]
        o_ref[...] = a + skip_ref[...]


def _deconv_head_kernel(x_ref, w_ref, b_ref, scale_ref, shift_ref,
                        hw_ref, hb_ref, o_ref, acc_ref):
    """Last deconv stage: GEMM + bias -> ReLU -> BN affine -> fused
    (classifier o singlelinear) 32->1 GEMV per parity (block-diagonal weight)."""
    k = pl.program_id(1)

    @pl.when(k == 0)
    def _():
        acc_ref[...] = jnp.zeros_like(acc_ref)

    acc_ref[...] += jnp.dot(x_ref[...], w_ref[...],
                            preferred_element_type=jnp.float32)

    @pl.when(k == pl.num_programs(1) - 1)
    def _():
        a = acc_ref[...] + b_ref[...]
        a = jnp.maximum(a, 0.0)
        a = a * scale_ref[...] + shift_ref[...]
        o_ref[...] = jnp.dot(a, hw_ref[...],
                             preferred_element_type=jnp.float32) + hb_ref[...]


def _tail_relu_fc_kernel(t_ref, w_ref, b_ref, o_ref):
    """Final permute(0,1,3,2)+squeeze -> ReLU -> Linear(h, 1).
    One image per grid step; contraction over H with W on lanes."""
    s = jnp.maximum(t_ref[...], 0.0)                     # (H, W)
    o_ref[0] = jnp.dot(w_ref[...], s,
                       preferred_element_type=jnp.float32) + b_ref[...]


# ----------------------------- tiling helpers ------------------------------

def _pick_tm(m, cap=1024):
    """Largest tile <= cap that divides m, is a multiple of 8 (sublane rule), and gives
    >=2 grid steps when possible (v7x has two TensorCores).  Falls back to the full M."""
    t = min(cap, m)
    t -= t % 8
    while t >= 8:
        if m % t == 0 and (m // t) >= 2:
            return t
        t -= 8
    return m


def _pick_tk(k4, cap=512):
    """K-reduction tile: multiple of 128 dividing K (streams large weights instead of
    requiring them fully resident before compute starts)."""
    t = min(cap, k4)
    while t >= 128:
        if k4 % t == 0 and t % 128 == 0:
            return t
        t -= 128
    return k4


# ------------------------ subpixel ConvTranspose glue -----------------------

def _subpixel_input(x):
    """(N, H, W, Cin) -> (N, H, W, 4*Cin): the four {0,1}-shifted views (zero padded)."""
    N, H, W, _ = x.shape
    xp = jnp.pad(x, ((0, 0), (0, 1), (0, 1), (0, 0)))
    views = [xp[:, dy:dy + H, dx:dx + W, :] for dy in (0, 1) for dx in (0, 1)]
    return jnp.concatenate(views, axis=-1)


def _subpixel_weight(w_t):
    """torch ConvTranspose2d weight (Cin, Cout, 3, 3) -> (4*Cin, 4*Cout) subpixel GEMM
    weight.  Row blocks: shifted-input offset (dy, dx); col blocks: output parity (py, px).
    Exactly the 9 taps of the original kernel appear (the other 7 blocks are zero)."""
    cin, cout = w_t.shape[0], w_t.shape[1]
    wf = jnp.flip(w_t, axis=(2, 3)).transpose(2, 3, 0, 1)        # (ky, kx, Cin, Cout)

    def kidx(p, d):   # parity p, input offset d -> flipped-kernel tap index (or None)
        if p == 0:
            return 1 if d == 0 else None
        return 0 if d == 0 else 2

    rows = []
    for dy in (0, 1):
        for dx in (0, 1):
            blocks = []
            for py in (0, 1):
                for px in (0, 1):
                    ky, kx = kidx(py, dy), kidx(px, dx)
                    if ky is None or kx is None:
                        blocks.append(jnp.zeros((cin, cout), w_t.dtype))
                    else:
                        blocks.append(wf[ky, kx])
            rows.append(jnp.concatenate(blocks, axis=1))         # (Cin, 4*Cout)
    return jnp.concatenate(rows, axis=0)                         # (4*Cin, 4*Cout)


# ----------------------------- wrapped stages ------------------------------

def deconv_bn_relu_add(x_nhwc, w_t, b, bn_scale, bn_shift, skip_nhwc):
    """ConvTranspose2d(k=3,s=2,p=1,op=1) + bias -> ReLU -> BatchNorm(eval) -> +skip."""
    N, H, W, Cin = x_nhwc.shape
    Cout = w_t.shape[1]
    K4, C4 = 4 * Cin, 4 * Cout
    M = N * H * W

    xcat = _subpixel_input(x_nhwc).reshape(M, K4).astype(jnp.bfloat16)
    wbig = _subpixel_weight(w_t).astype(jnp.bfloat16)
    b4 = jnp.tile(b, 4).reshape(1, C4).astype(jnp.float32)
    s4 = jnp.tile(bn_scale, 4).reshape(1, C4).astype(jnp.float32)
    t4 = jnp.tile(bn_shift, 4).reshape(1, C4).astype(jnp.float32)
    # space-to-depth the skip into the same (parity-major) channel layout
    skip_cat = (skip_nhwc.reshape(N, H, 2, W, 2, Cout)
                .transpose(0, 1, 3, 2, 4, 5)
                .reshape(M, C4).astype(jnp.float32))

    tm, tk = _pick_tm(M), _pick_tk(K4)
    grid = (M // tm, K4 // tk)
    cost = pl.CostEstimate(
        flops=2 * M * K4 * C4,
        transcendentals=0,
        bytes_accessed=M * K4 * 2 + K4 * C4 * 2 + 2 * M * C4 * 4 + 3 * C4 * 4,
    )
    out = pl.pallas_call(
        _deconv_skip_kernel,
        out_shape=jax.ShapeDtypeStruct((M, C4), jnp.float32),
        grid=grid,
        in_specs=[
            pl.BlockSpec((tm, tk), lambda i, k: (i, k)),
            pl.BlockSpec((tk, C4), lambda i, k: (k, 0)),
            pl.BlockSpec((1, C4), lambda i, k: (0, 0)),
            pl.BlockSpec((1, C4), lambda i, k: (0, 0)),
            pl.BlockSpec((1, C4), lambda i, k: (0, 0)),
            pl.BlockSpec((tm, C4), lambda i, k: (i, 0)),
        ],
        out_specs=pl.BlockSpec((tm, C4), lambda i, k: (i, 0)),
        scratch_shapes=[pltpu.VMEM((tm, C4), jnp.float32)],
        compiler_params=_DECONV_COMPILER_PARAMS,
        cost_estimate=cost,
    )(xcat, wbig, b4, s4, t4, skip_cat)

    # depth-to-space: parity slab (M, 4*Cout) -> (N, 2H, 2W, Cout)
    return (out.reshape(N, H, W, 2, 2, Cout)
            .transpose(0, 1, 3, 2, 4, 5)
            .reshape(N, 2 * H, 2 * W, Cout))


def deconv_bn_relu_head(x_nhwc, w_t, b, bn_scale, bn_shift, head_w, head_b):
    """Last deconv stage (no skip) with the folded classifier+singlelinear fused into
    the epilogue.  Returns the scalar map (N, 2H, 2W)."""
    N, H, W, Cin = x_nhwc.shape
    Cout = w_t.shape[1]
    K4, C4 = 4 * Cin, 4 * Cout
    M = N * H * W

    xcat = _subpixel_input(x_nhwc).reshape(M, K4).astype(jnp.bfloat16)
    wbig = _subpixel_weight(w_t).astype(jnp.bfloat16)
    b4 = jnp.tile(b, 4).reshape(1, C4).astype(jnp.float32)
    s4 = jnp.tile(bn_scale, 4).reshape(1, C4).astype(jnp.float32)
    t4 = jnp.tile(bn_shift, 4).reshape(1, C4).astype(jnp.float32)
    # block-diagonal per-parity head: act[:, p*Cout:(p+1)*Cout] @ head_w -> out[:, p]
    hd = jnp.zeros((C4, 4), jnp.float32)
    for p in range(4):
        hd = hd.at[p * Cout:(p + 1) * Cout, p].set(head_w[:, 0])
    hb = jnp.tile(head_b.reshape(1, 1), (1, 4)).astype(jnp.float32)

    tm, tk = _pick_tm(M), _pick_tk(K4)
    grid = (M // tm, K4 // tk)
    cost = pl.CostEstimate(
        flops=2 * M * K4 * C4 + 2 * M * C4 * 4,
        transcendentals=0,
        bytes_accessed=M * K4 * 2 + K4 * C4 * 2 + M * 4 * 4 + (3 * C4 + C4 * 4) * 4,
    )
    out = pl.pallas_call(
        _deconv_head_kernel,
        out_shape=jax.ShapeDtypeStruct((M, 4), jnp.float32),
        grid=grid,
        in_specs=[
            pl.BlockSpec((tm, tk), lambda i, k: (i, k)),
            pl.BlockSpec((tk, C4), lambda i, k: (k, 0)),
            pl.BlockSpec((1, C4), lambda i, k: (0, 0)),
            pl.BlockSpec((1, C4), lambda i, k: (0, 0)),
            pl.BlockSpec((1, C4), lambda i, k: (0, 0)),
            pl.BlockSpec((C4, 4), lambda i, k: (0, 0)),
            pl.BlockSpec((1, 4), lambda i, k: (0, 0)),
        ],
        out_specs=pl.BlockSpec((tm, 4), lambda i, k: (i, 0)),
        scratch_shapes=[pltpu.VMEM((tm, C4), jnp.float32)],
        compiler_params=_DECONV_COMPILER_PARAMS,
        cost_estimate=cost,
    )(xcat, wbig, b4, s4, t4, hd, hb)

    # depth-to-space of the 4 parity columns -> (N, 2H, 2W) scalar map
    return (out.reshape(N, H, W, 2, 2)
            .transpose(0, 1, 3, 2, 4)
            .reshape(N, 2 * H, 2 * W))


def relu_fc_tail(t_nhw, fc_w, fc_b):
    """torch tail: permute(0,1,3,2) -> squeeze(1) -> ReLU -> Linear(h, 1) => (N, W, 1)."""
    N, H, W = t_nhw.shape
    out = pl.pallas_call(
        _tail_relu_fc_kernel,
        out_shape=jax.ShapeDtypeStruct((N, 1, W), jnp.float32),
        grid=(N,),
        in_specs=[
            pl.BlockSpec((H, W), lambda n: (n, 0)),
            pl.BlockSpec((1, H), lambda n: (0, 0)),
            pl.BlockSpec((1, 1), lambda n: (0, 0)),
        ],
        out_specs=pl.BlockSpec((1, 1, W), lambda n: (n, 0, 0)),
        compiler_params=_TAIL_COMPILER_PARAMS,
    )(t_nhw.reshape(N * H, W), fc_w.reshape(1, H), fc_b.reshape(1, 1))
    return out.reshape(N, W, 1)


# ----------------------------- parameters ----------------------------------

def init_params(key, n_class, h):
    keys = iter(jax.random.split(key, 64))

    def nrm(shape, scale):
        return scale * jax.random.normal(next(keys), shape, jnp.float32)

    p = {}
    # stand-in encoder: 1x1 channel projections at each scale
    enc_in = [3, 64, 128, 256, 512]
    enc_out = [64, 128, 256, 512, 512]
    for i, (ci, co) in enumerate(zip(enc_in, enc_out), 1):
        p[f"enc{i}"] = nrm((ci, co), 1.0 / (ci ** 0.5))

    # decoder deconv stages (torch ConvTranspose2d weight layout: (Cin, Cout, kH, kW))
    dec = [(512, 512), (512, 256), (256, 128), (128, 64), (64, 32)]
    for i, (ci, co) in enumerate(dec, 1):
        p[f"d{i}_w"] = nrm((ci, co, 3, 3), 1.0 / ((ci * 9) ** 0.5))
        p[f"d{i}_b"] = nrm((co,), 0.01)
        gamma = 1.0 + nrm((co,), 0.1)
        beta = nrm((co,), 0.1)
        rmean = nrm((co,), 0.1)
        rvar = 1.0 + jnp.abs(nrm((co,), 0.1))
        scale = gamma / jnp.sqrt(rvar + 1e-5)   # BatchNorm2d eval-mode folded affine
        p[f"d{i}_scale"] = scale
        p[f"d{i}_shift"] = beta - rmean * scale

    p["cls_w"] = nrm((32, n_class), 1.0 / (32 ** 0.5))      # Conv2d(32, n_class, k=1)
    p["cls_b"] = nrm((n_class,), 0.01)
    p["sl_w"] = nrm((n_class, 1), 1.0 / (n_class ** 0.5))   # Linear(n_class, 1)
    p["sl_b"] = nrm((1,), 0.01)
    p["fc_w"] = nrm((h, 1), 1.0 / (h ** 0.5))               # Linear(h, 1)
    p["fc_b"] = nrm((1,), 0.01)
    return p


# ----------------------------- forward pass --------------------------------

def standin_encoder(x_nchw, params):
    """Deterministic stand-in for `pretrained_net`: produces x1..x5 (NHWC) at /2../32."""
    x = jnp.transpose(x_nchw, (0, 2, 3, 1))  # -> NHWC
    feats = {}
    cur = x
    for i in range(1, 6):
        N, H, W, C = cur.shape
        pooled = cur.reshape(N, H // 2, 2, W // 2, 2, C).mean(axis=(2, 4))
        cur = jnp.maximum(pooled @ params[f"enc{i}"], 0.0)
        feats[f"x{i}"] = cur
    return feats


def fcn_forward(x_nchw, params):
    f = standin_encoder(x_nchw, params)
    x1, x2, x3, x4, x5 = f["x1"], f["x2"], f["x3"], f["x4"], f["x5"]

    score = deconv_bn_relu_add(x5, params["d1_w"], params["d1_b"],
                               params["d1_scale"], params["d1_shift"], x4)
    score = deconv_bn_relu_add(score, params["d2_w"], params["d2_b"],
                               params["d2_scale"], params["d2_shift"], x3)
    score = deconv_bn_relu_add(score, params["d3_w"], params["d3_b"],
                               params["d3_scale"], params["d3_shift"], x2)
    score = deconv_bn_relu_add(score, params["d4_w"], params["d4_b"],
                               params["d4_scale"], params["d4_shift"], x1)

    # Exact algebraic fold of classifier (1x1 conv, 32->n_class) and singlelinear
    # (n_class->1): no nonlinearity sits between them in the reference module.
    w_fold = params["cls_w"] @ params["sl_w"]                    # (32, 1)
    b_fold = params["cls_b"] @ params["sl_w"] + params["sl_b"]   # (1,)
    t = deconv_bn_relu_head(score, params["d5_w"], params["d5_b"],
                            params["d5_scale"], params["d5_shift"], w_fold, b_fold)

    # torch tail: permute(0,1,3,2) -> squeeze(1) -> ReLU -> fc Linear(h, 1)
    return relu_fc_tail(t, params["fc_w"], params["fc_b"])


# ----------------------------- main -----------------------------------------

if __name__ == "__main__":
    N, in_ch, spatial = 2, 3, 64
    n_class = 4
    h = spatial  # Linear(h, 1) operates on the H axis -> h must equal the input height

    key = jax.random.PRNGKey(0)
    kp, kx = jax.random.split(key)
    params = init_params(kp, n_class=n_class, h=h)
    x = jax.random.normal(kx, (N, in_ch, spatial, spatial), jnp.float32)  # NCHW like torch

    fwd = jax.jit(functools.partial(fcn_forward, params=params))
    out = fwd(x)
    jax.block_until_ready(out)
    assert out.shape == (N, spatial, 1), out.shape
    assert jnp.all(jnp.isfinite(out))
    print("KERNEL_OK")
</pallas_src>

<mosaic_0001>
module attributes {stable_mosaic.version = 11 : i64} {
  func.func @_deconv_skip_kernel(%arg0: i32, %arg1: i32, %arg2: memref<8x512xbf16, #tpu.memory_space<vmem>>, %arg3: memref<512x2048xbf16, #tpu.memory_space<vmem>>, %arg4: memref<1x2048xf32, #tpu.memory_space<vmem>>, %arg5: memref<1x2048xf32, #tpu.memory_space<vmem>>, %arg6: memref<1x2048xf32, #tpu.memory_space<vmem>>, %arg7: memref<8x2048xf32, #tpu.memory_space<vmem>>, %arg8: memref<8x2048xf32, #tpu.memory_space<vmem>>, %arg9: memref<8x2048xf32, #tpu.memory_space<vmem>>) attributes {dimension_semantics = [#tpu.dimension_semantics<parallel>, #tpu.dimension_semantics<arbitrary>], iteration_bounds = array<i64: 1, 4>, scalar_prefetch = 0 : i64, scratch_operands = 1 : i64, tpu.core_type = #tpu.core_type<tc>, window_params = [{transform_indices = @transform_0, window_bounds = array<i64: 8, 512>}, {transform_indices = @transform_1, window_bounds = array<i64: 512, 2048>}, {pipeline_mode = #tpu.pipeline_mode<synchronous>, transform_indices = @transform_2, window_bounds = array<i64: 1, 2048>}, {pipeline_mode = #tpu.pipeline_mode<synchronous>, transform_indices = @transform_3, window_bounds = array<i64: 1, 2048>}, {pipeline_mode = #tpu.pipeline_mode<synchronous>, transform_indices = @transform_4, window_bounds = array<i64: 1, 2048>}, {transform_indices = @transform_5, window_bounds = array<i64: 8, 2048>}, {transform_indices = @transform_6, window_bounds = array<i64: 8, 2048>}]} {
    %c0_i32 = arith.constant 0 : i32
    %0 = arith.cmpi eq, %arg1, %c0_i32 : i32
    %1 = arith.extui %0 : i1 to i32
    %c0_i32_0 = arith.constant 0 : i32
    %2 = arith.cmpi ne, %1, %c0_i32_0 : i32
    scf.if %2 {
      %cst_9 = arith.constant 0.000000e+00 : f32
      %12 = vector.broadcast %cst_9 : f32 to vector<8x2048xf32>
      %c0_10 = arith.constant 0 : index
      %c0_11 = arith.constant 0 : index
      %13 = vector.load %arg9[%c0_10, %c0_11] : memref<8x2048xf32, #tpu.memory_space<vmem>>, vector<8x2048xf32>
      tpu.vector_store %arg9[%c0_10, %c0_11], %12 {strides = array<i32>} : memref<8x2048xf32, #tpu.memory_space<vmem>>, vector<8x2048xf32>,
    } else {
    }
    %c0 = arith.constant 0 : index
    %c0_1 = arith.constant 0 : index
    %3 = vector.load %arg9[%c0, %c0_1] : memref<8x2048xf32, #tpu.memory_space<vmem>>, vector<8x2048xf32>
    %c0_2 = arith.constant 0 : index
    %c0_3 = arith.constant 0 : index
    %4 = vector.load %arg2[%c0_2, %c0_3] : memref<8x512xbf16, #tpu.memory_space<vmem>>, vector<8x512xbf16>
    %c0_4 = arith.constant 0 : index
    %c0_5 = arith.constant 0 : index
    %5 = vector.load %arg3[%c0_4, %c0_5] : memref<512x2048xbf16, #tpu.memory_space<vmem>>, vector<512x2048xbf16>
    %cst = arith.constant dense<0.000000e+00> : vector<8x2048xf32>
    %6 = tpu.matmul %4, %5, %cst {dimension_numbers = #tpu.dot_dimension_numbers<[1], [0], [0], [1], [0, 0, 1, 1], [], []>} : vector<8x512xbf16>, vector<512x2048xbf16>, vector<8x2048xf32> -> vector<8x2048xf32>
    %7 = arith.addf %3, %6 : vector<8x2048xf32>
    %c0_6 = arith.constant 0 : index
    %c0_7 = arith.constant 0 : index
    %8 = vector.load %arg9[%c0_6, %c0_7] : memref<8x2048xf32, #tpu.memory_space<vmem>>, vector<8x2048xf32>
    tpu.vector_store %arg9[%c0_6, %c0_7], %7 {strides = array<i32>} : memref<8x2048xf32, #tpu.memory_space<vmem>>, vector<8x2048xf32>,
    %c3_i32 = arith.constant 3 : i32
    %9 = arith.cmpi eq, %arg1, %c3_i32 : i32
    %10 = arith.extui %9 : i1 to i32
    %c0_i32_8 = arith.constant 0 : i32
    %11 = arith.cmpi ne, %10, %c0_i32_8 : i32
    scf.if %11 {
      %c0_9 = arith.constant 0 : index
      %c0_10 = arith.constant 0 : index
      %12 = vector.load %arg9[%c0_9, %c0_10] : memref<8x2048xf32, #tpu.memory_space<vmem>>, vector<8x2048xf32>
      %c0_11 = arith.constant 0 : index
      %c0_12 = arith.constant 0 : index
      %13 = vector.load %arg4[%c0_11, %c0_12] : memref<1x2048xf32, #tpu.memory_space<vmem>>, vector<1x2048xf32>
      %14 = vector.broadcast %13 : vector<1x2048xf32> to vector<8x2048xf32>
      %15 = arith.addf %12, %14 : vector<8x2048xf32>
      %cst_13 = arith.constant 0.000000e+00 : f32
      %16 = vector.broadcast %cst_13 : f32 to vector<8x2048xf32>
      %17 = arith.maximumf %15, %16 : vector<8x2048xf32>
      %c0_14 = arith.constant 0 : index
      %c0_15 = arith.constant 0 : index
      %18 = vector.load %arg5[%c0_14, %c0_15] : memref<1x2048xf32, #tpu.memory_space<vmem>>, vector<1x2048xf32>
      %19 = vector.broadcast %18 : vector<1x2048xf32> to vector<8x2048xf32>
      %20 = arith.mulf %17, %19 : vector<8x2048xf32>
      %c0_16 = arith.constant 0 : index
      %c0_17 = arith.constant 0 : index
      %21 = vector.load %arg6[%c0_16, %c0_17] : memref<1x2048xf32, #tpu.memory_space<vmem>>, vector<1x2048xf32>
      %22 = vector.broadcast %21 : vector<1x2048xf32> to vector<8x2048xf32>
      %23 = arith.addf %20, %22 : vector<8x2048xf32>
      %c0_18 = arith.constant 0 : index
      %c0_19 = arith.constant 0 : index
      %24 = vector.load %arg7[%c0_18, %c0_19] : memref<8x2048xf32, #tpu.memory_space<vmem>>, vector<8x2048xf32>
      %25 = arith.addf %23, %24 : vector<8x2048xf32>
      %c0_20 = arith.constant 0 : index
      %c0_21 = arith.constant 0 : index
      %26 = vector.load %arg8[%c0_20, %c0_21] : memref<8x2048xf32, #tpu.memory_space<vmem>>, vector<8x2048xf32>
      tpu.vector_store %arg8[%c0_20, %c0_21], %25 {strides = array<i32>} : memref<8x2048xf32, #tpu.memory_space<vmem>>, vector<8x2048xf32>,
    } else {
    }
    return
  }
  func.func @transform_0(%arg0: i32, %arg1: i32) -> (i32, i32) {
    %c0_i32 = arith.constant 0 : i32
    return %arg0, %arg1 : i32, i32
  }
  func.func @transform_1(%arg0: i32, %arg1: i32) -> (i32, i32) {
    %c0_i32 = arith.constant 0 : i32
    %c0_i32_0 = arith.constant 0 : i32
    return %arg1, %c0_i32 : i32, i32
  }
  func.func @transform_2(%arg0: i32, %arg1: i32) -> (i32, i32) {
    %c0_i32 = arith.constant 0 : i32
    %c0_i32_0 = arith.constant 0 : i32
    %c0_i32_1 = arith.constant 0 : i32
    return %c0_i32, %c0_i32_0 : i32, i32
  }
  func.func @transform_3(%arg0: i32, %arg1: i32) -> (i32, i32) {
    %c0_i32 = arith.constant 0 : i32
    %c0_i32_0 = arith.constant 0 : i32
    %c0_i32_1 = arith.constant 0 : i32
    return %c0_i32, %c0_i32_0 : i32, i32
  }
  func.func @transform_4(%arg0: i32, %arg1: i32) -> (i32, i32) {
    %c0_i32 = arith.constant 0 : i32
    %c0_i32_0 = arith.constant 0 : i32
    %c0_i32_1 = arith.constant 0 : i32
    return %c0_i32, %c0_i32_0 : i32, i32
  }
  func.func @transform_5(%arg0: i32, %arg1: i32) -> (i32, i32) {
    %c0_i32 = arith.constant 0 : i32
    %c0_i32_0 = arith.constant 0 : i32
    return %arg0, %c0_i32 : i32, i32
  }
  func.func @transform_6(%arg0: i32, %arg1: i32) -> (i32, i32) {
    %c0_i32 = arith.constant 0 : i32
    %c0_i32_0 = arith.constant 0 : i32
    return %arg0, %c0_i32 : i32, i32
  }
}

module attributes {stable_mosaic.version = 11 : i64} {
  func.func @_deconv_skip_kernel(%arg0: i32, %arg1: i32, %arg2: memref<16x512xbf16, #tpu.memory_space<vmem>>, %arg3: memref<512x1024xbf16, #tpu.memory_space<vmem>>, %arg4: memref<1x1024xf32, #tpu.memory_space<vmem>>, %arg5: memref<1x1024xf32, #tpu.memory_space<vmem>>, %arg6: memref<1x1024xf32, #tpu.memory_space<vmem>>, %arg7: memref<16x1024xf32, #tpu.memory_space<vmem>>, %arg8: memref<16x1024xf32, #tpu.memory_space<vmem>>, %arg9: memref<16x1024xf32, #tpu.memory_space<vmem>>) attributes {dimension_semantics = [#tpu.dimension_semantics<parallel>, #tpu.dimension_semantics<arbitrary>], iteration_bounds = array<i64: 2, 4>, scalar_prefetch = 0 : i64, scratch_operands = 1 : i64, tpu.core_type = #tpu.core_type<tc>, window_params = [{transform_indices = @transform_0, window_bounds = array<i64: 16, 512>}, {transform_indices = @transform_1, window_bounds = array<i64: 512, 1024>}, {pipeline_mode = #tpu.pipeline_mode<synchronous>, transform_indices = @transform_2, window_bounds = array<i64: 1, 1024>}, {pipeline_mode = #tpu.pipeline_mode<synchronous>, transform_indices = @transform_3, window_bounds = array<i64: 1, 1024>}, {pipeline_mode = #tpu.pipeline_mode<synchronous>, transform_indices = @transform_4, window_bounds = array<i64: 1, 1024>}, {transform_indices = @transform_5, window_bounds = array<i64: 16, 1024>}, {transform_indices = @transform_6, window_bounds = array<i64: 16, 1024>}]} {
    %c0_i32 = arith.constant 0 : i32
    %0 = arith.cmpi eq, %arg1, %c0_i32 : i32
    %1 = arith.extui %0 : i1 to i32
    %c0_i32_0 = arith.constant 0 : i32
    %2 = arith.cmpi ne, %1, %c0_i32_0 : i32
    scf.if %2 {
      %cst_9 = arith.constant 0.000000e+00 : f32
      %12 = vector.broadcast %cst_9 : f32 to vector<16x1024xf32>
      %c0_10 = arith.constant 0 : index
      %c0_11 = arith.constant 0 : index
      %13 = vector.load %arg9[%c0_10, %c0_11] : memref<16x1024xf32, #tpu.memory_space<vmem>>, vector<16x1024xf32>
      tpu.vector_store %arg9[%c0_10, %c0_11], %12 {strides = array<i32>} : memref<16x1024xf32, #tpu.memory_space<vmem>>, vector<16x1024xf32>,
    } else {
    }
    %c0 = arith.constant 0 : index
    %c0_1 = arith.constant 0 : index
    %3 = vector.load %arg9[%c0, %c0_1] : memref<16x1024xf32, #tpu.memory_space<vmem>>, vector<16x1024xf32>
    %c0_2 = arith.constant 0 : index
    %c0_3 = arith.constant 0 : index
    %4 = vector.load %arg2[%c0_2, %c0_3] : memref<16x512xbf16, #tpu.memory_space<vmem>>, vector<16x512xbf16>
    %c0_4 = arith.constant 0 : index
    %c0_5 = arith.constant 0 : index
    %5 = vector.load %arg3[%c0_4, %c0_5] : memref<512x1024xbf16, #tpu.memory_space<vmem>>, vector<512x1024xbf16>
    %cst = arith.constant dense<0.000000e+00> : vector<16x1024xf32>
    %6 = tpu.matmul %4, %5, %cst {dimension_numbers = #tpu.dot_dimension_numbers<[1], [0], [0], [1], [0, 0, 1, 1], [], []>} : vector<16x512xbf16>, vector<512x1024xbf16>, vector<16x1024xf32> -> vector<16x1024xf32>
    %7 = arith.addf %3, %6 : vector<16x1024xf32>
    %c0_6 = arith.constant 0 : index
    %c0_7 = arith.constant 0 : index
    %8 = vector.load %arg9[%c0_6, %c0_7] : memref<16x1024xf32, #tpu.memory_space<vmem>>, vector<16x1024xf32>
    tpu.vector_store %arg9[%c0_6, %c0_7], %7 {strides = array<i32>} : memref<16x1024xf32, #tpu.memory_space<vmem>>, vector<16x1024xf32>,
    %c3_i32 = arith.constant 3 : i32
    %9 = arith.cmpi eq, %arg1, %c3_i32 : i32
    %10 = arith.extui %9 : i1 to i32
    %c0_i32_8 = arith.constant 0 : i32
    %11 = arith.cmpi ne, %10, %c0_i32_8 : i32
    scf.if %11 {
      %c0_9 = arith.constant 0 : index
      %c0_10 = arith.constant 0 : index
      %12 = vector.load %arg9[%c0_9, %c0_10] : memref<16x1024xf32, #tpu.memory_space<vmem>>, vector<16x1024xf32>
      %c0_11 = arith.constant 0 : index
      %c0_12 = arith.constant 0 : index
      %13 = vector.load %arg4[%c0_11, %c0_12] : memref<1x1024xf32, #tpu.memory_space<vmem>>, vector<1x1024xf32>
      %14 = vector.broadcast %13 : vector<1x1024xf32> to vector<16x1024xf32>
      %15 = arith.addf %12, %14 : vector<16x1024xf32>
      %cst_13 = arith.constant 0.000000e+00 : f32
      %16 = vector.broadcast %cst_13 : f32 to vector<16x1024xf32>
      %17 = arith.maximumf %15, %16 : vector<16x1024xf32>
      %c0_14 = arith.constant 0 : index
      %c0_15 = arith.constant 0 : index
      %18 = vector.load %arg5[%c0_14, %c0_15] : memref<1x1024xf32, #tpu.memory_space<vmem>>, vector<1x1024xf32>
      %19 = vector.broadcast %18 : vector<1x1024xf32> to vector<16x1024xf32>
      %20 = arith.mulf %17, %19 : vector<16x1024xf32>
      %c0_16 = arith.constant 0 : index
      %c0_17 = arith.constant 0 : index
      %21 = vector.load %arg6[%c0_16, %c0_17] : memref<1x1024xf32, #tpu.memory_space<vmem>>, vector<1x1024xf32>
      %22 = vector.broadcast %21 : vector<1x1024xf32> to vector<16x1024xf32>
      %23 = arith.addf %20, %22 : vector<16x1024xf32>
      %c0_18 = arith.constant 0 : index
      %c0_19 = arith.constant 0 : index
      %24 = vector.load %arg7[%c0_18, %c0_19] : memref<16x1024xf32, #tpu.memory_space<vmem>>, vector<16x1024xf32>
      %25 = arith.addf %23, %24 : vector<16x1024xf32>
      %c0_20 = arith.constant 0 : index
      %c0_21 = arith.constant 0 : index
      %26 = vector.load %arg8[%c0_20, %c0_21] : memref<16x1024xf32, #tpu.memory_space<vmem>>, vector<16x1024xf32>
      tpu.vector_store %arg8[%c0_20, %c0_21], %25 {strides = array<i32>} : memref<16x1024xf32, #tpu.memory_space<vmem>>, vector<16x1024xf32>,
    } else {
    }
    return
  }
  func.func @transform_0(%arg0: i32, %arg1: i32) -> (i32, i32) {
    %c0_i32 = arith.constant 0 : i32
    return %arg0, %arg1 : i32, i32
  }
  func.func @transform_1(%arg0: i32, %arg1: i32) -> (i32, i32) {
    %c0_i32 = arith.constant 0 : i32
    %c0_i32_0 = arith.constant 0 : i32
    return %arg1, %c0_i32 : i32, i32
  }
  func.func @transform_2(%arg0: i32, %arg1: i32) -> (i32, i32) {
    %c0_i32 = arith.constant 0 : i32
    %c0_i32_0 = arith.constant 0 : i32
    %c0_i32_1 = arith.constant 0 : i32
    return %c0_i32, %c0_i32_0 : i32, i32
  }
  func.func @transform_3(%arg0: i32, %arg1: i32) -> (i32, i32) {
    %c0_i32 = arith.constant 0 : i32
    %c0_i32_0 = arith.constant 0 : i32
    %c0_i32_1 = arith.constant 0 : i32
    return %c0_i32, %c0_i32_0 : i32, i32
  }
  func.func @transform_4(%arg0: i32, %arg1: i32) -> (i32, i32) {
    %c0_i32 = arith.constant 0 : i32
    %c0_i32_0 = arith.constant 0 : i32
    %c0_i32_1 = arith.constant 0 : i32
    return %c0_i32, %c0_i32_0 : i32, i32
  }
  func.func @transform_5(%arg0: i32, %arg1: i32) -> (i32, i32) {
    %c0_i32 = arith.constant 0 : i32
    %c0_i32_0 = arith.constant 0 : i32
    return %arg0, %c0_i32 : i32, i32
  }
  func.func @transform_6(%arg0: i32, %arg1: i32) -> (i32, i32) {
    %c0_i32 = arith.constant 0 : i32
    %c0_i32_0 = arith.constant 0 : i32
    return %arg0, %c0_i32 : i32, i32
  }
}

module attributes {stable_mosaic.version = 11 : i64} {
  func.func @_deconv_skip_kernel(%arg0: i32, %arg1: i32, %arg2: memref<64x512xbf16, #tpu.memory_space<vmem>>, %arg3: memref<512x512xbf16, #tpu.memory_space<vmem>>, %arg4: memref<1x512xf32, #tpu.memory_space<vmem>>, %arg5: memref<1x512xf32, #tpu.memory_space<vmem>>, %arg6: memref<1x512xf32, #tpu.memory_space<vmem>>, %arg7: memref<64x512xf32, #tpu.memory_space<vmem>>, %arg8: memref<64x512xf32, #tpu.memory_space<vmem>>, %arg9: memref<64x512xf32, #tpu.memory_space<vmem>>) attributes {dimension_semantics = [#tpu.dimension_semantics<parallel>, #tpu.dimension_semantics<arbitrary>], iteration_bounds = array<i64: 2, 2>, scalar_prefetch = 0 : i64, scratch_operands = 1 : i64, tpu.core_type = #tpu.core_type<tc>, window_params = [{transform_indices = @transform_0, window_bounds = array<i64: 64, 512>}, {transform_indices = @transform_1, window_bounds = array<i64: 512, 512>}, {pipeline_mode = #tpu.pipeline_mode<synchronous>, transform_indices = @transform_2, window_bounds = array<i64: 1, 512>}, {pipeline_mode = #tpu.pipeline_mode<synchronous>, transform_indices = @transform_3, window_bounds = array<i64: 1, 512>}, {pipeline_mode = #tpu.pipeline_mode<synchronous>, transform_indices = @transform_4, window_bounds = array<i64: 1, 512>}, {transform_indices = @transform_5, window_bounds = array<i64: 64, 512>}, {transform_indices = @transform_6, window_bounds = array<i64: 64, 512>}]} {
    %c0_i32 = arith.constant 0 : i32
    %0 = arith.cmpi eq, %arg1, %c0_i32 : i32
    %1 = arith.extui %0 : i1 to i32
    %c0_i32_0 = arith.constant 0 : i32
    %2 = arith.cmpi ne, %1, %c0_i32_0 : i32
    scf.if %2 {
      %cst_9 = arith.constant 0.000000e+00 : f32
      %12 = vector.broadcast %cst_9 : f32 to vector<64x512xf32>
      %c0_10 = arith.constant 0 : index
      %c0_11 = arith.constant 0 : index
      %13 = vector.load %arg9[%c0_10, %c0_11] : memref<64x512xf32, #tpu.memory_space<vmem>>, vector<64x512xf32>
      tpu.vector_store %arg9[%c0_10, %c0_11], %12 {strides = array<i32>} : memref<64x512xf32, #tpu.memory_space<vmem>>, vector<64x512xf32>,
    } else {
    }
    %c0 = arith.constant 0 : index
    %c0_1 = arith.constant 0 : index
    %3 = vector.load %arg9[%c0, %c0_1] : memref<64x512xf32, #tpu.memory_space<vmem>>, vector<64x512xf32>
    %c0_2 = arith.constant 0 : index
    %c0_3 = arith.constant 0 : index
    %4 = vector.load %arg2[%c0_2, %c0_3] : memref<64x512xbf16, #tpu.memory_space<vmem>>, vector<64x512xbf16>
    %c0_4 = arith.constant 0 : index
    %c0_5 = arith.constant 0 : index
    %5 = vector.load %arg3[%c0_4, %c0_5] : memref<512x512xbf16, #tpu.memory_space<vmem>>, vector<512x512xbf16>
    %cst = arith.constant dense<0.000000e+00> : vector<64x512xf32>
    %6 = tpu.matmul %4, %5, %cst {dimension_numbers = #tpu.dot_dimension_numbers<[1], [0], [0], [1], [0, 0, 1, 1], [], []>} : vector<64x512xbf16>, vector<512x512xbf16>, vector<64x512xf32> -> vector<64x512xf32>
    %7 = arith.addf %3, %6 : vector<64x512xf32>
    %c0_6 = arith.constant 0 : index
    %c0_7 = arith.constant 0 : index
    %8 = vector.load %arg9[%c0_6, %c0_7] : memref<64x512xf32, #tpu.memory_space<vmem>>, vector<64x512xf32>
    tpu.vector_store %arg9[%c0_6, %c0_7], %7 {strides = array<i32>} : memref<64x512xf32, #tpu.memory_space<vmem>>, vector<64x512xf32>,
    %c1_i32 = arith.constant 1 : i32
    %9 = arith.cmpi eq, %arg1, %c1_i32 : i32
    %10 = arith.extui %9 : i1 to i32
    %c0_i32_8 = arith.constant 0 : i32
    %11 = arith.cmpi ne, %10, %c0_i32_8 : i32
    scf.if %11 {
      %c0_9 = arith.constant 0 : index
      %c0_10 = arith.constant 0 : index
      %12 = vector.load %arg9[%c0_9, %c0_10] : memref<64x512xf32, #tpu.memory_space<vmem>>, vector<64x512xf32>
      %c0_11 = arith.constant 0 : index
      %c0_12 = arith.constant 0 : index
      %13 = vector.load %arg4[%c0_11, %c0_12] : memref<1x512xf32, #tpu.memory_space<vmem>>, vector<1x512xf32>
      %14 = vector.broadcast %13 : vector<1x512xf32> to vector<64x512xf32>
      %15 = arith.addf %12, %14 : vector<64x512xf32>
      %cst_13 = arith.constant 0.000000e+00 : f32
      %16 = vector.broadcast %cst_13 : f32 to vector<64x512xf32>
      %17 = arith.maximumf %15, %16 : vector<64x512xf32>
      %c0_14 = arith.constant 0 : index
      %c0_15 = arith.constant 0 : index
      %18 = vector.load %arg5[%c0_14, %c0_15] : memref<1x512xf32, #tpu.memory_space<vmem>>, vector<1x512xf32>
      %19 = vector.broadcast %18 : vector<1x512xf32> to vector<64x512xf32>
      %20 = arith.mulf %17, %19 : vector<64x512xf32>
      %c0_16 = arith.constant 0 : index
      %c0_17 = arith.constant 0 : index
      %21 = vector.load %arg6[%c0_16, %c0_17] : memref<1x512xf32, #tpu.memory_space<vmem>>, vector<1x512xf32>
      %22 = vector.broadcast %21 : vector<1x512xf32> to vector<64x512xf32>
      %23 = arith.addf %20, %22 : vector<64x512xf32>
      %c0_18 = arith.constant 0 : index
      %c0_19 = arith.constant 0 : index
      %24 = vector.load %arg7[%c0_18, %c0_19] : memref<64x512xf32, #tpu.memory_space<vmem>>, vector<64x512xf32>
      %25 = arith.addf %23, %24 : vector<64x512xf32>
      %c0_20 = arith.constant 0 : index
      %c0_21 = arith.constant 0 : index
      %26 = vector.load %arg8[%c0_20, %c0_21] : memref<64x512xf32, #tpu.memory_space<vmem>>, vector<64x512xf32>
      tpu.vector_store %arg8[%c0_20, %c0_21], %25 {strides = array<i32>} : memref<64x512xf32, #tpu.memory_space<vmem>>, vector<64x512xf32>,
    } else {
    }
    return
  }
  func.func @transform_0(%arg0: i32, %arg1: i32) -> (i32, i32) {
    %c0_i32 = arith.constant 0 : i32
    return %arg0, %arg1 : i32, i32
  }
  func.func @transform_1(%arg0: i32, %arg1: i32) -> (i32, i32) {
    %c0_i32 = arith.constant 0 : i32
    %c0_i32_0 = arith.constant 0 : i32
    return %arg1, %c0_i32 : i32, i32
  }
  func.func @transform_2(%arg0: i32, %arg1: i32) -> (i32, i32) {
    %c0_i32 = arith.constant 0 : i32
    %c0_i32_0 = arith.constant 0 : i32
    %c0_i32_1 = arith.constant 0 : i32
    return %c0_i32, %c0_i32_0 : i32, i32
  }
  func.func @transform_3(%arg0: i32, %arg1: i32) -> (i32, i32) {
    %c0_i32 = arith.constant 0 : i32
    %c0_i32_0 = arith.constant 0 : i32
    %c0_i32_1 = arith.constant 0 : i32
    return %c0_i32, %c0_i32_0 : i32, i32
  }
  func.func @transform_4(%arg0: i32, %arg1: i32) -> (i32, i32) {
    %c0_i32 = arith.constant 0 : i32
    %c0_i32_0 = arith.constant 0 : i32
    %c0_i32_1 = arith.constant 0 : i32
    return %c0_i32, %c0_i32_0 : i32, i32
  }
  func.func @transform_5(%arg0: i32, %arg1: i32) -> (i32, i32) {
    %c0_i32 = arith.constant 0 : i32
    %c0_i32_0 = arith.constant 0 : i32
    return %arg0, %c0_i32 : i32, i32
  }
  func.func @transform_6(%arg0: i32, %arg1: i32) -> (i32, i32) {
    %c0_i32 = arith.constant 0 : i32
    %c0_i32_0 = arith.constant 0 : i32
    return %arg0, %c0_i32 : i32, i32
  }
}

module attributes {stable_mosaic.version = 11 : i64} {
  func.func @_deconv_skip_kernel(%arg0: i32, %arg1: i32, %arg2: memref<256x512xbf16, #tpu.memory_space<vmem>>, %arg3: memref<512x256xbf16, #tpu.memory_space<vmem>>, %arg4: memref<1x256xf32, #tpu.memory_space<vmem>>, %arg5: memref<1x256xf32, #tpu.memory_space<vmem>>, %arg6: memref<1x256xf32, #tpu.memory_space<vmem>>, %arg7: memref<256x256xf32, #tpu.memory_space<vmem>>, %arg8: memref<256x256xf32, #tpu.memory_space<vmem>>, %arg9: memref<256x256xf32, #tpu.memory_space<vmem>>) attributes {dimension_semantics = [#tpu.dimension_semantics<parallel>, #tpu.dimension_semantics<arbitrary>], iteration_bounds = array<i64: 2, 1>, scalar_prefetch = 0 : i64, scratch_operands = 1 : i64, tpu.core_type = #tpu.core_type<tc>, window_params = [{transform_indices = @transform_0, window_bounds = array<i64: 256, 512>}, {transform_indices = @transform_1, window_bounds = array<i64: 512, 256>}, {pipeline_mode = #tpu.pipeline_mode<synchronous>, transform_indices = @transform_2, window_bounds = array<i64: 1, 256>}, {pipeline_mode = #tpu.pipeline_mode<synchronous>, transform_indices = @transform_3, window_bounds = array<i64: 1, 256>}, {pipeline_mode = #tpu.pipeline_mode<synchronous>, transform_indices = @transform_4, window_bounds = array<i64: 1, 256>}, {transform_indices = @transform_5, window_bounds = array<i64: 256, 256>}, {transform_indices = @transform_6, window_bounds = array<i64: 256, 256>}]} {
    %c0_i32 = arith.constant 0 : i32
    %0 = arith.cmpi eq, %arg1, %c0_i32 : i32
    %1 = arith.extui %0 : i1 to i32
    %c0_i32_0 = arith.constant 0 : i32
    %2 = arith.cmpi ne, %1, %c0_i32_0 : i32
    scf.if %2 {
      %cst_10 = arith.constant 0.000000e+00 : f32
      %12 = vector.broadcast %cst_10 : f32 to vector<256x256xf32>
      %c0_11 = arith.constant 0 : index
      %c0_12 = arith.constant 0 : index
      %13 = vector.load %arg9[%c0_11, %c0_12] : memref<256x256xf32, #tpu.memory_space<vmem>>, vector<256x256xf32>
      tpu.vector_store %arg9[%c0_11, %c0_12], %12 {strides = array<i32>} : memref<256x256xf32, #tpu.memory_space<vmem>>, vector<256x256xf32>,
    } else {
    }
    %c0 = arith.constant 0 : index
    %c0_1 = arith.constant 0 : index
    %3 = vector.load %arg9[%c0, %c0_1] : memref<256x256xf32, #tpu.memory_space<vmem>>, vector<256x256xf32>
    %c0_2 = arith.constant 0 : index
    %c0_3 = arith.constant 0 : index
    %4 = vector.load %arg2[%c0_2, %c0_3] : memref<256x512xbf16, #tpu.memory_space<vmem>>, vector<256x512xbf16>
    %c0_4 = arith.constant 0 : index
    %c0_5 = arith.constant 0 : index
    %5 = vector.load %arg3[%c0_4, %c0_5] : memref<512x256xbf16, #tpu.memory_space<vmem>>, vector<512x256xbf16>
    %cst = arith.constant dense<0.000000e+00> : vector<256x256xf32>
    %6 = tpu.matmul %4, %5, %cst {dimension_numbers = #tpu.dot_dimension_numbers<[1], [0], [0], [1], [0, 0, 1, 1], [], []>} : vector<256x512xbf16>, vector<512x256xbf16>, vector<256x256xf32> -> vector<256x256xf32>
    %7 = arith.addf %3, %6 : vector<256x256xf32>
    %c0_6 = arith.constant 0 : index
    %c0_7 = arith.constant 0 : index
    %8 = vector.load %arg9[%c0_6, %c0_7] : memref<256x256xf32, #tpu.memory_space<vmem>>, vector<256x256xf32>
    tpu.vector_store %arg9[%c0_6, %c0_7], %7 {strides = array<i32>} : memref<256x256xf32, #tpu.memory_space<vmem>>, vector<256x256xf32>,
    %c0_i32_8 = arith.constant 0 : i32
    %9 = arith.cmpi eq, %arg1, %c0_i32_8 : i32
    %10 = arith.extui %9 : i1 to i32
    %c0_i32_9 = arith.constant 0 : i32
    %11 = arith.cmpi ne, %10, %c0_i32_9 : i32
    scf.if %11 {
      %c0_10 = arith.constant 0 : index
      %c0_11 = arith.constant 0 : index
      %12 = vector.load %arg9[%c0_10, %c0_11] : memref<256x256xf32, #tpu.memory_space<vmem>>, vector<256x256xf32>
      %c0_12 = arith.constant 0 : index
      %c0_13 = arith.constant 0 : index
      %13 = vector.load %arg4[%c0_12, %c0_13] : memref<1x256xf32, #tpu.memory_space<vmem>>, vector<1x256xf32>
      %14 = vector.broadcast %13 : vector<1x256xf32> to vector<256x256xf32>
      %15 = arith.addf %12, %14 : vector<256x256xf32>
      %cst_14 = arith.constant 0.000000e+00 : f32
      %16 = vector.broadcast %cst_14 : f32 to vector<256x256xf32>
      %17 = arith.maximumf %15, %16 : vector<256x256xf32>
      %c0_15 = arith.constant 0 : index
      %c0_16 = arith.constant 0 : index
      %18 = vector.load %arg5[%c0_15, %c0_16] : memref<1x256xf32, #tpu.memory_space<vmem>>, vector<1x256xf32>
      %19 = vector.broadcast %18 : vector<1x256xf32> to vector<256x256xf32>
      %20 = arith.mulf %17, %19 : vector<256x256xf32>
      %c0_17 = arith.constant 0 : index
      %c0_18 = arith.constant 0 : index
      %21 = vector.load %arg6[%c0_17, %c0_18] : memref<1x256xf32, #tpu.memory_space<vmem>>, vector<1x256xf32>
      %22 = vector.broadcast %21 : vector<1x256xf32> to vector<256x256xf32>
      %23 = arith.addf %20, %22 : vector<256x256xf32>
      %c0_19 = arith.constant 0 : index
      %c0_20 = arith.constant 0 : index
      %24 = vector.load %arg7[%c0_19, %c0_20] : memref<256x256xf32, #tpu.memory_space<vmem>>, vector<256x256xf32>
      %25 = arith.addf %23, %24 : vector<256x256xf32>
      %c0_21 = arith.constant 0 : index
      %c0_22 = arith.constant 0 : index
      %26 = vector.load %arg8[%c0_21, %c0_22] : memref<256x256xf32, #tpu.memory_space<vmem>>, vector<256x256xf32>
      tpu.vector_store %arg8[%c0_21, %c0_22], %25 {strides = array<i32>} : memref<256x256xf32, #tpu.memory_space<vmem>>, vector<256x256xf32>,
    } else {
    }
    return
  }
  func.func @transform_0(%arg0: i32, %arg1: i32) -> (i32, i32) {
    %c0_i32 = arith.constant 0 : i32
    return %arg0, %arg1 : i32, i32
  }
  func.func @transform_1(%arg0: i32, %arg1: i32) -> (i32, i32) {
    %c0_i32 = arith.constant 0 : i32
    %c0_i32_0 = arith.constant 0 : i32
    return %arg1, %c0_i32 : i32, i32
  }
  func.func @transform_2(%arg0: i32, %arg1: i32) -> (i32, i32) {
    %c0_i32 = arith.constant 0 : i32
    %c0_i32_0 = arith.constant 0 : i32
    %c0_i32_1 = arith.constant 0 : i32
    return %c0_i32, %c0_i32_0 : i32, i32
  }
  func.func @transform_3(%arg0: i32, %arg1: i32) -> (i32, i32) {
    %c0_i32 = arith.constant 0 : i32
    %c0_i32_0 = arith.constant 0 : i32
    %c0_i32_1 = arith.constant 0 : i32
    return %c0_i32, %c0_i32_0 : i32, i32
  }
  func.func @transform_4(%arg0: i32, %arg1: i32) -> (i32, i32) {
    %c0_i32 = arith.constant 0 : i32
    %c0_i32_0 = arith.constant 0 : i32
    %c0_i32_1 = arith.constant 0 : i32
    return %c0_i32, %c0_i32_0 : i32, i32
  }
  func.func @transform_5(%arg0: i32, %arg1: i32) -> (i32, i32) {
    %c0_i32 = arith.constant 0 : i32
    %c0_i32_0 = arith.constant 0 : i32
    return %arg0, %c0_i32 : i32, i32
  }
  func.func @transform_6(%arg0: i32, %arg1: i32) -> (i32, i32) {
    %c0_i32 = arith.constant 0 : i32
    %c0_i32_0 = arith.constant 0 : i32
    return %arg0, %c0_i32 : i32, i32
  }
}

module attributes {stable_mosaic.version = 11 : i64} {
  func.func @_deconv_head_kernel(%arg0: i32, %arg1: i32, %arg2: memref<1024x256xbf16, #tpu.memory_space<vmem>>, %arg3: memref<256x128xbf16, #tpu.memory_space<vmem>>, %arg4: memref<1x128xf32, #tpu.memory_space<vmem>>, %arg5: memref<1x128xf32, #tpu.memory_space<vmem>>, %arg6: memref<1x128xf32, #tpu.memory_space<vmem>>, %arg7: memref<128x4xf32, #tpu.memory_space<vmem>>, %arg8: memref<1x4xf32, #tpu.memory_space<vmem>>, %arg9: memref<1024x4xf32, #tpu.memory_space<vmem>>, %arg10: memref<1024x128xf32, #tpu.memory_space<vmem>>) attributes {dimension_semantics = [#tpu.dimension_semantics<parallel>, #tpu.dimension_semantics<arbitrary>], iteration_bounds = array<i64: 2, 1>, scalar_prefetch = 0 : i64, scratch_operands = 1 : i64, tpu.core_type = #tpu.core_type<tc>, window_params = [{transform_indices = @transform_0, window_bounds = array<i64: 1024, 256>}, {transform_indices = @transform_1, window_bounds = array<i64: 256, 128>}, {pipeline_mode = #tpu.pipeline_mode<synchronous>, transform_indices = @transform_2, window_bounds = array<i64: 1, 128>}, {pipeline_mode = #tpu.pipeline_mode<synchronous>, transform_indices = @transform_3, window_bounds = array<i64: 1, 128>}, {pipeline_mode = #tpu.pipeline_mode<synchronous>, transform_indices = @transform_4, window_bounds = array<i64: 1, 128>}, {pipeline_mode = #tpu.pipeline_mode<synchronous>, transform_indices = @transform_5, window_bounds = array<i64: 128, 4>}, {pipeline_mode = #tpu.pipeline_mode<synchronous>, transform_indices = @transform_6, window_bounds = array<i64: 1, 4>}, {transform_indices = @transform_7, window_bounds = array<i64: 1024, 4>}]} {
    %c0_i32 = arith.constant 0 : i32
    %0 = arith.cmpi eq, %arg1, %c0_i32 : i32
    %1 = arith.extui %0 : i1 to i32
    %c0_i32_0 = arith.constant 0 : i32
    %2 = arith.cmpi ne, %1, %c0_i32_0 : i32
    scf.if %2 {
      %cst_10 = arith.constant 0.000000e+00 : f32
      %12 = vector.broadcast %cst_10 : f32 to vector<1024x128xf32>
      %c0_11 = arith.constant 0 : index
      %c0_12 = arith.constant 0 : index
      %13 = vector.load %arg10[%c0_11, %c0_12] : memref<1024x128xf32, #tpu.memory_space<vmem>>, vector<1024x128xf32>
      tpu.vector_store %arg10[%c0_11, %c0_12], %12 {strides = array<i32>} : memref<1024x128xf32, #tpu.memory_space<vmem>>, vector<1024x128xf32>,
    } else {
    }
    %c0 = arith.constant 0 : index
    %c0_1 = arith.constant 0 : index
    %3 = vector.load %arg10[%c0, %c0_1] : memref<1024x128xf32, #tpu.memory_space<vmem>>, vector<1024x128xf32>
    %c0_2 = arith.constant 0 : index
    %c0_3 = arith.constant 0 : index
    %4 = vector.load %arg2[%c0_2, %c0_3] : memref<1024x256xbf16, #tpu.memory_space<vmem>>, vector<1024x256xbf16>
    %c0_4 = arith.constant 0 : index
    %c0_5 = arith.constant 0 : index
    %5 = vector.load %arg3[%c0_4, %c0_5] : memref<256x128xbf16, #tpu.memory_space<vmem>>, vector<256x128xbf16>
    %cst = arith.constant dense<0.000000e+00> : vector<1024x128xf32>
    %6 = tpu.matmul %4, %5, %cst {dimension_numbers = #tpu.dot_dimension_numbers<[1], [0], [0], [1], [0, 0, 1, 1], [], []>} : vector<1024x256xbf16>, vector<256x128xbf16>, vector<1024x128xf32> -> vector<1024x128xf32>
    %7 = arith.addf %3, %6 : vector<1024x128xf32>
    %c0_6 = arith.constant 0 : index
    %c0_7 = arith.constant 0 : index
    %8 = vector.load %arg10[%c0_6, %c0_7] : memref<1024x128xf32, #tpu.memory_space<vmem>>, vector<1024x128xf32>
    tpu.vector_store %arg10[%c0_6, %c0_7], %7 {strides = array<i32>} : memref<1024x128xf32, #tpu.memory_space<vmem>>, vector<1024x128xf32>,
    %c0_i32_8 = arith.constant 0 : i32
    %9 = arith.cmpi eq, %arg1, %c0_i32_8 : i32
    %10 = arith.extui %9 : i1 to i32
    %c0_i32_9 = arith.constant 0 : i32
    %11 = arith.cmpi ne, %10, %c0_i32_9 : i32
    scf.if %11 {
      %c0_10 = arith.constant 0 : index
      %c0_11 = arith.constant 0 : index
      %12 = vector.load %arg10[%c0_10, %c0_11] : memref<1024x128xf32, #tpu.memory_space<vmem>>, vector<1024x128xf32>
      %c0_12 = arith.constant 0 : index
      %c0_13 = arith.constant 0 : index
      %13 = vector.load %arg4[%c0_12, %c0_13] : memref<1x128xf32, #tpu.memory_space<vmem>>, vector<1x128xf32>
      %14 = vector.broadcast %13 : vector<1x128xf32> to vector<1024x128xf32>
      %15 = arith.addf %12, %14 : vector<1024x128xf32>
      %cst_14 = arith.constant 0.000000e+00 : f32
      %16 = vector.broadcast %cst_14 : f32 to vector<1024x128xf32>
      %17 = arith.maximumf %15, %16 : vector<1024x128xf32>
      %c0_15 = arith.constant 0 : index
      %c0_16 = arith.constant 0 : index
      %18 = vector.load %arg5[%c0_15, %c0_16] : memref<1x128xf32, #tpu.memory_space<vmem>>, vector<1x128xf32>
      %19 = vector.broadcast %18 : vector<1x128xf32> to vector<1024x128xf32>
      %20 = arith.mulf %17, %19 : vector<1024x128xf32>
      %c0_17 = arith.constant 0 : index
      %c0_18 = arith.constant 0 : index
      %21 = vector.load %arg6[%c0_17, %c0_18] : memref<1x128xf32, #tpu.memory_space<vmem>>, vector<1x128xf32>
      %22 = vector.broadcast %21 : vector<1x128xf32> to vector<1024x128xf32>
      %23 = arith.addf %20, %22 : vector<1024x128xf32>
      %c0_19 = arith.constant 0 : index
      %c0_20 = arith.constant 0 : index
      %24 = vector.load %arg7[%c0_19, %c0_20] : memref<128x4xf32, #tpu.memory_space<vmem>>, vector<128x4xf32>
      %cst_21 = arith.constant dense<0.000000e+00> : vector<1024x4xf32>
      %25 = tpu.matmul %23, %24, %cst_21 {dimension_numbers = #tpu.dot_dimension_numbers<[1], [0], [0], [1], [0, 0, 1, 1], [], []>} : vector<1024x128xf32>, vector<128x4xf32>, vector<1024x4xf32> -> vector<1024x4xf32>
      %c0_22 = arith.constant 0 : index
      %c0_23 = arith.constant 0 : index
      %26 = vector.load %arg8[%c0_22, %c0_23] : memref<1x4xf32, #tpu.memory_space<vmem>>, vector<1x4xf32>
      %27 = vector.broadcast %26 : vector<1x4xf32> to vector<1024x4xf32>
      %28 = arith.addf %25, %27 : vector<1024x4xf32>
      %c0_24 = arith.constant 0 : index
      %c0_25 = arith.constant 0 : index
      %29 = vector.load %arg9[%c0_24, %c0_25] : memref<1024x4xf32, #tpu.memory_space<vmem>>, vector<1024x4xf32>
      tpu.vector_store %arg9[%c0_24, %c0_25], %28 {strides = array<i32>} : memref<1024x4xf32, #tpu.memory_space<vmem>>, vector<1024x4xf32>,
    } else {
    }
    return
  }
  func.func @transform_0(%arg0: i32, %arg1: i32) -> (i32, i32) {
    %c0_i32 = arith.constant 0 : i32
    return %arg0, %arg1 : i32, i32
  }
  func.func @transform_1(%arg0: i32, %arg1: i32) -> (i32, i32) {
    %c0_i32 = arith.constant 0 : i32
    %c0_i32_0 = arith.constant 0 : i32
    return %arg1, %c0_i32 : i32, i32
  }
  func.func @transform_2(%arg0: i32, %arg1: i32) -> (i32, i32) {
    %c0_i32 = arith.constant 0 : i32
    %c0_i32_0 = arith.constant 0 : i32
    %c0_i32_1 = arith.constant 0 : i32
    return %c0_i32, %c0_i32_0 : i32, i32
  }
  func.func @transform_3(%arg0: i32, %arg1: i32) -> (i32, i32) {
    %c0_i32 = arith.constant 0 : i32
    %c0_i32_0 = arith.constant 0 : i32
    %c0_i32_1 = arith.constant 0 : i32
    return %c0_i32, %c0_i32_0 : i32, i32
  }
  func.func @transform_4(%arg0: i32, %arg1: i32) -> (i32, i32) {
    %c0_i32 = arith.constant 0 : i32
    %c0_i32_0 = arith.constant 0 : i32
    %c0_i32_1 = arith.constant 0 : i32
    return %c0_i32, %c0_i32_0 : i32, i32
  }
  func.func @transform_5(%arg0: i32, %arg1: i32) -> (i32, i32) {
    %c0_i32 = arith.constant 0 : i32
    %c0_i32_0 = arith.constant 0 : i32
    %c0_i32_1 = arith.constant 0 : i32
    return %c0_i32, %c0_i32_0 : i32, i32
  }
  func.func @transform_6(%arg0: i32, %arg1: i32) -> (i32, i32) {
    %c0_i32 = arith.constant 0 : i32
    %c0_i32_0 = arith.constant 0 : i32
    %c0_i32_1 = arith.constant 0 : i32
    return %c0_i32, %c0_i32_0 : i32, i32
  }
  func.func @transform_7(%arg0: i32, %arg1: i32) -> (i32, i32) {
    %c0_i32 = arith.constant 0 : i32
    %c0_i32_0 = arith.constant 0 : i32
    return %arg0, %c0_i32 : i32, i32
  }
}

module attributes {stable_mosaic.version = 11 : i64} {
  func.func @_tail_relu_fc_kernel(%arg0: i32, %arg1: memref<64x64xf32, #tpu.memory_space<vmem>>, %arg2: memref<1x64xf32, #tpu.memory_space<vmem>>, %arg3: memref<1x1xf32, #tpu.memory_space<vmem>>, %arg4: memref<1x1x64xf32, #tpu.memory_space<vmem>>) attributes {dimension_semantics = [#tpu.dimension_semantics<parallel>], iteration_bounds = array<i64: 2>, scalar_prefetch = 0 : i64, scratch_operands = 0 : i64, tpu.core_type = #tpu.core_type<tc>, window_params = [{transform_indices = @transform_0, window_bounds = array<i64: 64, 64>}, {pipeline_mode = #tpu.pipeline_mode<synchronous>, transform_indices = @transform_1, window_bounds = array<i64: 1, 64>}, {pipeline_mode = #tpu.pipeline_mode<synchronous>, transform_indices = @transform_2, window_bounds = array<i64: 1, 1>}, {transform_indices = @transform_3, window_bounds = array<i64: 1, 1, 64>}]} {
    %c0 = arith.constant 0 : index
    %c0_0 = arith.constant 0 : index
    %0 = vector.load %arg1[%c0, %c0_0] : memref<64x64xf32, #tpu.memory_space<vmem>>, vector<64x64xf32>
    %cst = arith.constant 0.000000e+00 : f32
    %1 = vector.broadcast %cst : f32 to vector<64x64xf32>
    %2 = arith.maximumf %0, %1 : vector<64x64xf32>
    %c0_1 = arith.constant 0 : index
    %c0_2 = arith.constant 0 : index
    %3 = vector.load %arg2[%c0_1, %c0_2] : memref<1x64xf32, #tpu.memory_space<vmem>>, vector<1x64xf32>
    %cst_3 = arith.constant dense<0.000000e+00> : vector<1x64xf32>
    %4 = tpu.matmul %3, %2, %cst_3 {dimension_numbers = #tpu.dot_dimension_numbers<[1], [0], [0], [1], [0, 0, 1, 1], [], []>} : vector<1x64xf32>, vector<64x64xf32>, vector<1x64xf32> -> vector<1x64xf32>
    %c0_4 = arith.constant 0 : index
    %c0_5 = arith.constant 0 : index
    %5 = vector.load %arg3[%c0_4, %c0_5] : memref<1x1xf32, #tpu.memory_space<vmem>>, vector<1x1xf32>
    %6 = vector.broadcast %5 : vector<1x1xf32> to vector<1x64xf32>
    %7 = arith.addf %4, %6 : vector<1x64xf32>
    %c0_6 = arith.constant 0 : index
    %c0_7 = arith.constant 0 : index
    %c0_8 = arith.constant 0 : index
    %8 = vector.load %arg4[%c0_6, %c0_7, %c0_8] : memref<1x1x64xf32, #tpu.memory_space<vmem>>, vector<1x1x64xf32>
    %9 = vector.shape_cast %8 : vector<1x1x64xf32> to vector<1x64xf32>
    %10 = vector.shape_cast %7 : vector<1x64xf32> to vector<1x1x64xf32>
    tpu.vector_store %arg4[%c0_6, %c0_7, %c0_8], %10 {strides = array<i32>} : memref<1x1x64xf32, #tpu.memory_space<vmem>>, vector<1x1x64xf32>,
    return
  }
  func.func @transform_0(%arg0: i32) -> (i32, i32) {
    %c0_i32 = arith.constant 0 : i32
    %c0_i32_0 = arith.constant 0 : i32
    return %arg0, %c0_i32 : i32, i32
  }
  func.func @transform_1(%arg0: i32) -> (i32, i32) {
    %c0_i32 = arith.constant 0 : i32
    %c0_i32_0 = arith.constant 0 : i32
    %c0_i32_1 = arith.constant 0 : i32
    return %c0_i32, %c0_i32_0 : i32, i32
  }
  func.func @transform_2(%arg0: i32) -> (i32, i32) {
    %c0_i32 = arith.constant 0 : i32
    %c0_i32_0 = arith.constant 0 : i32
    %c0_i32_1 = arith.constant 0 : i32
    return %c0_i32, %c0_i32_0 : i32, i32
  }
  func.func @transform_3(%arg0: i32) -> (i32, i32, i32) {
    %c0_i32 = arith.constant 0 : i32
    %c0_i32_0 = arith.constant 0 : i32
    %c0_i32_1 = arith.constant 0 : i32
    return %arg0, %c0_i32, %c0_i32_0 : i32, i32, i32
  }
}

</mosaic_0001>

<bundles_post_ra>
// kernel: fcn_forward.6
= control target key start
LH: loop header
LB: loop body
LE: loop exit
PB: predicated region body
PF: predicated region fallthrough
CT: control target
= control target key end

     0   :  { %s5236_s21 = smov 0   ;;  %s5238_s22 = smov 0   ;;  %s6093_s0 = inlined_call_operand.vmem [shape: bf16[8,2048], index: 0, kind: input, shape index: {}]   ;;  %s6094_s1 = inlined_call_operand.vmem [shape: bf16[2048,2048], index: 1, kind: input, shape index: {}]   ;;  %s6095_s2 = inlined_call_operand.vmem [shape: f32[1,2048], index: 2, kind: input, shape index: {}]   ;;  %s6096_s3 = inlined_call_operand.vmem [shape: f32[1,2048], index: 3, kind: input, shape index: {}]   ;;  %s6097_s4 = inlined_call_operand.vmem [shape: f32[1,2048], index: 4, kind: input, shape index: {}]   ;;  %s6098_s5 = inlined_call_operand.vmem [shape: f32[8,2048], index: 5, kind: input, shape index: {}]   ;;  %s6099_s6 = inlined_call_operand.vmem [shape: f32[8,2048], index: 6, kind: output, shape index: {}]  }
   0x1   :  { %s5240_s23 = smov 0  }
   0x2 LB: > { %s25_s24 = sadd.s32 1, %s5194_s22  ;;  %p4619_p0 = scmp.ge.s32.totalorder %s5198_s23, 1  ;;  %s5198_s23 = sphi %s5240_s23, %s16_s23   ;;  %s5194_s22 = sphi %s5238_s22, %s6101_s22   ;;  %s5190_s21 = sphi %s5236_s21, %s6100_s21  }
   0x3   : > { %p26_p1 = scmp.ge.s32.totalorder %s25_s24, 4  ;;  %p253_p2 = scmp.lt.s32.totalorder %s5198_s23, 5 }
   0x5   : > { %s6103_s24 = smov (%p26_p1, %s25_s24), 0  ;;  %p254_p3 = pnand %p4619_p0, %p253_p2 }
   0x6   : > { %s4620_s25 = sshll.u32 (!%p254_p3), %s5190_s21, 2  ;;  %s4622_s26 = sshll.u32 (!%p254_p3), %s5190_s21, 6 }
   0x7   : > { %257 = sbr.rel (%p254_p3) target bundleno = 788 (0x314), region = 44  ;;  %p301_p4 = scmp.lt.s32.totalorder (!%p254_p3), %s4620_s25, 15 }
   0x8   : > { %p309_p5 = scmp.lt.s32.totalorder (!%p254_p3), %s4622_s26, 255  ;;  %p4625_p6 = scmp.ne.s32.totalorder (!%p254_p3), %s5190_s21, 0 }
   0xe   : > { %s6105_s25 = smov (!%p301_p4, %s4620_s25), 15  ;;  %s6107_s26 = smov (!%p309_p5, %s4622_s26), 255 }
   0xf   : > { %s4621_s27 = sshll.u32 %s6105_s25, 2  ;;  %s5146_s7 = sshll.u32 %s6107_s26, 6  ;;  %v5200_v0 = vmov (!%p4625_p6), 0.0  }
  0x10   : > { %s5261_s30 = scalar_lea.vmem %s6093_s0, %s4621_s27  ;;  %s5266_s10 = scalar_lea.vmem %s6094_s1, %s5146_s7  ;;  %329 = vst [vmem:[#allocation2] sm:$0xff] (!%p4625_p6), %v5200_v0  ;;  %330 = vst [vmem:[#allocation2 + $0x8] sm:$0xff] (!%p4625_p6), %v5200_v0 }
  0x11   : > { %328 = sbr.rel (%p4625_p6) target bundleno = 24 (0x18), region = 48  ;;  %331 = vst [vmem:[#allocation2 + $0x10] sm:$0xff] (!%p4625_p6), %v5200_v0  ;;  %332 = vst [vmem:[#allocation2 + $0x18] sm:$0xff] (!%p4625_p6), %v5200_v0 }
  0x12   : > { %333 = vst [vmem:[#allocation2 + $0x20] sm:$0xff] (!%p4625_p6), %v5200_v0  ;;  %334 = vst [vmem:[#allocation2 + $0x28] sm:$0xff] (!%p4625_p6), %v5200_v0 }
  0x13   : > { %335 = vst [vmem:[#allocation2 + $0x30] sm:$0xff] (!%p4625_p6), %v5200_v0  ;;  %336 = vst [vmem:[#allocation2 + $0x38] sm:$0xff] (!%p4625_p6), %v5200_v0 }
  0x14   : > { %337 = vst [vmem:[#allocation2 + $0x40] sm:$0xff] (!%p4625_p6), %v5200_v0  ;;  %338 = vst [vmem:[#allocation2 + $0x48] sm:$0xff] (!%p4625_p6), %v5200_v0 }
  0x15   : > { %339 = vst [vmem:[#allocation2 + $0x50] sm:$0xff] (!%p4625_p6), %v5200_v0  ;;  %340 = vst [vmem:[#allocation2 + $0x58] sm:$0xff] (!%p4625_p6), %v5200_v0 }
  0x16   : > { %341 = vst [vmem:[#allocation2 + $0x60] sm:$0xff] (!%p4625_p6), %v5200_v0  ;;  %342 = vst [vmem:[#allocation2 + $0x68] sm:$0xff] (!%p4625_p6), %v5200_v0 }
  0x17   : > { %343 = vst [vmem:[#allocation2 + $0x70] sm:$0xff] (!%p4625_p6), %v5200_v0  ;;  %344 = vst [vmem:[#allocation2 + $0x78] sm:$0xff] (!%p4625_p6), %v5200_v0 }
  0x18 PF: > { %v363_v1 = vld [vmem:[%s5266_s10] sm:$0xff]  ;;  %v5301_v55 = vld [vmem:[%s5261_s30 + $0x8] sm:$0xff]  ;;  %p5142_p7 = scmp.ne.s32.totalorder %s5190_s21, 3 }
  0x19   : > { %v371_v2 = vld [vmem:[%s5266_s10 + $0x40] sm:$0xff]  ;;  %v5311_v60 = vcombine.high %v5301_v55, %v5301_v55 }
  0x1a   : > { %v619_v3 = vld [vmem:[%s5266_s10 + $0x800] sm:$0xff]  ;;  %v4631_v4 = vcombine.high %v363_v1, %v371_v2  ;;  %v4630_v6 = vcombine.low %v363_v1, %v371_v2 }
  0x1b   : > { %v627_v5 = vld [vmem:[%s5266_s10 + $0x840] sm:$0xff]  ;;  %3522 = vmatprep.mubr.bf16.mxu1 %v5311_v60 }
  0x1c   : > { %v379_v7 = vld [vmem:[%s5266_s10 + $0x80] sm:$0xff]  ;;  %v4887_v9 = vcombine.high %v619_v3, %v627_v5  ;;  %v4886_v10 = vcombine.low %v619_v3, %v627_v5  ;;  %3449 = vmatprep.subr.bf16.mxu0 %v4631_v4 }
  0x1d   : > { %v387_v8 = vld [vmem:[%s5266_s10 + $0xc0] sm:$0xff]  ;;  %3450 = vmatpush1.bf16.msra.mxu0 %v4630_v6 }
  0x1e   : > { %v4647_v11 = vcombine.high %v379_v7, %v387_v8  ;;  %v635_v12 = vld [vmem:[%s5266_s10 + $0x880] sm:$0xff]  ;;  %3490 = vmatprep.subr.bf16.mxu1 %v4887_v9  ;;  %v4646_v19 = vcombine.low %v379_v7, %v387_v8 }
  0x1f   : > { %v643_v13 = vld [vmem:[%s5266_s10 + $0x8c0] sm:$0xff]  ;;  %3491 = vmatpush1.bf16.msra.mxu1 %v4886_v10 }
  0x20   : > { %v395_v14 = vld [vmem:[%s5266_s10 + $0x100] sm:$0xff]  ;;  %v4903_v15 = vcombine.high %v635_v12, %v643_v13  ;;  %3451 = vmatprep.subr.bf16.mxu0 %v4647_v11  ;;  %v4902_v20 = vcombine.low %v635_v12, %v643_v13 }
  0x21   : > { %v403_v16 = vld [vmem:[%s5266_s10 + $0x140] sm:$0xff]  ;;  %3452 = vmatpush1.bf16.msra.mxu0 %v4646_v19 }
  0x22   : > { %v651_v17 = vld [vmem:[%s5266_s10 + $0x900] sm:$0xff]  ;;  %v4663_v21 = vcombine.high %v395_v14, %v403_v16  ;;  %3492 = vmatprep.subr.bf16.mxu1 %v4903_v15  ;;  %v4662_v27 = vcombine.low %v395_v14, %v403_v16 }
  0x23   : > { %v659_v18 = vld [vmem:[%s5266_s10 + $0x940] sm:$0xff]  ;;  %3493 = vmatpush1.bf16.msra.mxu1 %v4902_v20 }
  0x24   : > { %v4919_v22 = vcombine.high %v651_v17, %v659_v18  ;;  %v411_v23 = vld [vmem:[%s5266_s10 + $0x180] sm:$0xff]  ;;  %3453 = vmatprep.subr.bf16.mxu0 %v4663_v21  ;;  %v4918_v28 = vcombine.low %v651_v17, %v659_v18 }
  0x25   : > { %v419_v24 = vld [vmem:[%s5266_s10 + $0x1c0] sm:$0xff]  ;;  %3454 = vmatpush1.bf16.msra.mxu0 %v4662_v27 }
  0x26   : > { %v667_v25 = vld [vmem:[%s5266_s10 + $0x980] sm:$0xff]  ;;  %v4679_v29 = vcombine.high %v411_v23, %v419_v24  ;;  %3494 = vmatprep.subr.bf16.mxu1 %v4919_v22  ;;  %v4678_v35 = vcombine.low %v411_v23, %v419_v24 }
  0x27   : > { %v675_v26 = vld [vmem:[%s5266_s10 + $0x9c0] sm:$0xff]  ;;  %3495 = vmatpush1.bf16.msra.mxu1 %v4918_v28 }
  0x28   : > { %v4935_v30 = vcombine.high %v667_v25, %v675_v26  ;;  %v427_v31 = vld [vmem:[%s5266_s10 + $0x200] sm:$0xff]  ;;  %3455 = vmatprep.subr.bf16.mxu0 %v4679_v29  ;;  %v4934_v36 = vcombine.low %v667_v25, %v675_v26 }
  0x29   : > { %v435_v32 = vld [vmem:[%s5266_s10 + $0x240] sm:$0xff]  ;;  %3456 = vmatpush1.bf16.msra.mxu0 %v4678_v35 }
  0x2a   : > { %v683_v33 = vld [vmem:[%s5266_s10 + $0xa00] sm:$0xff]  ;;  %v4695_v37 = vcombine.high %v427_v31, %v435_v32  ;;  %3496 = vmatprep.subr.bf16.mxu1 %v4935_v30  ;;  %v4694_v43 = vcombine.low %v427_v31, %v435_v32 }
  0x2b   : > { %v691_v34 = vld [vmem:[%s5266_s10 + $0xa40] sm:$0xff]  ;;  %3497 = vmatpush1.bf16.msra.mxu1 %v4934_v36 }
  0x2c   : > { %v4951_v38 = vcombine.high %v683_v33, %v691_v34  ;;  %v443_v39 = vld [vmem:[%s5266_s10 + $0x280] sm:$0xff]  ;;  %3457 = vmatprep.subr.bf16.mxu0 %v4695_v37  ;;  %v4950_v44 = vcombine.low %v683_v33, %v691_v34 }
  0x2d   : > { %v451_v40 = vld [vmem:[%s5266_s10 + $0x2c0] sm:$0xff]  ;;  %3458 = vmatpush1.bf16.msra.mxu0 %v4694_v43 }
  0x2e   : > { %v699_v41 = vld [vmem:[%s5266_s10 + $0xa80] sm:$0xff]  ;;  %v4711_v45 = vcombine.high %v443_v39, %v451_v40  ;;  %3498 = vmatprep.subr.bf16.mxu1 %v4951_v38  ;;  %v4710_v51 = vcombine.low %v443_v39, %v451_v40 }
  0x2f   : > { %v707_v42 = vld [vmem:[%s5266_s10 + $0xac0] sm:$0xff]  ;;  %3499 = vmatpush1.bf16.msra.mxu1 %v4950_v44 }
  0x30   : > { %v4967_v46 = vcombine.high %v699_v41, %v707_v42  ;;  %v459_v47 = vld [vmem:[%s5266_s10 + $0x300] sm:$0xff]  ;;  %3459 = vmatprep.subr.bf16.mxu0 %v4711_v45  ;;  %v4966_v52 = vcombine.low %v699_v41, %v707_v42 }
  0x31   : > { %v467_v48 = vld [vmem:[%s5266_s10 + $0x340] sm:$0xff]  ;;  %3460 = vmatpush1.bf16.msra.mxu0 %v4710_v51 }
  0x32   : > { %v715_v49 = vld [vmem:[%s5266_s10 + $0xb00] sm:$0xff]  ;;  %v4727_v53 = vcombine.high %v459_v47, %v467_v48  ;;  %3500 = vmatprep.subr.bf16.mxu1 %v4967_v46  ;;  %v4726_v63 = vcombine.low %v459_v47, %v467_v48 }
  0x33   : > { %v723_v50 = vld [vmem:[%s5266_s10 + $0xb40] sm:$0xff]  ;;  %3501 = vmatpush1.bf16.msra.mxu1 %v4966_v52 }
  0x34   : > { %v5298_v54 = vld [vmem:[%s5261_s30] sm:$0xff]  ;;  %v4983_v56 = vcombine.high %v715_v49, %v723_v50  ;;  %3461 = vmatprep.subr.bf16.mxu0 %v4727_v53  ;;  %v4982_v0 = vcombine.low %v715_v49, %v723_v50 }
  0x35   : > { %v475_v57 = vld [vmem:[%s5266_s10 + $0x380] sm:$0xff]  ;;  %v5307_v59 = vcombine.high %v5298_v54, %v5298_v54  ;;  %3462 = vmatpush1.bf16.msra.mxu0 %v4726_v63 }
  0x36   : > { %v483_v58 = vld [vmem:[%s5266_s10 + $0x3c0] sm:$0xff]  ;;  %3502 = vmatprep.subr.bf16.mxu1 %v4983_v56 }
  0x37   : > { %v731_v61 = vld [vmem:[%s5266_s10 + $0xb80] sm:$0xff]  ;;  %3481 = vmatprep.mubr.bf16.mxu0 %v5307_v59  ;;  %v4743_v1 = vcombine.high %v475_v57, %v483_v58  ;;  %v4742_v7 = vcombine.low %v475_v57, %v483_v58  ;;  %3503 = vmatpush1.bf16.msra.mxu1 %v4982_v0 }
  0x38   : > { %v739_v62 = vld [vmem:[%s5266_s10 + $0xbc0] sm:$0xff] }
  0x39   : > { %v4999_v2 = vcombine.high %v731_v61, %v739_v62  ;;  %v491_v3 = vld [vmem:[%s5266_s10 + $0x400] sm:$0xff]  ;;  %3463 = vmatprep.subr.bf16.mxu0 %v4743_v1  ;;  %v4998_v8 = vcombine.low %v731_v61, %v739_v62 }
  0x3a   : > { %v499_v4 = vld [vmem:[%s5266_s10 + $0x440] sm:$0xff]  ;;  %3464 = vmatpush1.bf16.msra.mxu0 %v4742_v7  ;;  %v364_v7 = vld [vmem:[%s5266_s10 + $0x8] sm:$0xff] }
  0x3b   : > { %v747_v5 = vld [vmem:[%s5266_s10 + $0xc00] sm:$0xff]  ;;  %v4759_v9 = vcombine.high %v491_v3, %v499_v4  ;;  %3504 = vmatprep.subr.bf16.mxu1 %v4999_v2  ;;  %v4758_v15 = vcombine.low %v491_v3, %v499_v4 }
  0x3c   : > { %v755_v6 = vld [vmem:[%s5266_s10 + $0xc40] sm:$0xff]  ;;  %3505 = vmatpush1.bf16.msra.mxu1 %v4998_v8  ;;  %v372_v8 = vld [vmem:[%s5266_s10 + $0x48] sm:$0xff] }
  0x3d   : > { %v5015_v10 = vcombine.high %v747_v5, %v755_v6  ;;  %v507_v11 = vld [vmem:[%s5266_s10 + $0x480] sm:$0xff]  ;;  %3465 = vmatprep.subr.bf16.mxu0 %v4759_v9  ;;  %v5014_v16 = vcombine.low %v747_v5, %v755_v6  ;;  %v620_v9 = vld [vmem:[%s5266_s10 + $0x808] sm:$0xff] }
  0x3e   : > { %v515_v12 = vld [vmem:[%s5266_s10 + $0x4c0] sm:$0xff]  ;;  %3466 = vmatpush1.bf16.msra.mxu0 %v4758_v15  ;;  %v380_v15 = vld [vmem:[%s5266_s10 + $0x88] sm:$0xff] }
  0x3f   : > { %v763_v13 = vld [vmem:[%s5266_s10 + $0xc80] sm:$0xff]  ;;  %v4775_v17 = vcombine.high %v507_v11, %v515_v12  ;;  %3506 = vmatprep.subr.bf16.mxu1 %v5015_v10  ;;  %v4774_v23 = vcombine.low %v507_v11, %v515_v12  ;;  %v628_v10 = vld [vmem:[%s5266_s10 + $0x848] sm:$0xff] }
  0x40   : > { %v771_v14 = vld [vmem:[%s5266_s10 + $0xcc0] sm:$0xff]  ;;  %3507 = vmatpush1.bf16.msra.mxu1 %v5014_v16  ;;  %v388_v16 = vld [vmem:[%s5266_s10 + $0xc8] sm:$0xff] }
  0x41   : > { %v5031_v18 = vcombine.high %v763_v13, %v771_v14  ;;  %v523_v19 = vld [vmem:[%s5266_s10 + $0x500] sm:$0xff]  ;;  %3467 = vmatprep.subr.bf16.mxu0 %v4775_v17  ;;  %v5030_v24 = vcombine.low %v763_v13, %v771_v14  ;;  %v4633_v13 = vcombine.high %v364_v7, %v372_v8  ;;  %v4889_v14 = vcombine.high %v620_v9, %v628_v10 }
  0x42   : > { %v531_v20 = vld [vmem:[%s5266_s10 + $0x540] sm:$0xff]  ;;  %3468 = vmatpush1.bf16.msra.mxu0 %v4774_v23  ;;  %v5357_v17 = vcombine.low %v5298_v54, %v5298_v54  ;;  %v4649_v23 = vcombine.high %v380_v15, %v388_v16  ;;  %v404_v54 = vld [vmem:[%s5266_s10 + $0x148] sm:$0xff] }
  0x43   : > { %v779_v21 = vld [vmem:[%s5266_s10 + $0xd00] sm:$0xff]  ;;  %v4791_v25 = vcombine.high %v523_v19, %v531_v20  ;;  %3508 = vmatprep.subr.bf16.mxu1 %v5031_v18  ;;  %v4790_v31 = vcombine.low %v523_v19, %v531_v20  ;;  %v636_v18 = vld [vmem:[%s5266_s10 + $0x888] sm:$0xff]  ;;  %v5363_v20 = vcombine.low %v5301_v55, %v5301_v55  ;;  %v4648_v55 = vcombine.low %v380_v15, %v388_v16 }
  0x44   : > { %v787_v22 = vld [vmem:[%s5266_s10 + $0xd40] sm:$0xff]  ;;  %3509 = vmatpush1.bf16.msra.mxu1 %v5030_v24  ;;  %v644_v19 = vld [vmem:[%s5266_s10 + $0x8c8] sm:$0xff] }
  0x45   : > { %v5047_v26 = vcombine.high %v779_v21, %v787_v22  ;;  %v539_v27 = vld [vmem:[%s5266_s10 + $0x580] sm:$0xff]  ;;  %3469 = vmatprep.subr.bf16.mxu0 %v4791_v25  ;;  %v5046_v32 = vcombine.low %v779_v21, %v787_v22  ;;  %v4632_v21 = vcombine.low %v364_v7, %v372_v8  ;;  %v4888_v22 = vcombine.low %v620_v9, %v628_v10  ;;  %v396_v25 = vld [vmem:[%s5266_s10 + $0x108] sm:$0xff] }
  0x46   : > { %v547_v28 = vld [vmem:[%s5266_s10 + $0x5c0] sm:$0xff]  ;;  %3470 = vmatpush1.bf16.msra.mxu0 %v4790_v31  ;;  %v4905_v24 = vcombine.high %v636_v18, %v644_v19  ;;  %v412_v31 = vld [vmem:[%s5266_s10 + $0x188] sm:$0xff] }
  0x47   : > { %v795_v29 = vld [vmem:[%s5266_s10 + $0xd80] sm:$0xff]  ;;  %v4807_v33 = vcombine.high %v539_v27, %v547_v28  ;;  %3510 = vmatprep.subr.bf16.mxu1 %v5047_v26  ;;  %v4806_v39 = vcombine.low %v539_v27, %v547_v28  ;;  %v652_v26 = vld [vmem:[%s5266_s10 + $0x908] sm:$0xff]  ;;  %v4904_v28 = vcombine.low %v636_v18, %v644_v19 }
  0x48   : > { %v803_v30 = vld [vmem:[%s5266_s10 + $0xdc0] sm:$0xff]  ;;  %3511 = vmatpush1.bf16.msra.mxu1 %v5046_v32  ;;  %v660_v27 = vld [vmem:[%s5266_s10 + $0x948] sm:$0xff] }
  0x49   : > { %v5063_v34 = vcombine.high %v795_v29, %v803_v30  ;;  %v555_v35 = vld [vmem:[%s5266_s10 + $0x600] sm:$0xff]  ;;  %3471 = vmatprep.subr.bf16.mxu0 %v4807_v33  ;;  %v5062_v40 = vcombine.low %v795_v29, %v803_v30  ;;  %v4665_v29 = vcombine.high %v396_v25, %v404_v54  ;;  %v4921_v30 = vcombine.high %v652_v26, %v660_v27  ;;  %v420_v32 = vld [vmem:[%s5266_s10 + $0x1c8] sm:$0xff] }
  0x4a   : > { %v563_v36 = vld [vmem:[%s5266_s10 + $0x640] sm:$0xff]  ;;  %3472 = vmatpush1.bf16.msra.mxu0 %v4806_v39  ;;  %v668_v33 = vld [vmem:[%s5266_s10 + $0x988] sm:$0xff] }
  0x4b   : > { %v811_v37 = vld [vmem:[%s5266_s10 + $0xe00] sm:$0xff]  ;;  %v4823_v41 = vcombine.high %v555_v35, %v563_v36  ;;  %3512 = vmatprep.subr.bf16.mxu1 %v5063_v34  ;;  %v4822_v47 = vcombine.low %v555_v35, %v563_v36  ;;  %v676_v34 = vld [vmem:[%s5266_s10 + $0x9c8] sm:$0xff]  ;;  %v4664_v35 = vcombine.low %v396_v25, %v404_v54  ;;  %v4920_v36 = vcombine.low %v652_v26, %v660_v27 }
  0x4c   : > { %v819_v38 = vld [vmem:[%s5266_s10 + $0xe40] sm:$0xff]  ;;  %3513 = vmatpush1.bf16.msra.mxu1 %v5062_v40  ;;  %v428_v39 = vld [vmem:[%s5266_s10 + $0x208] sm:$0xff] }
  0x4d   : > { %v5079_v42 = vcombine.high %v811_v37, %v819_v38  ;;  %v571_v43 = vld [vmem:[%s5266_s10 + $0x680] sm:$0xff]  ;;  %3473 = vmatprep.subr.bf16.mxu0 %v4823_v41  ;;  %v5078_v48 = vcombine.low %v811_v37, %v819_v38  ;;  %v4681_v37 = vcombine.high %v412_v31, %v420_v32  ;;  %v4937_v38 = vcombine.high %v668_v33, %v676_v34  ;;  %v436_v40 = vld [vmem:[%s5266_s10 + $0x248] sm:$0xff] }
  0x4e   : > { %v579_v44 = vld [vmem:[%s5266_s10 + $0x6c0] sm:$0xff]  ;;  %3474 = vmatpush1.bf16.msra.mxu0 %v4822_v47  ;;  %v684_v41 = vld [vmem:[%s5266_s10 + $0xa08] sm:$0xff] }
  0x4f   : > { %v827_v45 = vld [vmem:[%s5266_s10 + $0xe80] sm:$0xff]  ;;  %v4839_v49 = vcombine.high %v571_v43, %v579_v44  ;;  %3514 = vmatprep.subr.bf16.mxu1 %v5079_v42  ;;  %v4838_v57 = vcombine.low %v571_v43, %v579_v44  ;;  %v692_v42 = vld [vmem:[%s5266_s10 + $0xa48] sm:$0xff]  ;;  %v4680_v43 = vcombine.low %v412_v31, %v420_v32  ;;  %v4936_v44 = vcombine.low %v668_v33, %v676_v34 }
  0x50   : > { %v835_v46 = vld [vmem:[%s5266_s10 + $0xec0] sm:$0xff]  ;;  %3515 = vmatpush1.bf16.msra.mxu1 %v5078_v48  ;;  %v444_v47 = vld [vmem:[%s5266_s10 + $0x288] sm:$0xff] }
  0x51   : > { %v5095_v50 = vcombine.high %v827_v45, %v835_v46  ;;  %v587_v51 = vld [vmem:[%s5266_s10 + $0x700] sm:$0xff]  ;;  %3475 = vmatprep.subr.bf16.mxu0 %v4839_v49  ;;  %v5094_v58 = vcombine.low %v827_v45, %v835_v46  ;;  %v4697_v45 = vcombine.high %v428_v39, %v436_v40  ;;  %v4953_v46 = vcombine.high %v684_v41, %v692_v42  ;;  %v452_v48 = vld [vmem:[%s5266_s10 + $0x2c8] sm:$0xff] }
  0x52   : > { %v595_v52 = vld [vmem:[%s5266_s10 + $0x740] sm:$0xff]  ;;  %3476 = vmatpush1.bf16.msra.mxu0 %v4838_v57  ;;  %v700_v49 = vld [vmem:[%s5266_s10 + $0xa88] sm:$0xff] }
  0x53   : > { %v843_v53 = vld [vmem:[%s5266_s10 + $0xf00] sm:$0xff]  ;;  %v4855_v61 = vcombine.high %v587_v51, %v595_v52  ;;  %3516 = vmatprep.subr.bf16.mxu1 %v5095_v50  ;;  %v4854_v3 = vcombine.low %v587_v51, %v595_v52  ;;  %v708_v50 = vld [vmem:[%s5266_s10 + $0xac8] sm:$0xff]  ;;  %v4696_v51 = vcombine.low %v428_v39, %v436_v40  ;;  %v4952_v52 = vcombine.low %v684_v41, %v692_v42 }
  0x54   : > { %v851_v56 = vld [vmem:[%s5266_s10 + $0xf40] sm:$0xff]  ;;  %3517 = vmatpush1.bf16.msra.mxu1 %v5094_v58  ;;  %v460_v57 = vld [vmem:[%s5266_s10 + $0x308] sm:$0xff] }
  0x55   : > { %v5111_v62 = vcombine.high %v843_v53, %v851_v56  ;;  %v603_v63 = vld [vmem:[%s5266_s10 + $0x780] sm:$0xff]  ;;  %3477 = vmatprep.subr.bf16.mxu0 %v4855_v61  ;;  %v5110_v4 = vcombine.low %v843_v53, %v851_v56  ;;  %v4713_v53 = vcombine.high %v444_v47, %v452_v48  ;;  %v4969_v56 = vcombine.high %v700_v49, %v708_v50  ;;  %v468_v58 = vld [vmem:[%s5266_s10 + $0x348] sm:$0xff] }
  0x56   : > { %v611_v0 = vld [vmem:[%s5266_s10 + $0x7c0] sm:$0xff]  ;;  %3478 = vmatpush1.bf16.msra.mxu0 %v4854_v3  ;;  %v716_v61 = vld [vmem:[%s5266_s10 + $0xb08] sm:$0xff]  ;;  %v4728_v7 = vcombine.low %v460_v57, %v468_v58 }
  0x57   : > { %v859_v1 = vld [vmem:[%s5266_s10 + $0xf80] sm:$0xff]  ;;  %v4871_v5 = vcombine.high %v603_v63, %v611_v0  ;;  %3518 = vmatprep.subr.bf16.mxu1 %v5111_v62  ;;  %v4870_v11 = vcombine.low %v603_v63, %v611_v0  ;;  %v724_v62 = vld [vmem:[%s5266_s10 + $0xb48] sm:$0xff]  ;;  %v4712_v63 = vcombine.low %v444_v47, %v452_v48  ;;  %v4968_v0 = vcombine.low %v700_v49, %v708_v50 }
  0x58   : > { %v867_v2 = vld [vmem:[%s5266_s10 + $0xfc0] sm:$0xff]  ;;  %3519 = vmatpush1.bf16.msra.mxu1 %v5110_v4  ;;  %v476_v3 = vld [vmem:[%s5266_s10 + $0x388] sm:$0xff]  ;;  %v4984_v8 = vcombine.low %v716_v61, %v724_v62 }
  0x59   : > { %v5127_v6 = vcombine.high %v859_v1, %v867_v2  ;;  %3479 = vmatprep.subr.bf16.mxu0 %v4871_v5  ;;  %v5126_v12 = vcombine.low %v859_v1, %v867_v2  ;;  %v4729_v1 = vcombine.high %v460_v57, %v468_v58  ;;  %v4985_v2 = vcombine.high %v716_v61, %v724_v62  ;;  %v484_v4 = vld [vmem:[%s5266_s10 + $0x3c8] sm:$0xff] }
  0x5a   : > { %3480 = vmatpush1.bf16.msra.mxu0 %v4870_v11  ;;  %v732_v5 = vld [vmem:[%s5266_s10 + $0xb88] sm:$0xff]  ;;  %v4745_v9 = vcombine.high %v476_v3, %v484_v4  ;;  %v4744_v15 = vcombine.low %v476_v3, %v484_v4 }
  0x5b   : > { %3520 = vmatprep.subr.bf16.mxu1 %v5127_v6  ;;  %3531 = vmatprep.subr.bf16.mxu0 %v4633_v13  ;;  %v740_v6 = vld [vmem:[%s5266_s10 + $0xbc8] sm:$0xff] }
  0x5c   : > { %3521 = vmatpush1.bf16.msra.mxu1 %v5126_v12  ;;  %v5001_v10 = vcombine.high %v732_v5, %v740_v6  ;;  %v492_v11 = vld [vmem:[%s5266_s10 + $0x408] sm:$0xff]  ;;  %v5000_v16 = vcombine.low %v732_v5, %v740_v6 }
  0x5d   : > { %3572 = vmatprep.subr.bf16.mxu1 %v4889_v14  ;;  %3482 = vmatmul.mubr.bf16.vlgmr.msra.gmra.mrb[0].mxu0 %v5357_v17  ;;  %v500_v12 = vld [vmem:[%s5266_s10 + $0x448] sm:$0xff] }
  0x5e   : > { %3532 = vmatpush1.bf16.msra.mxu0 %v4632_v21  ;;  %3563 = vmatprep.mubr.bf16.mxu0 %v5307_v59  ;;  %v748_v13 = vld [vmem:[%s5266_s10 + $0xc08] sm:$0xff]  ;;  %v4761_v18 = vcombine.high %v492_v11, %v500_v12  ;;  %v4760_v25 = vcombine.low %v492_v11, %v500_v12 }
  0x5f   : > { %3523 = vmatmul.mubr.bf16.vlgmr.msra.gmra.mrb[0].mxu1 %v5363_v20  ;;  %3533 = vmatprep.subr.bf16.mxu0 %v4649_v23  ;;  %v756_v14 = vld [vmem:[%s5266_s10 + $0xc48] sm:$0xff] }
  0x60   : > { %3573 = vmatpush1.bf16.msra.mxu1 %v4888_v22  ;;  %3604 = vmatprep.mubr.bf16.mxu1 %v5311_v60  ;;  %v5017_v19 = vcombine.high %v748_v13, %v756_v14  ;;  %v508_v21 = vld [vmem:[%s5266_s10 + $0x488] sm:$0xff]  ;;  %v5016_v54 = vcombine.low %v748_v13, %v756_v14 }
  0x61   : > { %3574 = vmatprep.subr.bf16.mxu1 %v4905_v24  ;;  %v516_v22 = vld [vmem:[%s5266_s10 + $0x4c8] sm:$0xff] }
  0x62   : > { %3534 = vmatpush1.bf16.msra.mxu0 %v4648_v55  ;;  %v764_v23 = vld [vmem:[%s5266_s10 + $0xc88] sm:$0xff]  ;;  %v4777_v26 = vcombine.high %v508_v21, %v516_v22  ;;  %v4776_v31 = vcombine.low %v508_v21, %v516_v22 }
  0x63   : > { %3535 = vmatprep.subr.bf16.mxu0 %v4665_v29  ;;  %v772_v24 = vld [vmem:[%s5266_s10 + $0xcc8] sm:$0xff] }
  0x64   : > { %3575 = vmatpush1.bf16.msra.mxu1 %v4904_v28  ;;  %v5033_v27 = vcombine.high %v764_v23, %v772_v24  ;;  %v524_v55 = vld [vmem:[%s5266_s10 + $0x508] sm:$0xff]  ;;  %v5032_v32 = vcombine.low %v764_v23, %v772_v24 }
  0x65   : > { %3576 = vmatprep.subr.bf16.mxu1 %v4921_v30  ;;  %v532_v28 = vld [vmem:[%s5266_s10 + $0x548] sm:$0xff] }
  0x66   : > { %3536 = vmatpush1.bf16.msra.mxu0 %v4664_v35  ;;  %v780_v29 = vld [vmem:[%s5266_s10 + $0xd08] sm:$0xff]  ;;  %v4793_v33 = vcombine.high %v524_v55, %v532_v28  ;;  %v4792_v39 = vcombine.low %v524_v55, %v532_v28 }
  0x67   : > { %3537 = vmatprep.subr.bf16.mxu0 %v4681_v37  ;;  %v788_v30 = vld [vmem:[%s5266_s10 + $0xd48] sm:$0xff] }
  0x68   : > { %3577 = vmatpush1.bf16.msra.mxu1 %v4920_v36  ;;  %v5049_v34 = vcombine.high %v780_v29, %v788_v30  ;;  %v540_v35 = vld [vmem:[%s5266_s10 + $0x588] sm:$0xff]  ;;  %v5048_v40 = vcombine.low %v780_v29, %v788_v30 }
  0x69   : > { %3578 = vmatprep.subr.bf16.mxu1 %v4937_v38  ;;  %v548_v36 = vld [vmem:[%s5266_s10 + $0x5c8] sm:$0xff] }
  0x6a   : > { %3538 = vmatpush1.bf16.msra.mxu0 %v4680_v43  ;;  %v796_v37 = vld [vmem:[%s5266_s10 + $0xd88] sm:$0xff]  ;;  %v4809_v41 = vcombine.high %v540_v35, %v548_v36  ;;  %v4808_v47 = vcombine.low %v540_v35, %v548_v36 }
  0x6b   : > { %3539 = vmatprep.subr.bf16.mxu0 %v4697_v45  ;;  %v804_v38 = vld [vmem:[%s5266_s10 + $0xdc8] sm:$0xff] }
  0x6c   : > { %3579 = vmatpush1.bf16.msra.mxu1 %v4936_v44  ;;  %v5065_v42 = vcombine.high %v796_v37, %v804_v38  ;;  %v556_v43 = vld [vmem:[%s5266_s10 + $0x608] sm:$0xff]  ;;  %v5064_v48 = vcombine.low %v796_v37, %v804_v38 }
  0x6d   : > { %3580 = vmatprep.subr.bf16.mxu1 %v4953_v46  ;;  %v564_v44 = vld [vmem:[%s5266_s10 + $0x648] sm:$0xff] }
  0x6e   : > { %3540 = vmatpush1.bf16.msra.mxu0 %v4696_v51  ;;  %v812_v45 = vld [vmem:[%s5266_s10 + $0xe08] sm:$0xff]  ;;  %v4825_v49 = vcombine.high %v556_v43, %v564_v44  ;;  %v4824_v57 = vcombine.low %v556_v43, %v564_v44 }
  0x6f   : > { %3541 = vmatprep.subr.bf16.mxu0 %v4713_v53  ;;  %v820_v46 = vld [vmem:[%s5266_s10 + $0xe48] sm:$0xff] }
  0x70   : > { %3581 = vmatpush1.bf16.msra.mxu1 %v4952_v52  ;;  %v5081_v50 = vcombine.high %v812_v45, %v820_v46  ;;  %v572_v51 = vld [vmem:[%s5266_s10 + $0x688] sm:$0xff]  ;;  %v5080_v58 = vcombine.low %v812_v45, %v820_v46 }
  0x71   : > { %3582 = vmatprep.subr.bf16.mxu1 %v4969_v56  ;;  %v580_v52 = vld [vmem:[%s5266_s10 + $0x6c8] sm:$0xff] }
  0x72   : > { %3542 = vmatpush1.bf16.msra.mxu0 %v4712_v63  ;;  %v828_v53 = vld [vmem:[%s5266_s10 + $0xe88] sm:$0xff]  ;;  %v4841_v61 = vcombine.high %v572_v51, %v580_v52  ;;  %v4840_v3 = vcombine.low %v572_v51, %v580_v52 }
  0x73   : > { %3543 = vmatprep.subr.bf16.mxu0 %v4729_v1  ;;  %v836_v56 = vld [vmem:[%s5266_s10 + $0xec8] sm:$0xff] }
  0x74   : > { %3583 = vmatpush1.bf16.msra.mxu1 %v4968_v0  ;;  %v5097_v62 = vcombine.high %v828_v53, %v836_v56  ;;  %v588_v63 = vld [vmem:[%s5266_s10 + $0x708] sm:$0xff]  ;;  %v5096_v4 = vcombine.low %v828_v53, %v836_v56 }
  0x75   : > { %3584 = vmatprep.subr.bf16.mxu1 %v4985_v2  ;;  %v596_v0 = vld [vmem:[%s5266_s10 + $0x748] sm:$0xff] }
  0x76   : > { %3544 = vmatpush1.bf16.msra.mxu0 %v4728_v7  ;;  %v844_v1 = vld [vmem:[%s5266_s10 + $0xf08] sm:$0xff]  ;;  %v4857_v5 = vcombine.high %v588_v63, %v596_v0  ;;  %v4856_v11 = vcombine.low %v588_v63, %v596_v0 }
  0x77   : > { %3545 = vmatprep.subr.bf16.mxu0 %v4745_v9  ;;  %v852_v2 = vld [vmem:[%s5266_s10 + $0xf48] sm:$0xff] }
  0x78   : > { %3585 = vmatpush1.bf16.msra.mxu1 %v4984_v8  ;;  %v5113_v6 = vcombine.high %v844_v1, %v852_v2  ;;  %v604_v7 = vld [vmem:[%s5266_s10 + $0x788] sm:$0xff]  ;;  %v5112_v12 = vcombine.low %v844_v1, %v852_v2 }
  0x79   : > { %3586 = vmatprep.subr.bf16.mxu1 %v5001_v10  ;;  %v612_v8 = vld [vmem:[%s5266_s10 + $0x7c8] sm:$0xff] }
  0x7a   : > { %3546 = vmatpush1.bf16.msra.mxu0 %v4744_v15  ;;  %v860_v9 = vld [vmem:[%s5266_s10 + $0xf88] sm:$0xff]  ;;  %v4873_v13 = vcombine.high %v604_v7, %v612_v8  ;;  %v365_v15 = vld [vmem:[%s5266_s10 + $0x10] sm:$0xff]  ;;  %v4872_v21 = vcombine.low %v604_v7, %v612_v8 }
  0x7b   : > { %3547 = vmatprep.subr.bf16.mxu0 %v4761_v18  ;;  %v868_v10 = vld [vmem:[%s5266_s10 + $0xfc8] sm:$0xff]  ;;  %v621_v18 = vld [vmem:[%s5266_s10 + $0x810] sm:$0xff] }
  0x7c   : > { %3587 = vmatpush1.bf16.msra.mxu1 %v5000_v16  ;;  %v5129_v14 = vcombine.high %v860_v9, %v868_v10  ;;  %v373_v16 = vld [vmem:[%s5266_s10 + $0x50] sm:$0xff]  ;;  %v5128_v22 = vcombine.low %v860_v9, %v868_v10 }
  0x7d   : > { %3588 = vmatprep.subr.bf16.mxu1 %v5017_v19  ;;  %v629_v19 = vld [vmem:[%s5266_s10 + $0x850] sm:$0xff]  ;;  %v4635_v23 = vcombine.high %v365_v15, %v373_v16  ;;  %v4634_v55 = vcombine.low %v365_v15, %v373_v16 }
  0x7e   : > { %3548 = vmatpush1.bf16.msra.mxu0 %v4760_v25  ;;  %v4891_v24 = vcombine.high %v621_v18, %v629_v19  ;;  %v381_v25 = vld [vmem:[%s5266_s10 + $0x90] sm:$0xff]  ;;  %v4890_v28 = vcombine.low %v621_v18, %v629_v19 }
  0x7f   : > { %3549 = vmatprep.subr.bf16.mxu0 %v4777_v26  ;;  %v637_v26 = vld [vmem:[%s5266_s10 + $0x890] sm:$0xff] }
  0x80   : > { %3589 = vmatpush1.bf16.msra.mxu1 %v5016_v54  ;;  %v389_v54 = vld [vmem:[%s5266_s10 + $0xd0] sm:$0xff] }
  0x81   : > { %3590 = vmatprep.subr.bf16.mxu1 %v5033_v27  ;;  %v645_v27 = vld [vmem:[%s5266_s10 + $0x8d0] sm:$0xff]  ;;  %v4651_v29 = vcombine.high %v381_v25, %v389_v54  ;;  %v4650_v35 = vcombine.low %v381_v25, %v389_v54 }
  0x82   : > { %3550 = vmatpush1.bf16.msra.mxu0 %v4776_v31  ;;  %v4907_v30 = vcombine.high %v637_v26, %v645_v27  ;;  %v397_v31 = vld [vmem:[%s5266_s10 + $0x110] sm:$0xff]  ;;  %v4906_v36 = vcombine.low %v637_v26, %v645_v27 }
  0x83   : > { %3551 = vmatprep.subr.bf16.mxu0 %v4793_v33  ;;  %v653_v33 = vld [vmem:[%s5266_s10 + $0x910] sm:$0xff] }
  0x84   : > { %3591 = vmatpush1.bf16.msra.mxu1 %v5032_v32  ;;  %v405_v32 = vld [vmem:[%s5266_s10 + $0x150] sm:$0xff] }
  0x85   : > { %3592 = vmatprep.subr.bf16.mxu1 %v5049_v34  ;;  %v661_v34 = vld [vmem:[%s5266_s10 + $0x950] sm:$0xff]  ;;  %v4667_v37 = vcombine.high %v397_v31, %v405_v32  ;;  %v4666_v43 = vcombine.low %v397_v31, %v405_v32 }
  0x86   : > { %3552 = vmatpush1.bf16.msra.mxu0 %v4792_v39  ;;  %v4923_v38 = vcombine.high %v653_v33, %v661_v34  ;;  %v413_v39 = vld [vmem:[%s5266_s10 + $0x190] sm:$0xff]  ;;  %v4922_v44 = vcombine.low %v653_v33, %v661_v34 }
  0x87   : > { %3553 = vmatprep.subr.bf16.mxu0 %v4809_v41  ;;  %v669_v41 = vld [vmem:[%s5266_s10 + $0x990] sm:$0xff] }
  0x88   : > { %3593 = vmatpush1.bf16.msra.mxu1 %v5048_v40  ;;  %v421_v40 = vld [vmem:[%s5266_s10 + $0x1d0] sm:$0xff] }
  0x89   : > { %3594 = vmatprep.subr.bf16.mxu1 %v5065_v42  ;;  %v677_v42 = vld [vmem:[%s5266_s10 + $0x9d0] sm:$0xff]  ;;  %v4683_v45 = vcombine.high %v413_v39, %v421_v40  ;;  %v4682_v51 = vcombine.low %v413_v39, %v421_v40 }
  0x8a   : > { %3554 = vmatpush1.bf16.msra.mxu0 %v4808_v47  ;;  %v4939_v46 = vcombine.high %v669_v41, %v677_v42  ;;  %v429_v47 = vld [vmem:[%s5266_s10 + $0x210] sm:$0xff]  ;;  %v4938_v52 = vcombine.low %v669_v41, %v677_v42 }
  0x8b   : > { %3555 = vmatprep.subr.bf16.mxu0 %v4825_v49  ;;  %v685_v49 = vld [vmem:[%s5266_s10 + $0xa10] sm:$0xff] }
  0x8c   : > { %3595 = vmatpush1.bf16.msra.mxu1 %v5064_v48  ;;  %v437_v48 = vld [vmem:[%s5266_s10 + $0x250] sm:$0xff] }
  0x8d   : > { %3596 = vmatprep.subr.bf16.mxu1 %v5081_v50  ;;  %v693_v50 = vld [vmem:[%s5266_s10 + $0xa50] sm:$0xff]  ;;  %v4699_v53 = vcombine.high %v429_v47, %v437_v48  ;;  %v4698_v63 = vcombine.low %v429_v47, %v437_v48 }
  0x8e   : > { %3556 = vmatpush1.bf16.msra.mxu0 %v4824_v57  ;;  %v4955_v56 = vcombine.high %v685_v49, %v693_v50  ;;  %v445_v57 = vld [vmem:[%s5266_s10 + $0x290] sm:$0xff]  ;;  %v4954_v0 = vcombine.low %v685_v49, %v693_v50 }
  0x8f   : > { %3557 = vmatprep.subr.bf16.mxu0 %v4841_v61  ;;  %v701_v61 = vld [vmem:[%s5266_s10 + $0xa90] sm:$0xff] }
  0x90   : > { %3597 = vmatpush1.bf16.msra.mxu1 %v5080_v58  ;;  %v453_v58 = vld [vmem:[%s5266_s10 + $0x2d0] sm:$0xff] }
  0x91   : > { %3598 = vmatprep.subr.bf16.mxu1 %v5097_v62  ;;  %v709_v62 = vld [vmem:[%s5266_s10 + $0xad0] sm:$0xff]  ;;  %v4715_v1 = vcombine.high %v445_v57, %v453_v58  ;;  %v4714_v7 = vcombine.low %v445_v57, %v453_v58 }
  0x92   : > { %3558 = vmatpush1.bf16.msra.mxu0 %v4840_v3  ;;  %v4971_v2 = vcombine.high %v701_v61, %v709_v62  ;;  %v461_v3 = vld [vmem:[%s5266_s10 + $0x310] sm:$0xff]  ;;  %v4970_v8 = vcombine.low %v701_v61, %v709_v62 }
  0x93   : > { %3559 = vmatprep.subr.bf16.mxu0 %v4857_v5  ;;  %v717_v5 = vld [vmem:[%s5266_s10 + $0xb10] sm:$0xff] }
  0x94   : > { %3599 = vmatpush1.bf16.msra.mxu1 %v5096_v4  ;;  %v469_v4 = vld [vmem:[%s5266_s10 + $0x350] sm:$0xff] }
  0x95   : > { %3600 = vmatprep.subr.bf16.mxu1 %v5113_v6  ;;  %v725_v6 = vld [vmem:[%s5266_s10 + $0xb50] sm:$0xff]  ;;  %v4731_v9 = vcombine.high %v461_v3, %v469_v4  ;;  %v4730_v15 = vcombine.low %v461_v3, %v469_v4 }
  0x96   : > { %3560 = vmatpush1.bf16.msra.mxu0 %v4856_v11  ;;  %v4987_v10 = vcombine.high %v717_v5, %v725_v6  ;;  %v477_v11 = vld [vmem:[%s5266_s10 + $0x390] sm:$0xff]  ;;  %v4986_v16 = vcombine.low %v717_v5, %v725_v6 }
  0x97   : > { %3561 = vmatprep.subr.bf16.mxu0 %v4873_v13  ;;  %v733_v13 = vld [vmem:[%s5266_s10 + $0xb90] sm:$0xff] }
  0x98   : > { %3601 = vmatpush1.bf16.msra.mxu1 %v5112_v12  ;;  %v485_v12 = vld [vmem:[%s5266_s10 + $0x3d0] sm:$0xff] }
  0x99   : > { %3602 = vmatprep.subr.bf16.mxu1 %v5129_v14  ;;  %v741_v14 = vld [vmem:[%s5266_s10 + $0xbd0] sm:$0xff]  ;;  %v4747_v18 = vcombine.high %v477_v11, %v485_v12  ;;  %v4746_v25 = vcombine.low %v477_v11, %v485_v12 }
  0x9a   : > { %3562 = vmatpush1.bf16.msra.mxu0 %v4872_v21  ;;  %v5003_v19 = vcombine.high %v733_v13, %v741_v14  ;;  %v493_v21 = vld [vmem:[%s5266_s10 + $0x410] sm:$0xff]  ;;  %v5002_v54 = vcombine.low %v733_v13, %v741_v14 }
  0x9b   : > { %3613 = vmatprep.subr.bf16.mxu0 %v4635_v23  ;;  %v749_v23 = vld [vmem:[%s5266_s10 + $0xc10] sm:$0xff] }
  0x9c   : > { %3603 = vmatpush1.bf16.msra.mxu1 %v5128_v22  ;;  %v501_v22 = vld [vmem:[%s5266_s10 + $0x450] sm:$0xff] }
  0x9d   : > { %3654 = vmatprep.subr.bf16.mxu1 %v4891_v24  ;;  %3564 = vmatmul.mubr.bf16.vlgmr.msra.gmra.mrb[4].mxu0 %v5357_v17  ;;  %v757_v24 = vld [vmem:[%s5266_s10 + $0xc50] sm:$0xff]  ;;  %v4763_v26 = vcombine.high %v493_v21, %v501_v22  ;;  %v4762_v31 = vcombine.low %v493_v21, %v501_v22 }
  0x9e   : > { %3614 = vmatpush1.bf16.msra.mxu0 %v4634_v55  ;;  %3645 = vmatprep.mubr.bf16.mxu0 %v5307_v59  ;;  %v5019_v27 = vcombine.high %v749_v23, %v757_v24  ;;  %v509_v55 = vld [vmem:[%s5266_s10 + $0x490] sm:$0xff]  ;;  %v5018_v32 = vcombine.low %v749_v23, %v757_v24 }
  0x9f   : > { %3605 = vmatmul.mubr.bf16.vlgmr.msra.gmra.mrb[4].mxu1 %v5363_v20  ;;  %3615 = vmatprep.subr.bf16.mxu0 %v4651_v29  ;;  %v765_v29 = vld [vmem:[%s5266_s10 + $0xc90] sm:$0xff] }
  0xa0   : > { %3655 = vmatpush1.bf16.msra.mxu1 %v4890_v28  ;;  %3686 = vmatprep.mubr.bf16.mxu1 %v5311_v60  ;;  %v517_v28 = vld [vmem:[%s5266_s10 + $0x4d0] sm:$0xff] }
  0xa1   : > { %3656 = vmatprep.subr.bf16.mxu1 %v4907_v30  ;;  %v773_v30 = vld [vmem:[%s5266_s10 + $0xcd0] sm:$0xff]  ;;  %v4779_v33 = vcombine.high %v509_v55, %v517_v28  ;;  %v4778_v39 = vcombine.low %v509_v55, %v517_v28 }
  0xa2   : > { %3616 = vmatpush1.bf16.msra.mxu0 %v4650_v35  ;;  %v5035_v34 = vcombine.high %v765_v29, %v773_v30  ;;  %v525_v35 = vld [vmem:[%s5266_s10 + $0x510] sm:$0xff]  ;;  %v5034_v40 = vcombine.low %v765_v29, %v773_v30 }
  0xa3   : > { %3617 = vmatprep.subr.bf16.mxu0 %v4667_v37  ;;  %v781_v37 = vld [vmem:[%s5266_s10 + $0xd10] sm:$0xff] }
  0xa4   : > { %3657 = vmatpush1.bf16.msra.mxu1 %v4906_v36  ;;  %v533_v36 = vld [vmem:[%s5266_s10 + $0x550] sm:$0xff] }
  0xa5   : > { %3658 = vmatprep.subr.bf16.mxu1 %v4923_v38  ;;  %v789_v38 = vld [vmem:[%s5266_s10 + $0xd50] sm:$0xff]  ;;  %v4795_v41 = vcombine.high %v525_v35, %v533_v36  ;;  %v4794_v47 = vcombine.low %v525_v35, %v533_v36 }
  0xa6   : > { %3618 = vmatpush1.bf16.msra.mxu0 %v4666_v43  ;;  %v5051_v42 = vcombine.high %v781_v37, %v789_v38  ;;  %v541_v43 = vld [vmem:[%s5266_s10 + $0x590] sm:$0xff]  ;;  %v5050_v48 = vcombine.low %v781_v37, %v789_v38 }
  0xa7   : > { %3619 = vmatprep.subr.bf16.mxu0 %v4683_v45  ;;  %v797_v45 = vld [vmem:[%s5266_s10 + $0xd90] sm:$0xff] }
  0xa8   : > { %3659 = vmatpush1.bf16.msra.mxu1 %v4922_v44  ;;  %v549_v44 = vld [vmem:[%s5266_s10 + $0x5d0] sm:$0xff] }
  0xa9   : > { %3660 = vmatprep.subr.bf16.mxu1 %v4939_v46  ;;  %v805_v46 = vld [vmem:[%s5266_s10 + $0xdd0] sm:$0xff]  ;;  %v4811_v49 = vcombine.high %v541_v43, %v549_v44  ;;  %v4810_v57 = vcombine.low %v541_v43, %v549_v44 }
  0xaa   : > { %3620 = vmatpush1.bf16.msra.mxu0 %v4682_v51  ;;  %v5067_v50 = vcombine.high %v797_v45, %v805_v46  ;;  %v557_v51 = vld [vmem:[%s5266_s10 + $0x610] sm:$0xff]  ;;  %v5066_v58 = vcombine.low %v797_v45, %v805_v46 }
  0xab   : > { %3621 = vmatprep.subr.bf16.mxu0 %v4699_v53  ;;  %v813_v53 = vld [vmem:[%s5266_s10 + $0xe10] sm:$0xff] }
  0xac   : > { %3661 = vmatpush1.bf16.msra.mxu1 %v4938_v52  ;;  %v565_v52 = vld [vmem:[%s5266_s10 + $0x650] sm:$0xff] }
  0xad   : > { %3662 = vmatprep.subr.bf16.mxu1 %v4955_v56  ;;  %v821_v56 = vld [vmem:[%s5266_s10 + $0xe50] sm:$0xff]  ;;  %v4827_v61 = vcombine.high %v557_v51, %v565_v52  ;;  %v4826_v3 = vcombine.low %v557_v51, %v565_v52 }
  0xae   : > { %3622 = vmatpush1.bf16.msra.mxu0 %v4698_v63  ;;  %v5083_v62 = vcombine.high %v813_v53, %v821_v56  ;;  %v573_v63 = vld [vmem:[%s5266_s10 + $0x690] sm:$0xff]  ;;  %v5082_v4 = vcombine.low %v813_v53, %v821_v56 }
  0xaf   : > { %3623 = vmatprep.subr.bf16.mxu0 %v4715_v1  ;;  %v829_v1 = vld [vmem:[%s5266_s10 + $0xe90] sm:$0xff] }
  0xb0   : > { %3663 = vmatpush1.bf16.msra.mxu1 %v4954_v0  ;;  %v581_v0 = vld [vmem:[%s5266_s10 + $0x6d0] sm:$0xff] }
  0xb1   : > { %3664 = vmatprep.subr.bf16.mxu1 %v4971_v2  ;;  %v837_v2 = vld [vmem:[%s5266_s10 + $0xed0] sm:$0xff]  ;;  %v4843_v5 = vcombine.high %v573_v63, %v581_v0  ;;  %v4842_v11 = vcombine.low %v573_v63, %v581_v0 }
  0xb2   : > { %3624 = vmatpush1.bf16.msra.mxu0 %v4714_v7  ;;  %v5099_v6 = vcombine.high %v829_v1, %v837_v2  ;;  %v589_v7 = vld [vmem:[%s5266_s10 + $0x710] sm:$0xff]  ;;  %v5098_v12 = vcombine.low %v829_v1, %v837_v2 }
  0xb3   : > { %3625 = vmatprep.subr.bf16.mxu0 %v4731_v9  ;;  %v845_v9 = vld [vmem:[%s5266_s10 + $0xf10] sm:$0xff] }
  0xb4   : > { %3665 = vmatpush1.bf16.msra.mxu1 %v4970_v8  ;;  %v597_v8 = vld [vmem:[%s5266_s10 + $0x750] sm:$0xff] }
  0xb5   : > { %3666 = vmatprep.subr.bf16.mxu1 %v4987_v10  ;;  %v853_v10 = vld [vmem:[%s5266_s10 + $0xf50] sm:$0xff]  ;;  %v4859_v13 = vcombine.high %v589_v7, %v597_v8  ;;  %v4858_v21 = vcombine.low %v589_v7, %v597_v8 }
  0xb6   : > { %3626 = vmatpush1.bf16.msra.mxu0 %v4730_v15  ;;  %v5115_v14 = vcombine.high %v845_v9, %v853_v10  ;;  %v605_v15 = vld [vmem:[%s5266_s10 + $0x790] sm:$0xff]  ;;  %v5114_v22 = vcombine.low %v845_v9, %v853_v10 }
  0xb7   : > { %3627 = vmatprep.subr.bf16.mxu0 %v4747_v18  ;;  %v861_v18 = vld [vmem:[%s5266_s10 + $0xf90] sm:$0xff] }
  0xb8   : > { %3667 = vmatpush1.bf16.msra.mxu1 %v4986_v16  ;;  %v613_v16 = vld [vmem:[%s5266_s10 + $0x7d0] sm:$0xff] }
  0xb9   : > { %3668 = vmatprep.subr.bf16.mxu1 %v5003_v19  ;;  %v869_v19 = vld [vmem:[%s5266_s10 + $0xfd0] sm:$0xff]  ;;  %v4875_v23 = vcombine.high %v605_v15, %v613_v16  ;;  %v4874_v55 = vcombine.low %v605_v15, %v613_v16 }
  0xba   : > { %3628 = vmatpush1.bf16.msra.mxu0 %v4746_v25  ;;  %v5131_v24 = vcombine.high %v861_v18, %v869_v19  ;;  %v366_v25 = vld [vmem:[%s5266_s10 + $0x18] sm:$0xff]  ;;  %v5130_v28 = vcombine.low %v861_v18, %v869_v19 }
  0xbb   : > { %3629 = vmatprep.subr.bf16.mxu0 %v4763_v26  ;;  %v622_v26 = vld [vmem:[%s5266_s10 + $0x818] sm:$0xff] }
  0xbc   : > { %3669 = vmatpush1.bf16.msra.mxu1 %v5002_v54  ;;  %v374_v54 = vld [vmem:[%s5266_s10 + $0x58] sm:$0xff] }
  0xbd   : > { %3670 = vmatprep.subr.bf16.mxu1 %v5019_v27  ;;  %v630_v27 = vld [vmem:[%s5266_s10 + $0x858] sm:$0xff]  ;;  %v4637_v29 = vcombine.high %v366_v25, %v374_v54  ;;  %v4636_v35 = vcombine.low %v366_v25, %v374_v54 }
  0xbe   : > { %3630 = vmatpush1.bf16.msra.mxu0 %v4762_v31  ;;  %v4893_v30 = vcombine.high %v622_v26, %v630_v27  ;;  %v382_v31 = vld [vmem:[%s5266_s10 + $0x98] sm:$0xff]  ;;  %v4892_v36 = vcombine.low %v622_v26, %v630_v27 }
  0xbf   : > { %3631 = vmatprep.subr.bf16.mxu0 %v4779_v33  ;;  %v638_v33 = vld [vmem:[%s5266_s10 + $0x898] sm:$0xff] }
  0xc0   : > { %3671 = vmatpush1.bf16.msra.mxu1 %v5018_v32  ;;  %v390_v32 = vld [vmem:[%s5266_s10 + $0xd8] sm:$0xff] }
  0xc1   : > { %3672 = vmatprep.subr.bf16.mxu1 %v5035_v34  ;;  %v646_v34 = vld [vmem:[%s5266_s10 + $0x8d8] sm:$0xff]  ;;  %v4653_v37 = vcombine.high %v382_v31, %v390_v32  ;;  %v4652_v43 = vcombine.low %v382_v31, %v390_v32 }
  0xc2   : > { %3632 = vmatpush1.bf16.msra.mxu0 %v4778_v39  ;;  %v4909_v38 = vcombine.high %v638_v33, %v646_v34  ;;  %v398_v39 = vld [vmem:[%s5266_s10 + $0x118] sm:$0xff]  ;;  %v4908_v44 = vcombine.low %v638_v33, %v646_v34 }
  0xc3   : > { %3633 = vmatprep.subr.bf16.mxu0 %v4795_v41  ;;  %v654_v41 = vld [vmem:[%s5266_s10 + $0x918] sm:$0xff] }
  0xc4   : > { %3673 = vmatpush1.bf16.msra.mxu1 %v5034_v40  ;;  %v406_v40 = vld [vmem:[%s5266_s10 + $0x158] sm:$0xff] }
  0xc5   : > { %3674 = vmatprep.subr.bf16.mxu1 %v5051_v42  ;;  %v662_v42 = vld [vmem:[%s5266_s10 + $0x958] sm:$0xff]  ;;  %v4669_v45 = vcombine.high %v398_v39, %v406_v40  ;;  %v4668_v51 = vcombine.low %v398_v39, %v406_v40 }
  0xc6   : > { %3634 = vmatpush1.bf16.msra.mxu0 %v4794_v47  ;;  %v4925_v46 = vcombine.high %v654_v41, %v662_v42  ;;  %v414_v47 = vld [vmem:[%s5266_s10 + $0x198] sm:$0xff]  ;;  %v4924_v52 = vcombine.low %v654_v41, %v662_v42 }
  0xc7   : > { %3635 = vmatprep.subr.bf16.mxu0 %v4811_v49  ;;  %v670_v49 = vld [vmem:[%s5266_s10 + $0x998] sm:$0xff] }
  0xc8   : > { %3675 = vmatpush1.bf16.msra.mxu1 %v5050_v48  ;;  %v422_v48 = vld [vmem:[%s5266_s10 + $0x1d8] sm:$0xff] }
  0xc9   : > { %3676 = vmatprep.subr.bf16.mxu1 %v5067_v50  ;;  %v678_v50 = vld [vmem:[%s5266_s10 + $0x9d8] sm:$0xff]  ;;  %v4685_v53 = vcombine.high %v414_v47, %v422_v48  ;;  %v4684_v63 = vcombine.low %v414_v47, %v422_v48 }
  0xca   : > { %3636 = vmatpush1.bf16.msra.mxu0 %v4810_v57  ;;  %v4941_v56 = vcombine.high %v670_v49, %v678_v50  ;;  %v430_v57 = vld [vmem:[%s5266_s10 + $0x218] sm:$0xff]  ;;  %v4940_v0 = vcombine.low %v670_v49, %v678_v50 }
  0xcb   : > { %3637 = vmatprep.subr.bf16.mxu0 %v4827_v61  ;;  %v686_v61 = vld [vmem:[%s5266_s10 + $0xa18] sm:$0xff] }
  0xcc   : > { %3677 = vmatpush1.bf16.msra.mxu1 %v5066_v58  ;;  %v438_v58 = vld [vmem:[%s5266_s10 + $0x258] sm:$0xff] }
  0xcd   : > { %3678 = vmatprep.subr.bf16.mxu1 %v5083_v62  ;;  %v694_v62 = vld [vmem:[%s5266_s10 + $0xa58] sm:$0xff]  ;;  %v4701_v1 = vcombine.high %v430_v57, %v438_v58  ;;  %v4700_v7 = vcombine.low %v430_v57, %v438_v58 }
  0xce   : > { %3638 = vmatpush1.bf16.msra.mxu0 %v4826_v3  ;;  %v4957_v2 = vcombine.high %v686_v61, %v694_v62  ;;  %v446_v3 = vld [vmem:[%s5266_s10 + $0x298] sm:$0xff]  ;;  %v4956_v8 = vcombine.low %v686_v61, %v694_v62 }
  0xcf   : > { %3639 = vmatprep.subr.bf16.mxu0 %v4843_v5  ;;  %v702_v5 = vld [vmem:[%s5266_s10 + $0xa98] sm:$0xff] }
  0xd0   : > { %3679 = vmatpush1.bf16.msra.mxu1 %v5082_v4  ;;  %v454_v4 = vld [vmem:[%s5266_s10 + $0x2d8] sm:$0xff] }
  0xd1   : > { %3680 = vmatprep.subr.bf16.mxu1 %v5099_v6  ;;  %v710_v6 = vld [vmem:[%s5266_s10 + $0xad8] sm:$0xff]  ;;  %v4717_v9 = vcombine.high %v446_v3, %v454_v4  ;;  %v4716_v15 = vcombine.low %v446_v3, %v454_v4 }
  0xd2   : > { %3640 = vmatpush1.bf16.msra.mxu0 %v4842_v11  ;;  %v4973_v10 = vcombine.high %v702_v5, %v710_v6  ;;  %v462_v11 = vld [vmem:[%s5266_s10 + $0x318] sm:$0xff]  ;;  %v4972_v16 = vcombine.low %v702_v5, %v710_v6 }
  0xd3   : > { %3641 = vmatprep.subr.bf16.mxu0 %v4859_v13  ;;  %v718_v13 = vld [vmem:[%s5266_s10 + $0xb18] sm:$0xff] }
  0xd4   : > { %3681 = vmatpush1.bf16.msra.mxu1 %v5098_v12  ;;  %v470_v12 = vld [vmem:[%s5266_s10 + $0x358] sm:$0xff] }
  0xd5   : > { %3682 = vmatprep.subr.bf16.mxu1 %v5115_v14  ;;  %v726_v14 = vld [vmem:[%s5266_s10 + $0xb58] sm:$0xff]  ;;  %v4733_v18 = vcombine.high %v462_v11, %v470_v12  ;;  %v4732_v25 = vcombine.low %v462_v11, %v470_v12 }
  0xd6   : > { %3642 = vmatpush1.bf16.msra.mxu0 %v4858_v21  ;;  %v4989_v19 = vcombine.high %v718_v13, %v726_v14  ;;  %v478_v21 = vld [vmem:[%s5266_s10 + $0x398] sm:$0xff]  ;;  %v4988_v54 = vcombine.low %v718_v13, %v726_v14 }
  0xd7   : > { %3643 = vmatprep.subr.bf16.mxu0 %v4875_v23  ;;  %v734_v23 = vld [vmem:[%s5266_s10 + $0xb98] sm:$0xff] }
  0xd8   : > { %3683 = vmatpush1.bf16.msra.mxu1 %v5114_v22  ;;  %v486_v22 = vld [vmem:[%s5266_s10 + $0x3d8] sm:$0xff] }
  0xd9   : > { %3684 = vmatprep.subr.bf16.mxu1 %v5131_v24  ;;  %v742_v24 = vld [vmem:[%s5266_s10 + $0xbd8] sm:$0xff]  ;;  %v4749_v26 = vcombine.high %v478_v21, %v486_v22  ;;  %v4748_v31 = vcombine.low %v478_v21, %v486_v22 }
  0xda   : > { %3644 = vmatpush1.bf16.msra.mxu0 %v4874_v55  ;;  %v5005_v27 = vcombine.high %v734_v23, %v742_v24  ;;  %v494_v55 = vld [vmem:[%s5266_s10 + $0x418] sm:$0xff]  ;;  %v5004_v32 = vcombine.low %v734_v23, %v742_v24 }
  0xdb   : > { %3695 = vmatprep.subr.bf16.mxu0 %v4637_v29  ;;  %v750_v29 = vld [vmem:[%s5266_s10 + $0xc18] sm:$0xff] }
  0xdc   : > { %3685 = vmatpush1.bf16.msra.mxu1 %v5130_v28  ;;  %v502_v28 = vld [vmem:[%s5266_s10 + $0x458] sm:$0xff] }
  0xdd   : > { %3736 = vmatprep.subr.bf16.mxu1 %v4893_v30  ;;  %3646 = vmatmul.mubr.bf16.vlgmr.msra.gmra.mrb[8].mxu0 %v5357_v17  ;;  %v758_v30 = vld [vmem:[%s5266_s10 + $0xc58] sm:$0xff]  ;;  %v4765_v33 = vcombine.high %v494_v55, %v502_v28  ;;  %v4764_v39 = vcombine.low %v494_v55, %v502_v28 }
  0xde   : > { %3696 = vmatpush1.bf16.msra.mxu0 %v4636_v35  ;;  %3727 = vmatprep.mubr.bf16.mxu0 %v5307_v59  ;;  %v5021_v34 = vcombine.high %v750_v29, %v758_v30  ;;  %v510_v35 = vld [vmem:[%s5266_s10 + $0x498] sm:$0xff]  ;;  %v5020_v40 = vcombine.low %v750_v29, %v758_v30 }
  0xdf   : > { %3687 = vmatmul.mubr.bf16.vlgmr.msra.gmra.mrb[8].mxu1 %v5363_v20  ;;  %3697 = vmatprep.subr.bf16.mxu0 %v4653_v37  ;;  %v766_v37 = vld [vmem:[%s5266_s10 + $0xc98] sm:$0xff] }
  0xe0   : > { %3737 = vmatpush1.bf16.msra.mxu1 %v4892_v36  ;;  %3768 = vmatprep.mubr.bf16.mxu1 %v5311_v60  ;;  %v518_v36 = vld [vmem:[%s5266_s10 + $0x4d8] sm:$0xff] }
  0xe1   : > { %3738 = vmatprep.subr.bf16.mxu1 %v4909_v38  ;;  %v774_v38 = vld [vmem:[%s5266_s10 + $0xcd8] sm:$0xff]  ;;  %v4781_v41 = vcombine.high %v510_v35, %v518_v36  ;;  %v4780_v47 = vcombine.low %v510_v35, %v518_v36 }
  0xe2   : > { %3698 = vmatpush1.bf16.msra.mxu0 %v4652_v43  ;;  %v5037_v42 = vcombine.high %v766_v37, %v774_v38  ;;  %v526_v43 = vld [vmem:[%s5266_s10 + $0x518] sm:$0xff]  ;;  %v5036_v48 = vcombine.low %v766_v37, %v774_v38 }
  0xe3   : > { %3699 = vmatprep.subr.bf16.mxu0 %v4669_v45  ;;  %v782_v45 = vld [vmem:[%s5266_s10 + $0xd18] sm:$0xff] }
  0xe4   : > { %3739 = vmatpush1.bf16.msra.mxu1 %v4908_v44  ;;  %v534_v44 = vld [vmem:[%s5266_s10 + $0x558] sm:$0xff] }
  0xe5   : > { %3740 = vmatprep.subr.bf16.mxu1 %v4925_v46  ;;  %v790_v46 = vld [vmem:[%s5266_s10 + $0xd58] sm:$0xff]  ;;  %v4797_v49 = vcombine.high %v526_v43, %v534_v44  ;;  %v4796_v57 = vcombine.low %v526_v43, %v534_v44 }
  0xe6   : > { %3700 = vmatpush1.bf16.msra.mxu0 %v4668_v51  ;;  %v5053_v50 = vcombine.high %v782_v45, %v790_v46  ;;  %v542_v51 = vld [vmem:[%s5266_s10 + $0x598] sm:$0xff]  ;;  %v5052_v58 = vcombine.low %v782_v45, %v790_v46 }
  0xe7   : > { %3701 = vmatprep.subr.bf16.mxu0 %v4685_v53  ;;  %v798_v53 = vld [vmem:[%s5266_s10 + $0xd98] sm:$0xff] }
  0xe8   : > { %3741 = vmatpush1.bf16.msra.mxu1 %v4924_v52  ;;  %v550_v52 = vld [vmem:[%s5266_s10 + $0x5d8] sm:$0xff] }
  0xe9   : > { %3742 = vmatprep.subr.bf16.mxu1 %v4941_v56  ;;  %v806_v56 = vld [vmem:[%s5266_s10 + $0xdd8] sm:$0xff]  ;;  %v4813_v61 = vcombine.high %v542_v51, %v550_v52  ;;  %v4812_v3 = vcombine.low %v542_v51, %v550_v52 }
  0xea   : > { %3702 = vmatpush1.bf16.msra.mxu0 %v4684_v63  ;;  %v5069_v62 = vcombine.high %v798_v53, %v806_v56  ;;  %v558_v63 = vld [vmem:[%s5266_s10 + $0x618] sm:$0xff]  ;;  %v5068_v4 = vcombine.low %v798_v53, %v806_v56 }
  0xeb   : > { %3703 = vmatprep.subr.bf16.mxu0 %v4701_v1  ;;  %v814_v1 = vld [vmem:[%s5266_s10 + $0xe18] sm:$0xff] }
  0xec   : > { %3743 = vmatpush1.bf16.msra.mxu1 %v4940_v0  ;;  %v566_v0 = vld [vmem:[%s5266_s10 + $0x658] sm:$0xff] }
  0xed   : > { %3744 = vmatprep.subr.bf16.mxu1 %v4957_v2  ;;  %v822_v2 = vld [vmem:[%s5266_s10 + $0xe58] sm:$0xff]  ;;  %v4829_v5 = vcombine.high %v558_v63, %v566_v0  ;;  %v4828_v11 = vcombine.low %v558_v63, %v566_v0 }
  0xee   : > { %3704 = vmatpush1.bf16.msra.mxu0 %v4700_v7  ;;  %v5085_v6 = vcombine.high %v814_v1, %v822_v2  ;;  %v574_v7 = vld [vmem:[%s5266_s10 + $0x698] sm:$0xff]  ;;  %v5084_v12 = vcombine.low %v814_v1, %v822_v2 }
  0xef   : > { %3705 = vmatprep.subr.bf16.mxu0 %v4717_v9  ;;  %v830_v9 = vld [vmem:[%s5266_s10 + $0xe98] sm:$0xff] }
  0xf0   : > { %3745 = vmatpush1.bf16.msra.mxu1 %v4956_v8  ;;  %v582_v8 = vld [vmem:[%s5266_s10 + $0x6d8] sm:$0xff] }
  0xf1   : > { %3746 = vmatprep.subr.bf16.mxu1 %v4973_v10  ;;  %v838_v10 = vld [vmem:[%s5266_s10 + $0xed8] sm:$0xff]  ;;  %v4845_v13 = vcombine.high %v574_v7, %v582_v8  ;;  %v4844_v21 = vcombine.low %v574_v7, %v582_v8 }
  0xf2   : > { %3706 = vmatpush1.bf16.msra.mxu0 %v4716_v15  ;;  %v5101_v14 = vcombine.high %v830_v9, %v838_v10  ;;  %v590_v15 = vld [vmem:[%s5266_s10 + $0x718] sm:$0xff]  ;;  %v5100_v22 = vcombine.low %v830_v9, %v838_v10 }
  0xf3   : > { %3707 = vmatprep.subr.bf16.mxu0 %v4733_v18  ;;  %v846_v18 = vld [vmem:[%s5266_s10 + $0xf18] sm:$0xff] }
  0xf4   : > { %3747 = vmatpush1.bf16.msra.mxu1 %v4972_v16  ;;  %v598_v16 = vld [vmem:[%s5266_s10 + $0x758] sm:$0xff] }
  0xf5   : > { %3748 = vmatprep.subr.bf16.mxu1 %v4989_v19  ;;  %v854_v19 = vld [vmem:[%s5266_s10 + $0xf58] sm:$0xff]  ;;  %v4861_v23 = vcombine.high %v590_v15, %v598_v16  ;;  %v4860_v55 = vcombine.low %v590_v15, %v598_v16 }
  0xf6   : > { %3708 = vmatpush1.bf16.msra.mxu0 %v4732_v25  ;;  %v5117_v24 = vcombine.high %v846_v18, %v854_v19  ;;  %v606_v25 = vld [vmem:[%s5266_s10 + $0x798] sm:$0xff]  ;;  %v5116_v28 = vcombine.low %v846_v18, %v854_v19 }
  0xf7   : > { %3709 = vmatprep.subr.bf16.mxu0 %v4749_v26  ;;  %v862_v26 = vld [vmem:[%s5266_s10 + $0xf98] sm:$0xff] }
  0xf8   : > { %3749 = vmatpush1.bf16.msra.mxu1 %v4988_v54  ;;  %v614_v54 = vld [vmem:[%s5266_s10 + $0x7d8] sm:$0xff] }
  0xf9   : > { %3750 = vmatprep.subr.bf16.mxu1 %v5005_v27  ;;  %v870_v27 = vld [vmem:[%s5266_s10 + $0xfd8] sm:$0xff]  ;;  %v4877_v29 = vcombine.high %v606_v25, %v614_v54  ;;  %v4876_v35 = vcombine.low %v606_v25, %v614_v54 }
  0xfa   : > { %3710 = vmatpush1.bf16.msra.mxu0 %v4748_v31  ;;  %v5133_v30 = vcombine.high %v862_v26, %v870_v27  ;;  %v367_v31 = vld [vmem:[%s5266_s10 + $0x20] sm:$0xff]  ;;  %v5132_v36 = vcombine.low %v862_v26, %v870_v27 }
  0xfb   : > { %3711 = vmatprep.subr.bf16.mxu0 %v4765_v33  ;;  %v623_v33 = vld [vmem:[%s5266_s10 + $0x820] sm:$0xff] }
  0xfc   : > { %3751 = vmatpush1.bf16.msra.mxu1 %v5004_v32  ;;  %v375_v32 = vld [vmem:[%s5266_s10 + $0x60] sm:$0xff] }
  0xfd   : > { %3752 = vmatprep.subr.bf16.mxu1 %v5021_v34  ;;  %v631_v34 = vld [vmem:[%s5266_s10 + $0x860] sm:$0xff]  ;;  %v4639_v37 = vcombine.high %v367_v31, %v375_v32  ;;  %v4638_v43 = vcombine.low %v367_v31, %v375_v32 }
  0xfe   : > { %3712 = vmatpush1.bf16.msra.mxu0 %v4764_v39  ;;  %v4895_v38 = vcombine.high %v623_v33, %v631_v34  ;;  %v383_v39 = vld [vmem:[%s5266_s10 + $0xa0] sm:$0xff]  ;;  %v4894_v44 = vcombine.low %v623_v33, %v631_v34 }
  0xff   : > { %3713 = vmatprep.subr.bf16.mxu0 %v4781_v41  ;;  %v639_v41 = vld [vmem:[%s5266_s10 + $0x8a0] sm:$0xff] }
 0x100   : > { %3753 = vmatpush1.bf16.msra.mxu1 %v5020_v40  ;;  %v391_v40 = vld [vmem:[%s5266_s10 + $0xe0] sm:$0xff] }
 0x101   : > { %3754 = vmatprep.subr.bf16.mxu1 %v5037_v42  ;;  %v647_v42 = vld [vmem:[%s5266_s10 + $0x8e0] sm:$0xff]  ;;  %v4655_v45 = vcombine.high %v383_v39, %v391_v40  ;;  %v4654_v51 = vcombine.low %v383_v39, %v391_v40 }
 0x102   : > { %3714 = vmatpush1.bf16.msra.mxu0 %v4780_v47  ;;  %v4911_v46 = vcombine.high %v639_v41, %v647_v42  ;;  %v399_v47 = vld [vmem:[%s5266_s10 + $0x120] sm:$0xff]  ;;  %v4910_v52 = vcombine.low %v639_v41, %v647_v42 }
 0x103   : > { %3715 = vmatprep.subr.bf16.mxu0 %v4797_v49  ;;  %v655_v49 = vld [vmem:[%s5266_s10 + $0x920] sm:$0xff] }
 0x104   : > { %3755 = vmatpush1.bf16.msra.mxu1 %v5036_v48  ;;  %v407_v48 = vld [vmem:[%s5266_s10 + $0x160] sm:$0xff] }
 0x105   : > { %3756 = vmatprep.subr.bf16.mxu1 %v5053_v50  ;;  %v663_v50 = vld [vmem:[%s5266_s10 + $0x960] sm:$0xff]  ;;  %v4671_v53 = vcombine.high %v399_v47, %v407_v48  ;;  %v4670_v63 = vcombine.low %v399_v47, %v407_v48 }
 0x106   : > { %3716 = vmatpush1.bf16.msra.mxu0 %v4796_v57  ;;  %v4927_v56 = vcombine.high %v655_v49, %v663_v50  ;;  %v415_v57 = vld [vmem:[%s5266_s10 + $0x1a0] sm:$0xff]  ;;  %v4926_v0 = vcombine.low %v655_v49, %v663_v50 }
 0x107   : > { %3717 = vmatprep.subr.bf16.mxu0 %v4813_v61  ;;  %v671_v61 = vld [vmem:[%s5266_s10 + $0x9a0] sm:$0xff] }
 0x108   : > { %3757 = vmatpush1.bf16.msra.mxu1 %v5052_v58  ;;  %v423_v58 = vld [vmem:[%s5266_s10 + $0x1e0] sm:$0xff] }
 0x109   : > { %3758 = vmatprep.subr.bf16.mxu1 %v5069_v62  ;;  %v679_v62 = vld [vmem:[%s5266_s10 + $0x9e0] sm:$0xff]  ;;  %v4687_v1 = vcombine.high %v415_v57, %v423_v58  ;;  %v4686_v7 = vcombine.low %v415_v57, %v423_v58 }
 0x10a   : > { %3718 = vmatpush1.bf16.msra.mxu0 %v4812_v3  ;;  %v4943_v2 = vcombine.high %v671_v61, %v679_v62  ;;  %v431_v3 = vld [vmem:[%s5266_s10 + $0x220] sm:$0xff]  ;;  %v4942_v8 = vcombine.low %v671_v61, %v679_v62 }
 0x10b   : > { %3719 = vmatprep.subr.bf16.mxu0 %v4829_v5  ;;  %v687_v5 = vld [vmem:[%s5266_s10 + $0xa20] sm:$0xff] }
 0x10c   : > { %3759 = vmatpush1.bf16.msra.mxu1 %v5068_v4  ;;  %v439_v4 = vld [vmem:[%s5266_s10 + $0x260] sm:$0xff] }
 0x10d   : > { %3760 = vmatprep.subr.bf16.mxu1 %v5085_v6  ;;  %v695_v6 = vld [vmem:[%s5266_s10 + $0xa60] sm:$0xff]  ;;  %v4703_v9 = vcombine.high %v431_v3, %v439_v4  ;;  %v4702_v15 = vcombine.low %v431_v3, %v439_v4 }
 0x10e   : > { %3720 = vmatpush1.bf16.msra.mxu0 %v4828_v11  ;;  %v4959_v10 = vcombine.high %v687_v5, %v695_v6  ;;  %v447_v11 = vld [vmem:[%s5266_s10 + $0x2a0] sm:$0xff]  ;;  %v4958_v16 = vcombine.low %v687_v5, %v695_v6 }
 0x10f   : > { %3721 = vmatprep.subr.bf16.mxu0 %v4845_v13  ;;  %v703_v13 = vld [vmem:[%s5266_s10 + $0xaa0] sm:$0xff] }
 0x110   : > { %3761 = vmatpush1.bf16.msra.mxu1 %v5084_v12  ;;  %v455_v12 = vld [vmem:[%s5266_s10 + $0x2e0] sm:$0xff] }
 0x111   : > { %3762 = vmatprep.subr.bf16.mxu1 %v5101_v14  ;;  %v711_v14 = vld [vmem:[%s5266_s10 + $0xae0] sm:$0xff]  ;;  %v4719_v18 = vcombine.high %v447_v11, %v455_v12  ;;  %v4718_v25 = vcombine.low %v447_v11, %v455_v12 }
 0x112   : > { %3722 = vmatpush1.bf16.msra.mxu0 %v4844_v21  ;;  %v4975_v19 = vcombine.high %v703_v13, %v711_v14  ;;  %v463_v21 = vld [vmem:[%s5266_s10 + $0x320] sm:$0xff]  ;;  %v4974_v54 = vcombine.low %v703_v13, %v711_v14 }
 0x113   : > { %3723 = vmatprep.subr.bf16.mxu0 %v4861_v23  ;;  %v719_v23 = vld [vmem:[%s5266_s10 + $0xb20] sm:$0xff] }
 0x114   : > { %3763 = vmatpush1.bf16.msra.mxu1 %v5100_v22  ;;  %v471_v22 = vld [vmem:[%s5266_s10 + $0x360] sm:$0xff] }
 0x115   : > { %3764 = vmatprep.subr.bf16.mxu1 %v5117_v24  ;;  %v727_v24 = vld [vmem:[%s5266_s10 + $0xb60] sm:$0xff]  ;;  %v4735_v26 = vcombine.high %v463_v21, %v471_v22  ;;  %v4734_v39 = vcombine.low %v463_v21, %v471_v22 }
 0x116   : > { %3724 = vmatpush1.bf16.msra.mxu0 %v4860_v55  ;;  %v4991_v55 = vcombine.high %v719_v23, %v727_v24  ;;  %v735_v33 = vld [vmem:[%s5266_s10 + $0xba0] sm:$0xff] }
 0x117   : > { %3725 = vmatprep.subr.bf16.mxu0 %v4877_v29  ;;  %v487_v29 = vld [vmem:[%s5266_s10 + $0x3e0] sm:$0xff] }
 0x118   : > { %3765 = vmatpush1.bf16.msra.mxu1 %v5116_v28  ;;  %v479_v28 = vld [vmem:[%s5266_s10 + $0x3a0] sm:$0xff] }
 0x119   : > { %3766 = vmatprep.subr.bf16.mxu1 %v5133_v30  ;;  %v345_v30 = vld [vmem:[#allocation2] sm:$0xff] }
 0x11a   : > { %3726 = vmatpush1.bf16.msra.mxu0 %v4876_v35  ;;  %v743_v34 = vld [vmem:[%s5266_s10 + $0xbe0] sm:$0xff] }
 0x11b   : > { %3777 = vmatprep.subr.bf16.mxu0 %v4639_v37  ;;  %v5007_v47 = vcombine.high %v735_v33, %v743_v34  ;;  %v495_v48 = vld [vmem:[%s5266_s10 + $0x420] sm:$0xff] }
 0x11c   : > { %3767 = vmatpush1.bf16.msra.mxu1 %v5132_v36  ;;  %v346_v36 = vld [vmem:[#allocation2 + $0x8] sm:$0xff]  ;;  %v503_v49 = vld [vmem:[%s5266_s10 + $0x460] sm:$0xff] }
 0x11d   : > { %3818 = vmatprep.subr.bf16.mxu1 %v4895_v38  ;;  %3728 = vmatmul.mubr.bf16.vlgmr.msra.gmra.mrb[12].mxu0 %v5357_v17  ;;  %v4767_v57 = vcombine.high %v495_v48, %v503_v49  ;;  %v511_v61 = vld [vmem:[%s5266_s10 + $0x4a0] sm:$0xff] }
 0x11e   : > { %3778 = vmatpush1.bf16.msra.mxu0 %v4638_v43  ;;  %3809 = vmatprep.mubr.bf16.mxu0 %v5307_v59  ;;  %v4990_v43 = vcombine.low %v719_v23, %v727_v24  ;;  %v519_v62 = vld [vmem:[%s5266_s10 + $0x4e0] sm:$0xff] }
 0x11f   : > { %3769 = vmatmul.mubr.bf16.vlgmr.msra.gmra.mrb[12].mxu1 %v5363_v20  ;;  %3779 = vmatprep.subr.bf16.mxu0 %v4655_v45  ;;  %v4783_v3 = vcombine.high %v511_v61, %v519_v62  ;;  %v527_v5 = vld [vmem:[%s5266_s10 + $0x520] sm:$0xff] }
 0x120   : > { %3819 = vmatpush1.bf16.msra.mxu1 %v4894_v44  ;;  %3850 = vmatprep.mubr.bf16.mxu1 %v5311_v60  ;;  %v4751_v44 = vcombine.high %v479_v28, %v487_v29  ;;  %v535_v6 = vld [vmem:[%s5266_s10 + $0x560] sm:$0xff] }
 0x121   : > { %3820 = vmatprep.subr.bf16.mxu1 %v4911_v46  ;;  %v4799_v11 = vcombine.high %v527_v5, %v535_v6  ;;  %v543_v13 = vld [vmem:[%s5266_s10 + $0x5a0] sm:$0xff] }
 0x122   : > { %3780 = vmatpush1.bf16.msra.mxu0 %v4654_v51  ;;  %v751_v51 = vld [vmem:[%s5266_s10 + $0xc20] sm:$0xff] }
 0x123   : > { %3781 = vmatprep.subr.bf16.mxu0 %v4671_v53  ;;  %v4750_v53 = vcombine.low %v479_v28, %v487_v29  ;;  %v551_v14 = vld [vmem:[%s5266_s10 + $0x5e0] sm:$0xff] }
 0x124   : > { %3821 = vmatpush1.bf16.msra.mxu1 %v4910_v52  ;;  %v759_v52 = vld [vmem:[%s5266_s10 + $0xc60] sm:$0xff]  ;;  %v4815_v21 = vcombine.high %v543_v13, %v551_v14 }
 0x125   : > { %3822 = vmatprep.subr.bf16.mxu1 %v4927_v56  ;;  %v5006_v56 = vcombine.low %v735_v33, %v743_v34  ;;  %v5023_v58 = vcombine.high %v751_v51, %v759_v52  ;;  %v559_v23 = vld [vmem:[%s5266_s10 + $0x620] sm:$0xff] }
 0x126   : > { %3782 = vmatpush1.bf16.msra.mxu0 %v4670_v63  ;;  %v767_v63 = vld [vmem:[%s5266_s10 + $0xca0] sm:$0xff] }
 0x127   : > { %3783 = vmatprep.subr.bf16.mxu0 %v4687_v1  ;;  %v4766_v1 = vcombine.low %v495_v48, %v503_v49  ;;  %v567_v24 = vld [vmem:[%s5266_s10 + $0x660] sm:$0xff] }
 0x128   : > { %3823 = vmatpush1.bf16.msra.mxu1 %v4926_v0  ;;  %v775_v0 = vld [vmem:[%s5266_s10 + $0xce0] sm:$0xff]  ;;  %v4830_v33 = vcombine.low %v559_v23, %v567_v24 }
 0x129   : > { %3824 = vmatprep.subr.bf16.mxu1 %v4943_v2  ;;  %v5022_v2 = vcombine.low %v751_v51, %v759_v52  ;;  %v5039_v4 = vcombine.high %v767_v63, %v775_v0  ;;  %v575_v29 = vld [vmem:[%s5266_s10 + $0x6a0] sm:$0xff] }
 0x12a   : > { %3784 = vmatpush1.bf16.msra.mxu0 %v4686_v7  ;;  %v783_v7 = vld [vmem:[%s5266_s10 + $0xd20] sm:$0xff] }
 0x12b   : > { %3785 = vmatprep.subr.bf16.mxu0 %v4703_v9  ;;  %v4782_v9 = vcombine.low %v511_v61, %v519_v62  ;;  %v871_v48 = vld [vmem:[%s5266_s10 + $0xfe0] sm:$0xff] }
 0x12c   : > { %3825 = vmatpush1.bf16.msra.mxu1 %v4942_v8  ;;  %v791_v8 = vld [vmem:[%s5266_s10 + $0xd60] sm:$0xff] }
 0x12d   : > { %3826 = vmatprep.subr.bf16.mxu1 %v4959_v10  ;;  %v5038_v10 = vcombine.low %v767_v63, %v775_v0  ;;  %v5055_v12 = vcombine.high %v783_v7, %v791_v8 }
 0x12e   : > { %3786 = vmatpush1.bf16.msra.mxu0 %v4702_v15  ;;  %v799_v15 = vld [vmem:[%s5266_s10 + $0xda0] sm:$0xff] }
 0x12f   : > { %3787 = vmatprep.subr.bf16.mxu0 %v4719_v18  ;;  %v4798_v18 = vcombine.low %v527_v5, %v535_v6 }
 0x130   : > { %3827 = vmatpush1.bf16.msra.mxu1 %v4958_v16  ;;  %v3483_v27 = vpop.f32.mrb[0].mxu0  ;;  %v807_v16 = vld [vmem:[%s5266_s10 + $0xde0] sm:$0xff] }
 0x131   : > { %3828 = vmatprep.subr.bf16.mxu1 %v4975_v19  ;;  %v3485_v32 = vpop.f32.mrb[1].mxu0  ;;  %v5054_v19 = vcombine.low %v783_v7, %v791_v8  ;;  %v5071_v22 = vcombine.high %v799_v15, %v807_v16 }
 0x132   : > { %v3524_v31 = vpop.f32.mrb[0].mxu1  ;;  %v3487_v38 = vpop.f32.mrb[2].mxu0  ;;  %3788 = vmatpush1.bf16.msra.mxu0 %v4718_v25  ;;  %v815_v25 = vld [vmem:[%s5266_s10 + $0xe20] sm:$0xff] }
 0x133   : > { %v3525_v35 = vadd.f32 %v3524_v31, %v3483_v27  ;;  %v3526_v37 = vpop.f32.mrb[1].mxu1  ;;  %v3488_v42 = vpop.f32.mrb[3].mxu0  ;;  %3789 = vmatprep.subr.bf16.mxu0 %v4735_v26  ;;  %v4814_v26 = vcombine.low %v543_v13, %v551_v14  ;;  %v5070_v27 = vcombine.low %v799_v15, %v807_v16  ;;  %v831_v31 = vld [vmem:[%s5266_s10 + $0xea0] sm:$0xff] }
 0x134   : > { %v3527_v40 = vadd.f32 %v3526_v37, %v3485_v32  ;;  %v3528_v41 = vpop.f32.mrb[2].mxu1  ;;  %3829 = vmatpush1.bf16.msra.mxu1 %v4974_v54  ;;  %v823_v54 = vld [vmem:[%s5266_s10 + $0xe60] sm:$0xff] }
 0x135   : > { %v4105_v45 = vadd.f32 %v3525_v35, %v345_v30  ;;  %v3529_v46 = vpop.f32.mrb[3].mxu1  ;;  %3830 = vmatprep.subr.bf16.mxu1 %v4991_v55  ;;  %v4831_v55 = vcombine.high %v559_v23, %v567_v24  ;;  %v5087_v28 = vcombine.high %v815_v25, %v823_v54  ;;  %v583_v30 = vld [vmem:[%s5266_s10 + $0x6e0] sm:$0xff]  ;;  %v5086_v34 = vcombine.low %v815_v25, %v823_v54 }
 0x136   : > { %v4106_v50 = vadd.f32 %v3527_v40, %v346_v36  ;;  %3790 = vmatpush1.bf16.msra.mxu0 %v4734_v39  ;;  %v839_v32 = vld [vmem:[%s5266_s10 + $0xee0] sm:$0xff]  ;;  %v4847_v35 = vcombine.high %v575_v29, %v583_v30  ;;  %v4846_v41 = vcombine.low %v575_v29, %v583_v30 }
 0x137   : > { %4121 = vst [vmem:[#allocation2] sm:$0xff] %v4105_v45  ;;  %3791 = vmatprep.subr.bf16.mxu0 %v4751_v44  ;;  %v5103_v36 = vcombine.high %v831_v31, %v839_v32  ;;  %v591_v37 = vld [vmem:[%s5266_s10 + $0x720] sm:$0xff]  ;;  %v5102_v42 = vcombine.low %v831_v31, %v839_v32 }
 0x138   : > { %4122 = vst [vmem:[#allocation2 + $0x8] sm:$0xff] %v4106_v50  ;;  %3831 = vmatpush1.bf16.msra.mxu1 %v4990_v43  ;;  %v599_v38 = vld [vmem:[%s5266_s10 + $0x760] sm:$0xff] }
 0x139   : > { %3832 = vmatprep.subr.bf16.mxu1 %v5007_v47  ;;  %v847_v39 = vld [vmem:[%s5266_s10 + $0xf20] sm:$0xff]  ;;  %v4863_v43 = vcombine.high %v591_v37, %v599_v38  ;;  %v4862_v49 = vcombine.low %v591_v37, %v599_v38 }
 0x13a   : > { %3792 = vmatpush1.bf16.msra.mxu0 %v4750_v53  ;;  %v855_v40 = vld [vmem:[%s5266_s10 + $0xf60] sm:$0xff]  ;;  %v368_v53 = vld [vmem:[%s5266_s10 + $0x28] sm:$0xff] }
 0x13b   : > { %3793 = vmatprep.subr.bf16.mxu0 %v4767_v57  ;;  %v5119_v44 = vcombine.high %v847_v39, %v855_v40  ;;  %v607_v45 = vld [vmem:[%s5266_s10 + $0x7a0] sm:$0xff]  ;;  %v5118_v50 = vcombine.low %v847_v39, %v855_v40  ;;  %v624_v57 = vld [vmem:[%s5266_s10 + $0x828] sm:$0xff] }
 0x13c   : > { %3833 = vmatpush1.bf16.msra.mxu1 %v5006_v56  ;;  %v615_v46 = vld [vmem:[%s5266_s10 + $0x7e0] sm:$0xff]  ;;  %v376_v56 = vld [vmem:[%s5266_s10 + $0x68] sm:$0xff] }
 0x13d   : > { %3834 = vmatprep.subr.bf16.mxu1 %v5023_v58  ;;  %v863_v47 = vld [vmem:[%s5266_s10 + $0xfa0] sm:$0xff]  ;;  %v4879_v51 = vcombine.high %v607_v45, %v615_v46  ;;  %v632_v58 = vld [vmem:[%s5266_s10 + $0x868] sm:$0xff]  ;;  %v4878_v61 = vcombine.low %v607_v45, %v615_v46  ;;  %v4641_v63 = vcombine.high %v368_v53, %v376_v56  ;;  %v4640_v5 = vcombine.low %v368_v53, %v376_v56 }
 0x13e   : > { %3794 = vmatpush1.bf16.msra.mxu0 %v4766_v1  ;;  %v5135_v52 = vcombine.high %v863_v47, %v871_v48  ;;  %v5134_v62 = vcombine.low %v863_v47, %v871_v48  ;;  %v4897_v0 = vcombine.high %v624_v57, %v632_v58  ;;  %v384_v1 = vld [vmem:[%s5266_s10 + $0xa8] sm:$0xff]  ;;  %v4896_v6 = vcombine.low %v624_v57, %v632_v58 }
 0x13f   : > { %3795 = vmatprep.subr.bf16.mxu0 %v4783_v3  ;;  %v640_v3 = vld [vmem:[%s5266_s10 + $0x8a8] sm:$0xff] }
 0x140   : > { %3835 = vmatpush1.bf16.msra.mxu1 %v5022_v2  ;;  %v392_v2 = vld [vmem:[%s5266_s10 + $0xe8] sm:$0xff] }
 0x141   : > { %3836 = vmatprep.subr.bf16.mxu1 %v5039_v4  ;;  %v648_v4 = vld [vmem:[%s5266_s10 + $0x8e8] sm:$0xff]  ;;  %v4657_v7 = vcombine.high %v384_v1, %v392_v2  ;;  %v4656_v13 = vcombine.low %v384_v1, %v392_v2 }
 0x142   : > { %3796 = vmatpush1.bf16.msra.mxu0 %v4782_v9  ;;  %v4913_v8 = vcombine.high %v640_v3, %v648_v4  ;;  %v400_v9 = vld [vmem:[%s5266_s10 + $0x128] sm:$0xff]  ;;  %v4912_v14 = vcombine.low %v640_v3, %v648_v4 }
 0x143   : > { %3797 = vmatprep.subr.bf16.mxu0 %v4799_v11  ;;  %v656_v11 = vld [vmem:[%s5266_s10 + $0x928] sm:$0xff] }
 0x144   : > { %3837 = vmatpush1.bf16.msra.mxu1 %v5038_v10  ;;  %v408_v10 = vld [vmem:[%s5266_s10 + $0x168] sm:$0xff] }
 0x145   : > { %3838 = vmatprep.subr.bf16.mxu1 %v5055_v12  ;;  %v664_v12 = vld [vmem:[%s5266_s10 + $0x968] sm:$0xff]  ;;  %v4673_v15 = vcombine.high %v400_v9, %v408_v10  ;;  %v4672_v23 = vcombine.low %v400_v9, %v408_v10 }
 0x146   : > { %3798 = vmatpush1.bf16.msra.mxu0 %v4798_v18  ;;  %v4929_v16 = vcombine.high %v656_v11, %v664_v12  ;;  %v416_v18 = vld [vmem:[%s5266_s10 + $0x1a8] sm:$0xff]  ;;  %v4928_v24 = vcombine.low %v656_v11, %v664_v12 }
 0x147   : > { %3799 = vmatprep.subr.bf16.mxu0 %v4815_v21  ;;  %v672_v21 = vld [vmem:[%s5266_s10 + $0x9a8] sm:$0xff] }
 0x148   : > { %3839 = vmatpush1.bf16.msra.mxu1 %v5054_v19  ;;  %v424_v19 = vld [vmem:[%s5266_s10 + $0x1e8] sm:$0xff] }
 0x149   : > { %3840 = vmatprep.subr.bf16.mxu1 %v5071_v22  ;;  %v680_v22 = vld [vmem:[%s5266_s10 + $0x9e8] sm:$0xff]  ;;  %v4689_v25 = vcombine.high %v416_v18, %v424_v19  ;;  %v4688_v29 = vcombine.low %v416_v18, %v424_v19 }
 0x14a   : > { %3800 = vmatpush1.bf16.msra.mxu0 %v4814_v26  ;;  %v4945_v54 = vcombine.high %v672_v21, %v680_v22  ;;  %v432_v26 = vld [vmem:[%s5266_s10 + $0x228] sm:$0xff]  ;;  %v4944_v30 = vcombine.low %v672_v21, %v680_v22 }
 0x14b   : > { %3801 = vmatprep.subr.bf16.mxu0 %v4831_v55  ;;  %v688_v55 = vld [vmem:[%s5266_s10 + $0xa28] sm:$0xff] }
 0x14c   : > { %3841 = vmatpush1.bf16.msra.mxu1 %v5070_v27  ;;  %v440_v27 = vld [vmem:[%s5266_s10 + $0x268] sm:$0xff] }
 0x14d   : > { %3842 = vmatprep.subr.bf16.mxu1 %v5087_v28  ;;  %v696_v28 = vld [vmem:[%s5266_s10 + $0xa68] sm:$0xff]  ;;  %v4705_v31 = vcombine.high %v432_v26, %v440_v27  ;;  %v4704_v37 = vcombine.low %v432_v26, %v440_v27 }
 0x14e   : > { %3802 = vmatpush1.bf16.msra.mxu0 %v4830_v33  ;;  %v4961_v32 = vcombine.high %v688_v55, %v696_v28  ;;  %v448_v33 = vld [vmem:[%s5266_s10 + $0x2a8] sm:$0xff]  ;;  %v4960_v38 = vcombine.low %v688_v55, %v696_v28 }
 0x14f   : > { %3803 = vmatprep.subr.bf16.mxu0 %v4847_v35  ;;  %v704_v35 = vld [vmem:[%s5266_s10 + $0xaa8] sm:$0xff] }
 0x150   : > { %3843 = vmatpush1.bf16.msra.mxu1 %v5086_v34  ;;  %v456_v34 = vld [vmem:[%s5266_s10 + $0x2e8] sm:$0xff] }
 0x151   : > { %3844 = vmatprep.subr.bf16.mxu1 %v5103_v36  ;;  %v712_v36 = vld [vmem:[%s5266_s10 + $0xae8] sm:$0xff]  ;;  %v4721_v39 = vcombine.high %v448_v33, %v456_v34  ;;  %v4720_v45 = vcombine.low %v448_v33, %v456_v34 }
 0x152   : > { %3804 = vmatpush1.bf16.msra.mxu0 %v4846_v41  ;;  %v4977_v40 = vcombine.high %v704_v35, %v712_v36  ;;  %v464_v41 = vld [vmem:[%s5266_s10 + $0x328] sm:$0xff]  ;;  %v4976_v46 = vcombine.low %v704_v35, %v712_v36 }
 0x153   : > { %3805 = vmatprep.subr.bf16.mxu0 %v4863_v43  ;;  %v720_v43 = vld [vmem:[%s5266_s10 + $0xb28] sm:$0xff] }
 0x154   : > { %3845 = vmatpush1.bf16.msra.mxu1 %v5102_v42  ;;  %v472_v42 = vld [vmem:[%s5266_s10 + $0x368] sm:$0xff] }
 0x155   : > { %3846 = vmatprep.subr.bf16.mxu1 %v5119_v44  ;;  %v728_v44 = vld [vmem:[%s5266_s10 + $0xb68] sm:$0xff]  ;;  %v4737_v47 = vcombine.high %v464_v41, %v472_v42  ;;  %v4736_v1 = vcombine.low %v464_v41, %v472_v42 }
 0x156   : > { %3806 = vmatpush1.bf16.msra.mxu0 %v4862_v49  ;;  %v4993_v49 = vcombine.high %v720_v43, %v728_v44  ;;  %v736_v57 = vld [vmem:[%s5266_s10 + $0xba8] sm:$0xff] }
 0x157   : > { %3807 = vmatprep.subr.bf16.mxu0 %v4879_v51  ;;  %v488_v51 = vld [vmem:[%s5266_s10 + $0x3e8] sm:$0xff] }
 0x158   : > { %3847 = vmatpush1.bf16.msra.mxu1 %v5118_v50  ;;  %v480_v50 = vld [vmem:[%s5266_s10 + $0x3a8] sm:$0xff] }
 0x159   : > { %3848 = vmatprep.subr.bf16.mxu1 %v5135_v52  ;;  %v347_v52 = vld [vmem:[#allocation2 + $0x10] sm:$0xff]  ;;  %v744_v58 = vld [vmem:[%s5266_s10 + $0xbe8] sm:$0xff] }
 0x15a   : > { %3808 = vmatpush1.bf16.msra.mxu0 %v4878_v61  ;;  %v5009_v9 = vcombine.high %v736_v57, %v744_v58  ;;  %v496_v10 = vld [vmem:[%s5266_s10 + $0x428] sm:$0xff] }
 0x15b   : > { %3859 = vmatprep.subr.bf16.mxu0 %v4641_v63  ;;  %v504_v11 = vld [vmem:[%s5266_s10 + $0x468] sm:$0xff] }
 0x15c   : > { %3849 = vmatpush1.bf16.msra.mxu1 %v5134_v62  ;;  %v348_v62 = vld [vmem:[#allocation2 + $0x18] sm:$0xff]  ;;  %v4769_v18 = vcombine.high %v496_v10, %v504_v11  ;;  %v512_v21 = vld [vmem:[%s5266_s10 + $0x4a8] sm:$0xff] }
 0x15d   : > { %3900 = vmatprep.subr.bf16.mxu1 %v4897_v0  ;;  %3810 = vmatmul.mubr.bf16.vlgmr.msra.gmra.mrb[16].mxu0 %v5357_v17  ;;  %v520_v22 = vld [vmem:[%s5266_s10 + $0x4e8] sm:$0xff] }
 0x15e   : > { %3860 = vmatpush1.bf16.msra.mxu0 %v4640_v5  ;;  %3891 = vmatprep.mubr.bf16.mxu0 %v5307_v59  ;;  %v4992_v5 = vcombine.low %v720_v43, %v728_v44  ;;  %v4785_v26 = vcombine.high %v512_v21, %v520_v22  ;;  %v528_v55 = vld [vmem:[%s5266_s10 + $0x528] sm:$0xff] }
 0x15f   : > { %3851 = vmatmul.mubr.bf16.vlgmr.msra.gmra.mrb[16].mxu1 %v5363_v20  ;;  %3861 = vmatprep.subr.bf16.mxu0 %v4657_v7  ;;  %v536_v28 = vld [vmem:[%s5266_s10 + $0x568] sm:$0xff] }
 0x160   : > { %3901 = vmatpush1.bf16.msra.mxu1 %v4896_v6  ;;  %3932 = vmatprep.mubr.bf16.mxu1 %v5311_v60  ;;  %v4753_v6 = vcombine.high %v480_v50, %v488_v51  ;;  %v4801_v33 = vcombine.high %v528_v55, %v536_v28  ;;  %v544_v35 = vld [vmem:[%s5266_s10 + $0x5a8] sm:$0xff] }
 0x161   : > { %3902 = vmatprep.subr.bf16.mxu1 %v4913_v8  ;;  %v552_v36 = vld [vmem:[%s5266_s10 + $0x5e8] sm:$0xff] }
 0x162   : > { %3862 = vmatpush1.bf16.msra.mxu0 %v4656_v13  ;;  %v752_v13 = vld [vmem:[%s5266_s10 + $0xc28] sm:$0xff]  ;;  %v4817_v41 = vcombine.high %v544_v35, %v552_v36 }
 0x163   : > { %3863 = vmatprep.subr.bf16.mxu0 %v4673_v15  ;;  %v4752_v15 = vcombine.low %v480_v50, %v488_v51  ;;  %v560_v43 = vld [vmem:[%s5266_s10 + $0x628] sm:$0xff] }
 0x164   : > { %3903 = vmatpush1.bf16.msra.mxu1 %v4912_v14  ;;  %v760_v14 = vld [vmem:[%s5266_s10 + $0xc68] sm:$0xff] }
 0x165   : > { %3904 = vmatprep.subr.bf16.mxu1 %v4929_v16  ;;  %v5008_v16 = vcombine.low %v736_v57, %v744_v58  ;;  %v5025_v19 = vcombine.high %v752_v13, %v760_v14  ;;  %v568_v44 = vld [vmem:[%s5266_s10 + $0x668] sm:$0xff] }
 0x166   : > { %3864 = vmatpush1.bf16.msra.mxu0 %v4672_v23  ;;  %v768_v23 = vld [vmem:[%s5266_s10 + $0xca8] sm:$0xff]  ;;  %v4832_v57 = vcombine.low %v560_v43, %v568_v44 }
 0x167   : > { %3865 = vmatprep.subr.bf16.mxu0 %v4689_v25  ;;  %v4768_v25 = vcombine.low %v496_v10, %v504_v11  ;;  %v576_v51 = vld [vmem:[%s5266_s10 + $0x6a8] sm:$0xff] }
 0x168   : > { %3905 = vmatpush1.bf16.msra.mxu1 %v4928_v24  ;;  %v776_v24 = vld [vmem:[%s5266_s10 + $0xce8] sm:$0xff] }
 0x169   : > { %3906 = vmatprep.subr.bf16.mxu1 %v4945_v54  ;;  %v5024_v54 = vcombine.low %v752_v13, %v760_v14  ;;  %v5041_v27 = vcombine.high %v768_v23, %v776_v24  ;;  %v872_v10 = vld [vmem:[%s5266_s10 + $0xfe8] sm:$0xff] }
 0x16a   : > { %3866 = vmatpush1.bf16.msra.mxu0 %v4688_v29  ;;  %v784_v29 = vld [vmem:[%s5266_s10 + $0xd28] sm:$0xff] }
 0x16b   : > { %3867 = vmatprep.subr.bf16.mxu0 %v4705_v31  ;;  %v4784_v31 = vcombine.low %v512_v21, %v520_v22 }
 0x16c   : > { %3907 = vmatpush1.bf16.msra.mxu1 %v4944_v30  ;;  %v792_v30 = vld [vmem:[%s5266_s10 + $0xd68] sm:$0xff] }
 0x16d   : > { %3908 = vmatprep.subr.bf16.mxu1 %v4961_v32  ;;  %v5040_v32 = vcombine.low %v768_v23, %v776_v24  ;;  %v5057_v34 = vcombine.high %v784_v29, %v792_v30 }
 0x16e   : > { %3868 = vmatpush1.bf16.msra.mxu0 %v4704_v37  ;;  %v800_v37 = vld [vmem:[%s5266_s10 + $0xda8] sm:$0xff] }
 0x16f   : > { %3869 = vmatprep.subr.bf16.mxu0 %v4721_v39  ;;  %v4800_v39 = vcombine.low %v528_v55, %v536_v28 }
 0x170   : > { %3909 = vmatpush1.bf16.msra.mxu1 %v4960_v38  ;;  %v3565_v48 = vpop.f32.mrb[4].mxu0  ;;  %v808_v38 = vld [vmem:[%s5266_s10 + $0xde8] sm:$0xff] }
 0x171   : > { %3910 = vmatprep.subr.bf16.mxu1 %v4977_v40  ;;  %v3567_v56 = vpop.f32.mrb[5].mxu0  ;;  %v5056_v40 = vcombine.low %v784_v29, %v792_v30  ;;  %v5073_v42 = vcombine.high %v800_v37, %v808_v38 }
 0x172   : > { %v3606_v53 = vpop.f32.mrb[4].mxu1  ;;  %v3569_v0 = vpop.f32.mrb[6].mxu0  ;;  %3870 = vmatpush1.bf16.msra.mxu0 %v4720_v45  ;;  %v816_v45 = vld [vmem:[%s5266_s10 + $0xe28] sm:$0xff] }
 0x173   : > { %v3607_v61 = vadd.f32 %v3606_v53, %v3565_v48  ;;  %v3608_v63 = vpop.f32.mrb[5].mxu1  ;;  %v3570_v4 = vpop.f32.mrb[7].mxu0  ;;  %3871 = vmatprep.subr.bf16.mxu0 %v4737_v47  ;;  %v4816_v47 = vcombine.low %v544_v35, %v552_v36  ;;  %v5072_v48 = vcombine.low %v800_v37, %v808_v38  ;;  %v832_v53 = vld [vmem:[%s5266_s10 + $0xea8] sm:$0xff] }
 0x174   : > { %v3609_v2 = vadd.f32 %v3608_v63, %v3567_v56  ;;  %v3610_v3 = vpop.f32.mrb[6].mxu1  ;;  %3911 = vmatpush1.bf16.msra.mxu1 %v4976_v46  ;;  %v824_v46 = vld [vmem:[%s5266_s10 + $0xe68] sm:$0xff] }
 0x175   : > { %v4107_v7 = vadd.f32 %v3607_v61, %v347_v52  ;;  %v3611_v8 = vpop.f32.mrb[7].mxu1  ;;  %3912 = vmatprep.subr.bf16.mxu1 %v4993_v49  ;;  %v4833_v49 = vcombine.high %v560_v43, %v568_v44  ;;  %v5089_v50 = vcombine.high %v816_v45, %v824_v46  ;;  %v584_v52 = vld [vmem:[%s5266_s10 + $0x6e8] sm:$0xff]  ;;  %v5088_v58 = vcombine.low %v816_v45, %v824_v46 }
 0x176   : > { %v4108_v12 = vadd.f32 %v3609_v2, %v348_v62  ;;  %3872 = vmatpush1.bf16.msra.mxu0 %v4736_v1  ;;  %v840_v56 = vld [vmem:[%s5266_s10 + $0xee8] sm:$0xff]  ;;  %v4849_v61 = vcombine.high %v576_v51, %v584_v52  ;;  %v4848_v3 = vcombine.low %v576_v51, %v584_v52 }
 0x177   : > { %4123 = vst [vmem:[#allocation2 + $0x10] sm:$0xff] %v4107_v7  ;;  %3873 = vmatprep.subr.bf16.mxu0 %v4753_v6  ;;  %v5105_v62 = vcombine.high %v832_v53, %v840_v56  ;;  %v592_v63 = vld [vmem:[%s5266_s10 + $0x728] sm:$0xff]  ;;  %v5104_v4 = vcombine.low %v832_v53, %v840_v56 }
 0x178   : > { %4124 = vst [vmem:[#allocation2 + $0x18] sm:$0xff] %v4108_v12  ;;  %3913 = vmatpush1.bf16.msra.mxu1 %v4992_v5  ;;  %v600_v0 = vld [vmem:[%s5266_s10 + $0x768] sm:$0xff] }
 0x179   : > { %3914 = vmatprep.subr.bf16.mxu1 %v5009_v9  ;;  %v848_v1 = vld [vmem:[%s5266_s10 + $0xf28] sm:$0xff]  ;;  %v4865_v5 = vcombine.high %v592_v63, %v600_v0  ;;  %v4864_v11 = vcombine.low %v592_v63, %v600_v0 }
 0x17a   : > { %3874 = vmatpush1.bf16.msra.mxu0 %v4752_v15  ;;  %v856_v2 = vld [vmem:[%s5266_s10 + $0xf68] sm:$0xff]  ;;  %v369_v15 = vld [vmem:[%s5266_s10 + $0x30] sm:$0xff] }
 0x17b   : > { %3875 = vmatprep.subr.bf16.mxu0 %v4769_v18  ;;  %v5121_v6 = vcombine.high %v848_v1, %v856_v2  ;;  %v608_v7 = vld [vmem:[%s5266_s10 + $0x7a8] sm:$0xff]  ;;  %v5120_v12 = vcombine.low %v848_v1, %v856_v2  ;;  %v625_v18 = vld [vmem:[%s5266_s10 + $0x830] sm:$0xff] }
 0x17c   : > { %3915 = vmatpush1.bf16.msra.mxu1 %v5008_v16  ;;  %v616_v8 = vld [vmem:[%s5266_s10 + $0x7e8] sm:$0xff]  ;;  %v377_v16 = vld [vmem:[%s5266_s10 + $0x70] sm:$0xff] }
 0x17d   : > { %3916 = vmatprep.subr.bf16.mxu1 %v5025_v19  ;;  %v864_v9 = vld [vmem:[%s5266_s10 + $0xfa8] sm:$0xff]  ;;  %v4881_v13 = vcombine.high %v608_v7, %v616_v8  ;;  %v633_v19 = vld [vmem:[%s5266_s10 + $0x870] sm:$0xff]  ;;  %v4880_v21 = vcombine.low %v608_v7, %v616_v8  ;;  %v4643_v23 = vcombine.high %v369_v15, %v377_v16  ;;  %v4642_v55 = vcombine.low %v369_v15, %v377_v16 }
 0x17e   : > { %3876 = vmatpush1.bf16.msra.mxu0 %v4768_v25  ;;  %v5137_v14 = vcombine.high %v864_v9, %v872_v10  ;;  %v5136_v22 = vcombine.low %v864_v9, %v872_v10  ;;  %v4899_v24 = vcombine.high %v625_v18, %v633_v19  ;;  %v385_v25 = vld [vmem:[%s5266_s10 + $0xb0] sm:$0xff]  ;;  %v4898_v28 = vcombine.low %v625_v18, %v633_v19 }
 0x17f   : > { %3877 = vmatprep.subr.bf16.mxu0 %v4785_v26  ;;  %v641_v26 = vld [vmem:[%s5266_s10 + $0x8b0] sm:$0xff] }
 0x180   : > { %3917 = vmatpush1.bf16.msra.mxu1 %v5024_v54  ;;  %v393_v54 = vld [vmem:[%s5266_s10 + $0xf0] sm:$0xff] }
 0x181   : > { %3918 = vmatprep.subr.bf16.mxu1 %v5041_v27  ;;  %v649_v27 = vld [vmem:[%s5266_s10 + $0x8f0] sm:$0xff]  ;;  %v4659_v29 = vcombine.high %v385_v25, %v393_v54  ;;  %v4658_v35 = vcombine.low %v385_v25, %v393_v54 }
 0x182   : > { %3878 = vmatpush1.bf16.msra.mxu0 %v4784_v31  ;;  %v4915_v30 = vcombine.high %v641_v26, %v649_v27  ;;  %v401_v31 = vld [vmem:[%s5266_s10 + $0x130] sm:$0xff]  ;;  %v4914_v36 = vcombine.low %v641_v26, %v649_v27 }
 0x183   : > { %3879 = vmatprep.subr.bf16.mxu0 %v4801_v33  ;;  %v657_v33 = vld [vmem:[%s5266_s10 + $0x930] sm:$0xff] }
 0x184   : > { %3919 = vmatpush1.bf16.msra.mxu1 %v5040_v32  ;;  %v409_v32 = vld [vmem:[%s5266_s10 + $0x170] sm:$0xff] }
 0x185   : > { %3920 = vmatprep.subr.bf16.mxu1 %v5057_v34  ;;  %v665_v34 = vld [vmem:[%s5266_s10 + $0x970] sm:$0xff]  ;;  %v4675_v37 = vcombine.high %v401_v31, %v409_v32  ;;  %v4674_v43 = vcombine.low %v401_v31, %v409_v32 }
 0x186   : > { %3880 = vmatpush1.bf16.msra.mxu0 %v4800_v39  ;;  %v4931_v38 = vcombine.high %v657_v33, %v665_v34  ;;  %v417_v39 = vld [vmem:[%s5266_s10 + $0x1b0] sm:$0xff]  ;;  %v4930_v44 = vcombine.low %v657_v33, %v665_v34 }
 0x187   : > { %3881 = vmatprep.subr.bf16.mxu0 %v4817_v41  ;;  %v673_v41 = vld [vmem:[%s5266_s10 + $0x9b0] sm:$0xff] }
 0x188   : > { %3921 = vmatpush1.bf16.msra.mxu1 %v5056_v40  ;;  %v425_v40 = vld [vmem:[%s5266_s10 + $0x1f0] sm:$0xff] }
 0x189   : > { %3922 = vmatprep.subr.bf16.mxu1 %v5073_v42  ;;  %v681_v42 = vld [vmem:[%s5266_s10 + $0x9f0] sm:$0xff]  ;;  %v4691_v45 = vcombine.high %v417_v39, %v425_v40  ;;  %v4690_v51 = vcombine.low %v417_v39, %v425_v40 }
 0x18a   : > { %3882 = vmatpush1.bf16.msra.mxu0 %v4816_v47  ;;  %v4947_v46 = vcombine.high %v673_v41, %v681_v42  ;;  %v433_v47 = vld [vmem:[%s5266_s10 + $0x230] sm:$0xff]  ;;  %v4946_v52 = vcombine.low %v673_v41, %v681_v42 }
 0x18b   : > { %3883 = vmatprep.subr.bf16.mxu0 %v4833_v49  ;;  %v689_v49 = vld [vmem:[%s5266_s10 + $0xa30] sm:$0xff] }
 0x18c   : > { %3923 = vmatpush1.bf16.msra.mxu1 %v5072_v48  ;;  %v441_v48 = vld [vmem:[%s5266_s10 + $0x270] sm:$0xff] }
 0x18d   : > { %3924 = vmatprep.subr.bf16.mxu1 %v5089_v50  ;;  %v697_v50 = vld [vmem:[%s5266_s10 + $0xa70] sm:$0xff]  ;;  %v4707_v53 = vcombine.high %v433_v47, %v441_v48  ;;  %v4706_v63 = vcombine.low %v433_v47, %v441_v48 }
 0x18e   : > { %3884 = vmatpush1.bf16.msra.mxu0 %v4832_v57  ;;  %v4963_v56 = vcombine.high %v689_v49, %v697_v50  ;;  %v449_v57 = vld [vmem:[%s5266_s10 + $0x2b0] sm:$0xff]  ;;  %v4962_v0 = vcombine.low %v689_v49, %v697_v50 }
 0x18f   : > { %3885 = vmatprep.subr.bf16.mxu0 %v4849_v61  ;;  %v705_v61 = vld [vmem:[%s5266_s10 + $0xab0] sm:$0xff] }
 0x190   : > { %3925 = vmatpush1.bf16.msra.mxu1 %v5088_v58  ;;  %v457_v58 = vld [vmem:[%s5266_s10 + $0x2f0] sm:$0xff] }
 0x191   : > { %3926 = vmatprep.subr.bf16.mxu1 %v5105_v62  ;;  %v713_v62 = vld [vmem:[%s5266_s10 + $0xaf0] sm:$0xff]  ;;  %v4723_v1 = vcombine.high %v449_v57, %v457_v58  ;;  %v4722_v7 = vcombine.low %v449_v57, %v457_v58 }
 0x192   : > { %3886 = vmatpush1.bf16.msra.mxu0 %v4848_v3  ;;  %v4979_v2 = vcombine.high %v705_v61, %v713_v62  ;;  %v465_v3 = vld [vmem:[%s5266_s10 + $0x330] sm:$0xff]  ;;  %v4978_v8 = vcombine.low %v705_v61, %v713_v62 }
 0x193   : > { %3887 = vmatprep.subr.bf16.mxu0 %v4865_v5  ;;  %v721_v5 = vld [vmem:[%s5266_s10 + $0xb30] sm:$0xff] }
 0x194   : > { %3927 = vmatpush1.bf16.msra.mxu1 %v5104_v4  ;;  %v473_v4 = vld [vmem:[%s5266_s10 + $0x370] sm:$0xff] }
 0x195   : > { %3928 = vmatprep.subr.bf16.mxu1 %v5121_v6  ;;  %v729_v6 = vld [vmem:[%s5266_s10 + $0xb70] sm:$0xff]  ;;  %v4739_v9 = vcombine.high %v465_v3, %v473_v4  ;;  %v4738_v25 = vcombine.low %v465_v3, %v473_v4 }
 0x196   : > { %3888 = vmatpush1.bf16.msra.mxu0 %v4864_v11  ;;  %v4995_v11 = vcombine.high %v721_v5, %v729_v6  ;;  %v737_v18 = vld [vmem:[%s5266_s10 + $0xbb0] sm:$0xff] }
 0x197   : > { %3889 = vmatprep.subr.bf16.mxu0 %v4881_v13  ;;  %v489_v13 = vld [vmem:[%s5266_s10 + $0x3f0] sm:$0xff] }
 0x198   : > { %3929 = vmatpush1.bf16.msra.mxu1 %v5120_v12  ;;  %v481_v12 = vld [vmem:[%s5266_s10 + $0x3b0] sm:$0xff] }
 0x199   : > { %3930 = vmatprep.subr.bf16.mxu1 %v5137_v14  ;;  %v349_v14 = vld [vmem:[#allocation2 + $0x20] sm:$0xff]  ;;  %v745_v19 = vld [vmem:[%s5266_s10 + $0xbf0] sm:$0xff] }
 0x19a   : > { %3890 = vmatpush1.bf16.msra.mxu0 %v4880_v21  ;;  %v5011_v31 = vcombine.high %v737_v18, %v745_v19  ;;  %v497_v32 = vld [vmem:[%s5266_s10 + $0x430] sm:$0xff] }
 0x19b   : > { %3941 = vmatprep.subr.bf16.mxu0 %v4643_v23  ;;  %v505_v33 = vld [vmem:[%s5266_s10 + $0x470] sm:$0xff] }
 0x19c   : > { %3931 = vmatpush1.bf16.msra.mxu1 %v5136_v22  ;;  %v350_v22 = vld [vmem:[#allocation2 + $0x28] sm:$0xff]  ;;  %v4771_v39 = vcombine.high %v497_v32, %v505_v33  ;;  %v513_v41 = vld [vmem:[%s5266_s10 + $0x4b0] sm:$0xff] }
 0x19d   : > { %3982 = vmatprep.subr.bf16.mxu1 %v4899_v24  ;;  %3892 = vmatmul.mubr.bf16.vlgmr.msra.gmra.mrb[20].mxu0 %v5357_v17  ;;  %v521_v42 = vld [vmem:[%s5266_s10 + $0x4f0] sm:$0xff] }
 0x19e   : > { %3942 = vmatpush1.bf16.msra.mxu0 %v4642_v55  ;;  %3973 = vmatprep.mubr.bf16.mxu0 %v5307_v59  ;;  %v4994_v55 = vcombine.low %v721_v5, %v729_v6  ;;  %v4787_v47 = vcombine.high %v513_v41, %v521_v42  ;;  %v529_v49 = vld [vmem:[%s5266_s10 + $0x530] sm:$0xff] }
 0x19f   : > { %3933 = vmatmul.mubr.bf16.vlgmr.msra.gmra.mrb[20].mxu1 %v5363_v20  ;;  %3943 = vmatprep.subr.bf16.mxu0 %v4659_v29  ;;  %v537_v50 = vld [vmem:[%s5266_s10 + $0x570] sm:$0xff] }
 0x1a0   : > { %3983 = vmatpush1.bf16.msra.mxu1 %v4898_v28  ;;  %4014 = vmatprep.mubr.bf16.mxu1 %v5311_v60  ;;  %v4755_v28 = vcombine.high %v481_v12, %v489_v13  ;;  %v4803_v57 = vcombine.high %v529_v49, %v537_v50  ;;  %v545_v61 = vld [vmem:[%s5266_s10 + $0x5b0] sm:$0xff] }
 0x1a1   : > { %3984 = vmatprep.subr.bf16.mxu1 %v4915_v30  ;;  %v553_v62 = vld [vmem:[%s5266_s10 + $0x5f0] sm:$0xff] }
 0x1a2   : > { %3944 = vmatpush1.bf16.msra.mxu0 %v4658_v35  ;;  %v753_v35 = vld [vmem:[%s5266_s10 + $0xc30] sm:$0xff]  ;;  %v4819_v3 = vcombine.high %v545_v61, %v553_v62 }
 0x1a3   : > { %3945 = vmatprep.subr.bf16.mxu0 %v4675_v37  ;;  %v4754_v37 = vcombine.low %v481_v12, %v489_v13  ;;  %v561_v5 = vld [vmem:[%s5266_s10 + $0x630] sm:$0xff] }
 0x1a4   : > { %3985 = vmatpush1.bf16.msra.mxu1 %v4914_v36  ;;  %v761_v36 = vld [vmem:[%s5266_s10 + $0xc70] sm:$0xff] }
 0x1a5   : > { %3986 = vmatprep.subr.bf16.mxu1 %v4931_v38  ;;  %v5010_v38 = vcombine.low %v737_v18, %v745_v19  ;;  %v5027_v40 = vcombine.high %v753_v35, %v761_v36  ;;  %v569_v6 = vld [vmem:[%s5266_s10 + $0x670] sm:$0xff] }
 0x1a6   : > { %3946 = vmatpush1.bf16.msra.mxu0 %v4674_v43  ;;  %v769_v43 = vld [vmem:[%s5266_s10 + $0xcb0] sm:$0xff]  ;;  %v4834_v18 = vcombine.low %v561_v5, %v569_v6 }
 0x1a7   : > { %3947 = vmatprep.subr.bf16.mxu0 %v4691_v45  ;;  %v4770_v45 = vcombine.low %v497_v32, %v505_v33  ;;  %v577_v13 = vld [vmem:[%s5266_s10 + $0x6b0] sm:$0xff] }
 0x1a8   : > { %3987 = vmatpush1.bf16.msra.mxu1 %v4930_v44  ;;  %v777_v44 = vld [vmem:[%s5266_s10 + $0xcf0] sm:$0xff] }
 0x1a9   : > { %3988 = vmatprep.subr.bf16.mxu1 %v4947_v46  ;;  %v5026_v46 = vcombine.low %v753_v35, %v761_v36  ;;  %v5043_v48 = vcombine.high %v769_v43, %v777_v44  ;;  %v873_v32 = vld [vmem:[%s5266_s10 + $0xff0] sm:$0xff] }
 0x1aa   : > { %3948 = vmatpush1.bf16.msra.mxu0 %v4690_v51  ;;  %v785_v51 = vld [vmem:[%s5266_s10 + $0xd30] sm:$0xff] }
 0x1ab   : > { %3949 = vmatprep.subr.bf16.mxu0 %v4707_v53  ;;  %v4786_v53 = vcombine.low %v513_v41, %v521_v42 }
 0x1ac   : > { %3989 = vmatpush1.bf16.msra.mxu1 %v4946_v52  ;;  %v793_v52 = vld [vmem:[%s5266_s10 + $0xd70] sm:$0xff] }
 0x1ad   : > { %3990 = vmatprep.subr.bf16.mxu1 %v4963_v56  ;;  %v5042_v56 = vcombine.low %v769_v43, %v777_v44  ;;  %v5059_v58 = vcombine.high %v785_v51, %v793_v52 }
 0x1ae   : > { %3950 = vmatpush1.bf16.msra.mxu0 %v4706_v63  ;;  %v801_v63 = vld [vmem:[%s5266_s10 + $0xdb0] sm:$0xff] }
 0x1af   : > { %3951 = vmatprep.subr.bf16.mxu0 %v4723_v1  ;;  %v4802_v1 = vcombine.low %v529_v49, %v537_v50 }
 0x1b0   : > { %3991 = vmatpush1.bf16.msra.mxu1 %v4962_v0  ;;  %v3647_v10 = vpop.f32.mrb[8].mxu0  ;;  %v809_v0 = vld [vmem:[%s5266_s10 + $0xdf0] sm:$0xff] }
 0x1b1   : > { %3992 = vmatprep.subr.bf16.mxu1 %v4979_v2  ;;  %v3649_v16 = vpop.f32.mrb[9].mxu0  ;;  %v5058_v2 = vcombine.low %v785_v51, %v793_v52  ;;  %v5075_v4 = vcombine.high %v801_v63, %v809_v0 }
 0x1b2   : > { %v3688_v15 = vpop.f32.mrb[8].mxu1  ;;  %v3651_v24 = vpop.f32.mrb[10].mxu0  ;;  %3952 = vmatpush1.bf16.msra.mxu0 %v4722_v7  ;;  %v817_v7 = vld [vmem:[%s5266_s10 + $0xe30] sm:$0xff] }
 0x1b3   : > { %v3689_v21 = vadd.f32 %v3688_v15, %v3647_v10  ;;  %v3690_v23 = vpop.f32.mrb[9].mxu1  ;;  %v3652_v27 = vpop.f32.mrb[11].mxu0  ;;  %3953 = vmatprep.subr.bf16.mxu0 %v4739_v9  ;;  %v4818_v9 = vcombine.low %v545_v61, %v553_v62  ;;  %v5074_v10 = vcombine.low %v801_v63, %v809_v0  ;;  %v833_v15 = vld [vmem:[%s5266_s10 + $0xeb0] sm:$0xff] }
 0x1b4   : > { %v3691_v54 = vadd.f32 %v3690_v23, %v3649_v16  ;;  %v3692_v26 = vpop.f32.mrb[10].mxu1  ;;  %3993 = vmatpush1.bf16.msra.mxu1 %v4978_v8  ;;  %v825_v8 = vld [vmem:[%s5266_s10 + $0xe70] sm:$0xff] }
 0x1b5   : > { %v4109_v29 = vadd.f32 %v3689_v21, %v349_v14  ;;  %v3693_v30 = vpop.f32.mrb[11].mxu1  ;;  %3994 = vmatprep.subr.bf16.mxu1 %v4995_v11  ;;  %v4835_v11 = vcombine.high %v561_v5, %v569_v6  ;;  %v5091_v12 = vcombine.high %v817_v7, %v825_v8  ;;  %v585_v14 = vld [vmem:[%s5266_s10 + $0x6f0] sm:$0xff]  ;;  %v5090_v19 = vcombine.low %v817_v7, %v825_v8 }
 0x1b6   : > { %v4110_v34 = vadd.f32 %v3691_v54, %v350_v22  ;;  %3954 = vmatpush1.bf16.msra.mxu0 %v4738_v25  ;;  %v841_v16 = vld [vmem:[%s5266_s10 + $0xef0] sm:$0xff]  ;;  %v4851_v21 = vcombine.high %v577_v13, %v585_v14  ;;  %v4850_v26 = vcombine.low %v577_v13, %v585_v14 }
 0x1b7   : > { %4125 = vst [vmem:[#allocation2 + $0x20] sm:$0xff] %v4109_v29  ;;  %3955 = vmatprep.subr.bf16.mxu0 %v4755_v28  ;;  %v5107_v22 = vcombine.high %v833_v15, %v841_v16  ;;  %v593_v23 = vld [vmem:[%s5266_s10 + $0x730] sm:$0xff]  ;;  %v5106_v27 = vcombine.low %v833_v15, %v841_v16  ;;  %v450_v15 = vld [vmem:[%s5266_s10 + $0x2b8] sm:$0xff] }
 0x1b8   : > { %4126 = vst [vmem:[#allocation2 + $0x28] sm:$0xff] %v4110_v34  ;;  %3995 = vmatpush1.bf16.msra.mxu1 %v4994_v55  ;;  %v601_v24 = vld [vmem:[%s5266_s10 + $0x770] sm:$0xff]  ;;  %v458_v16 = vld [vmem:[%s5266_s10 + $0x2f8] sm:$0xff] }
 0x1b9   : > { %3996 = vmatprep.subr.bf16.mxu1 %v5011_v31  ;;  %v849_v25 = vld [vmem:[%s5266_s10 + $0xf30] sm:$0xff]  ;;  %v4867_v55 = vcombine.high %v593_v23, %v601_v24  ;;  %v4866_v33 = vcombine.low %v593_v23, %v601_v24  ;;  %v4725_v23 = vcombine.high %v450_v15, %v458_v16 }
 0x1ba   : > { %3956 = vmatpush1.bf16.msra.mxu0 %v4754_v37  ;;  %v857_v54 = vld [vmem:[%s5266_s10 + $0xf70] sm:$0xff]  ;;  %v370_v37 = vld [vmem:[%s5266_s10 + $0x38] sm:$0xff] }
 0x1bb   : > { %3957 = vmatprep.subr.bf16.mxu0 %v4771_v39  ;;  %v5123_v28 = vcombine.high %v849_v25, %v857_v54  ;;  %v609_v29 = vld [vmem:[%s5266_s10 + $0x7b0] sm:$0xff]  ;;  %v5122_v34 = vcombine.low %v849_v25, %v857_v54  ;;  %v626_v39 = vld [vmem:[%s5266_s10 + $0x838] sm:$0xff] }
 0x1bc   : > { %3997 = vmatpush1.bf16.msra.mxu1 %v5010_v38  ;;  %v617_v30 = vld [vmem:[%s5266_s10 + $0x7f0] sm:$0xff]  ;;  %v378_v38 = vld [vmem:[%s5266_s10 + $0x78] sm:$0xff] }
 0x1bd   : > { %3998 = vmatprep.subr.bf16.mxu1 %v5027_v40  ;;  %v865_v31 = vld [vmem:[%s5266_s10 + $0xfb0] sm:$0xff]  ;;  %v4883_v35 = vcombine.high %v609_v29, %v617_v30  ;;  %v634_v40 = vld [vmem:[%s5266_s10 + $0x878] sm:$0xff]  ;;  %v4882_v41 = vcombine.low %v609_v29, %v617_v30  ;;  %v4645_v43 = vcombine.high %v370_v37, %v378_v38  ;;  %v4644_v49 = vcombine.low %v370_v37, %v378_v38 }
 0x1be   : > { %3958 = vmatpush1.bf16.msra.mxu0 %v4770_v45  ;;  %v5139_v36 = vcombine.high %v865_v31, %v873_v32  ;;  %v5138_v42 = vcombine.low %v865_v31, %v873_v32  ;;  %v4901_v44 = vcombine.high %v626_v39, %v634_v40  ;;  %v386_v45 = vld [vmem:[%s5266_s10 + $0xb8] sm:$0xff]  ;;  %v4900_v50 = vcombine.low %v626_v39, %v634_v40 }
 0x1bf   : > { %3959 = vmatprep.subr.bf16.mxu0 %v4787_v47  ;;  %v642_v47 = vld [vmem:[%s5266_s10 + $0x8b8] sm:$0xff] }
 0x1c0   : > { %3999 = vmatpush1.bf16.msra.mxu1 %v5026_v46  ;;  %v394_v46 = vld [vmem:[%s5266_s10 + $0xf8] sm:$0xff] }
 0x1c1   : > { %4000 = vmatprep.subr.bf16.mxu1 %v5043_v48  ;;  %v650_v48 = vld [vmem:[%s5266_s10 + $0x8f8] sm:$0xff]  ;;  %v4661_v51 = vcombine.high %v386_v45, %v394_v46  ;;  %v4660_v61 = vcombine.low %v386_v45, %v394_v46 }
 0x1c2   : > { %3960 = vmatpush1.bf16.msra.mxu0 %v4786_v53  ;;  %v4917_v52 = vcombine.high %v642_v47, %v650_v48  ;;  %v402_v53 = vld [vmem:[%s5266_s10 + $0x138] sm:$0xff]  ;;  %v4916_v62 = vcombine.low %v642_v47, %v650_v48 }
 0x1c3   : > { %3961 = vmatprep.subr.bf16.mxu0 %v4803_v57  ;;  %v658_v57 = vld [vmem:[%s5266_s10 + $0x938] sm:$0xff] }
 0x1c4   : > { %4001 = vmatpush1.bf16.msra.mxu1 %v5042_v56  ;;  %v410_v56 = vld [vmem:[%s5266_s10 + $0x178] sm:$0xff] }
 0x1c5   : > { %4002 = vmatprep.subr.bf16.mxu1 %v5059_v58  ;;  %v666_v58 = vld [vmem:[%s5266_s10 + $0x978] sm:$0xff]  ;;  %v4677_v63 = vcombine.high %v402_v53, %v410_v56  ;;  %v4676_v5 = vcombine.low %v402_v53, %v410_v56 }
 0x1c6   : > { %3962 = vmatpush1.bf16.msra.mxu0 %v4802_v1  ;;  %v4933_v0 = vcombine.high %v658_v57, %v666_v58  ;;  %v418_v1 = vld [vmem:[%s5266_s10 + $0x1b8] sm:$0xff]  ;;  %v4932_v6 = vcombine.low %v658_v57, %v666_v58 }
 0x1c7   : > { %3963 = vmatprep.subr.bf16.mxu0 %v4819_v3  ;;  %v674_v3 = vld [vmem:[%s5266_s10 + $0x9b8] sm:$0xff] }
 0x1c8   : > { %4003 = vmatpush1.bf16.msra.mxu1 %v5058_v2  ;;  %v426_v2 = vld [vmem:[%s5266_s10 + $0x1f8] sm:$0xff] }
 0x1c9   : > { %4004 = vmatprep.subr.bf16.mxu1 %v5075_v4  ;;  %v682_v4 = vld [vmem:[%s5266_s10 + $0x9f8] sm:$0xff]  ;;  %v4693_v7 = vcombine.high %v418_v1, %v426_v2 }
 0x1ca   : > { %3964 = vmatpush1.bf16.msra.mxu0 %v4818_v9  ;;  %v4949_v8 = vcombine.high %v674_v3, %v682_v4  ;;  %v434_v9 = vld [vmem:[%s5266_s10 + $0x238] sm:$0xff] }
 0x1cb   : > { %3965 = vmatprep.subr.bf16.mxu0 %v4835_v11  ;;  %v690_v11 = vld [vmem:[%s5266_s10 + $0xa38] sm:$0xff] }
 0x1cc   : > { %4005 = vmatpush1.bf16.msra.mxu1 %v5074_v10  ;;  %v442_v10 = vld [vmem:[%s5266_s10 + $0x278] sm:$0xff] }
 0x1cd   : > { %4006 = vmatprep.subr.bf16.mxu1 %v5091_v12  ;;  %v4692_v12 = vcombine.low %v418_v1, %v426_v2  ;;  %v4709_v13 = vcombine.high %v434_v9, %v442_v10  ;;  %v466_v25 = vld [vmem:[%s5266_s10 + $0x338] sm:$0xff] }
 0x1ce   : > { %3966 = vmatpush1.bf16.msra.mxu0 %v4834_v18  ;;  %v706_v18 = vld [vmem:[%s5266_s10 + $0xab8] sm:$0xff] }
 0x1cf   : > { %3967 = vmatprep.subr.bf16.mxu0 %v4851_v21  ;;  %v4708_v21 = vcombine.low %v434_v9, %v442_v10  ;;  %v474_v54 = vld [vmem:[%s5266_s10 + $0x378] sm:$0xff] }
 0x1d0   : > { %4007 = vmatpush1.bf16.msra.mxu1 %v5090_v19  ;;  %v714_v19 = vld [vmem:[%s5266_s10 + $0xaf8] sm:$0xff]  ;;  %v4741_v29 = vcombine.high %v466_v25, %v474_v54 }
 0x1d1   : > { %4008 = vmatprep.subr.bf16.mxu1 %v5107_v22  ;;  %v4981_v24 = vcombine.high %v706_v18, %v714_v19  ;;  %v482_v32 = vld [vmem:[%s5266_s10 + $0x3b8] sm:$0xff] }
 0x1d2   : > { %3968 = vmatpush1.bf16.msra.mxu0 %v4850_v26  ;;  %v722_v26 = vld [vmem:[%s5266_s10 + $0xb38] sm:$0xff] }
 0x1d3   : > { %3969 = vmatprep.subr.bf16.mxu0 %v4867_v55  ;;  %v4724_v55 = vcombine.low %v450_v15, %v458_v16  ;;  %v738_v37 = vld [vmem:[%s5266_s10 + $0xbb8] sm:$0xff] }
 0x1d4   : > { %4009 = vmatpush1.bf16.msra.mxu1 %v5106_v27  ;;  %v730_v27 = vld [vmem:[%s5266_s10 + $0xb78] sm:$0xff] }
 0x1d5   : > { %4010 = vmatprep.subr.bf16.mxu1 %v5123_v28  ;;  %v4980_v28 = vcombine.low %v706_v18, %v714_v19  ;;  %v4997_v31 = vcombine.high %v722_v26, %v730_v27  ;;  %v746_v38 = vld [vmem:[%s5266_s10 + $0xbf8] sm:$0xff]  ;;  %v4996_v47 = vcombine.low %v722_v26, %v730_v27 }
 0x1d6   : > { %3970 = vmatpush1.bf16.msra.mxu0 %v4866_v33  ;;  %v490_v33 = vld [vmem:[%s5266_s10 + $0x3f8] sm:$0xff] }
 0x1d7   : > { %3971 = vmatprep.subr.bf16.mxu0 %v4883_v35  ;;  %v352_v40 = vld [vmem:[#allocation2 + $0x38] sm:$0xff]  ;;  %v4757_v48 = vcombine.high %v482_v32, %v490_v33 }
 0x1d8   : > { %4011 = vmatpush1.bf16.msra.mxu1 %v5122_v34  ;;  %v351_v34 = vld [vmem:[#allocation2 + $0x30] sm:$0xff]  ;;  %v506_v53 = vld [vmem:[%s5266_s10 + $0x478] sm:$0xff] }
 0x1d9   : > { %4012 = vmatprep.subr.bf16.mxu1 %v5139_v36  ;;  %v754_v57 = vld [vmem:[%s5266_s10 + $0xc38] sm:$0xff] }
 0x1da   : > { %3972 = vmatpush1.bf16.msra.mxu0 %v4882_v41  ;;  %v762_v58 = vld [vmem:[%s5266_s10 + $0xc78] sm:$0xff] }
 0x1db   : > { %4023 = vmatprep.subr.bf16.mxu0 %v4645_v43  ;;  %v4740_v43 = vcombine.low %v466_v25, %v474_v54  ;;  %v514_v1 = vld [vmem:[%s5266_s10 + $0x4b8] sm:$0xff] }
 0x1dc   : > { %4013 = vmatpush1.bf16.msra.mxu1 %v5138_v42  ;;  %v522_v2 = vld [vmem:[%s5266_s10 + $0x4f8] sm:$0xff] }
 0x1dd   : > { %4064 = vmatprep.subr.bf16.mxu1 %v4901_v44  ;;  %3974 = vmatmul.mubr.bf16.vlgmr.msra.gmra.mrb[24].mxu0 %v5357_v17  ;;  %v530_v9 = vld [vmem:[%s5266_s10 + $0x538] sm:$0xff] }
 0x1de   : > { %4024 = vmatpush1.bf16.msra.mxu0 %v4644_v49  ;;  %4055 = vmatprep.mubr.bf16.mxu0 %v5307_v59  ;;  %v698_v59 = vld [vmem:[%s5266_s10 + $0xa78] sm:$0xff] }
 0x1df   : > { %4015 = vmatmul.mubr.bf16.vlgmr.msra.gmra.mrb[24].mxu1 %v5363_v20  ;;  %4025 = vmatprep.subr.bf16.mxu0 %v4661_v51  ;;  %v4965_v14 = vcombine.high %v690_v11, %v698_v59  ;;  %v4964_v22 = vcombine.low %v690_v11, %v698_v59  ;;  %v5013_v51 = vcombine.high %v738_v37, %v746_v38  ;;  %v538_v10 = vld [vmem:[%s5266_s10 + $0x578] sm:$0xff] }
 0x1e0   : > { %4065 = vmatpush1.bf16.msra.mxu1 %v4900_v50  ;;  %4096 = vmatprep.mubr.bf16.mxu1 %v5311_v60  ;;  %v4948_v60 = vcombine.low %v674_v3, %v682_v4  ;;  %v770_v3 = vld [vmem:[%s5266_s10 + $0xcb8] sm:$0xff] }
 0x1e1   : > { %4066 = vmatprep.subr.bf16.mxu1 %v4917_v52  ;;  %v498_v52 = vld [vmem:[%s5266_s10 + $0x438] sm:$0xff] }
 0x1e2   : > { %4026 = vmatpush1.bf16.msra.mxu0 %v4660_v61  ;;  %v4756_v61 = vcombine.low %v482_v32, %v490_v33  ;;  %v778_v4 = vld [vmem:[%s5266_s10 + $0xcf8] sm:$0xff] }
 0x1e3   : > { %4027 = vmatprep.subr.bf16.mxu0 %v4677_v63  ;;  %v4773_v63 = vcombine.high %v498_v52, %v506_v53  ;;  %v786_v11 = vld [vmem:[%s5266_s10 + $0xd38] sm:$0xff] }
 0x1e4   : > { %4067 = vmatpush1.bf16.msra.mxu1 %v4916_v62  ;;  %v5012_v62 = vcombine.low %v738_v37, %v746_v38  ;;  %v794_v59 = vld [vmem:[%s5266_s10 + $0xd78] sm:$0xff] }
 0x1e5   : > { %4068 = vmatprep.subr.bf16.mxu1 %v4933_v0  ;;  %v5029_v0 = vcombine.high %v754_v57, %v762_v58  ;;  %v546_v15 = vld [vmem:[%s5266_s10 + $0x5b8] sm:$0xff] }
 0x1e6   : > { %4028 = vmatpush1.bf16.msra.mxu0 %v4676_v5  ;;  %v4772_v5 = vcombine.low %v498_v52, %v506_v53  ;;  %v554_v16 = vld [vmem:[%s5266_s10 + $0x5f8] sm:$0xff] }
 0x1e7   : > { %4029 = vmatprep.subr.bf16.mxu0 %v4693_v7  ;;  %v4789_v7 = vcombine.high %v514_v1, %v522_v2  ;;  %v802_v18 = vld [vmem:[%s5266_s10 + $0xdb8] sm:$0xff] }
 0x1e8   : > { %4069 = vmatpush1.bf16.msra.mxu1 %v4932_v6  ;;  %v5028_v6 = vcombine.low %v754_v57, %v762_v58  ;;  %v810_v19 = vld [vmem:[%s5266_s10 + $0xdf8] sm:$0xff] }
 0x1e9   : > { %4070 = vmatprep.subr.bf16.mxu1 %v4949_v8  ;;  %v5045_v8 = vcombine.high %v770_v3, %v778_v4  ;;  %v562_v25 = vld [vmem:[%s5266_s10 + $0x638] sm:$0xff] }
 0x1ea   : > { %4030 = vmatpush1.bf16.msra.mxu0 %v4692_v12  ;;  %v4788_v12 = vcombine.low %v514_v1, %v522_v2  ;;  %v570_v54 = vld [vmem:[%s5266_s10 + $0x678] sm:$0xff]  ;;  %v354_v2 = vld [vmem:[#allocation2 + $0x48] sm:$0xff] }
 0x1eb   : > { %4031 = vmatprep.subr.bf16.mxu0 %v4709_v13  ;;  %v4805_v13 = vcombine.high %v530_v9, %v538_v10  ;;  %v818_v26 = vld [vmem:[%s5266_s10 + $0xe38] sm:$0xff] }
 0x1ec   : > { %4071 = vmatpush1.bf16.msra.mxu1 %v4948_v60  ;;  %v5044_v60 = vcombine.low %v770_v3, %v778_v4  ;;  %v826_v27 = vld [vmem:[%s5266_s10 + $0xe78] sm:$0xff] }
 0x1ed   : > { %4072 = vmatprep.subr.bf16.mxu1 %v4965_v14  ;;  %v5061_v14 = vcombine.high %v786_v11, %v794_v59  ;;  %v586_v32 = vld [vmem:[%s5266_s10 + $0x6f8] sm:$0xff] }
 0x1ee   : > { %4032 = vmatpush1.bf16.msra.mxu0 %v4708_v21  ;;  %v4804_v21 = vcombine.low %v530_v9, %v538_v10  ;;  %v834_v33 = vld [vmem:[%s5266_s10 + $0xeb8] sm:$0xff] }
 0x1ef   : > { %4033 = vmatprep.subr.bf16.mxu0 %v4725_v23  ;;  %v4821_v23 = vcombine.high %v546_v15, %v554_v16 }
 0x1f0   : > { %4073 = vmatpush1.bf16.msra.mxu1 %v4964_v22  ;;  %v3729_v30 = vpop.f32.mrb[12].mxu0  ;;  %v5060_v22 = vcombine.low %v786_v11, %v794_v59 }
 0x1f1   : > { %4074 = vmatprep.subr.bf16.mxu1 %v4981_v24  ;;  %v3731_v36 = vpop.f32.mrb[13].mxu0  ;;  %v5077_v24 = vcombine.high %v802_v18, %v810_v19 }
 0x1f2   : > { %v3770_v35 = vpop.f32.mrb[12].mxu1  ;;  %v3733_v42 = vpop.f32.mrb[14].mxu0  ;;  %4034 = vmatpush1.bf16.msra.mxu0 %v4724_v55  ;;  %v4820_v55 = vcombine.low %v546_v15, %v554_v16 }
 0x1f3   : > { %v3771_v39 = vadd.f32 %v3770_v35, %v3729_v30  ;;  %v3772_v41 = vpop.f32.mrb[13].mxu1  ;;  %v3734_v46 = vpop.f32.mrb[15].mxu0  ;;  %4035 = vmatprep.subr.bf16.mxu0 %v4741_v29  ;;  %v4837_v29 = vcombine.high %v562_v25, %v570_v54  ;;  %v5093_v30 = vcombine.high %v818_v26, %v826_v27  ;;  %v4836_v35 = vcombine.low %v562_v25, %v570_v54  ;;  %v858_v42 = vld [vmem:[%s5266_s10 + $0xf78] sm:$0xff] }
 0x1f4   : > { %v3773_v44 = vadd.f32 %v3772_v41, %v3731_v36  ;;  %v3774_v45 = vpop.f32.mrb[14].mxu1  ;;  %4075 = vmatpush1.bf16.msra.mxu1 %v4980_v28  ;;  %v5076_v28 = vcombine.low %v802_v18, %v810_v19  ;;  %v5092_v36 = vcombine.low %v818_v26, %v826_v27  ;;  %v850_v41 = vld [vmem:[%s5266_s10 + $0xf38] sm:$0xff]  ;;  %v358_v27 = vld [vmem:[#allocation2 + $0x68] sm:$0xff] }
 0x1f5   : > { %v4111_v49 = vadd.f32 %v3771_v39, %v351_v34  ;;  %v3775_v50 = vpop.f32.mrb[15].mxu1  ;;  %4076 = vmatprep.subr.bf16.mxu1 %v4997_v31  ;;  %v578_v31 = vld [vmem:[%s5266_s10 + $0x6b8] sm:$0xff]  ;;  %v5125_v46 = vcombine.high %v850_v41, %v858_v42  ;;  %v5124_v52 = vcombine.low %v850_v41, %v858_v42 }
 0x1f6   : > { %v4112_v56 = vadd.f32 %v3773_v44, %v352_v40  ;;  %4036 = vmatpush1.bf16.msra.mxu0 %v4740_v43  ;;  %v842_v34 = vld [vmem:[%s5266_s10 + $0xef8] sm:$0xff]  ;;  %v4853_v37 = vcombine.high %v578_v31, %v586_v32  ;;  %v4852_v43 = vcombine.low %v578_v31, %v586_v32 }
 0x1f7   : > { %4127 = vst [vmem:[#allocation2 + $0x30] sm:$0xff] %v4111_v49  ;;  %4037 = vmatprep.subr.bf16.mxu0 %v4757_v48  ;;  %v5109_v38 = vcombine.high %v834_v33, %v842_v34  ;;  %v594_v39 = vld [vmem:[%s5266_s10 + $0x738] sm:$0xff]  ;;  %v5108_v44 = vcombine.low %v834_v33, %v842_v34 }
 0x1f8   : > { %4128 = vst [vmem:[#allocation2 + $0x38] sm:$0xff] %v4112_v56  ;;  %4077 = vmatpush1.bf16.msra.mxu1 %v4996_v47  ;;  %v602_v40 = vld [vmem:[%s5266_s10 + $0x778] sm:$0xff] }
 0x1f9   : > { %4078 = vmatprep.subr.bf16.mxu1 %v5013_v51  ;;  %v4869_v45 = vcombine.high %v594_v39, %v602_v40  ;;  %v610_v47 = vld [vmem:[%s5266_s10 + $0x7b8] sm:$0xff]  ;;  %v4868_v51 = vcombine.low %v594_v39, %v602_v40 }
 0x1fa   : > { %4038 = vmatpush1.bf16.msra.mxu0 %v4756_v61  ;;  %v618_v48 = vld [vmem:[%s5266_s10 + $0x7f8] sm:$0xff] }
 0x1fb   : > { %4039 = vmatprep.subr.bf16.mxu0 %v4773_v63  ;;  %v866_v49 = vld [vmem:[%s5266_s10 + $0xfb8] sm:$0xff]  ;;  %v4885_v53 = vcombine.high %v610_v47, %v618_v48  ;;  %v4884_v57 = vcombine.low %v610_v47, %v618_v48 }
 0x1fc   : > { %4079 = vmatpush1.bf16.msra.mxu1 %v5012_v62  ;;  %v874_v50 = vld [vmem:[%s5266_s10 + $0xff8] sm:$0xff]  ;;  %v353_v62 = vld [vmem:[#allocation2 + $0x40] sm:$0xff] }
 0x1fd   : > { %4080 = vmatprep.subr.bf16.mxu1 %v5029_v0  ;;  %v5141_v56 = vcombine.high %v866_v49, %v874_v50  ;;  %v5140_v58 = vcombine.low %v866_v49, %v874_v50  ;;  %v360_v40 = vld [vmem:[#allocation2 + $0x78] sm:$0xff]  ;;  %v4161_v49 = vlaneseq (!%p5142_p7) }
 0x1fe   : > { %4040 = vmatpush1.bf16.msra.mxu0 %v4772_v5 }
 0x1ff   : > { %4041 = vmatprep.subr.bf16.mxu0 %v4789_v7  ;;  %v5836_v50 = vshrl.u32 (!%p5142_p7), %v4161_v49, 7 }
 0x200   : > { %4081 = vmatpush1.bf16.msra.mxu1 %v5028_v6 }
 0x201   : > { %4082 = vmatprep.subr.bf16.mxu1 %v5045_v8 }
 0x202   : > { %4042 = vmatpush1.bf16.msra.mxu0 %v4788_v12 }
 0x203   : > { %4043 = vmatprep.subr.bf16.mxu0 %v4805_v13 }
 0x204   : > { %4083 = vmatpush1.bf16.msra.mxu1 %v5044_v60  ;;  %v356_v60 = vld [vmem:[#allocation2 + $0x58] sm:$0xff] }
 0x205   : > { %4084 = vmatprep.subr.bf16.mxu1 %v5061_v14 }
 0x206   : > { %4044 = vmatpush1.bf16.msra.mxu0 %v4804_v21 }
 0x207   : > { %4045 = vmatprep.subr.bf16.mxu0 %v4821_v23 }
 0x208   : > { %4085 = vmatpush1.bf16.msra.mxu1 %v5060_v22 }
 0x209   : > { %4086 = vmatprep.subr.bf16.mxu1 %v5077_v24  ;;  %v357_v24 = vld [vmem:[#allocation2 + $0x60] sm:$0xff] }
 0x20a   : > { %4046 = vmatpush1.bf16.msra.mxu0 %v4820_v55 }
 0x20b   : > { %4047 = vmatprep.subr.bf16.mxu0 %v4837_v29 }
 0x20c   : > { %4087 = vmatpush1.bf16.msra.mxu1 %v5076_v28 }
 0x20d   : > { %4088 = vmatprep.subr.bf16.mxu1 %v5093_v30 }
 0x20e   : > { %4048 = vmatpush1.bf16.msra.mxu0 %v4836_v35 }
 0x20f   : > { %4049 = vmatprep.subr.bf16.mxu0 %v4853_v37 }
 0x210   : > { %4089 = vmatpush1.bf16.msra.mxu1 %v5092_v36  ;;  %v359_v36 = vld [vmem:[#allocation2 + $0x70] sm:$0xff] }
 0x211   : > { %4090 = vmatprep.subr.bf16.mxu1 %v5109_v38 }
 0x212   : > { %4050 = vmatpush1.bf16.msra.mxu0 %v4852_v43 }
 0x213   : > { %4051 = vmatprep.subr.bf16.mxu0 %v4869_v45 }
 0x214   : > { %4091 = vmatpush1.bf16.msra.mxu1 %v5108_v44 }
 0x215   : > { %4092 = vmatprep.subr.bf16.mxu1 %v5125_v46 }
 0x216   : > { %4052 = vmatpush1.bf16.msra.mxu0 %v4868_v51  ;;  %v5841_v51 = vld [vmem:[%s6095_s2] sm:$0xff] (!%p5142_p7) }
 0x217   : > { %4053 = vmatprep.subr.bf16.mxu0 %v4885_v53  ;;  %v5851_v53 = vld [vmem:[%s6097_s4] sm:$0xff] (!%p5142_p7) }
 0x218   : > { %4093 = vmatpush1.bf16.msra.mxu1 %v5124_v52  ;;  %v5846_v52 = vld [vmem:[%s6096_s3] sm:$0xff] (!%p5142_p7) }
 0x219   : > { %4094 = vmatprep.subr.bf16.mxu1 %v5141_v56  ;;  %v5854_v56 = vsub.s32 (!%p5142_p7), 0, %v5836_v50 }
 0x21a   : > { %4054 = vmatpush1.bf16.msra.mxu0 %v4884_v57  ;;  %v5857_v57 = vsub.s32 (!%p5142_p7), 1, %v5836_v50 }
 0x21c   : > { %4095 = vmatpush1.bf16.msra.mxu1 %v5140_v58  ;;  %v5860_v58 = vsub.s32 (!%p5142_p7), 2, %v5836_v50 }
 0x21d   : > { %4056 = vmatmul.mubr.bf16.vlgmr.msra.gmra.mrb[28].mxu0 %v5357_v17  ;;  %v355_v17 = vld [vmem:[#allocation2 + $0x50] sm:$0xff] }
 0x21f   : > { %4097 = vmatmul.mubr.bf16.vlgmr.msra.gmra.mrb[28].mxu1 %v5363_v20 }
 0x230   : > { %v3811_v61 = vpop.f32.mrb[16].mxu0 }
 0x231   : > { %v3813_v0 = vpop.f32.mrb[17].mxu0 }
 0x232   : > { %v3852_v63 = vpop.f32.mrb[16].mxu1  ;;  %v3815_v4 = vpop.f32.mrb[18].mxu0 }
 0x233   : > { %v3853_v1 = vadd.f32 %v3852_v63, %v3811_v61  ;;  %v3854_v3 = vpop.f32.mrb[17].mxu1  ;;  %v3816_v7 = vpop.f32.mrb[19].mxu0  ;;  %v5863_v61 = vsub.s32 (!%p5142_p7), 3, %v5836_v50  ;;  %v4142_v63 = vld [vmem:[#allocation2 + $0x8] sm:$0xff] (!%p5142_p7)  ;;  %v4280_v4 = vrot.slane (!%p5142_p7), %v5846_v52, %v5854_v56 }
 0x234   : > { %v3855_v5 = vadd.f32 %v3854_v3, %v3813_v0  ;;  %v3856_v6 = vpop.f32.mrb[18].mxu1  ;;  %v5866_v0 = vsub.s32 (!%p5142_p7), 4, %v5836_v50  ;;  %v4164_v3 = vrot.slane (!%p5142_p7), %v5841_v51, %v5854_v56  ;;  %v4143_v7 = vld [vmem:[#allocation2 + $0x10] sm:$0xff] (!%p5142_p7) }
 0x235   : > { %v4113_v8 = vadd.f32 %v3853_v1, %v353_v62  ;;  %v3857_v9 = vpop.f32.mrb[19].mxu1  ;;  %v4141_v62 = vld [vmem:[#allocation2] sm:$0xff] (!%p5142_p7)  ;;  %v5869_v1 = vsub.s32 (!%p5142_p7), 5, %v5836_v50  ;;  %v4168_v6 = vrot.slane (!%p5142_p7), %v5841_v51, %v5857_v57 }
 0x236   : > { %v4114_v10 = vadd.f32 %v3855_v5, %v354_v2  ;;  %v5872_v2 = vsub.s32 (!%p5142_p7), 6, %v5836_v50  ;;  %v4380_v5 = vrot.slane (!%p5142_p7), %v5851_v53, %v5854_v56  ;;  %v4384_v9 = vrot.slane (!%p5142_p7), %v5851_v53, %v5857_v57 }
 0x237   : > { %4129 = vst [vmem:[#allocation2 + $0x40] sm:$0xff] %v4113_v8  ;;  %v4284_v8 = vrot.slane (!%p5142_p7), %v5846_v52, %v5857_v57 }
 0x238   : > { %4130 = vst [vmem:[#allocation2 + $0x48] sm:$0xff] %v4114_v10  ;;  %v4172_v10 = vrot.slane (!%p5142_p7), %v5841_v51, %v5860_v58 }
 0x270   : > { %v3893_v11 = vpop.f32.mrb[20].mxu0 }
 0x271   : > { %v3895_v20 = vpop.f32.mrb[21].mxu0 }
 0x272   : > { %v3934_v59 = vpop.f32.mrb[20].mxu1  ;;  %v3897_v14 = vpop.f32.mrb[22].mxu0 }
 0x273   : > { %v3935_v12 = vadd.f32 %v3934_v59, %v3893_v11  ;;  %v3936_v13 = vpop.f32.mrb[21].mxu1  ;;  %v3898_v18 = vpop.f32.mrb[23].mxu0  ;;  %v4288_v11 = vrot.slane (!%p5142_p7), %v5846_v52, %v5860_v58  ;;  %v4241_v59 = vadd.f32 (!%p5142_p7), %v4164_v3, %v4141_v62  ;;  %v4243_v14 = vadd.f32 (!%p5142_p7), %v4172_v10, %v4143_v7  ;;  %v4477_v3 = vld [vmem:[%s6098_s5 + $0x20] sm:$0xff] (!%p5142_p7)  ;;  %v5944_v10 = vld [vmem:[%s6097_s4 + $0x8] sm:$0xff] (!%p5142_p7) }
 0x274   : > { %v3937_v15 = vadd.f32 %v3936_v13, %v3895_v20  ;;  %v3938_v16 = vpop.f32.mrb[22].mxu1  ;;  %v4242_v20 = vadd.f32 (!%p5142_p7), %v4168_v6, %v4142_v63  ;;  %v4145_v13 = vld [vmem:[#allocation2 + $0x20] sm:$0xff] (!%p5142_p7)  ;;  %v4180_v18 = vrot.slane (!%p5142_p7), %v5841_v51, %v5866_v0 }
 0x275   : > { %v4115_v19 = vadd.f32 %v3935_v12, %v355_v17  ;;  %v3939_v21 = vpop.f32.mrb[23].mxu1  ;;  %v4144_v17 = vld [vmem:[#allocation2 + $0x18] sm:$0xff] (!%p5142_p7)  ;;  %v4388_v12 = vrot.slane (!%p5142_p7), %v5851_v53, %v5860_v58  ;;  %v4392_v16 = vrot.slane (!%p5142_p7), %v5851_v53, %v5863_v61 }
 0x276   : > { %v4116_v22 = vadd.f32 %v3937_v15, %v356_v60  ;;  %v4176_v60 = vrot.slane (!%p5142_p7), %v5841_v51, %v5863_v61  ;;  %v4292_v15 = vrot.slane (!%p5142_p7), %v5846_v52, %v5863_v61  ;;  %v4258_v21 = vmax.f32 (!%p5142_p7), %v4242_v20, 0.0 }
 0x277   : > { %4131 = vst [vmem:[#allocation2 + $0x50] sm:$0xff] %v4115_v19  ;;  %v4257_v19 = vmax.f32 (!%p5142_p7), %v4241_v59, 0.0  ;;  %v5956_v20 = vsub.s32 (!%p5142_p7), 7, %v5836_v50 }
 0x278   : > { %4132 = vst [vmem:[#allocation2 + $0x58] sm:$0xff] %v4116_v22  ;;  %v4244_v22 = vadd.f32 (!%p5142_p7), %v4176_v60, %v4144_v17  ;;  %v4478_v17 = vld [vmem:[%s6098_s5 + $0x28] sm:$0xff] (!%p5142_p7) }
 0x2b0   : > { %v3975_v23 = vpop.f32.mrb[24].mxu0 }
 0x2b1   : > { %v3977_v54 = vpop.f32.mrb[25].mxu0 }
 0x2b2   : > { %v4016_v25 = vpop.f32.mrb[24].mxu1  ;;  %v3979_v28 = vpop.f32.mrb[26].mxu0 }
 0x2b3   : > { %v4017_v26 = vadd.f32 %v4016_v25, %v3975_v23  ;;  %v4018_v55 = vpop.f32.mrb[25].mxu1  ;;  %v3980_v31 = vpop.f32.mrb[27].mxu0  ;;  %v4296_v23 = vrot.slane (!%p5142_p7), %v5846_v52, %v5866_v0  ;;  %v4259_v25 = vmax.f32 (!%p5142_p7), %v4243_v14, 0.0  ;;  %v4358_v28 = vmul.f32 (!%p5142_p7), %v4284_v8, %v4258_v21 }
 0x2b4   : > { %v4019_v29 = vadd.f32 %v4018_v55, %v3977_v54  ;;  %v4020_v30 = vpop.f32.mrb[26].mxu1  ;;  %v4245_v54 = vadd.f32 (!%p5142_p7), %v4180_v18, %v4145_v13  ;;  %v4357_v55 = vmul.f32 (!%p5142_p7), %v4280_v4, %v4257_v19  ;;  %v4473_v31 = vld [vmem:[%s6098_s5] sm:$0xff] (!%p5142_p7)  ;;  %v4192_v18 = vrot.slane (!%p5142_p7), %v5841_v51, %v5956_v20 }
 0x2b5   : > { %v4117_v32 = vadd.f32 %v4017_v26, %v357_v24  ;;  %v4021_v33 = vpop.f32.mrb[27].mxu1  ;;  %v4146_v24 = vld [vmem:[#allocation2 + $0x28] sm:$0xff] (!%p5142_p7)  ;;  %v4396_v26 = vrot.slane (!%p5142_p7), %v5851_v53, %v5866_v0  ;;  %v4300_v30 = vrot.slane (!%p5142_p7), %v5846_v52, %v5869_v1  ;;  %v4308_v19 = vrot.slane (!%p5142_p7), %v5846_v52, %v5956_v20 }
 0x2b6   : > { %v4118_v34 = vadd.f32 %v4019_v29, %v358_v27  ;;  %v4184_v27 = vrot.slane (!%p5142_p7), %v5841_v51, %v5869_v1  ;;  %v4260_v29 = vmax.f32 (!%p5142_p7), %v4244_v22, 0.0  ;;  %v4359_v33 = vmul.f32 (!%p5142_p7), %v4288_v11, %v4259_v25  ;;  %v4150_v22 = vld [vmem:[#allocation2 + $0x48] sm:$0xff] (!%p5142_p7) }
 0x2b7   : > { %4133 = vst [vmem:[#allocation2 + $0x60] sm:$0xff] %v4117_v32  ;;  %v4474_v32 = vld [vmem:[%s6098_s5 + $0x8] sm:$0xff] (!%p5142_p7)  ;;  %v4412_v21 = vrot.slane (!%p5142_p7), %v5944_v10, %v5854_v56  ;;  %v4408_v25 = vrot.slane (!%p5142_p7), %v5851_v53, %v5956_v20 }
 0x2b8   : > { %4134 = vst [vmem:[#allocation2 + $0x68] sm:$0xff] %v4118_v34  ;;  %v4261_v34 = vmax.f32 (!%p5142_p7), %v4245_v54, 0.0  ;;  %v4151_v54 = vld [vmem:[#allocation2 + $0x50] sm:$0xff] (!%p5142_p7) }
 0x2f0   : > { %v4057_v35 = vpop.f32.mrb[28].mxu0 }
 0x2f1   : > { %v4059_v38 = vpop.f32.mrb[29].mxu0 }
 0x2f2   : > { %v4098_v37 = vpop.f32.mrb[28].mxu1  ;;  %v4061_v42 = vpop.f32.mrb[30].mxu0  ;;  %4140 = sbr.rel (%p5142_p7) target bundleno = 788 (0x314), region = 52 }
 0x2f3   : > { %v4099_v39 = vadd.f32 %v4098_v37, %v4057_v35  ;;  %v4100_v41 = vpop.f32.mrb[29].mxu1  ;;  %v4062_v45 = vpop.f32.mrb[31].mxu0  ;;  %v4246_v35 = vadd.f32 (!%p5142_p7), %v4184_v27, %v4146_v24  ;;  %v4147_v37 = vld [vmem:[#allocation2 + $0x30] sm:$0xff] (!%p5142_p7)  ;;  %v4188_v42 = vrot.slane (!%p5142_p7), %v5841_v51, %v5872_v2 }
 0x2f4   : > { %v4101_v43 = vadd.f32 %v4100_v41, %v4059_v38  ;;  %v4102_v44 = vpop.f32.mrb[30].mxu1  ;;  %v4457_v38 = vadd.f32 (!%p5142_p7), %v4380_v5, %v4357_v55  ;;  %v4360_v41 = vmul.f32 (!%p5142_p7), %v4292_v15, %v4260_v29  ;;  %v4361_v45 = vmul.f32 (!%p5142_p7), %v4296_v23, %v4261_v34  ;;  %v5937_v5 = vld [vmem:[%s6096_s3 + $0x8] sm:$0xff] (!%p5142_p7)  ;;  %v4148_v15 = vld [vmem:[#allocation2 + $0x38] sm:$0xff] (!%p5142_p7)  ;;  %v4479_v24 = vld [vmem:[%s6098_s5 + $0x30] sm:$0xff] (!%p5142_p7) }
 0x2f5   : > { %v4119_v46 = vadd.f32 %v4099_v39, %v359_v36  ;;  %v4103_v47 = vpop.f32.mrb[31].mxu1  ;;  %v4400_v36 = vrot.slane (!%p5142_p7), %v5851_v53, %v5869_v1  ;;  %v4458_v39 = vadd.f32 (!%p5142_p7), %v4384_v9, %v4358_v28  ;;  %v4476_v44 = vld [vmem:[%s6098_s5 + $0x18] sm:$0xff] (!%p5142_p7)  ;;  %v4247_v4 = vadd.f32 (!%p5142_p7), %v4188_v42, %v4147_v37 }
 0x2f6   : > { %v4120_v48 = vadd.f32 %v4101_v43, %v360_v40  ;;  %v4475_v40 = vld [vmem:[%s6098_s5 + $0x10] sm:$0xff] (!%p5142_p7)  ;;  %v4459_v43 = vadd.f32 (!%p5142_p7), %v4388_v12, %v4359_v33  ;;  %v4304_v47 = vrot.slane (!%p5142_p7), %v5846_v52, %v5872_v2  ;;  %v4489_v49 = vadd.f32 (!%p5142_p7), %v4473_v31, %v4457_v38  ;;  %v4149_v12 = vld [vmem:[#allocation2 + $0x40] sm:$0xff] (!%p5142_p7)  ;;  %v4152_v31 = vld [vmem:[#allocation2 + $0x58] sm:$0xff] (!%p5142_p7) }
 0x2f7   : > { %4135 = vst [vmem:[#allocation2 + $0x70] sm:$0xff] %v4119_v46  ;;  %v4262_v46 = vmax.f32 (!%p5142_p7), %v4246_v35, 0.0  ;;  %v4490_v62 = vadd.f32 (!%p5142_p7), %v4474_v32, %v4458_v39  ;;  %v4460_v63 = vadd.f32 (!%p5142_p7), %v4392_v16, %v4360_v41  ;;  %v4461_v7 = vadd.f32 (!%p5142_p7), %v4396_v26, %v4361_v45  ;;  %v4481_v41 = vld [vmem:[%s6098_s5 + $0x40] sm:$0xff] (!%p5142_p7) }
 0x2f8   : > { %4136 = vst [vmem:[#allocation2 + $0x78] sm:$0xff] %v4120_v48  ;;  %v5929_v48 = vld [vmem:[%s6095_s2 + $0x8] sm:$0xff] (!%p5142_p7)  ;;  %v4491_v6 = vadd.f32 (!%p5142_p7), %v4475_v40, %v4459_v43  ;;  %v4404_v9 = vrot.slane (!%p5142_p7), %v5851_v53, %v5872_v2  ;;  %4505 = vst [vmem:[%s6099_s6] sm:$0xff] (!%p5142_p7), %v4489_v49  ;;  %v4263_v59 = vmax.f32 (!%p5142_p7), %v4247_v4, 0.0  ;;  %v4312_v16 = vrot.slane (!%p5142_p7), %v5937_v5, %v5854_v56  ;;  %v4153_v40 = vld [vmem:[#allocation2 + $0x60] sm:$0xff] (!%p5142_p7) }
 0x2f9   : > { %v4362_v8 = vmul.f32 %v4300_v30, %v4262_v46  ;;  %4506 = vst [vmem:[%s6099_s6 + $0x8] sm:$0xff] %v4490_v62  ;;  %v4492_v11 = vadd.f32 %v4476_v44, %v4460_v63  ;;  %v4196_v60 = vrot.slane %v5929_v48, %v5854_v56  ;;  %v4493_v13 = vadd.f32 %v4477_v3, %v4461_v7  ;;  %v4482_v63 = vld [vmem:[%s6098_s5 + $0x48] sm:$0xff] }
 0x2fa   : > { %4507 = vst [vmem:[%s6099_s6 + $0x10] sm:$0xff] %v4491_v6  ;;  %v4363_v50 = vmul.f32 %v4304_v47, %v4263_v59  ;;  %v4200_v52 = vrot.slane %v5929_v48, %v5857_v57  ;;  %v4248_v56 = vadd.f32 %v4192_v18, %v4148_v15  ;;  %v4316_v27 = vrot.slane %v5937_v5, %v5857_v57  ;;  %v4154_v7 = vld [vmem:[#allocation2 + $0x68] sm:$0xff] }
 0x2fb   : > { %v4462_v14 = vadd.f32 %v4400_v36, %v4362_v8  ;;  %4508 = vst [vmem:[%s6099_s6 + $0x18] sm:$0xff] %v4492_v11  ;;  %4509 = vst [vmem:[%s6099_s6 + $0x20] sm:$0xff] %v4493_v13  ;;  %v4249_v51 = vadd.f32 %v4196_v60, %v4149_v12  ;;  %v4204_v55 = vrot.slane %v5929_v48, %v5860_v58  ;;  %v4483_v11 = vld [vmem:[%s6098_s5 + $0x50] sm:$0xff] }
 0x2fc   : > { %v4463_v26 = vadd.f32 %v4404_v9, %v4363_v50  ;;  %v4250_v29 = vadd.f32 %v4200_v52, %v4150_v22  ;;  %v4416_v53 = vrot.slane %v5944_v10, %v5857_v57  ;;  %v4320_v30 = vrot.slane %v5937_v5, %v5860_v58 }
 0x2fd   : > { %v4494_v23 = vadd.f32 %v4478_v17, %v4462_v14  ;;  %v4265_v28 = vmax.f32 %v4249_v51, 0.0  ;;  %v4264_v33 = vmax.f32 %v4248_v56, 0.0  ;;  %v4251_v34 = vadd.f32 %v4204_v55, %v4151_v54 }
 0x2fe   : > { %v4495_v32 = vadd.f32 %v4479_v24, %v4463_v26  ;;  %v4208_v35 = vrot.slane %v5929_v48, %v5863_v61  ;;  %v4266_v37 = vmax.f32 %v4250_v29, 0.0  ;;  %v4420_v38 = vrot.slane %v5944_v10, %v5860_v58  ;;  %v4480_v58 = vld [vmem:[%s6098_s5 + $0x38] sm:$0xff]  ;;  %v4155_v14 = vld [vmem:[#allocation2 + $0x70] sm:$0xff] }
 0x2ff   : > { %4510 = vst [vmem:[%s6099_s6 + $0x28] sm:$0xff] %v4494_v23  ;;  %v4365_v36 = vmul.f32 %v4312_v16, %v4265_v28  ;;  %v4324_v39 = vrot.slane %v5937_v5, %v5863_v61  ;;  %v4364_v57 = vmul.f32 %v4308_v19, %v4264_v33  ;;  %v4267_v42 = vmax.f32 %v4251_v34, 0.0  ;;  %v4484_v16 = vld [vmem:[%s6098_s5 + $0x58] sm:$0xff] }
 0x300   : > { %4511 = vst [vmem:[%s6099_s6 + $0x30] sm:$0xff] %v4495_v32  ;;  %v4252_v43 = vadd.f32 %v4208_v35, %v4152_v31  ;;  %v4212_v44 = vrot.slane %v5929_v48, %v5866_v0  ;;  %v4366_v46 = vmul.f32 %v4316_v27, %v4266_v37  ;;  %v4424_v47 = vrot.slane %v5944_v10, %v5863_v61  ;;  %v4156_v24 = vld [vmem:[#allocation2 + $0x78] sm:$0xff] }
 0x301   : > { %v4465_v45 = vadd.f32 %v4412_v21, %v4365_v36  ;;  %v4328_v49 = vrot.slane %v5937_v5, %v5866_v0  ;;  %v4464_v62 = vadd.f32 %v4408_v25, %v4364_v57  ;;  %v4367_v3 = vmul.f32 %v4320_v30, %v4267_v42  ;;  %v4485_v25 = vld [vmem:[%s6098_s5 + $0x60] sm:$0xff]  ;;  %v4486_v30 = vld [vmem:[%s6098_s5 + $0x68] sm:$0xff]  ;;  %v4488_v37 = vld [vmem:[%s6098_s5 + $0x78] sm:$0xff] }
 0x302   : > { %v4268_v4 = vmax.f32 %v4252_v43, 0.0  ;;  %v4253_v6 = vadd.f32 %v4212_v44, %v4153_v40  ;;  %v4466_v9 = vadd.f32 %v4416_v53, %v4366_v46  ;;  %v4428_v61 = vrot.slane %v5944_v10, %v5866_v0 }
 0x303   : > { %v4497_v8 = vadd.f32 %v4481_v41, %v4465_v45  ;;  %v4216_v17 = vrot.slane %v5929_v48, %v5869_v1  ;;  %v4496_v59 = vadd.f32 %v4480_v58, %v4464_v62  ;;  %v4467_v12 = vadd.f32 %v4420_v38, %v4367_v3 }
 0x304   : > { %v4368_v60 = vmul.f32 %v4324_v39, %v4268_v4  ;;  %v4269_v13 = vmax.f32 %v4253_v6, 0.0  ;;  %v4498_v15 = vadd.f32 %v4482_v63, %v4466_v9  ;;  %v4332_v0 = vrot.slane %v5937_v5, %v5869_v1 }
 0x305   : > { %4513 = vst [vmem:[%s6099_s6 + $0x40] sm:$0xff] %v4497_v8  ;;  %v4254_v50 = vadd.f32 %v4216_v17, %v4154_v7  ;;  %v4220_v18 = vrot.slane %v5929_v48, %v5872_v2  ;;  %4512 = vst [vmem:[%s6099_s6 + $0x38] sm:$0xff] %v4496_v59  ;;  %v4499_v19 = vadd.f32 %v4483_v11, %v4467_v12 }
 0x306   : > { %v4468_v21 = vadd.f32 %v4424_v47, %v4368_v60  ;;  %v4369_v22 = vmul.f32 %v4328_v49, %v4269_v13  ;;  %v4432_v23 = vrot.slane %v5944_v10, %v5869_v1  ;;  %4514 = vst [vmem:[%s6099_s6 + $0x48] sm:$0xff] %v4498_v15  ;;  %v4336_v54 = vrot.slane %v5937_v5, %v5872_v2 }
 0x307   : > { %v4270_v51 = vmax.f32 %v4254_v50, 0.0  ;;  %v4255_v52 = vadd.f32 %v4220_v18, %v4155_v14  ;;  %v4224_v26 = vrot.slane %v5929_v48, %v5956_v20  ;;  %4515 = vst [vmem:[%s6099_s6 + $0x50] sm:$0xff] %v4499_v19  ;;  %v4436_v27 = vrot.slane %v5944_v10, %v5872_v2 }
 0x308   : > { %v4500_v1 = vadd.f32 %v4484_v16, %v4468_v21  ;;  %v4469_v56 = vadd.f32 %v4428_v61, %v4369_v22  ;;  %v4340_v53 = vrot.slane %v5937_v5, %v5956_v20  ;;  %v4440_v2 = vrot.slane %v5944_v10, %v5956_v20  ;;  %v4487_v5 = vld [vmem:[%s6098_s5 + $0x70] sm:$0xff] }
 0x309   : > { %v4370_v55 = vmul.f32 %v4332_v0, %v4270_v51  ;;  %v4271_v28 = vmax.f32 %v4255_v52, 0.0  ;;  %v4256_v29 = vadd.f32 %v4224_v26, %v4156_v24 }
 0x30a   : > { %4516 = vst [vmem:[%s6099_s6 + $0x58] sm:$0xff] %v4500_v1  ;;  %v4501_v48 = vadd.f32 %v4485_v25, %v4469_v56 }
 0x30b   : > { %v4470_v31 = vadd.f32 %v4432_v23, %v4370_v55  ;;  %v4371_v32 = vmul.f32 %v4336_v54, %v4271_v28  ;;  %v4272_v33 = vmax.f32 %v4256_v29, 0.0 }
 0x30c   : > { %4517 = vst [vmem:[%s6099_s6 + $0x60] sm:$0xff] %v4501_v48 }
 0x30d   : > { %v4502_v34 = vadd.f32 %v4486_v30, %v4470_v31  ;;  %v4471_v35 = vadd.f32 %v4436_v27, %v4371_v32  ;;  %v4372_v36 = vmul.f32 %v4340_v53, %v4272_v33 }
 0x30f   : > { %4518 = vst [vmem:[%s6099_s6 + $0x68] sm:$0xff] %v4502_v34  ;;  %v4503_v10 = vadd.f32 %v4487_v5, %v4471_v35  ;;  %v4472_v20 = vadd.f32 %v4440_v2, %v4372_v36 }
 0x311   : > { %4519 = vst [vmem:[%s6099_s6 + $0x70] sm:$0xff] %v4503_v10  ;;  %v4504_v38 = vadd.f32 %v4488_v37, %v4472_v20 }
 0x313   : > { %4520 = vst [vmem:[%s6099_s6 + $0x78] sm:$0xff] %v4504_v38 }
 0x314 PF: > { %s16_s23 = sadd.s32 1, %s5198_s23   ;;  %s6100_s21 = smov %s5194_s22 }
 0x315   : > { %p13_p8 = scmp.ge.s32.totalorder %s16_s23, 6   ;;  %s6101_s22 = smov %s6103_s24 }
 0x317   :  { %15 = sbr.rel (!%p13_p8) target bundleno = 2 (0x2), region = 88 }

// kernel: fcn_forward.7
= control target key start
LH: loop header
LB: loop body
LE: loop exit
PB: predicated region body
PF: predicated region fallthrough
CT: control target
= control target key end

     0   :  { %s3142_s21 = smov 0   ;;  %s3144_s22 = smov 0   ;;  %s3704_s0 = inlined_call_operand.vmem [shape: bf16[32,2048], index: 0, kind: input, shape index: {}]   ;;  %s3705_s1 = inlined_call_operand.vmem [shape: bf16[2048,1024], index: 1, kind: input, shape index: {}]   ;;  %s3706_s2 = inlined_call_operand.vmem [shape: f32[1,1024], index: 2, kind: input, shape index: {}]   ;;  %s3707_s3 = inlined_call_operand.vmem [shape: f32[1,1024], index: 3, kind: input, shape index: {}]   ;;  %s3708_s4 = inlined_call_operand.vmem [shape: f32[1,1024], index: 4, kind: input, shape index: {}]   ;;  %s3709_s5 = inlined_call_operand.vmem [shape: f32[32,1024], index: 5, kind: input, shape index: {}]   ;;  %s3710_s6 = inlined_call_operand.vmem [shape: f32[32,1024], index: 6, kind: output, shape index: {}]  }
   0x1   :  { %s3146_s23 = smov 0   ;;  %s3148_s24 = smov 0  }
   0x2   :  { %s3150_s25 = smov 0   ;;  %s3152_s26 = smov 0  }
   0x3   :  { %s3154_s27 = smov 0  }
   0x4 LB: > { %s25_s28 = sadd.s32 1, %s3096_s25  ;;  %s28_s29 = sadd.s32 1, %s3100_s26  ;;  %s3104_s27 = sphi %s3154_s27, %s16_s27   ;;  %s3100_s26 = sphi %s3152_s26, %s3716_s26   ;;  %s3096_s25 = sphi %s3150_s25, %s3715_s25   ;;  %s3092_s24 = sphi %s3148_s24, %s3714_s24   ;;  %s3088_s23 = sphi %s3146_s23, %s3713_s23   ;;  %s3084_s22 = sphi %s3144_s22, %s3712_s22   ;;  %s3080_s21 = sphi %s3142_s21, %s3711_s21  }
   0x5   : > { %p26_p0 = scmp.ge.s32.totalorder %s25_s28, 4  ;;  %p44_p1 = scmp.ne.s32.totalorder %s3084_s22, %s3080_s21 }
   0x6   : > { %p45_p2 = scmp.eq.s32.totalorder %s3104_s27, 0  ;;  %s37_s9 = sadd.s32 1, %s3084_s22 }
   0x7   : > { %s3718_s28 = smov (%p26_p0, %s25_s28), 0  ;;  %s3720_s29 = smov (!%p26_p0, %s28_s29), %s3100_s26 }
   0x8   : > { %p46_p3 = por %p45_p2, %p44_p1  ;;  %p30_p4 = scmp.ge.s32.totalorder %s3720_s29, 2 }
   0x9   : > { %s33_s30 = ssub.s32 %s3096_s25, %s3718_s28  ;;  %p2686_p6 = scmp.ge.s32.totalorder %s3104_s27, 8 }
   0xa   : > { %s3722_s29 = smov (%p30_p4, %s3720_s29), 0 }
   0xb   : > { %s32_s7 = ssub.s32 %s3100_s26, %s3722_s29  ;;  %220 = sbr.rel (%p2686_p6) target bundleno = 27 (0x1b), region = 28 }
   0xc   : > { %s34_s8 = sor.u32 %s33_s30, %s32_s7 }
   0xd   : > { %p35_p5 = scmp.eq.s32.totalorder %s34_s8, 0 }
   0xf   : > { %s3193_s10 = scalar_select %p35_p5, %s3084_s22, %s37_s9  }
  0x12   : > { %223 = sbr.rel (!%p46_p3) target bundleno = 27 (0x1b), region = 32  ;;  %s225_s11 = sand.u32 (%p46_p3), 1, %s3084_s22  }
  0x13   : > { %s2689_s12 = sshll.u32 (%p46_p3), %s3096_s25, 2  ;;  %s2687_s13 = sshll.u32 (%p46_p3), %s225_s11, 5 }
  0x14   : > { %s2967_s14 = sshll.u32 (%p46_p3), %s3100_s26, 5  ;;  %s227_s20 = scalar_lea.vmem (%p46_p3), [#allocation3], %s2687_s13 }
  0x15   : > { %s231_s15 = sadd.s32 (%p46_p3), %s2967_s14, %s2689_s12 }
  0x16   : > { %s2691_s16 = sshll.u32 (%p46_p3), %s231_s15, 2 }
  0x17   : > { %s233_s19 = scalar_lea.vmem (%p46_p3), %s3704_s0, %s2691_s16 }
  0x18   : > { %v246_v0 = vld [vmem:[%s233_s19] sm:$0xff] (%p46_p3)  ;;  %v248_v1 = vld [vmem:[%s233_s19 + $0x8] sm:$0xff] (%p46_p3) }
  0x19   : > { %v250_v2 = vld [vmem:[%s233_s19 + $0x40] sm:$0xff]  ;;  %247 = vst [vmem:[%s227_s20] sm:$0xff] %v246_v0  ;;  %249 = vst [vmem:[%s227_s20 + $0x8] sm:$0xff] %v248_v1  ;;  %v252_v3 = vld [vmem:[%s233_s19 + $0x48] sm:$0xff] }
  0x1a   : > { %251 = vst [vmem:[%s227_s20 + $0x10] sm:$0xff] %v250_v2  ;;  %253 = vst [vmem:[%s227_s20 + $0x18] sm:$0xff] %v252_v3 }
  0x1b PF: > { %p2692_p7 = scmp.ge.s32.totalorder %s3104_s27, 1  ;;  %p278_p8 = scmp.lt.s32.totalorder %s3104_s27, 9 }
  0x1d   : > { %p279_p9 = pnand %p2692_p7, %p278_p8 }
  0x1e   : > { %s285_s30 = sand.u32 (!%p279_p9), 1, %s3080_s21   ;;  %s2694_s7 = sshll.u32 (!%p279_p9), %s3088_s23, 6 }
  0x1f   : > { %282 = sbr.rel (%p279_p9) target bundleno = 552 (0x228), region = 63  ;;  %s2693_s8 = sshll.u32 (!%p279_p9), %s285_s30, 5 }
  0x20   : > { %p330_p10 = scmp.lt.s32.totalorder (!%p279_p9), %s2694_s7, 255  ;;  %s2697_s9 = sshll.u32 (!%p279_p9), %s3092_s24, 1 }
  0x21   : > { %p337_p11 = scmp.lt.s32.totalorder (!%p279_p9), %s2697_s9, 3  ;;  %s3222_s24 = scalar_lea.vmem (!%p279_p9), [#allocation3], %s2693_s8 }
  0x22   : > { %p2703_p12 = scmp.ne.s32.totalorder (!%p279_p9), %s3088_s23, 0 }
  0x26   : > { %s3724_s7 = smov (!%p330_p10, %s2694_s7), 255  ;;  %s3726_s9 = smov (!%p337_p11, %s2697_s9), 3 }
  0x27   : > { %s2968_s11 = sshll.u32 %s3724_s7, 5  ;;  %s2969_s15 = sshll.u32 %s3726_s9, 6  ;;  %v3106_v4 = vmov (!%p2703_p12), 0.0  }
  0x28   : > { %s3210_s14 = scalar_lea.vmem %s3705_s1, %s2968_s11  ;;  %s3215_s18 = scalar_lea.vmem %s3709_s5, %s2969_s15  ;;  %354 = vst [vmem:[#allocation2] sm:$0xff] (!%p2703_p12), %v3106_v4  ;;  %355 = vst [vmem:[#allocation2 + $0x8] sm:$0xff] (!%p2703_p12), %v3106_v4 }
  0x29   : > { %s3220_s20 = scalar_lea.vmem %s3710_s6, %s2969_s15  ;;  %353 = sbr.rel (%p2703_p12) target bundleno = 48 (0x30), region = 71  ;;  %356 = vst [vmem:[#allocation2 + $0x10] sm:$0xff] (!%p2703_p12), %v3106_v4  ;;  %357 = vst [vmem:[#allocation2 + $0x18] sm:$0xff] (!%p2703_p12), %v3106_v4 }
  0x2a   : > { %358 = vst [vmem:[#allocation2 + $0x20] sm:$0xff] (!%p2703_p12), %v3106_v4  ;;  %359 = vst [vmem:[#allocation2 + $0x28] sm:$0xff] (!%p2703_p12), %v3106_v4 }
  0x2b   : > { %360 = vst [vmem:[#allocation2 + $0x30] sm:$0xff] (!%p2703_p12), %v3106_v4  ;;  %361 = vst [vmem:[#allocation2 + $0x38] sm:$0xff] (!%p2703_p12), %v3106_v4 }
  0x2c   : > { %362 = vst [vmem:[#allocation2 + $0x40] sm:$0xff] (!%p2703_p12), %v3106_v4  ;;  %363 = vst [vmem:[#allocation2 + $0x48] sm:$0xff] (!%p2703_p12), %v3106_v4 }
  0x2d   : > { %364 = vst [vmem:[#allocation2 + $0x50] sm:$0xff] (!%p2703_p12), %v3106_v4  ;;  %365 = vst [vmem:[#allocation2 + $0x58] sm:$0xff] (!%p2703_p12), %v3106_v4 }
  0x2e   : > { %366 = vst [vmem:[#allocation2 + $0x60] sm:$0xff] (!%p2703_p12), %v3106_v4  ;;  %367 = vst [vmem:[#allocation2 + $0x68] sm:$0xff] (!%p2703_p12), %v3106_v4 }
  0x2f   : > { %368 = vst [vmem:[#allocation2 + $0x70] sm:$0xff] (!%p2703_p12), %v3106_v4  ;;  %369 = vst [vmem:[#allocation2 + $0x78] sm:$0xff] (!%p2703_p12), %v3106_v4 }
  0x30 PF: > { %v390_v5 = vld [vmem:[%s3210_s14] sm:$0xff]  ;;  %v391_v7 = vld [vmem:[%s3210_s14 + $0x8] sm:$0xff]  ;;  %p2964_p13 = scmp.ne.s32.totalorder %s3088_s23, 3 }
  0x31   : > { %v394_v6 = vld [vmem:[%s3210_s14 + $0x20] sm:$0xff]  ;;  %v395_v9 = vld [vmem:[%s3210_s14 + $0x28] sm:$0xff] }
  0x32   : > { %v2709_v8 = vcombine.high %v390_v5, %v394_v6  ;;  %v2708_v10 = vcombine.low %v390_v5, %v394_v6  ;;  %v398_v11 = vld [vmem:[%s3210_s14 + $0x40] sm:$0xff]  ;;  %v2711_v13 = vcombine.high %v391_v7, %v395_v9  ;;  %v2710_v14 = vcombine.low %v391_v7, %v395_v9  ;;  %v399_v16 = vld [vmem:[%s3210_s14 + $0x48] sm:$0xff] }
  0x33   : > { %v402_v12 = vld [vmem:[%s3210_s14 + $0x60] sm:$0xff]  ;;  %v403_v17 = vld [vmem:[%s3210_s14 + $0x68] sm:$0xff] }
  0x34   : > { %v2717_v15 = vcombine.high %v398_v11, %v402_v12  ;;  %v406_v18 = vld [vmem:[%s3210_s14 + $0x80] sm:$0xff]  ;;  %1946 = vmatprep.subr.bf16.mxu0 %v2709_v8  ;;  %v2719_v19 = vcombine.high %v399_v16, %v403_v17  ;;  %v407_v21 = vld [vmem:[%s3210_s14 + $0x88] sm:$0xff]  ;;  %2032 = vmatprep.subr.bf16.mxu1 %v2711_v13  ;;  %v2716_v23 = vcombine.low %v398_v11, %v402_v12 }
  0x35   : > { %v410_v20 = vld [vmem:[%s3210_s14 + $0xa0] sm:$0xff]  ;;  %v411_v22 = vld [vmem:[%s3210_s14 + $0xa8] sm:$0xff]  ;;  %1947 = vmatpush1.bf16.msra.mxu0 %v2708_v10  ;;  %2033 = vmatpush1.bf16.msra.mxu1 %v2710_v14  ;;  %v2718_v24 = vcombine.low %v399_v16, %v403_v17 }
  0x36   : > { %1948 = vmatprep.subr.bf16.mxu0 %v2717_v15  ;;  %v2725_v25 = vcombine.high %v406_v18, %v410_v20  ;;  %2034 = vmatprep.subr.bf16.mxu1 %v2719_v19  ;;  %v2727_v26 = vcombine.high %v407_v21, %v411_v22  ;;  %v414_v27 = vld [vmem:[%s3210_s14 + $0xc0] sm:$0xff]  ;;  %v415_v29 = vld [vmem:[%s3210_s14 + $0xc8] sm:$0xff]  ;;  %v2724_v31 = vcombine.low %v406_v18, %v410_v20 }
  0x37   : > { %v418_v28 = vld [vmem:[%s3210_s14 + $0xe0] sm:$0xff]  ;;  %v419_v30 = vld [vmem:[%s3210_s14 + $0xe8] sm:$0xff]  ;;  %v2726_v32 = vcombine.low %v407_v21, %v411_v22 }
  0x38   : > { %v2733_v33 = vcombine.high %v414_v27, %v418_v28  ;;  %v2735_v34 = vcombine.high %v415_v29, %v419_v30  ;;  %v422_v35 = vld [vmem:[%s3210_s14 + $0x100] sm:$0xff]  ;;  %v423_v37 = vld [vmem:[%s3210_s14 + $0x108] sm:$0xff]  ;;  %v2732_v39 = vcombine.low %v414_v27, %v418_v28  ;;  %v2734_v40 = vcombine.low %v415_v29, %v419_v30 }
  0x39   : > { %1949 = vmatpush1.bf16.msra.mxu0 %v2716_v23  ;;  %2035 = vmatpush1.bf16.msra.mxu1 %v2718_v24  ;;  %v426_v36 = vld [vmem:[%s3210_s14 + $0x120] sm:$0xff]  ;;  %v427_v38 = vld [vmem:[%s3210_s14 + $0x128] sm:$0xff] }
  0x3a   : > { %1950 = vmatprep.subr.bf16.mxu0 %v2725_v25  ;;  %2036 = vmatprep.subr.bf16.mxu1 %v2727_v26  ;;  %v2741_v41 = vcombine.high %v422_v35, %v426_v36  ;;  %v2743_v42 = vcombine.high %v423_v37, %v427_v38  ;;  %v430_v43 = vld [vmem:[%s3210_s14 + $0x140] sm:$0xff]  ;;  %v431_v45 = vld [vmem:[%s3210_s14 + $0x148] sm:$0xff]  ;;  %v2740_v47 = vcombine.low %v422_v35, %v426_v36 }
  0x3b   : > { %v434_v44 = vld [vmem:[%s3210_s14 + $0x160] sm:$0xff]  ;;  %v435_v46 = vld [vmem:[%s3210_s14 + $0x168] sm:$0xff]  ;;  %v2742_v48 = vcombine.low %v423_v37, %v427_v38 }
  0x3c   : > { %v2749_v49 = vcombine.high %v430_v43, %v434_v44  ;;  %v2751_v50 = vcombine.high %v431_v45, %v435_v46  ;;  %v438_v51 = vld [vmem:[%s3210_s14 + $0x180] sm:$0xff]  ;;  %v439_v53 = vld [vmem:[%s3210_s14 + $0x188] sm:$0xff]  ;;  %v2748_v55 = vcombine.low %v430_v43, %v434_v44  ;;  %v2750_v56 = vcombine.low %v431_v45, %v435_v46 }
  0x3d   : > { %1951 = vmatpush1.bf16.msra.mxu0 %v2724_v31  ;;  %2037 = vmatpush1.bf16.msra.mxu1 %v2726_v32  ;;  %v442_v52 = vld [vmem:[%s3210_s14 + $0x1a0] sm:$0xff]  ;;  %v443_v54 = vld [vmem:[%s3210_s14 + $0x1a8] sm:$0xff] }
  0x3e   : > { %1952 = vmatprep.subr.bf16.mxu0 %v2733_v33  ;;  %2038 = vmatprep.subr.bf16.mxu1 %v2735_v34  ;;  %v2757_v57 = vcombine.high %v438_v51, %v442_v52  ;;  %v2759_v58 = vcombine.high %v439_v53, %v443_v54  ;;  %v446_v59 = vld [vmem:[%s3210_s14 + $0x1c0] sm:$0xff]  ;;  %v447_v62 = vld [vmem:[%s3210_s14 + $0x1c8] sm:$0xff]  ;;  %v2756_v0 = vcombine.low %v438_v51, %v442_v52 }
  0x3f   : > { %v450_v60 = vld [vmem:[%s3210_s14 + $0x1e0] sm:$0xff]  ;;  %v451_v63 = vld [vmem:[%s3210_s14 + $0x1e8] sm:$0xff]  ;;  %v2758_v1 = vcombine.low %v439_v53, %v443_v54 }
  0x40   : > { %v3256_v61 = vld [vmem:[%s3222_s24 + $0x4] ss:$16 sps:$4 sm:$0xff]   ;;  %v2765_v2 = vcombine.high %v446_v59, %v450_v60  ;;  %v2767_v3 = vcombine.high %v447_v62, %v451_v63  ;;  %v455_v6 = vld [vmem:[%s3210_s14 + $0x208] sm:$0xff]  ;;  %v2764_v8 = vcombine.low %v446_v59, %v450_v60  ;;  %v2766_v9 = vcombine.low %v447_v62, %v451_v63 }
  0x41   : > { %1953 = vmatpush1.bf16.msra.mxu0 %v2732_v39  ;;  %2039 = vmatpush1.bf16.msra.mxu1 %v2734_v40  ;;  %v454_v4 = vld [vmem:[%s3210_s14 + $0x200] sm:$0xff]  ;;  %v459_v7 = vld [vmem:[%s3210_s14 + $0x228] sm:$0xff] }
  0x42   : > { %1954 = vmatprep.subr.bf16.mxu0 %v2741_v41  ;;  %2040 = vmatprep.subr.bf16.mxu1 %v2743_v42  ;;  %v458_v5 = vld [vmem:[%s3210_s14 + $0x220] sm:$0xff]  ;;  %v2775_v11 = vcombine.high %v455_v6, %v459_v7  ;;  %v463_v14 = vld [vmem:[%s3210_s14 + $0x248] sm:$0xff]  ;;  %v2774_v17 = vcombine.low %v455_v6, %v459_v7 }
  0x43   : > { %1978 = vmatprep.mubr.bf16.mxu0 %v3256_v61  ;;  %2064 = vmatprep.mubr.bf16.mxu1 %v3256_v61  ;;  %v2773_v10 = vcombine.high %v454_v4, %v458_v5  ;;  %v462_v12 = vld [vmem:[%s3210_s14 + $0x240] sm:$0xff]  ;;  %v467_v15 = vld [vmem:[%s3210_s14 + $0x268] sm:$0xff]  ;;  %v2772_v16 = vcombine.low %v454_v4, %v458_v5 }
  0x44   : > { %v466_v13 = vld [vmem:[%s3210_s14 + $0x260] sm:$0xff]  ;;  %v2783_v19 = vcombine.high %v463_v14, %v467_v15  ;;  %v471_v22 = vld [vmem:[%s3210_s14 + $0x288] sm:$0xff]  ;;  %v2782_v25 = vcombine.low %v463_v14, %v467_v15 }
  0x45   : > { %1955 = vmatpush1.bf16.msra.mxu0 %v2740_v47  ;;  %2041 = vmatpush1.bf16.msra.mxu1 %v2742_v48  ;;  %v2781_v18 = vcombine.high %v462_v12, %v466_v13  ;;  %v470_v20 = vld [vmem:[%s3210_s14 + $0x280] sm:$0xff]  ;;  %v475_v23 = vld [vmem:[%s3210_s14 + $0x2a8] sm:$0xff]  ;;  %v2780_v24 = vcombine.low %v462_v12, %v466_v13 }
  0x46   : > { %1956 = vmatprep.subr.bf16.mxu0 %v2749_v49  ;;  %2042 = vmatprep.subr.bf16.mxu1 %v2751_v50  ;;  %v474_v21 = vld [vmem:[%s3210_s14 + $0x2a0] sm:$0xff]  ;;  %v2791_v27 = vcombine.high %v471_v22, %v475_v23  ;;  %v479_v30 = vld [vmem:[%s3210_s14 + $0x2c8] sm:$0xff]  ;;  %v2790_v33 = vcombine.low %v471_v22, %v475_v23 }
  0x47   : > { %v2789_v26 = vcombine.high %v470_v20, %v474_v21  ;;  %v478_v28 = vld [vmem:[%s3210_s14 + $0x2c0] sm:$0xff]  ;;  %v483_v31 = vld [vmem:[%s3210_s14 + $0x2e8] sm:$0xff]  ;;  %v2788_v32 = vcombine.low %v470_v20, %v474_v21 }
  0x48   : > { %v482_v29 = vld [vmem:[%s3210_s14 + $0x2e0] sm:$0xff]  ;;  %v2799_v35 = vcombine.high %v479_v30, %v483_v31  ;;  %v487_v38 = vld [vmem:[%s3210_s14 + $0x308] sm:$0xff]  ;;  %v2798_v41 = vcombine.low %v479_v30, %v483_v31 }
  0x49   : > { %1957 = vmatpush1.bf16.msra.mxu0 %v2748_v55  ;;  %2043 = vmatpush1.bf16.msra.mxu1 %v2750_v56  ;;  %v2797_v34 = vcombine.high %v478_v28, %v482_v29  ;;  %v486_v36 = vld [vmem:[%s3210_s14 + $0x300] sm:$0xff]  ;;  %v491_v39 = vld [vmem:[%s3210_s14 + $0x328] sm:$0xff]  ;;  %v2796_v40 = vcombine.low %v478_v28, %v482_v29 }
  0x4a   : > { %1958 = vmatprep.subr.bf16.mxu0 %v2757_v57  ;;  %2044 = vmatprep.subr.bf16.mxu1 %v2759_v58  ;;  %v490_v37 = vld [vmem:[%s3210_s14 + $0x320] sm:$0xff]  ;;  %v2807_v43 = vcombine.high %v487_v38, %v491_v39  ;;  %v495_v46 = vld [vmem:[%s3210_s14 + $0x348] sm:$0xff]  ;;  %v2806_v49 = vcombine.low %v487_v38, %v491_v39 }
  0x4b   : > { %v2805_v42 = vcombine.high %v486_v36, %v490_v37  ;;  %v494_v44 = vld [vmem:[%s3210_s14 + $0x340] sm:$0xff]  ;;  %v499_v47 = vld [vmem:[%s3210_s14 + $0x368] sm:$0xff]  ;;  %v2804_v48 = vcombine.low %v486_v36, %v490_v37 }
  0x4c   : > { %v498_v45 = vld [vmem:[%s3210_s14 + $0x360] sm:$0xff]  ;;  %v2815_v51 = vcombine.high %v495_v46, %v499_v47  ;;  %v503_v54 = vld [vmem:[%s3210_s14 + $0x388] sm:$0xff]  ;;  %v2814_v57 = vcombine.low %v495_v46, %v499_v47 }
  0x4d   : > { %1959 = vmatpush1.bf16.msra.mxu0 %v2756_v0  ;;  %2045 = vmatpush1.bf16.msra.mxu1 %v2758_v1  ;;  %v2813_v50 = vcombine.high %v494_v44, %v498_v45  ;;  %v502_v52 = vld [vmem:[%s3210_s14 + $0x380] sm:$0xff]  ;;  %v507_v55 = vld [vmem:[%s3210_s14 + $0x3a8] sm:$0xff]  ;;  %v2812_v56 = vcombine.low %v494_v44, %v498_v45 }
  0x4e   : > { %1960 = vmatprep.subr.bf16.mxu0 %v2765_v2  ;;  %2046 = vmatprep.subr.bf16.mxu1 %v2767_v3  ;;  %v506_v53 = vld [vmem:[%s3210_s14 + $0x3a0] sm:$0xff]  ;;  %v2823_v59 = vcombine.high %v503_v54, %v507_v55  ;;  %v511_v63 = vld [vmem:[%s3210_s14 + $0x3c8] sm:$0xff]  ;;  %v2822_v2 = vcombine.low %v503_v54, %v507_v55 }
  0x4f   : > { %v2821_v58 = vcombine.high %v502_v52, %v506_v53  ;;  %v510_v60 = vld [vmem:[%s3210_s14 + $0x3c0] sm:$0xff]  ;;  %v515_v0 = vld [vmem:[%s3210_s14 + $0x3e8] sm:$0xff]  ;;  %v2820_v1 = vcombine.low %v502_v52, %v506_v53 }
  0x50   : > { %v514_v62 = vld [vmem:[%s3210_s14 + $0x3e0] sm:$0xff]  ;;  %v2831_v4 = vcombine.high %v511_v63, %v515_v0  ;;  %v519_v7 = vld [vmem:[%s3210_s14 + $0x408] sm:$0xff] }
  0x51   : > { %1961 = vmatpush1.bf16.msra.mxu0 %v2764_v8  ;;  %2047 = vmatpush1.bf16.msra.mxu1 %v2766_v9  ;;  %v2829_v3 = vcombine.high %v510_v60, %v514_v62  ;;  %v518_v5 = vld [vmem:[%s3210_s14 + $0x400] sm:$0xff]  ;;  %v523_v8 = vld [vmem:[%s3210_s14 + $0x428] sm:$0xff]  ;;  %v2828_v9 = vcombine.low %v510_v60, %v514_v62 }
  0x52   : > { %1962 = vmatprep.subr.bf16.mxu0 %v2773_v10  ;;  %2048 = vmatprep.subr.bf16.mxu1 %v2775_v11  ;;  %v522_v6 = vld [vmem:[%s3210_s14 + $0x420] sm:$0xff]  ;;  %v2830_v10 = vcombine.low %v511_v63, %v515_v0  ;;  %v2839_v12 = vcombine.high %v519_v7, %v523_v8 }
  0x53   : > { %v2837_v11 = vcombine.high %v518_v5, %v522_v6  ;;  %v526_v13 = vld [vmem:[%s3210_s14 + $0x440] sm:$0xff] }
  0x54   : > { %v530_v14 = vld [vmem:[%s3210_s14 + $0x460] sm:$0xff] }
  0x55   : > { %1963 = vmatpush1.bf16.msra.mxu0 %v2772_v16  ;;  %2049 = vmatpush1.bf16.msra.mxu1 %v2774_v17  ;;  %v3301_v15 = vld [vmem:[%s3222_s24] ss:$16 sps:$4 sm:$0xff]   ;;  %v527_v16 = vld [vmem:[%s3210_s14 + $0x448] sm:$0xff]  ;;  %v2845_v20 = vcombine.high %v526_v13, %v530_v14 }
  0x56   : > { %1964 = vmatprep.subr.bf16.mxu0 %v2781_v18  ;;  %2050 = vmatprep.subr.bf16.mxu1 %v2783_v19  ;;  %v531_v17 = vld [vmem:[%s3210_s14 + $0x468] sm:$0xff]  ;;  %v2836_v18 = vcombine.low %v518_v5, %v522_v6  ;;  %v2838_v19 = vcombine.low %v519_v7, %v523_v8  ;;  %v534_v22 = vld [vmem:[%s3210_s14 + $0x480] sm:$0xff] }
  0x57   : > { %v2847_v21 = vcombine.high %v527_v16, %v531_v17  ;;  %v538_v23 = vld [vmem:[%s3210_s14 + $0x4a0] sm:$0xff]  ;;  %v2846_v28 = vcombine.low %v527_v16, %v531_v17 }
  0x58   : > { %v2853_v29 = vcombine.high %v534_v22, %v538_v23  ;;  %v542_v31 = vld [vmem:[%s3210_s14 + $0x4c0] sm:$0xff] }
  0x59   : > { %1965 = vmatpush1.bf16.msra.mxu0 %v2780_v24  ;;  %2051 = vmatpush1.bf16.msra.mxu1 %v2782_v25  ;;  %v3308_v24 = vld [vmem:[%s3222_s24 + $0xc] ss:$16 sps:$4 sm:$0xff]   ;;  %v550_v39 = vld [vmem:[%s3210_s14 + $0x500] sm:$0xff] }
  0x5a   : > { %1966 = vmatprep.subr.bf16.mxu0 %v2789_v26  ;;  %2052 = vmatprep.subr.bf16.mxu1 %v2791_v27  ;;  %v535_v25 = vld [vmem:[%s3210_s14 + $0x488] sm:$0xff]  ;;  %v2844_v27 = vcombine.low %v526_v13, %v530_v14  ;;  %v558_v47 = vld [vmem:[%s3210_s14 + $0x540] sm:$0xff] }
  0x5b   : > { %v539_v26 = vld [vmem:[%s3210_s14 + $0x4a8] sm:$0xff]  ;;  %v566_v55 = vld [vmem:[%s3210_s14 + $0x580] sm:$0xff] }
  0x5c   : > { %v2855_v30 = vcombine.high %v535_v25, %v539_v26  ;;  %v2854_v36 = vcombine.low %v535_v25, %v539_v26  ;;  %v574_v0 = vld [vmem:[%s3210_s14 + $0x5c0] sm:$0xff] }
  0x5d   : > { %1967 = vmatpush1.bf16.msra.mxu0 %v2788_v32  ;;  %2053 = vmatpush1.bf16.msra.mxu1 %v2790_v33  ;;  %v546_v32 = vld [vmem:[%s3210_s14 + $0x4e0] sm:$0xff]  ;;  %v543_v33 = vld [vmem:[%s3210_s14 + $0x4c8] sm:$0xff] }
  0x5e   : > { %1968 = vmatprep.subr.bf16.mxu0 %v2797_v34  ;;  %2054 = vmatprep.subr.bf16.mxu1 %v2799_v35  ;;  %v547_v34 = vld [vmem:[%s3210_s14 + $0x4e8] sm:$0xff]  ;;  %v2852_v35 = vcombine.low %v534_v22, %v538_v23  ;;  %v2861_v37 = vcombine.high %v542_v31, %v546_v32  ;;  %v582_v8 = vld [vmem:[%s3210_s14 + $0x600] sm:$0xff] }
  0x5f   : > { %v2863_v38 = vcombine.high %v543_v33, %v547_v34  ;;  %v2862_v44 = vcombine.low %v543_v33, %v547_v34  ;;  %v590_v17 = vld [vmem:[%s3210_s14 + $0x640] sm:$0xff] }
  0x60   : > { %v598_v26 = vld [vmem:[%s3210_s14 + $0x680] sm:$0xff] }
  0x61   : > { %1969 = vmatpush1.bf16.msra.mxu0 %v2796_v40  ;;  %2055 = vmatpush1.bf16.msra.mxu1 %v2798_v41  ;;  %v554_v40 = vld [vmem:[%s3210_s14 + $0x520] sm:$0xff]  ;;  %v551_v41 = vld [vmem:[%s3210_s14 + $0x508] sm:$0xff] }
  0x62   : > { %1970 = vmatprep.subr.bf16.mxu0 %v2805_v42  ;;  %2056 = vmatprep.subr.bf16.mxu1 %v2807_v43  ;;  %v555_v42 = vld [vmem:[%s3210_s14 + $0x528] sm:$0xff]  ;;  %v2860_v43 = vcombine.low %v542_v31, %v546_v32  ;;  %v2869_v45 = vcombine.high %v550_v39, %v554_v40  ;;  %v606_v34 = vld [vmem:[%s3210_s14 + $0x6c0] sm:$0xff] }
  0x63   : > { %v2871_v46 = vcombine.high %v551_v41, %v555_v42  ;;  %v2870_v52 = vcombine.low %v551_v41, %v555_v42  ;;  %v614_v42 = vld [vmem:[%s3210_s14 + $0x700] sm:$0xff] }
  0x65   : > { %1971 = vmatpush1.bf16.msra.mxu0 %v2804_v48  ;;  %2057 = vmatpush1.bf16.msra.mxu1 %v2806_v49  ;;  %v562_v48 = vld [vmem:[%s3210_s14 + $0x560] sm:$0xff]  ;;  %v559_v49 = vld [vmem:[%s3210_s14 + $0x548] sm:$0xff] }
  0x66   : > { %1972 = vmatprep.subr.bf16.mxu0 %v2813_v50  ;;  %2058 = vmatprep.subr.bf16.mxu1 %v2815_v51  ;;  %v563_v50 = vld [vmem:[%s3210_s14 + $0x568] sm:$0xff]  ;;  %v2868_v51 = vcombine.low %v550_v39, %v554_v40  ;;  %v2877_v53 = vcombine.high %v558_v47, %v562_v48 }
  0x67   : > { %v2879_v54 = vcombine.high %v559_v49, %v563_v50  ;;  %v2878_v60 = vcombine.low %v559_v49, %v563_v50  ;;  %v622_v50 = vld [vmem:[%s3210_s14 + $0x740] sm:$0xff] }
  0x69   : > { %1973 = vmatpush1.bf16.msra.mxu0 %v2812_v56  ;;  %2059 = vmatpush1.bf16.msra.mxu1 %v2814_v57  ;;  %v570_v56 = vld [vmem:[%s3210_s14 + $0x5a0] sm:$0xff]  ;;  %v567_v57 = vld [vmem:[%s3210_s14 + $0x588] sm:$0xff] }
  0x6a   : > { %1974 = vmatprep.subr.bf16.mxu0 %v2821_v58  ;;  %2060 = vmatprep.subr.bf16.mxu1 %v2823_v59  ;;  %v571_v58 = vld [vmem:[%s3210_s14 + $0x5a8] sm:$0xff]  ;;  %v2876_v59 = vcombine.low %v558_v47, %v562_v48  ;;  %v2885_v62 = vcombine.high %v566_v55, %v570_v56 }
  0x6b   : > { %v2887_v63 = vcombine.high %v567_v57, %v571_v58  ;;  %v2886_v5 = vcombine.low %v567_v57, %v571_v58  ;;  %v630_v58 = vld [vmem:[%s3210_s14 + $0x780] sm:$0xff] }
  0x6d   : > { %1975 = vmatpush1.bf16.msra.mxu0 %v2820_v1  ;;  %2061 = vmatpush1.bf16.msra.mxu1 %v2822_v2  ;;  %v578_v1 = vld [vmem:[%s3210_s14 + $0x5e0] sm:$0xff]  ;;  %v575_v2 = vld [vmem:[%s3210_s14 + $0x5c8] sm:$0xff] }
  0x6e   : > { %1976 = vmatprep.subr.bf16.mxu0 %v2829_v3  ;;  %2062 = vmatprep.subr.bf16.mxu1 %v2831_v4  ;;  %v579_v3 = vld [vmem:[%s3210_s14 + $0x5e8] sm:$0xff]  ;;  %v2884_v4 = vcombine.low %v566_v55, %v570_v56  ;;  %v2893_v6 = vcombine.high %v574_v0, %v578_v1 }
  0x6f   : > { %v2895_v7 = vcombine.high %v575_v2, %v579_v3  ;;  %v2894_v13 = vcombine.low %v575_v2, %v579_v3  ;;  %v638_v3 = vld [vmem:[%s3210_s14 + $0x7c0] sm:$0xff] }
  0x71   : > { %1977 = vmatpush1.bf16.msra.mxu0 %v2828_v9  ;;  %2063 = vmatpush1.bf16.msra.mxu1 %v2830_v10  ;;  %v586_v9 = vld [vmem:[%s3210_s14 + $0x620] sm:$0xff]  ;;  %v583_v10 = vld [vmem:[%s3210_s14 + $0x608] sm:$0xff] }
  0x72   : > { %1989 = vmatprep.subr.bf16.mxu0 %v2837_v11  ;;  %2075 = vmatprep.subr.bf16.mxu1 %v2839_v12  ;;  %v587_v11 = vld [vmem:[%s3210_s14 + $0x628] sm:$0xff]  ;;  %v2892_v12 = vcombine.low %v574_v0, %v578_v1  ;;  %v2901_v14 = vcombine.high %v582_v8, %v586_v9 }
  0x73   : > { %v2903_v16 = vcombine.high %v583_v10, %v587_v11  ;;  %v2902_v22 = vcombine.low %v583_v10, %v587_v11  ;;  %v392_v11 = vld [vmem:[%s3210_s14 + $0x10] sm:$0xff] }
  0x74   : > { %1979 = vmatmul.mubr.bf16.vlgmr.msra.gmra.mrb[0].mxu0 %v3301_v15  ;;  %2065 = vmatmul.mubr.bf16.vlgmr.msra.gmra.mrb[0].mxu1 %v3301_v15 }
  0x75   : > { %1990 = vmatpush1.bf16.msra.mxu0 %v2836_v18  ;;  %2076 = vmatpush1.bf16.msra.mxu1 %v2838_v19  ;;  %v594_v18 = vld [vmem:[%s3210_s14 + $0x660] sm:$0xff]  ;;  %v591_v19 = vld [vmem:[%s3210_s14 + $0x648] sm:$0xff] }
  0x76   : > { %1991 = vmatprep.subr.bf16.mxu0 %v2845_v20  ;;  %2077 = vmatprep.subr.bf16.mxu1 %v2847_v21  ;;  %v595_v20 = vld [vmem:[%s3210_s14 + $0x668] sm:$0xff]  ;;  %v2900_v21 = vcombine.low %v582_v8, %v586_v9  ;;  %v2909_v23 = vcombine.high %v590_v17, %v594_v18 }
  0x77   : > { %2021 = vmatprep.mubr.bf16.mxu0 %v3308_v24  ;;  %2107 = vmatprep.mubr.bf16.mxu1 %v3308_v24  ;;  %v2911_v25 = vcombine.high %v591_v19, %v595_v20  ;;  %v2910_v31 = vcombine.low %v591_v19, %v595_v20  ;;  %v400_v20 = vld [vmem:[%s3210_s14 + $0x50] sm:$0xff] }
  0x79   : > { %1992 = vmatpush1.bf16.msra.mxu0 %v2844_v27  ;;  %2078 = vmatpush1.bf16.msra.mxu1 %v2846_v28  ;;  %v602_v27 = vld [vmem:[%s3210_s14 + $0x6a0] sm:$0xff]  ;;  %v599_v28 = vld [vmem:[%s3210_s14 + $0x688] sm:$0xff] }
  0x7a   : > { %1993 = vmatprep.subr.bf16.mxu0 %v2853_v29  ;;  %2079 = vmatprep.subr.bf16.mxu1 %v2855_v30  ;;  %v603_v29 = vld [vmem:[%s3210_s14 + $0x6a8] sm:$0xff]  ;;  %v2908_v30 = vcombine.low %v590_v17, %v594_v18  ;;  %v2917_v32 = vcombine.high %v598_v26, %v602_v27 }
  0x7b   : > { %v2919_v33 = vcombine.high %v599_v28, %v603_v29  ;;  %v2918_v39 = vcombine.low %v599_v28, %v603_v29 }
  0x7d   : > { %1994 = vmatpush1.bf16.msra.mxu0 %v2852_v35  ;;  %2080 = vmatpush1.bf16.msra.mxu1 %v2854_v36  ;;  %v610_v35 = vld [vmem:[%s3210_s14 + $0x6e0] sm:$0xff]  ;;  %v607_v36 = vld [vmem:[%s3210_s14 + $0x6c8] sm:$0xff] }
  0x7e   : > { %1995 = vmatprep.subr.bf16.mxu0 %v2861_v37  ;;  %2081 = vmatprep.subr.bf16.mxu1 %v2863_v38  ;;  %v611_v37 = vld [vmem:[%s3210_s14 + $0x6e8] sm:$0xff]  ;;  %v2916_v38 = vcombine.low %v598_v26, %v602_v27  ;;  %v2925_v40 = vcombine.high %v606_v34, %v610_v35 }
  0x7f   : > { %v2927_v41 = vcombine.high %v607_v36, %v611_v37  ;;  %v2926_v47 = vcombine.low %v607_v36, %v611_v37 }
  0x81   : > { %1996 = vmatpush1.bf16.msra.mxu0 %v2860_v43  ;;  %2082 = vmatpush1.bf16.msra.mxu1 %v2862_v44  ;;  %v618_v43 = vld [vmem:[%s3210_s14 + $0x720] sm:$0xff]  ;;  %v615_v44 = vld [vmem:[%s3210_s14 + $0x708] sm:$0xff] }
  0x82   : > { %1997 = vmatprep.subr.bf16.mxu0 %v2869_v45  ;;  %2083 = vmatprep.subr.bf16.mxu1 %v2871_v46  ;;  %v619_v45 = vld [vmem:[%s3210_s14 + $0x728] sm:$0xff]  ;;  %v2924_v46 = vcombine.low %v606_v34, %v610_v35  ;;  %v2933_v48 = vcombine.high %v614_v42, %v618_v43 }
  0x83   : > { %v2935_v49 = vcombine.high %v615_v44, %v619_v45  ;;  %v2934_v55 = vcombine.low %v615_v44, %v619_v45 }
  0x85   : > { %1998 = vmatpush1.bf16.msra.mxu0 %v2868_v51  ;;  %2084 = vmatpush1.bf16.msra.mxu1 %v2870_v52  ;;  %v626_v51 = vld [vmem:[%s3210_s14 + $0x760] sm:$0xff]  ;;  %v623_v52 = vld [vmem:[%s3210_s14 + $0x748] sm:$0xff] }
  0x86   : > { %1999 = vmatprep.subr.bf16.mxu0 %v2877_v53  ;;  %2085 = vmatprep.subr.bf16.mxu1 %v2879_v54  ;;  %v627_v53 = vld [vmem:[%s3210_s14 + $0x768] sm:$0xff]  ;;  %v2932_v54 = vcombine.low %v614_v42, %v618_v43  ;;  %v2941_v56 = vcombine.high %v622_v50, %v626_v51 }
  0x87   : > { %v2943_v57 = vcombine.high %v623_v52, %v627_v53  ;;  %v2942_v0 = vcombine.low %v623_v52, %v627_v53  ;;  %v432_v53 = vld [vmem:[%s3210_s14 + $0x150] sm:$0xff] }
  0x89   : > { %2000 = vmatpush1.bf16.msra.mxu0 %v2876_v59  ;;  %2086 = vmatpush1.bf16.msra.mxu1 %v2878_v60  ;;  %v634_v59 = vld [vmem:[%s3210_s14 + $0x7a0] sm:$0xff]  ;;  %v631_v60 = vld [vmem:[%s3210_s14 + $0x788] sm:$0xff] }
  0x8a   : > { %2001 = vmatprep.subr.bf16.mxu0 %v2885_v62  ;;  %2087 = vmatprep.subr.bf16.mxu1 %v2887_v63  ;;  %v635_v62 = vld [vmem:[%s3210_s14 + $0x7a8] sm:$0xff]  ;;  %v2940_v63 = vcombine.low %v622_v50, %v626_v51  ;;  %v2949_v1 = vcombine.high %v630_v58, %v634_v59 }
  0x8b   : > { %v2951_v2 = vcombine.high %v631_v60, %v635_v62  ;;  %v2950_v8 = vcombine.low %v631_v60, %v635_v62  ;;  %v440_v62 = vld [vmem:[%s3210_s14 + $0x190] sm:$0xff] }
  0x8d   : > { %2002 = vmatpush1.bf16.msra.mxu0 %v2884_v4  ;;  %2088 = vmatpush1.bf16.msra.mxu1 %v2886_v5  ;;  %v642_v4 = vld [vmem:[%s3210_s14 + $0x7e0] sm:$0xff]  ;;  %v639_v5 = vld [vmem:[%s3210_s14 + $0x7c8] sm:$0xff] }
  0x8e   : > { %2003 = vmatprep.subr.bf16.mxu0 %v2893_v6  ;;  %2089 = vmatprep.subr.bf16.mxu1 %v2895_v7  ;;  %v643_v6 = vld [vmem:[%s3210_s14 + $0x7e8] sm:$0xff]  ;;  %v2948_v7 = vcombine.low %v630_v58, %v634_v59  ;;  %v2957_v9 = vcombine.high %v638_v3, %v642_v4 }
  0x8f   : > { %v2959_v10 = vcombine.high %v639_v5, %v643_v6  ;;  %v2958_v17 = vcombine.low %v639_v5, %v643_v6  ;;  %v448_v6 = vld [vmem:[%s3210_s14 + $0x1d0] sm:$0xff] }
  0x91   : > { %2004 = vmatpush1.bf16.msra.mxu0 %v2892_v12  ;;  %2090 = vmatpush1.bf16.msra.mxu1 %v2894_v13  ;;  %v396_v12 = vld [vmem:[%s3210_s14 + $0x30] sm:$0xff]  ;;  %v393_v13 = vld [vmem:[%s3210_s14 + $0x18] sm:$0xff] }
  0x92   : > { %2005 = vmatprep.subr.bf16.mxu0 %v2901_v14  ;;  %2091 = vmatprep.subr.bf16.mxu1 %v2903_v16  ;;  %v397_v14 = vld [vmem:[%s3210_s14 + $0x38] sm:$0xff]  ;;  %v2956_v16 = vcombine.low %v638_v3, %v642_v4  ;;  %v2713_v18 = vcombine.high %v392_v11, %v396_v12  ;;  %v2712_v26 = vcombine.low %v392_v11, %v396_v12 }
  0x93   : > { %v2715_v19 = vcombine.high %v393_v13, %v397_v14  ;;  %v2714_v27 = vcombine.low %v393_v13, %v397_v14  ;;  %v456_v14 = vld [vmem:[%s3210_s14 + $0x210] sm:$0xff] }
  0x95   : > { %2006 = vmatpush1.bf16.msra.mxu0 %v2900_v21  ;;  %2092 = vmatpush1.bf16.msra.mxu1 %v2902_v22  ;;  %v404_v21 = vld [vmem:[%s3210_s14 + $0x70] sm:$0xff]  ;;  %v3375_v22 = vld [vmem:[%s3222_s24 + $0x8] ss:$16 sps:$4 sm:$0xff]  }
  0x96   : > { %2007 = vmatprep.subr.bf16.mxu0 %v2909_v23  ;;  %2093 = vmatprep.subr.bf16.mxu1 %v2911_v25  ;;  %v401_v23 = vld [vmem:[%s3210_s14 + $0x58] sm:$0xff]  ;;  %v2721_v28 = vcombine.high %v400_v20, %v404_v21  ;;  %v2720_v34 = vcombine.low %v400_v20, %v404_v21 }
  0x97   : > { %v405_v25 = vld [vmem:[%s3210_s14 + $0x78] sm:$0xff] }
  0x98   : > { %v2723_v29 = vcombine.high %v401_v23, %v405_v25  ;;  %v2722_v35 = vcombine.low %v401_v23, %v405_v25  ;;  %v464_v25 = vld [vmem:[%s3210_s14 + $0x250] sm:$0xff] }
  0x99   : > { %2008 = vmatpush1.bf16.msra.mxu0 %v2908_v30  ;;  %2094 = vmatpush1.bf16.msra.mxu1 %v2910_v31  ;;  %v408_v30 = vld [vmem:[%s3210_s14 + $0x90] sm:$0xff] }
  0x9a   : > { %2009 = vmatprep.subr.bf16.mxu0 %v2917_v32  ;;  %2095 = vmatprep.subr.bf16.mxu1 %v2919_v33  ;;  %v412_v31 = vld [vmem:[%s3210_s14 + $0xb0] sm:$0xff]  ;;  %v409_v32 = vld [vmem:[%s3210_s14 + $0x98] sm:$0xff] }
  0x9b   : > { %v413_v33 = vld [vmem:[%s3210_s14 + $0xb8] sm:$0xff]  ;;  %v2729_v36 = vcombine.high %v408_v30, %v412_v31  ;;  %v2728_v42 = vcombine.low %v408_v30, %v412_v31 }
  0x9c   : > { %v2731_v37 = vcombine.high %v409_v32, %v413_v33  ;;  %v2730_v43 = vcombine.low %v409_v32, %v413_v33  ;;  %v472_v33 = vld [vmem:[%s3210_s14 + $0x290] sm:$0xff] }
  0x9d   : > { %2010 = vmatpush1.bf16.msra.mxu0 %v2916_v38  ;;  %2096 = vmatpush1.bf16.msra.mxu1 %v2918_v39  ;;  %v416_v38 = vld [vmem:[%s3210_s14 + $0xd0] sm:$0xff] }
  0x9e   : > { %2011 = vmatprep.subr.bf16.mxu0 %v2925_v40  ;;  %2097 = vmatprep.subr.bf16.mxu1 %v2927_v41  ;;  %v420_v39 = vld [vmem:[%s3210_s14 + $0xf0] sm:$0xff]  ;;  %v417_v40 = vld [vmem:[%s3210_s14 + $0xd8] sm:$0xff] }
  0x9f   : > { %v421_v41 = vld [vmem:[%s3210_s14 + $0xf8] sm:$0xff]  ;;  %v2737_v44 = vcombine.high %v416_v38, %v420_v39  ;;  %v2736_v50 = vcombine.low %v416_v38, %v420_v39 }
  0xa0   : > { %v2739_v45 = vcombine.high %v417_v40, %v421_v41 }
  0xa1   : > { %2012 = vmatpush1.bf16.msra.mxu0 %v2924_v46  ;;  %2098 = vmatpush1.bf16.msra.mxu1 %v2926_v47  ;;  %v424_v46 = vld [vmem:[%s3210_s14 + $0x110] sm:$0xff] }
  0xa2   : > { %2013 = vmatprep.subr.bf16.mxu0 %v2933_v48  ;;  %2099 = vmatprep.subr.bf16.mxu1 %v2935_v49  ;;  %v428_v47 = vld [vmem:[%s3210_s14 + $0x130] sm:$0xff]  ;;  %v425_v48 = vld [vmem:[%s3210_s14 + $0x118] sm:$0xff] }
  0xa3   : > { %v429_v49 = vld [vmem:[%s3210_s14 + $0x138] sm:$0xff]  ;;  %v2745_v51 = vcombine.high %v424_v46, %v428_v47 }
  0xa4   : > { %v2747_v52 = vcombine.high %v425_v48, %v429_v49  ;;  %v2746_v58 = vcombine.low %v425_v48, %v429_v49  ;;  %v488_v49 = vld [vmem:[%s3210_s14 + $0x310] sm:$0xff] }
  0xa5   : > { %2014 = vmatpush1.bf16.msra.mxu0 %v2932_v54  ;;  %2100 = vmatpush1.bf16.msra.mxu1 %v2934_v55  ;;  %v436_v54 = vld [vmem:[%s3210_s14 + $0x170] sm:$0xff]  ;;  %v433_v55 = vld [vmem:[%s3210_s14 + $0x158] sm:$0xff] }
  0xa6   : > { %2015 = vmatprep.subr.bf16.mxu0 %v2941_v56  ;;  %2101 = vmatprep.subr.bf16.mxu1 %v2943_v57  ;;  %v437_v56 = vld [vmem:[%s3210_s14 + $0x178] sm:$0xff]  ;;  %v2744_v57 = vcombine.low %v424_v46, %v428_v47  ;;  %v2753_v59 = vcombine.high %v432_v53, %v436_v54 }
  0xa7   : > { %v2755_v60 = vcombine.high %v433_v55, %v437_v56  ;;  %v2754_v3 = vcombine.low %v433_v55, %v437_v56  ;;  %v496_v56 = vld [vmem:[%s3210_s14 + $0x350] sm:$0xff] }
  0xa9   : > { %2016 = vmatpush1.bf16.msra.mxu0 %v2940_v63  ;;  %2102 = vmatpush1.bf16.msra.mxu1 %v2942_v0  ;;  %v444_v63 = vld [vmem:[%s3210_s14 + $0x1b0] sm:$0xff]  ;;  %v441_v0 = vld [vmem:[%s3210_s14 + $0x198] sm:$0xff] }
  0xaa   : > { %2017 = vmatprep.subr.bf16.mxu0 %v2949_v1  ;;  %2103 = vmatprep.subr.bf16.mxu1 %v2951_v2  ;;  %v445_v1 = vld [vmem:[%s3210_s14 + $0x1b8] sm:$0xff]  ;;  %v2752_v2 = vcombine.low %v432_v53, %v436_v54  ;;  %v2761_v4 = vcombine.high %v440_v62, %v444_v63 }
  0xab   : > { %v2763_v5 = vcombine.high %v441_v0, %v445_v1  ;;  %v2762_v11 = vcombine.low %v441_v0, %v445_v1  ;;  %v504_v1 = vld [vmem:[%s3210_s14 + $0x390] sm:$0xff] }
  0xad   : > { %2018 = vmatpush1.bf16.msra.mxu0 %v2948_v7  ;;  %2104 = vmatpush1.bf16.msra.mxu1 %v2950_v8  ;;  %v452_v7 = vld [vmem:[%s3210_s14 + $0x1f0] sm:$0xff]  ;;  %v449_v8 = vld [vmem:[%s3210_s14 + $0x1d8] sm:$0xff] }
  0xae   : > { %2019 = vmatprep.subr.bf16.mxu0 %v2957_v9  ;;  %2105 = vmatprep.subr.bf16.mxu1 %v2959_v10  ;;  %v453_v9 = vld [vmem:[%s3210_s14 + $0x1f8] sm:$0xff]  ;;  %v2760_v10 = vcombine.low %v440_v62, %v444_v63  ;;  %v2769_v12 = vcombine.high %v448_v6, %v452_v7 }
  0xaf   : > { %v2771_v13 = vcombine.high %v449_v8, %v453_v9  ;;  %v2770_v20 = vcombine.low %v449_v8, %v453_v9  ;;  %v512_v9 = vld [vmem:[%s3210_s14 + $0x3d0] sm:$0xff] }
  0xb1   : > { %2020 = vmatpush1.bf16.msra.mxu0 %v2956_v16  ;;  %2106 = vmatpush1.bf16.msra.mxu1 %v2958_v17  ;;  %v460_v16 = vld [vmem:[%s3210_s14 + $0x230] sm:$0xff]  ;;  %v457_v17 = vld [vmem:[%s3210_s14 + $0x218] sm:$0xff] }
  0xb2   : > { %2118 = vmatprep.subr.bf16.mxu0 %v2713_v18  ;;  %2204 = vmatprep.subr.bf16.mxu1 %v2715_v19  ;;  %v461_v18 = vld [vmem:[%s3210_s14 + $0x238] sm:$0xff]  ;;  %v2768_v19 = vcombine.low %v448_v6, %v452_v7  ;;  %v2777_v21 = vcombine.high %v456_v14, %v460_v16 }
  0xb3   : > { %v2779_v23 = vcombine.high %v457_v17, %v461_v18  ;;  %v2778_v30 = vcombine.low %v457_v17, %v461_v18  ;;  %v520_v18 = vld [vmem:[%s3210_s14 + $0x410] sm:$0xff] }
  0xb4   : > { %2022 = vmatmul.mubr.bf16.vlgmr.msra.gmra.mrb[0].mxu0 %v3375_v22  ;;  %2108 = vmatmul.mubr.bf16.vlgmr.msra.gmra.mrb[0].mxu1 %v3375_v22 }
  0xb5   : > { %2119 = vmatpush1.bf16.msra.mxu0 %v2712_v26  ;;  %2205 = vmatpush1.bf16.msra.mxu1 %v2714_v27  ;;  %v468_v26 = vld [vmem:[%s3210_s14 + $0x270] sm:$0xff]  ;;  %v465_v27 = vld [vmem:[%s3210_s14 + $0x258] sm:$0xff] }
  0xb6   : > { %2120 = vmatprep.subr.bf16.mxu0 %v2721_v28  ;;  %2206 = vmatprep.subr.bf16.mxu1 %v2723_v29  ;;  %v469_v28 = vld [vmem:[%s3210_s14 + $0x278] sm:$0xff]  ;;  %v2776_v29 = vcombine.low %v456_v14, %v460_v16  ;;  %v2785_v31 = vcombine.high %v464_v25, %v468_v26 }
  0xb7   : > { %2150 = vmatprep.mubr.bf16.mxu0 %v3256_v61  ;;  %2236 = vmatprep.mubr.bf16.mxu1 %v3256_v61  ;;  %v2738_v61 = vcombine.low %v417_v40, %v421_v41  ;;  %v2787_v32 = vcombine.high %v465_v27, %v469_v28  ;;  %v2786_v38 = vcombine.low %v465_v27, %v469_v28  ;;  %v480_v41 = vld [vmem:[%s3210_s14 + $0x2d0] sm:$0xff] }
  0xb8   : > { %v528_v28 = vld [vmem:[%s3210_s14 + $0x450] sm:$0xff] }
  0xb9   : > { %2121 = vmatpush1.bf16.msra.mxu0 %v2720_v34  ;;  %2207 = vmatpush1.bf16.msra.mxu1 %v2722_v35  ;;  %v476_v34 = vld [vmem:[%s3210_s14 + $0x2b0] sm:$0xff]  ;;  %v473_v35 = vld [vmem:[%s3210_s14 + $0x298] sm:$0xff] }
  0xba   : > { %2122 = vmatprep.subr.bf16.mxu0 %v2729_v36  ;;  %2208 = vmatprep.subr.bf16.mxu1 %v2731_v37  ;;  %v477_v36 = vld [vmem:[%s3210_s14 + $0x2b8] sm:$0xff]  ;;  %v2784_v37 = vcombine.low %v464_v25, %v468_v26  ;;  %v2793_v39 = vcombine.high %v472_v33, %v476_v34 }
  0xbb   : > { %v2795_v40 = vcombine.high %v473_v35, %v477_v36  ;;  %v2794_v46 = vcombine.low %v473_v35, %v477_v36  ;;  %v536_v36 = vld [vmem:[%s3210_s14 + $0x490] sm:$0xff] }
  0xbd   : > { %2123 = vmatpush1.bf16.msra.mxu0 %v2728_v42  ;;  %2209 = vmatpush1.bf16.msra.mxu1 %v2730_v43  ;;  %v484_v42 = vld [vmem:[%s3210_s14 + $0x2f0] sm:$0xff]  ;;  %v481_v43 = vld [vmem:[%s3210_s14 + $0x2d8] sm:$0xff] }
  0xbe   : > { %2124 = vmatprep.subr.bf16.mxu0 %v2737_v44  ;;  %2210 = vmatprep.subr.bf16.mxu1 %v2739_v45  ;;  %v485_v44 = vld [vmem:[%s3210_s14 + $0x2f8] sm:$0xff]  ;;  %v2792_v45 = vcombine.low %v472_v33, %v476_v34  ;;  %v2801_v47 = vcombine.high %v480_v41, %v484_v42 }
  0xbf   : > { %v2803_v48 = vcombine.high %v481_v43, %v485_v44  ;;  %v2802_v53 = vcombine.low %v481_v43, %v485_v44  ;;  %v544_v44 = vld [vmem:[%s3210_s14 + $0x4d0] sm:$0xff] }
  0xc1   : > { %2125 = vmatpush1.bf16.msra.mxu0 %v2736_v50  ;;  %2211 = vmatpush1.bf16.msra.mxu1 %v2738_v61  ;;  %v492_v50 = vld [vmem:[%s3210_s14 + $0x330] sm:$0xff]  ;;  %v489_v61 = vld [vmem:[%s3210_s14 + $0x318] sm:$0xff] }
  0xc2   : > { %2126 = vmatprep.subr.bf16.mxu0 %v2745_v51  ;;  %2212 = vmatprep.subr.bf16.mxu1 %v2747_v52  ;;  %v493_v51 = vld [vmem:[%s3210_s14 + $0x338] sm:$0xff]  ;;  %v2800_v52 = vcombine.low %v480_v41, %v484_v42  ;;  %v2809_v54 = vcombine.high %v488_v49, %v492_v50 }
  0xc3   : > { %v2811_v55 = vcombine.high %v489_v61, %v493_v51  ;;  %v2810_v62 = vcombine.low %v489_v61, %v493_v51  ;;  %v552_v61 = vld [vmem:[%s3210_s14 + $0x510] sm:$0xff] }
  0xc4   : > { %v556_v51 = vld [vmem:[%s3210_s14 + $0x530] sm:$0xff] }
  0xc5   : > { %2127 = vmatpush1.bf16.msra.mxu0 %v2744_v57  ;;  %2213 = vmatpush1.bf16.msra.mxu1 %v2746_v58  ;;  %v500_v57 = vld [vmem:[%s3210_s14 + $0x370] sm:$0xff]  ;;  %v497_v58 = vld [vmem:[%s3210_s14 + $0x358] sm:$0xff] }
  0xc6   : > { %2128 = vmatprep.subr.bf16.mxu0 %v2753_v59  ;;  %2214 = vmatprep.subr.bf16.mxu1 %v2755_v60  ;;  %v501_v59 = vld [vmem:[%s3210_s14 + $0x378] sm:$0xff]  ;;  %v2808_v60 = vcombine.low %v488_v49, %v492_v50  ;;  %v2817_v63 = vcombine.high %v496_v56, %v500_v57 }
  0xc7   : > { %v2819_v0 = vcombine.high %v497_v58, %v501_v59  ;;  %v2818_v6 = vcombine.low %v497_v58, %v501_v59  ;;  %v564_v58 = vld [vmem:[%s3210_s14 + $0x570] sm:$0xff]  ;;  %v561_v59 = vld [vmem:[%s3210_s14 + $0x558] sm:$0xff] }
  0xc9   : > { %2129 = vmatpush1.bf16.msra.mxu0 %v2752_v2  ;;  %2215 = vmatpush1.bf16.msra.mxu1 %v2754_v3  ;;  %v508_v2 = vld [vmem:[%s3210_s14 + $0x3b0] sm:$0xff]  ;;  %v505_v3 = vld [vmem:[%s3210_s14 + $0x398] sm:$0xff] }
  0xca   : > { %2130 = vmatprep.subr.bf16.mxu0 %v2761_v4  ;;  %2216 = vmatprep.subr.bf16.mxu1 %v2763_v5  ;;  %v509_v4 = vld [vmem:[%s3210_s14 + $0x3b8] sm:$0xff]  ;;  %v2816_v5 = vcombine.low %v496_v56, %v500_v57  ;;  %v2825_v7 = vcombine.high %v504_v1, %v508_v2  ;;  %v560_v57 = vld [vmem:[%s3210_s14 + $0x550] sm:$0xff] }
  0xcb   : > { %v2827_v8 = vcombine.high %v505_v3, %v509_v4  ;;  %v2826_v14 = vcombine.low %v505_v3, %v509_v4  ;;  %v572_v3 = vld [vmem:[%s3210_s14 + $0x5b0] sm:$0xff]  ;;  %v569_v4 = vld [vmem:[%s3210_s14 + $0x598] sm:$0xff] }
  0xcd   : > { %2131 = vmatpush1.bf16.msra.mxu0 %v2760_v10  ;;  %2217 = vmatpush1.bf16.msra.mxu1 %v2762_v11  ;;  %v516_v10 = vld [vmem:[%s3210_s14 + $0x3f0] sm:$0xff]  ;;  %v513_v11 = vld [vmem:[%s3210_s14 + $0x3d8] sm:$0xff] }
  0xce   : > { %2132 = vmatprep.subr.bf16.mxu0 %v2769_v12  ;;  %2218 = vmatprep.subr.bf16.mxu1 %v2771_v13  ;;  %v517_v12 = vld [vmem:[%s3210_s14 + $0x3f8] sm:$0xff]  ;;  %v2824_v13 = vcombine.low %v504_v1, %v508_v2  ;;  %v2833_v16 = vcombine.high %v512_v9, %v516_v10  ;;  %v568_v2 = vld [vmem:[%s3210_s14 + $0x590] sm:$0xff] }
  0xcf   : > { %v2835_v17 = vcombine.high %v513_v11, %v517_v12  ;;  %v2834_v25 = vcombine.low %v513_v11, %v517_v12  ;;  %v580_v11 = vld [vmem:[%s3210_s14 + $0x5f0] sm:$0xff]  ;;  %v577_v12 = vld [vmem:[%s3210_s14 + $0x5d8] sm:$0xff] }
  0xd1   : > { %2133 = vmatpush1.bf16.msra.mxu0 %v2768_v19  ;;  %2219 = vmatpush1.bf16.msra.mxu1 %v2770_v20  ;;  %v524_v19 = vld [vmem:[%s3210_s14 + $0x430] sm:$0xff]  ;;  %v521_v20 = vld [vmem:[%s3210_s14 + $0x418] sm:$0xff] }
  0xd2   : > { %2134 = vmatprep.subr.bf16.mxu0 %v2777_v21  ;;  %2220 = vmatprep.subr.bf16.mxu1 %v2779_v23  ;;  %v525_v21 = vld [vmem:[%s3210_s14 + $0x438] sm:$0xff]  ;;  %v2832_v23 = vcombine.low %v512_v9, %v516_v10  ;;  %v2841_v26 = vcombine.high %v520_v18, %v524_v19  ;;  %v576_v10 = vld [vmem:[%s3210_s14 + $0x5d0] sm:$0xff] }
  0xd3   : > { %v2843_v27 = vcombine.high %v521_v20, %v525_v21  ;;  %v2842_v33 = vcombine.low %v521_v20, %v525_v21  ;;  %v588_v20 = vld [vmem:[%s3210_s14 + $0x630] sm:$0xff]  ;;  %v585_v21 = vld [vmem:[%s3210_s14 + $0x618] sm:$0xff] }
  0xd5   : > { %2135 = vmatpush1.bf16.msra.mxu0 %v2776_v29  ;;  %2221 = vmatpush1.bf16.msra.mxu1 %v2778_v30  ;;  %v532_v29 = vld [vmem:[%s3210_s14 + $0x470] sm:$0xff]  ;;  %v529_v30 = vld [vmem:[%s3210_s14 + $0x458] sm:$0xff] }
  0xd6   : > { %2136 = vmatprep.subr.bf16.mxu0 %v2785_v31  ;;  %2222 = vmatprep.subr.bf16.mxu1 %v2787_v32  ;;  %v533_v31 = vld [vmem:[%s3210_s14 + $0x478] sm:$0xff]  ;;  %v2840_v32 = vcombine.low %v520_v18, %v524_v19  ;;  %v2849_v34 = vcombine.high %v528_v28, %v532_v29  ;;  %v584_v19 = vld [vmem:[%s3210_s14 + $0x610] sm:$0xff] }
  0xd7   : > { %v2851_v35 = vcombine.high %v529_v30, %v533_v31  ;;  %v2850_v41 = vcombine.low %v529_v30, %v533_v31  ;;  %v596_v30 = vld [vmem:[%s3210_s14 + $0x670] sm:$0xff]  ;;  %v593_v31 = vld [vmem:[%s3210_s14 + $0x658] sm:$0xff] }
  0xd9   : > { %2137 = vmatpush1.bf16.msra.mxu0 %v2784_v37  ;;  %2223 = vmatpush1.bf16.msra.mxu1 %v2786_v38  ;;  %v540_v37 = vld [vmem:[%s3210_s14 + $0x4b0] sm:$0xff]  ;;  %v537_v38 = vld [vmem:[%s3210_s14 + $0x498] sm:$0xff] }
  0xda   : > { %2138 = vmatprep.subr.bf16.mxu0 %v2793_v39  ;;  %2224 = vmatprep.subr.bf16.mxu1 %v2795_v40  ;;  %v541_v39 = vld [vmem:[%s3210_s14 + $0x4b8] sm:$0xff]  ;;  %v2848_v40 = vcombine.low %v528_v28, %v532_v29  ;;  %v2857_v42 = vcombine.high %v536_v36, %v540_v37  ;;  %v592_v29 = vld [vmem:[%s3210_s14 + $0x650] sm:$0xff] }
  0xdb   : > { %v2859_v43 = vcombine.high %v537_v38, %v541_v39 }
  0xdd   : > { %2139 = vmatpush1.bf16.msra.mxu0 %v2792_v45  ;;  %2225 = vmatpush1.bf16.msra.mxu1 %v2794_v46  ;;  %v548_v45 = vld [vmem:[%s3210_s14 + $0x4f0] sm:$0xff]  ;;  %v545_v46 = vld [vmem:[%s3210_s14 + $0x4d8] sm:$0xff] }
  0xde   : > { %2140 = vmatprep.subr.bf16.mxu0 %v2801_v47  ;;  %2226 = vmatprep.subr.bf16.mxu1 %v2803_v48  ;;  %v549_v47 = vld [vmem:[%s3210_s14 + $0x4f8] sm:$0xff]  ;;  %v2858_v48 = vcombine.low %v537_v38, %v541_v39  ;;  %v2865_v49 = vcombine.high %v544_v44, %v548_v45  ;;  %v604_v38 = vld [vmem:[%s3210_s14 + $0x6b0] sm:$0xff] }
  0xdf   : > { %v2867_v50 = vcombine.high %v545_v46, %v549_v47  ;;  %v601_v39 = vld [vmem:[%s3210_s14 + $0x698] sm:$0xff] }
  0xe1   : > { %2141 = vmatpush1.bf16.msra.mxu0 %v2800_v52  ;;  %2227 = vmatpush1.bf16.msra.mxu1 %v2802_v53  ;;  %v553_v52 = vld [vmem:[%s3210_s14 + $0x518] sm:$0xff] }
  0xe2   : > { %2142 = vmatprep.subr.bf16.mxu0 %v2809_v54  ;;  %2228 = vmatprep.subr.bf16.mxu1 %v2811_v55  ;;  %v557_v53 = vld [vmem:[%s3210_s14 + $0x538] sm:$0xff]  ;;  %v2864_v54 = vcombine.low %v544_v44, %v548_v45  ;;  %v2873_v55 = vcombine.high %v552_v61, %v556_v51  ;;  %v608_v45 = vld [vmem:[%s3210_s14 + $0x6d0] sm:$0xff] }
  0xe3   : > { %v2875_v56 = vcombine.high %v553_v52, %v557_v53 }
  0xe5   : > { %2143 = vmatpush1.bf16.msra.mxu0 %v2808_v60  ;;  %2229 = vmatpush1.bf16.msra.mxu1 %v2810_v62  ;;  %v565_v60 = vld [vmem:[%s3210_s14 + $0x578] sm:$0xff]  ;;  %v2872_v62 = vcombine.low %v552_v61, %v556_v51  ;;  %v616_v51 = vld [vmem:[%s3210_s14 + $0x710] sm:$0xff] }
  0xe6   : > { %2144 = vmatprep.subr.bf16.mxu0 %v2817_v63  ;;  %2230 = vmatprep.subr.bf16.mxu1 %v2819_v0  ;;  %v2874_v63 = vcombine.low %v553_v52, %v557_v53  ;;  %v2881_v0 = vcombine.high %v560_v57, %v564_v58  ;;  %v2883_v1 = vcombine.high %v561_v59, %v565_v60  ;;  %v620_v52 = vld [vmem:[%s3210_s14 + $0x730] sm:$0xff]  ;;  %v617_v53 = vld [vmem:[%s3210_s14 + $0x718] sm:$0xff] }
  0xe9   : > { %2145 = vmatpush1.bf16.msra.mxu0 %v2816_v5  ;;  %2231 = vmatpush1.bf16.msra.mxu1 %v2818_v6  ;;  %v573_v5 = vld [vmem:[%s3210_s14 + $0x5b8] sm:$0xff]  ;;  %v2880_v6 = vcombine.low %v560_v57, %v564_v58  ;;  %v624_v58 = vld [vmem:[%s3210_s14 + $0x750] sm:$0xff] }
  0xea   : > { %2146 = vmatprep.subr.bf16.mxu0 %v2825_v7  ;;  %2232 = vmatprep.subr.bf16.mxu1 %v2827_v8  ;;  %v2882_v7 = vcombine.low %v561_v59, %v565_v60  ;;  %v2889_v8 = vcombine.high %v568_v2, %v572_v3  ;;  %v2891_v9 = vcombine.high %v569_v4, %v573_v5  ;;  %v628_v59 = vld [vmem:[%s3210_s14 + $0x770] sm:$0xff]  ;;  %v625_v60 = vld [vmem:[%s3210_s14 + $0x758] sm:$0xff] }
  0xed   : > { %2147 = vmatpush1.bf16.msra.mxu0 %v2824_v13  ;;  %2233 = vmatpush1.bf16.msra.mxu1 %v2826_v14  ;;  %v581_v13 = vld [vmem:[%s3210_s14 + $0x5f8] sm:$0xff]  ;;  %v2888_v14 = vcombine.low %v568_v2, %v572_v3  ;;  %v632_v3 = vld [vmem:[%s3210_s14 + $0x790] sm:$0xff] }
  0xee   : > { %2148 = vmatprep.subr.bf16.mxu0 %v2833_v16  ;;  %2234 = vmatprep.subr.bf16.mxu1 %v2835_v17  ;;  %v2890_v16 = vcombine.low %v569_v4, %v573_v5  ;;  %v2897_v17 = vcombine.high %v576_v10, %v580_v11  ;;  %v2899_v18 = vcombine.high %v577_v12, %v581_v13  ;;  %v636_v4 = vld [vmem:[%s3210_s14 + $0x7b0] sm:$0xff]  ;;  %v633_v5 = vld [vmem:[%s3210_s14 + $0x798] sm:$0xff] }
  0xf1   : > { %2149 = vmatpush1.bf16.msra.mxu0 %v2832_v23  ;;  %2235 = vmatpush1.bf16.msra.mxu1 %v2834_v25  ;;  %v589_v23 = vld [vmem:[%s3210_s14 + $0x638] sm:$0xff]  ;;  %v2896_v25 = vcombine.low %v576_v10, %v580_v11  ;;  %v640_v11 = vld [vmem:[%s3210_s14 + $0x7d0] sm:$0xff] }
  0xf2   : > { %2161 = vmatprep.subr.bf16.mxu0 %v2841_v26  ;;  %2247 = vmatprep.subr.bf16.mxu1 %v2843_v27  ;;  %v2898_v26 = vcombine.low %v577_v12, %v581_v13  ;;  %v2905_v27 = vcombine.high %v584_v19, %v588_v20  ;;  %v2907_v28 = vcombine.high %v585_v21, %v589_v23  ;;  %v644_v12 = vld [vmem:[%s3210_s14 + $0x7f0] sm:$0xff]  ;;  %v641_v13 = vld [vmem:[%s3210_s14 + $0x7d8] sm:$0xff] }
  0xf4   : > { %2151 = vmatmul.mubr.bf16.vlgmr.msra.gmra.mrb[4].mxu0 %v3301_v15  ;;  %2237 = vmatmul.mubr.bf16.vlgmr.msra.gmra.mrb[4].mxu1 %v3301_v15  ;;  %v2856_v15 = vcombine.low %v536_v36, %v540_v37  ;;  %v600_v37 = vld [vmem:[%s3210_s14 + $0x690] sm:$0xff] }
  0xf5   : > { %2162 = vmatpush1.bf16.msra.mxu0 %v2840_v32  ;;  %2248 = vmatpush1.bf16.msra.mxu1 %v2842_v33  ;;  %v597_v32 = vld [vmem:[%s3210_s14 + $0x678] sm:$0xff]  ;;  %v2904_v33 = vcombine.low %v584_v19, %v588_v20  ;;  %v2960_v20 = vcombine.low %v640_v11, %v644_v12 }
  0xf6   : > { %2163 = vmatprep.subr.bf16.mxu0 %v2849_v34  ;;  %2249 = vmatprep.subr.bf16.mxu1 %v2851_v35  ;;  %v2906_v34 = vcombine.low %v585_v21, %v589_v23  ;;  %v2913_v35 = vcombine.high %v592_v29, %v596_v30  ;;  %v2915_v36 = vcombine.high %v593_v31, %v597_v32  ;;  %v370_v23 = vld [vmem:[#allocation2] sm:$0xff] }
  0xf7   : > { %2193 = vmatprep.mubr.bf16.mxu0 %v3308_v24  ;;  %2279 = vmatprep.mubr.bf16.mxu1 %v3308_v24  ;;  %v2866_v24 = vcombine.low %v545_v46, %v549_v47  ;;  %v612_v46 = vld [vmem:[%s3210_s14 + $0x6f0] sm:$0xff]  ;;  %v609_v47 = vld [vmem:[%s3210_s14 + $0x6d8] sm:$0xff] }
  0xf9   : > { %2164 = vmatpush1.bf16.msra.mxu0 %v2848_v40  ;;  %2250 = vmatpush1.bf16.msra.mxu1 %v2850_v41  ;;  %v605_v40 = vld [vmem:[%s3210_s14 + $0x6b8] sm:$0xff]  ;;  %v2912_v41 = vcombine.low %v592_v29, %v596_v30  ;;  %v378_v29 = vld [vmem:[#allocation2 + $0x40] sm:$0xff] }
  0xfa   : > { %2165 = vmatprep.subr.bf16.mxu0 %v2857_v42  ;;  %2251 = vmatprep.subr.bf16.mxu1 %v2859_v43  ;;  %v2914_v42 = vcombine.low %v593_v31, %v597_v32  ;;  %v2921_v43 = vcombine.high %v600_v37, %v604_v38  ;;  %v2923_v44 = vcombine.high %v601_v39, %v605_v40 }
  0xfd   : > { %2166 = vmatpush1.bf16.msra.mxu0 %v2856_v15  ;;  %2252 = vmatpush1.bf16.msra.mxu1 %v2858_v48  ;;  %v613_v15 = vld [vmem:[%s3210_s14 + $0x6f8] sm:$0xff]  ;;  %v2920_v48 = vcombine.low %v600_v37, %v604_v38 }
  0xfe   : > { %2167 = vmatprep.subr.bf16.mxu0 %v2865_v49  ;;  %2253 = vmatprep.subr.bf16.mxu1 %v2867_v50  ;;  %v2922_v49 = vcombine.low %v601_v39, %v605_v40  ;;  %v2929_v50 = vcombine.high %v608_v45, %v612_v46  ;;  %v2931_v61 = vcombine.high %v609_v47, %v613_v15  ;;  %v381_v39 = vld [vmem:[#allocation2 + $0x58] sm:$0xff] }
 0x101   : > { %2168 = vmatpush1.bf16.msra.mxu0 %v2864_v54  ;;  %2254 = vmatpush1.bf16.msra.mxu1 %v2866_v24  ;;  %v621_v54 = vld [vmem:[%s3210_s14 + $0x738] sm:$0xff]  ;;  %v2928_v24 = vcombine.low %v608_v45, %v612_v46 }
 0x102   : > { %2169 = vmatprep.subr.bf16.mxu0 %v2873_v55  ;;  %2255 = vmatprep.subr.bf16.mxu1 %v2875_v56  ;;  %v2930_v55 = vcombine.low %v609_v47, %v613_v15  ;;  %v2937_v56 = vcombine.high %v616_v51, %v620_v52  ;;  %v2939_v57 = vcombine.high %v617_v53, %v621_v54  ;;  %v374_v47 = vld [vmem:[#allocation2 + $0x20] sm:$0xff]  ;;  %v376_v15 = vld [vmem:[#allocation2 + $0x30] sm:$0xff] }
 0x105   : > { %2170 = vmatpush1.bf16.msra.mxu0 %v2872_v62  ;;  %2256 = vmatpush1.bf16.msra.mxu1 %v2874_v63  ;;  %v629_v62 = vld [vmem:[%s3210_s14 + $0x778] sm:$0xff]  ;;  %v2936_v63 = vcombine.low %v616_v51, %v620_v52 }
 0x106   : > { %2171 = vmatprep.subr.bf16.mxu0 %v2881_v0  ;;  %2257 = vmatprep.subr.bf16.mxu1 %v2883_v1  ;;  %v2938_v0 = vcombine.low %v617_v53, %v621_v54  ;;  %v2945_v1 = vcombine.high %v624_v58, %v628_v59  ;;  %v2947_v2 = vcombine.high %v625_v60, %v629_v62  ;;  %v384_v54 = vld [vmem:[#allocation2 + $0x70] sm:$0xff] }
 0x109   : > { %2172 = vmatpush1.bf16.msra.mxu0 %v2880_v6  ;;  %2258 = vmatpush1.bf16.msra.mxu1 %v2882_v7  ;;  %v637_v6 = vld [vmem:[%s3210_s14 + $0x7b8] sm:$0xff]  ;;  %v2944_v7 = vcombine.low %v624_v58, %v628_v59 }
 0x10a   : > { %2173 = vmatprep.subr.bf16.mxu0 %v2889_v8  ;;  %2259 = vmatprep.subr.bf16.mxu1 %v2891_v9  ;;  %v2946_v8 = vcombine.low %v625_v60, %v629_v62  ;;  %v2953_v9 = vcombine.high %v632_v3, %v636_v4  ;;  %v2955_v10 = vcombine.high %v633_v5, %v637_v6  ;;  %v385_v59 = vld [vmem:[#allocation2 + $0x78] sm:$0xff] }
 0x10d   : > { %2174 = vmatpush1.bf16.msra.mxu0 %v2888_v14  ;;  %2260 = vmatpush1.bf16.msra.mxu1 %v2890_v16  ;;  %v645_v14 = vld [vmem:[%s3210_s14 + $0x7f8] sm:$0xff]  ;;  %v2952_v16 = vcombine.low %v632_v3, %v636_v4 }
 0x10e   : > { %2175 = vmatprep.subr.bf16.mxu0 %v2897_v17  ;;  %2261 = vmatprep.subr.bf16.mxu1 %v2899_v18  ;;  %v2954_v17 = vcombine.low %v633_v5, %v637_v6  ;;  %v2961_v18 = vcombine.high %v640_v11, %v644_v12  ;;  %v2963_v19 = vcombine.high %v641_v13, %v645_v14  ;;  %v2344_v5 = vlaneseq (!%p2964_p13) }
 0x10f   : > { %v2962_v21 = vcombine.low %v641_v13, %v645_v14 }
 0x110   : > { %v3510_v6 = vshrl.u32 (!%p2964_p13), %v2344_v5, 7 }
 0x111   : > { %2176 = vmatpush1.bf16.msra.mxu0 %v2896_v25  ;;  %2262 = vmatpush1.bf16.msra.mxu1 %v2898_v26  ;;  %v372_v25 = vld [vmem:[#allocation2 + $0x10] sm:$0xff]  ;;  %v371_v26 = vld [vmem:[#allocation2 + $0x8] sm:$0xff] }
 0x112   : > { %2177 = vmatprep.subr.bf16.mxu0 %v2905_v27  ;;  %2263 = vmatprep.subr.bf16.mxu1 %v2907_v28  ;;  %v373_v28 = vld [vmem:[#allocation2 + $0x18] sm:$0xff]  ;;  %v2350_v11 = vsub.s32 (!%p2964_p13), 1, %v3510_v6  ;;  %v2354_v12 = vsub.s32 (!%p2964_p13), 2, %v3510_v6  ;;  %v2358_v13 = vsub.s32 (!%p2964_p13), 3, %v3510_v6 }
 0x115   : > { %2178 = vmatpush1.bf16.msra.mxu0 %v2904_v33  ;;  %2264 = vmatpush1.bf16.msra.mxu1 %v2906_v34  ;;  %v380_v33 = vld [vmem:[#allocation2 + $0x50] sm:$0xff]  ;;  %v379_v34 = vld [vmem:[#allocation2 + $0x48] sm:$0xff] }
 0x116   : > { %2179 = vmatprep.subr.bf16.mxu0 %v2913_v35  ;;  %2265 = vmatprep.subr.bf16.mxu1 %v2915_v36 }
 0x119   : > { %2180 = vmatpush1.bf16.msra.mxu0 %v2912_v41  ;;  %2266 = vmatpush1.bf16.msra.mxu1 %v2914_v42 }
 0x11a   : > { %2181 = vmatprep.subr.bf16.mxu0 %v2921_v43  ;;  %2267 = vmatprep.subr.bf16.mxu1 %v2923_v44 }
 0x11d   : > { %2182 = vmatpush1.bf16.msra.mxu0 %v2920_v48  ;;  %2268 = vmatpush1.bf16.msra.mxu1 %v2922_v49  ;;  %v375_v48 = vld [vmem:[#allocation2 + $0x28] sm:$0xff] }
 0x11e   : > { %2183 = vmatprep.subr.bf16.mxu0 %v2929_v50  ;;  %2269 = vmatprep.subr.bf16.mxu1 %v2931_v61  ;;  %v377_v50 = vld [vmem:[#allocation2 + $0x38] sm:$0xff]  ;;  %v382_v61 = vld [vmem:[#allocation2 + $0x60] sm:$0xff] }
 0x121   : > { %2184 = vmatpush1.bf16.msra.mxu0 %v2928_v24  ;;  %2270 = vmatpush1.bf16.msra.mxu1 %v2930_v55  ;;  %v383_v24 = vld [vmem:[#allocation2 + $0x68] sm:$0xff] }
 0x122   : > { %2185 = vmatprep.subr.bf16.mxu0 %v2937_v56  ;;  %2271 = vmatprep.subr.bf16.mxu1 %v2939_v57 }
 0x125   : > { %2186 = vmatpush1.bf16.msra.mxu0 %v2936_v63  ;;  %2272 = vmatpush1.bf16.msra.mxu1 %v2938_v0 }
 0x126   : > { %2187 = vmatprep.subr.bf16.mxu0 %v2945_v1  ;;  %2273 = vmatprep.subr.bf16.mxu1 %v2947_v2 }
 0x129   : > { %2188 = vmatpush1.bf16.msra.mxu0 %v2944_v7  ;;  %2274 = vmatpush1.bf16.msra.mxu1 %v2946_v8  ;;  %v3515_v7 = vld [vmem:[%s3706_s2] sm:$0xff] (!%p2964_p13) }
 0x12a   : > { %2189 = vmatprep.subr.bf16.mxu0 %v2953_v9  ;;  %2275 = vmatprep.subr.bf16.mxu1 %v2955_v10  ;;  %v3520_v8 = vld [vmem:[%s3707_s3] sm:$0xff] (!%p2964_p13)  ;;  %v2346_v10 = vsub.s32 (!%p2964_p13), 0, %v3510_v6 }
 0x12b   : > { %v3525_v9 = vld [vmem:[%s3708_s4] sm:$0xff] (!%p2964_p13) }
 0x12d   : > { %2190 = vmatpush1.bf16.msra.mxu0 %v2952_v16  ;;  %2276 = vmatpush1.bf16.msra.mxu1 %v2954_v17  ;;  %v2362_v17 = vsub.s32 (!%p2964_p13), 4, %v3510_v6 }
 0x12e   : > { %2191 = vmatprep.subr.bf16.mxu0 %v2961_v18  ;;  %2277 = vmatprep.subr.bf16.mxu1 %v2963_v19  ;;  %v2366_v18 = vsub.s32 (!%p2964_p13), 5, %v3510_v6  ;;  %v2370_v19 = vsub.s32 (!%p2964_p13), 6, %v3510_v6 }
 0x131   : > { %2192 = vmatpush1.bf16.msra.mxu0 %v2960_v20  ;;  %2278 = vmatpush1.bf16.msra.mxu1 %v2962_v21  ;;  %v3535_v20 = vrot.slane (!%p2964_p13), %v3515_v7, %v2346_v10  ;;  %v3538_v21 = vrot.slane (!%p2964_p13), %v3520_v8, %v2346_v10 }
 0x134   : > { %2194 = vmatmul.mubr.bf16.vlgmr.msra.gmra.mrb[4].mxu0 %v3375_v22  ;;  %2280 = vmatmul.mubr.bf16.vlgmr.msra.gmra.mrb[4].mxu1 %v3375_v22 }
 0x187   : > { %v2023_v27 = vpop.f32.mrb[0].mxu0  ;;  %v2109_v31 = vpop.f32.mrb[0].mxu1 }
 0x188   : > { %v2290_v30 = vadd.f32 %v2023_v27, %v370_v23  ;;  %v2025_v32 = vpop.f32.mrb[1].mxu0  ;;  %v2292_v35 = vadd.f32 %v2109_v31, %v372_v25  ;;  %v2111_v37 = vpop.f32.mrb[1].mxu1  ;;  %v3541_v23 = vrot.slane (!%p2964_p13), %v3525_v9, %v2346_v10  ;;  %v3544_v25 = vrot.slane (!%p2964_p13), %v3515_v7, %v2350_v11 }
 0x189   : > { %v2291_v36 = vadd.f32 %v2025_v32, %v371_v26  ;;  %v2027_v38 = vpop.f32.mrb[2].mxu0  ;;  %v2293_v40 = vadd.f32 %v2111_v37, %v373_v28  ;;  %v2113_v22 = vpop.f32.mrb[2].mxu1  ;;  %v3547_v27 = vrot.slane (!%p2964_p13), %v3520_v8, %v2350_v11  ;;  %v3550_v28 = vrot.slane (!%p2964_p13), %v3525_v9, %v2350_v11 }
 0x18a   : > { %2306 = vst [vmem:[#allocation2] sm:$0xff] %v2290_v30  ;;  %v2298_v41 = vadd.f32 %v2027_v38, %v378_v29  ;;  %v2029_v42 = vpop.f32.mrb[3].mxu0  ;;  %2308 = vst [vmem:[#allocation2 + $0x10] sm:$0xff] %v2292_v35  ;;  %v2300_v43 = vadd.f32 %v2113_v22, %v380_v33  ;;  %v2115_v45 = vpop.f32.mrb[3].mxu1  ;;  %v3553_v29 = vrot.slane (!%p2964_p13), %v3515_v7, %v2354_v12 }
 0x18b   : > { %2307 = vst [vmem:[#allocation2 + $0x8] sm:$0xff] %v2291_v36  ;;  %v2299_v44 = vadd.f32 %v2029_v42, %v379_v34  ;;  %2309 = vst [vmem:[#allocation2 + $0x18] sm:$0xff] %v2293_v40  ;;  %v2301_v46 = vadd.f32 %v2115_v45, %v381_v39  ;;  %v3556_v30 = vrot.slane (!%p2964_p13), %v3520_v8, %v2354_v12 }
 0x18c   : > { %2314 = vst [vmem:[#allocation2 + $0x40] sm:$0xff] %v2298_v41  ;;  %2316 = vst [vmem:[#allocation2 + $0x50] sm:$0xff] %v2300_v43  ;;  %v3561_v34 = vrot.slane (!%p2964_p13), %v3525_v9, %v2354_v12  ;;  %v3564_v35 = vrot.slane (!%p2964_p13), %v3515_v7, %v2358_v13  ;;  %v3568_v38 = vrot.slane (!%p2964_p13), %v3520_v8, %v2358_v13  ;;  %v2536_v12 = vld [vmem:[%s3215_s18 + $0x20] sm:$0xff] (!%p2964_p13) }
 0x18d   : > { %2315 = vst [vmem:[#allocation2 + $0x48] sm:$0xff] %v2299_v44  ;;  %2317 = vst [vmem:[#allocation2 + $0x58] sm:$0xff] %v2301_v46  ;;  %v3571_v39 = vrot.slane (!%p2964_p13), %v3525_v9, %v2358_v13  ;;  %v3574_v40 = vrot.slane (!%p2964_p13), %v3515_v7, %v2362_v17  ;;  %v3578_v43 = vrot.slane (!%p2964_p13), %v3520_v8, %v2362_v17 }
 0x191   : > { %v2326_v14 = vld [vmem:[#allocation2] sm:$0xff] (!%p2964_p13)  ;;  %v2328_v26 = vld [vmem:[#allocation2 + $0x10] sm:$0xff] (!%p2964_p13) }
 0x192   : > { %v2327_v16 = vld [vmem:[#allocation2 + $0x8] sm:$0xff] (!%p2964_p13)  ;;  %v2329_v31 = vld [vmem:[#allocation2 + $0x18] sm:$0xff] (!%p2964_p13)  ;;  %v2384_v32 = vadd.f32 (!%p2964_p13), %v3535_v20, %v2326_v14  ;;  %v2386_v37 = vadd.f32 (!%p2964_p13), %v3553_v29, %v2328_v26 }
 0x193   : > { %v2385_v33 = vadd.f32 (!%p2964_p13), %v3544_v25, %v2327_v16  ;;  %v2387_v42 = vadd.f32 (!%p2964_p13), %v3564_v35, %v2329_v31  ;;  %v2336_v16 = vld [vmem:[#allocation2 + $0x50] sm:$0xff] (!%p2964_p13)  ;;  %v3618_v31 = vrot.slane (!%p2964_p13), %v3525_v9, %v2370_v19 }
 0x194   : > { %v2400_v41 = vmax.f32 (!%p2964_p13), %v2384_v32, 0.0  ;;  %v2402_v45 = vmax.f32 (!%p2964_p13), %v2386_v37, 0.0  ;;  %v2335_v14 = vld [vmem:[#allocation2 + $0x48] sm:$0xff] (!%p2964_p13)  ;;  %v2374_v37 = vsub.s32 (!%p2964_p13), 7, %v3510_v6 }
 0x195   : > { %v2401_v22 = vmax.f32 (!%p2964_p13), %v2385_v33, 0.0  ;;  %v2537_v33 = vld [vmem:[%s3215_s18 + $0x28] sm:$0xff] (!%p2964_p13) }
 0x196   : > { %v2375_v6 = vrot.slane (!%p2964_p13), %v3515_v7, %v2374_v37 }
 0x207   : > { %v2195_v49 = vpop.f32.mrb[4].mxu0  ;;  %v2281_v52 = vpop.f32.mrb[4].mxu1  ;;  %2325 = sbr.rel (%p2964_p13) target bundleno = 552 (0x228), region = 75 }
 0x208   : > { %v2294_v51 = vadd.f32 %v2195_v49, %v374_v47  ;;  %v2197_v53 = vpop.f32.mrb[5].mxu0  ;;  %v2296_v55 = vadd.f32 %v2281_v52, %v376_v15  ;;  %v2283_v57 = vpop.f32.mrb[5].mxu1  ;;  %v3582_v47 = vrot.slane (!%p2964_p13), %v3525_v9, %v2362_v17  ;;  %v3585_v15 = vrot.slane (!%p2964_p13), %v3515_v7, %v2366_v18  ;;  %v2533_v52 = vld [vmem:[%s3215_s18 + $0x8] sm:$0xff] (!%p2964_p13) }
 0x209   : > { %v2295_v56 = vadd.f32 %v2197_v53, %v375_v48  ;;  %v2199_v58 = vpop.f32.mrb[6].mxu0  ;;  %v2297_v60 = vadd.f32 %v2283_v57, %v377_v50  ;;  %v2285_v63 = vpop.f32.mrb[6].mxu1  ;;  %v2458_v48 = vmul.f32 (!%p2964_p13), %v3538_v21, %v2400_v41  ;;  %v2459_v49 = vmul.f32 (!%p2964_p13), %v3547_v27, %v2401_v22 }
 0x20a   : > { %2310 = vst [vmem:[#allocation2 + $0x20] sm:$0xff] %v2294_v51  ;;  %v2302_v62 = vadd.f32 %v2199_v58, %v382_v61  ;;  %v2201_v0 = vpop.f32.mrb[7].mxu0  ;;  %2312 = vst [vmem:[#allocation2 + $0x30] sm:$0xff] %v2296_v55  ;;  %v2304_v1 = vadd.f32 %v2285_v63, %v384_v54  ;;  %v2287_v3 = vpop.f32.mrb[7].mxu1  ;;  %v2403_v50 = vmax.f32 (!%p2964_p13), %v2387_v42, 0.0  ;;  %v3590_v61 = vrot.slane (!%p2964_p13), %v3520_v8, %v2366_v18  ;;  %v2532_v51 = vld [vmem:[%s3215_s18] sm:$0xff] (!%p2964_p13) }
 0x20b   : > { %2311 = vst [vmem:[#allocation2 + $0x28] sm:$0xff] %v2295_v56  ;;  %v2303_v2 = vadd.f32 %v2201_v0, %v383_v24  ;;  %2313 = vst [vmem:[#allocation2 + $0x38] sm:$0xff] %v2297_v60  ;;  %v2305_v4 = vadd.f32 %v2287_v3, %v385_v59  ;;  %v2460_v53 = vmul.f32 (!%p2964_p13), %v3556_v30, %v2402_v45  ;;  %v2534_v59 = vld [vmem:[%s3215_s18 + $0x10] sm:$0xff] (!%p2964_p13)  ;;  %v2535_v0 = vld [vmem:[%s3215_s18 + $0x18] sm:$0xff] (!%p2964_p13) }
 0x20c   : > { %2318 = vst [vmem:[#allocation2 + $0x60] sm:$0xff] %v2302_v62  ;;  %2320 = vst [vmem:[#allocation2 + $0x70] sm:$0xff] %v2304_v1  ;;  %v3597_v55 = vrot.slane (!%p2964_p13), %v3525_v9, %v2366_v18  ;;  %v2516_v57 = vadd.f32 (!%p2964_p13), %v3541_v23, %v2458_v48  ;;  %v2517_v58 = vadd.f32 (!%p2964_p13), %v3550_v28, %v2459_v49 }
 0x20d   : > { %2319 = vst [vmem:[#allocation2 + $0x68] sm:$0xff] %v2303_v2  ;;  %2321 = vst [vmem:[#allocation2 + $0x78] sm:$0xff] %v2305_v4  ;;  %v2461_v60 = vmul.f32 (!%p2964_p13), %v3568_v38, %v2403_v50  ;;  %v3604_v62 = vrot.slane (!%p2964_p13), %v3515_v7, %v2370_v19  ;;  %v2518_v63 = vadd.f32 (!%p2964_p13), %v3561_v34, %v2460_v53  ;;  %v2334_v4 = vld [vmem:[#allocation2 + $0x40] sm:$0xff] (!%p2964_p13) }
 0x20e   : > { %v3610_v3 = vrot.slane %v3520_v8, %v2370_v19  ;;  %v2548_v5 = vadd.f32 %v2532_v51, %v2516_v57  ;;  %v2549_v10 = vadd.f32 %v2533_v52, %v2517_v58  ;;  %v2392_v41 = vadd.f32 %v3535_v20, %v2334_v4  ;;  %v2542_v4 = vld [vmem:[%s3215_s18 + $0x50] sm:$0xff] }
 0x20f   : > { %v2519_v11 = vadd.f32 %v3571_v39, %v2461_v60  ;;  %v2550_v17 = vadd.f32 %v2534_v59, %v2518_v63  ;;  %v2393_v19 = vadd.f32 %v3544_v25, %v2335_v14  ;;  %v2394_v45 = vadd.f32 %v3553_v29, %v2336_v16  ;;  %v2538_v25 = vld [vmem:[%s3215_s18 + $0x30] sm:$0xff] }
 0x210   : > { %2564 = vst [vmem:[%s3220_s20] sm:$0xff] %v2548_v5  ;;  %2565 = vst [vmem:[%s3220_s20 + $0x8] sm:$0xff] %v2549_v10  ;;  %v3633_v20 = vrot.slane %v3520_v8, %v2374_v37  ;;  %v3636_v50 = vrot.slane %v3525_v9, %v2374_v37  ;;  %v2408_v29 = vmax.f32 %v2392_v41, 0.0 }
 0x211   : > { %v2330_v36 = vld [vmem:[#allocation2 + $0x20] sm:$0xff]  ;;  %v2332_v56 = vld [vmem:[#allocation2 + $0x30] sm:$0xff]  ;;  %v2551_v32 = vadd.f32 %v2535_v0, %v2519_v11  ;;  %2566 = vst [vmem:[%s3220_s20 + $0x10] sm:$0xff] %v2550_v17  ;;  %v2409_v53 = vmax.f32 %v2393_v19, 0.0 }
 0x212   : > { %v2331_v44 = vld [vmem:[#allocation2 + $0x28] sm:$0xff]  ;;  %v2388_v46 = vadd.f32 %v3574_v40, %v2330_v36  ;;  %v2390_v13 = vadd.f32 %v3604_v62, %v2332_v56  ;;  %v2466_v9 = vmul.f32 %v3538_v21, %v2408_v29  ;;  %v2544_v17 = vld [vmem:[%s3215_s18 + $0x60] sm:$0xff] }
 0x213   : > { %v2389_v24 = vadd.f32 %v3585_v15, %v2331_v44  ;;  %v2333_v44 = vld [vmem:[#allocation2 + $0x38] sm:$0xff]  ;;  %v2338_v48 = vld [vmem:[#allocation2 + $0x60] sm:$0xff]  ;;  %2567 = vst [vmem:[%s3220_s20 + $0x18] sm:$0xff] %v2551_v32  ;;  %v2467_v57 = vmul.f32 %v3547_v27, %v2409_v53  ;;  %v2340_v60 = vld [vmem:[#allocation2 + $0x70] sm:$0xff] }
 0x214   : > { %v2404_v54 = vmax.f32 %v2388_v46, 0.0  ;;  %v2406_v36 = vmax.f32 %v2390_v13, 0.0  ;;  %v2337_v46 = vld [vmem:[#allocation2 + $0x58] sm:$0xff]  ;;  %v2339_v51 = vld [vmem:[#allocation2 + $0x68] sm:$0xff]  ;;  %v2391_v56 = vadd.f32 %v2375_v6, %v2333_v44  ;;  %v2396_v8 = vadd.f32 %v3574_v40, %v2338_v48 }
 0x215   : > { %v2405_v2 = vmax.f32 %v2389_v24, 0.0  ;;  %v2395_v7 = vadd.f32 %v3564_v35, %v2337_v46  ;;  %v2397_v59 = vadd.f32 %v3585_v15, %v2339_v51  ;;  %v2524_v21 = vadd.f32 %v3541_v23, %v2466_v9  ;;  %v2341_v13 = vld [vmem:[#allocation2 + $0x78] sm:$0xff] }
 0x216   : > { %v2462_v1 = vmul.f32 %v3578_v43, %v2404_v54  ;;  %v2464_v49 = vmul.f32 %v3610_v3, %v2406_v36  ;;  %v2410_v54 = vmax.f32 %v2394_v45, 0.0  ;;  %v2407_v0 = vmax.f32 %v2391_v56, 0.0  ;;  %v2539_v23 = vld [vmem:[%s3215_s18 + $0x38] sm:$0xff] }
 0x217   : > { %v2463_v26 = vmul.f32 %v3590_v61, %v2405_v2  ;;  %v2541_v2 = vld [vmem:[%s3215_s18 + $0x48] sm:$0xff]  ;;  %v2411_v35 = vmax.f32 %v2395_v7, 0.0  ;;  %v2412_v40 = vmax.f32 %v2396_v8, 0.0  ;;  %v2525_v5 = vadd.f32 %v3550_v28, %v2467_v57  ;;  %v2547_v45 = vld [vmem:[%s3215_s18 + $0x78] sm:$0xff] }
 0x218   : > { %v2520_v18 = vadd.f32 %v3582_v47, %v2462_v1  ;;  %v2522_v24 = vadd.f32 %v3618_v31, %v2464_v49  ;;  %v2468_v58 = vmul.f32 %v3556_v30, %v2410_v54  ;;  %v2540_v1 = vld [vmem:[%s3215_s18 + $0x40] sm:$0xff]  ;;  %v2413_v30 = vmax.f32 %v2397_v59, 0.0 }
 0x219   : > { %v2521_v42 = vadd.f32 %v3597_v55, %v2463_v26  ;;  %v2465_v15 = vmul.f32 %v3633_v20, %v2407_v0  ;;  %v2469_v10 = vmul.f32 %v3568_v38, %v2411_v35  ;;  %v2470_v11 = vmul.f32 %v3578_v43, %v2412_v40 }
 0x21a   : > { %v2552_v22 = vadd.f32 %v2536_v12, %v2520_v18  ;;  %v2554_v63 = vadd.f32 %v2538_v25, %v2522_v24  ;;  %v2526_v27 = vadd.f32 %v3561_v34, %v2468_v58  ;;  %v2398_v12 = vadd.f32 %v3604_v62, %v2340_v60  ;;  %v2543_v34 = vld [vmem:[%s3215_s18 + $0x58] sm:$0xff]  ;;  %v2545_v62 = vld [vmem:[%s3215_s18 + $0x68] sm:$0xff] }
 0x21b   : > { %v2553_v52 = vadd.f32 %v2537_v33, %v2521_v42  ;;  %v2556_v14 = vadd.f32 %v2540_v1, %v2524_v21  ;;  %v2557_v28 = vadd.f32 %v2541_v2, %v2525_v5  ;;  %v2471_v18 = vmul.f32 %v3590_v61, %v2413_v30 }
 0x21c   : > { %2568 = vst [vmem:[%s3220_s20 + $0x20] sm:$0xff] %v2552_v22  ;;  %2570 = vst [vmem:[%s3220_s20 + $0x30] sm:$0xff] %v2554_v63  ;;  %v2558_v16 = vadd.f32 %v2542_v4, %v2526_v27  ;;  %v2523_v26 = vadd.f32 %v3636_v50, %v2465_v15  ;;  %v2527_v38 = vadd.f32 %v3571_v39, %v2469_v10  ;;  %v2414_v32 = vmax.f32 %v2398_v12, 0.0  ;;  %v2546_v22 = vld [vmem:[%s3215_s18 + $0x70] sm:$0xff] }
 0x21d   : > { %2569 = vst [vmem:[%s3220_s20 + $0x28] sm:$0xff] %v2553_v52  ;;  %v2528_v43 = vadd.f32 %v3582_v47, %v2470_v11  ;;  %2572 = vst [vmem:[%s3220_s20 + $0x40] sm:$0xff] %v2556_v14  ;;  %v2529_v33 = vadd.f32 %v3597_v55, %v2471_v18  ;;  %v2399_v61 = vadd.f32 %v2375_v6, %v2341_v13 }
 0x21e   : > { %2573 = vst [vmem:[%s3220_s20 + $0x48] sm:$0xff] %v2557_v28  ;;  %2574 = vst [vmem:[%s3220_s20 + $0x50] sm:$0xff] %v2558_v16  ;;  %v2555_v36 = vadd.f32 %v2539_v23, %v2523_v26  ;;  %v2559_v37 = vadd.f32 %v2543_v34, %v2527_v38  ;;  %v2472_v39 = vmul.f32 %v3610_v3, %v2414_v32 }
 0x21f   : > { %v2560_v41 = vadd.f32 %v2544_v17, %v2528_v43  ;;  %v2561_v47 = vadd.f32 %v2545_v62, %v2529_v33  ;;  %v2415_v42 = vmax.f32 %v2399_v61, 0.0 }
 0x220   : > { %2571 = vst [vmem:[%s3220_s20 + $0x38] sm:$0xff] %v2555_v36  ;;  %2575 = vst [vmem:[%s3220_s20 + $0x58] sm:$0xff] %v2559_v37  ;;  %v2530_v44 = vadd.f32 %v3618_v31, %v2472_v39 }
 0x221   : > { %2576 = vst [vmem:[%s3220_s20 + $0x60] sm:$0xff] %v2560_v41  ;;  %2577 = vst [vmem:[%s3220_s20 + $0x68] sm:$0xff] %v2561_v47  ;;  %v2473_v55 = vmul.f32 %v3633_v20, %v2415_v42 }
 0x222   : > { %v2562_v19 = vadd.f32 %v2546_v22, %v2530_v44 }
 0x223   : > { %v2531_v46 = vadd.f32 %v3636_v50, %v2473_v55 }
 0x224   : > { %2578 = vst [vmem:[%s3220_s20 + $0x70] sm:$0xff] %v2562_v19 }
 0x225   : > { %v2563_v48 = vadd.f32 %v2547_v45, %v2531_v46 }
 0x227   : > { %2579 = vst [vmem:[%s3220_s20 + $0x78] sm:$0xff] %v2563_v48 }
 0x228 PF: > { %s16_s27 = sadd.s32 1, %s3104_s27   ;;  %s3711_s21 = smov %s3084_s22 }
 0x229   : > { %p13_p0 = scmp.ge.s32.totalorder %s16_s27, 10   ;;  %s3712_s22 = smov %s3193_s10 }
 0x22a   : > { %s3713_s23 = smov %s3096_s25  ;;  %s3714_s24 = smov %s3100_s26 }
 0x22b   : > { %s3715_s25 = smov %s3718_s28  ;;  %s3716_s26 = smov %s3722_s29 }
 0x22c   :  { %15 = sbr.rel (!%p13_p0) target bundleno = 4 (0x4), region = 116 }

// kernel: tile.90
= control target key start
LH: loop header
LB: loop body
LE: loop exit
PB: predicated region body
PF: predicated region fallthrough
CT: control target
= control target key end

     0   :  { %s22_s0 = inlined_call_operand.vmem [shape: f32[128], index: 0, kind: input, shape index: {}]   ;;  %s23_s1 = inlined_call_operand.vmem [shape: f32[4,128], index: 1, kind: output, shape index: {}]  }
   0x1   :  { %v4_v0 = vld [vmem:[%s22_s0] ss:$0 sm:$0xff] }
   0x2   :  { %5 = vst [vmem:[%s23_s1] sm:$0xf] %v4_v0 }

// kernel: fcn_forward.8
= control target key start
LH: loop header
LB: loop body
LE: loop exit
PB: predicated region body
PF: predicated region fallthrough
CT: control target
= control target key end

     0   :  { %s2660_s21 = smov 0   ;;  %s2662_s22 = smov 0   ;;  %s3120_s0 = inlined_call_operand.vmem [shape: bf16[128,1024], index: 0, kind: input, shape index: {}]   ;;  %s3121_s1 = inlined_call_operand.vmem [shape: bf16[1024,512], index: 1, kind: input, shape index: {}]   ;;  %s3122_s2 = inlined_call_operand.vmem [shape: f32[1,512], index: 2, kind: input, shape index: {}]   ;;  %s3123_s3 = inlined_call_operand.vmem [shape: f32[1,512], index: 3, kind: input, shape index: {}]   ;;  %s3124_s4 = inlined_call_operand.vmem [shape: f32[1,512], index: 4, kind: input, shape index: {}]   ;;  %s3125_s5 = inlined_call_operand.vmem [shape: f32[128,512], index: 5, kind: input, shape index: {}]   ;;  %s3126_s6 = inlined_call_operand.vmem [shape: f32[128,512], index: 6, kind: output, shape index: {}]  }
   0x1   :  { %s2664_s23 = smov 0   ;;  %s2666_s24 = smov 0  }
   0x2   :  { %s2668_s25 = smov 0   ;;  %s2670_s26 = smov 0  }
   0x3   :  { %s2672_s27 = smov 0  }
   0x4 LB: > { %s25_s28 = sadd.s32 1, %s2614_s25  ;;  %s28_s29 = sadd.s32 1, %s2618_s26  ;;  %s2622_s27 = sphi %s2672_s27, %s16_s27   ;;  %s2618_s26 = sphi %s2670_s26, %s3132_s26   ;;  %s2614_s25 = sphi %s2668_s25, %s3131_s25   ;;  %s2610_s24 = sphi %s2666_s24, %s3130_s24   ;;  %s2606_s23 = sphi %s2664_s23, %s3129_s23   ;;  %s2602_s22 = sphi %s2662_s22, %s3128_s22   ;;  %s2598_s21 = sphi %s2660_s21, %s3127_s21  }
   0x5   : > { %p26_p0 = scmp.ge.s32.totalorder %s25_s28, 2  ;;  %p44_p1 = scmp.ne.s32.totalorder %s2602_s22, %s2598_s21 }
   0x6   : > { %p45_p2 = scmp.eq.s32.totalorder %s2622_s27, 0  ;;  %s37_s9 = sadd.s32 1, %s2602_s22 }
   0x7   : > { %s3134_s28 = smov (%p26_p0, %s25_s28), 0  ;;  %s3136_s29 = smov (!%p26_p0, %s28_s29), %s2618_s26 }
   0x8   : > { %p46_p3 = por %p45_p2, %p44_p1  ;;  %p30_p4 = scmp.ge.s32.totalorder %s3136_s29, 2 }
   0x9   : > { %s33_s30 = ssub.s32 %s2614_s25, %s3134_s28  ;;  %p2094_p6 = scmp.ge.s32.totalorder %s2622_s27, 4 }
   0xa   : > { %s3138_s29 = smov (%p30_p4, %s3136_s29), 0 }
   0xb   : > { %s32_s7 = ssub.s32 %s2618_s26, %s3138_s29  ;;  %220 = sbr.rel (%p2094_p6) target bundleno = 33 (0x21), region = 28 }
   0xc   : > { %s34_s8 = sor.u32 %s33_s30, %s32_s7 }
   0xd   : > { %p35_p5 = scmp.eq.s32.totalorder %s34_s8, 0 }
   0xf   : > { %s2711_s10 = scalar_select %p35_p5, %s2602_s22, %s37_s9  }
  0x12   : > { %223 = sbr.rel (!%p46_p3) target bundleno = 33 (0x21), region = 32  ;;  %s225_s11 = sand.u32 (%p46_p3), 1, %s2602_s22  }
  0x13   : > { %s2097_s12 = sshll.u32 (%p46_p3), %s2614_s25, 2  ;;  %s2095_s13 = sshll.u32 (%p46_p3), %s225_s11, 7 }
  0x14   : > { %s2259_s14 = sshll.u32 (%p46_p3), %s2618_s26, 6  ;;  %s227_s20 = scalar_lea.vmem (%p46_p3), [#allocation3], %s2095_s13 }
  0x15   : > { %s231_s15 = sadd.s32 (%p46_p3), %s2259_s14, %s2097_s12 }
  0x16   : > { %s2099_s16 = sshll.u32 (%p46_p3), %s231_s15, 2 }
  0x17   : > { %s2720_s19 = scalar_lea.vmem (%p46_p3), %s3120_s0, %s2099_s16 }
  0x18   : > { %v246_v0 = vld [vmem:[%s2720_s19] sm:$0xff] (%p46_p3)  ;;  %v248_v1 = vld [vmem:[%s2720_s19 + $0x8] sm:$0xff] (%p46_p3) }
  0x19   : > { %v250_v2 = vld [vmem:[%s2720_s19 + $0x20] sm:$0xff]  ;;  %247 = vst [vmem:[%s227_s20] sm:$0xff] %v246_v0  ;;  %249 = vst [vmem:[%s227_s20 + $0x8] sm:$0xff] %v248_v1  ;;  %v252_v3 = vld [vmem:[%s2720_s19 + $0x28] sm:$0xff] }
  0x1a   : > { %251 = vst [vmem:[%s227_s20 + $0x10] sm:$0xff] %v250_v2  ;;  %v254_v4 = vld [vmem:[%s2720_s19 + $0x40] sm:$0xff]  ;;  %v256_v5 = vld [vmem:[%s2720_s19 + $0x48] sm:$0xff]  ;;  %253 = vst [vmem:[%s227_s20 + $0x18] sm:$0xff] %v252_v3 }
  0x1b   : > { %255 = vst [vmem:[%s227_s20 + $0x20] sm:$0xff] %v254_v4  ;;  %257 = vst [vmem:[%s227_s20 + $0x28] sm:$0xff] %v256_v5  ;;  %v258_v6 = vld [vmem:[%s2720_s19 + $0x60] sm:$0xff]  ;;  %v260_v7 = vld [vmem:[%s2720_s19 + $0x68] sm:$0xff] }
  0x1c   : > { %v262_v8 = vld [vmem:[%s2720_s19 + $0x80] sm:$0xff]  ;;  %259 = vst [vmem:[%s227_s20 + $0x30] sm:$0xff] %v258_v6  ;;  %261 = vst [vmem:[%s227_s20 + $0x38] sm:$0xff] %v260_v7  ;;  %v264_v9 = vld [vmem:[%s2720_s19 + $0x88] sm:$0xff] }
  0x1d   : > { %263 = vst [vmem:[%s227_s20 + $0x40] sm:$0xff] %v262_v8  ;;  %v266_v10 = vld [vmem:[%s2720_s19 + $0xa0] sm:$0xff]  ;;  %v268_v11 = vld [vmem:[%s2720_s19 + $0xa8] sm:$0xff]  ;;  %265 = vst [vmem:[%s227_s20 + $0x48] sm:$0xff] %v264_v9 }
  0x1e   : > { %267 = vst [vmem:[%s227_s20 + $0x50] sm:$0xff] %v266_v10  ;;  %269 = vst [vmem:[%s227_s20 + $0x58] sm:$0xff] %v268_v11  ;;  %v270_v12 = vld [vmem:[%s2720_s19 + $0xc0] sm:$0xff]  ;;  %v272_v13 = vld [vmem:[%s2720_s19 + $0xc8] sm:$0xff] }
  0x1f   : > { %v274_v14 = vld [vmem:[%s2720_s19 + $0xe0] sm:$0xff]  ;;  %271 = vst [vmem:[%s227_s20 + $0x60] sm:$0xff] %v270_v12  ;;  %273 = vst [vmem:[%s227_s20 + $0x68] sm:$0xff] %v272_v13  ;;  %v276_v15 = vld [vmem:[%s2720_s19 + $0xe8] sm:$0xff] }
  0x20   : > { %275 = vst [vmem:[%s227_s20 + $0x70] sm:$0xff] %v274_v14  ;;  %277 = vst [vmem:[%s227_s20 + $0x78] sm:$0xff] %v276_v15 }
  0x21 PF: > { %p2100_p7 = scmp.ge.s32.totalorder %s2622_s27, 1  ;;  %p302_p8 = scmp.lt.s32.totalorder %s2622_s27, 5 }
  0x23   : > { %p303_p9 = pnand %p2100_p7, %p302_p8 }
  0x24   : > { %s309_s30 = sand.u32 (!%p303_p9), 1, %s2598_s21   ;;  %s2102_s7 = sshll.u32 (!%p303_p9), %s2606_s23, 6 }
  0x25   : > { %306 = sbr.rel (%p303_p9) target bundleno = 471 (0x1d7), region = 63  ;;  %s2101_s8 = sshll.u32 (!%p303_p9), %s309_s30, 7 }
  0x26   : > { %p354_p10 = scmp.lt.s32.totalorder (!%p303_p9), %s2102_s7, 127  ;;  %s2105_s9 = sshll.u32 (!%p303_p9), %s2610_s24, 3 }
  0x27   : > { %p361_p11 = scmp.lt.s32.totalorder (!%p303_p9), %s2105_s9, 15  ;;  %s2758_s24 = scalar_lea.vmem (!%p303_p9), [#allocation3], %s2101_s8 }
  0x28   : > { %p2111_p12 = scmp.ne.s32.totalorder (!%p303_p9), %s2606_s23, 0 }
  0x2c   : > { %s3140_s7 = smov (!%p354_p10, %s2102_s7), 127  ;;  %s3142_s9 = smov (!%p361_p11, %s2105_s9), 15 }
  0x2d   : > { %s2260_s11 = sshll.u32 %s3140_s7, 4  ;;  %s2261_s15 = sshll.u32 %s3142_s9, 5  ;;  %v2624_v16 = vmov (!%p2111_p12), 0.0  }
  0x2e   : > { %s2746_s14 = scalar_lea.vmem %s3121_s1, %s2260_s11  ;;  %s2751_s18 = scalar_lea.vmem %s3125_s5, %s2261_s15  ;;  %378 = vst [vmem:[#allocation2] sm:$0xff] (!%p2111_p12), %v2624_v16  ;;  %379 = vst [vmem:[#allocation2 + $0x8] sm:$0xff] (!%p2111_p12), %v2624_v16 }
  0x2f   : > { %s2756_s20 = scalar_lea.vmem %s3126_s6, %s2261_s15  ;;  %377 = sbr.rel (%p2111_p12) target bundleno = 62 (0x3e), region = 71  ;;  %380 = vst [vmem:[#allocation2 + $0x10] sm:$0xff] (!%p2111_p12), %v2624_v16  ;;  %381 = vst [vmem:[#allocation2 + $0x18] sm:$0xff] (!%p2111_p12), %v2624_v16 }
  0x30   : > { %382 = vst [vmem:[#allocation2 + $0x20] sm:$0xff] (!%p2111_p12), %v2624_v16  ;;  %383 = vst [vmem:[#allocation2 + $0x28] sm:$0xff] (!%p2111_p12), %v2624_v16 }
  0x31   : > { %384 = vst [vmem:[#allocation2 + $0x30] sm:$0xff] (!%p2111_p12), %v2624_v16  ;;  %385 = vst [vmem:[#allocation2 + $0x38] sm:$0xff] (!%p2111_p12), %v2624_v16 }
  0x32   : > { %386 = vst [vmem:[#allocation2 + $0x40] sm:$0xff] (!%p2111_p12), %v2624_v16  ;;  %387 = vst [vmem:[#allocation2 + $0x48] sm:$0xff] (!%p2111_p12), %v2624_v16 }
  0x33   : > { %388 = vst [vmem:[#allocation2 + $0x50] sm:$0xff] (!%p2111_p12), %v2624_v16  ;;  %389 = vst [vmem:[#allocation2 + $0x58] sm:$0xff] (!%p2111_p12), %v2624_v16 }
  0x34   : > { %390 = vst [vmem:[#allocation2 + $0x60] sm:$0xff] (!%p2111_p12), %v2624_v16  ;;  %391 = vst [vmem:[#allocation2 + $0x68] sm:$0xff] (!%p2111_p12), %v2624_v16 }
  0x35   : > { %392 = vst [vmem:[#allocation2 + $0x70] sm:$0xff] (!%p2111_p12), %v2624_v16  ;;  %393 = vst [vmem:[#allocation2 + $0x78] sm:$0xff] (!%p2111_p12), %v2624_v16 }
  0x36   : > { %394 = vst [vmem:[#allocation2 + $0x80] sm:$0xff] %v2624_v16  ;;  %395 = vst [vmem:[#allocation2 + $0x88] sm:$0xff] %v2624_v16 }
  0x37   : > { %396 = vst [vmem:[#allocation2 + $0x90] sm:$0xff] %v2624_v16  ;;  %397 = vst [vmem:[#allocation2 + $0x98] sm:$0xff] %v2624_v16 }
  0x38   : > { %398 = vst [vmem:[#allocation2 + $0xa0] sm:$0xff] %v2624_v16  ;;  %399 = vst [vmem:[#allocation2 + $0xa8] sm:$0xff] %v2624_v16 }
  0x39   : > { %400 = vst [vmem:[#allocation2 + $0xb0] sm:$0xff] %v2624_v16  ;;  %401 = vst [vmem:[#allocation2 + $0xb8] sm:$0xff] %v2624_v16 }
  0x3a   : > { %402 = vst [vmem:[#allocation2 + $0xc0] sm:$0xff] %v2624_v16  ;;  %403 = vst [vmem:[#allocation2 + $0xc8] sm:$0xff] %v2624_v16 }
  0x3b   : > { %404 = vst [vmem:[#allocation2 + $0xd0] sm:$0xff] %v2624_v16  ;;  %405 = vst [vmem:[#allocation2 + $0xd8] sm:$0xff] %v2624_v16 }
  0x3c   : > { %406 = vst [vmem:[#allocation2 + $0xe0] sm:$0xff] %v2624_v16  ;;  %407 = vst [vmem:[#allocation2 + $0xe8] sm:$0xff] %v2624_v16 }
  0x3d   : > { %408 = vst [vmem:[#allocation2 + $0xf0] sm:$0xff] %v2624_v16  ;;  %409 = vst [vmem:[#allocation2 + $0xf8] sm:$0xff] %v2624_v16 }
  0x3e PF: > { %v2352_v17 = vld [vmem:[%s2746_s14 + $0x4] ss:$16 sps:$4 sm:$0xff]   ;;  %v2354_v18 = vld [vmem:[%s2746_s14 + $0xc] ss:$16 sps:$4 sm:$0xff]   ;;  %v2356_v19 = vld [vmem:[%s2746_s14] ss:$16 sps:$4 sm:$0xff]  }
  0x3f   : > { %1306 = vmatprep.subr.bf16.mxu0 %v2352_v17  ;;  %v2357_v20 = vld [vmem:[%s2746_s14 + $0x8] ss:$16 sps:$4 sm:$0xff]   ;;  %1452 = vmatprep.subr.bf16.mxu1 %v2354_v18  ;;  %v2358_v21 = vld [vmem:[%s2746_s14 + $0x24] ss:$16 sps:$4 sm:$0xff]   ;;  %v2360_v22 = vld [vmem:[%s2746_s14 + $0x2c] ss:$16 sps:$4 sm:$0xff]  }
  0x40   : > { %1307 = vmatpush1.bf16.msra.mxu0 %v2356_v19  ;;  %1453 = vmatpush1.bf16.msra.mxu1 %v2357_v20  ;;  %v2362_v23 = vld [vmem:[%s2746_s14 + $0x20] ss:$16 sps:$4 sm:$0xff]   ;;  %v2363_v24 = vld [vmem:[%s2746_s14 + $0x28] ss:$16 sps:$4 sm:$0xff]   ;;  %v2364_v25 = vld [vmem:[%s2746_s14 + $0x44] ss:$16 sps:$4 sm:$0xff]  }
  0x41   : > { %1308 = vmatprep.subr.bf16.mxu0 %v2358_v21  ;;  %1454 = vmatprep.subr.bf16.mxu1 %v2360_v22  ;;  %v2366_v26 = vld [vmem:[%s2746_s14 + $0x4c] ss:$16 sps:$4 sm:$0xff]   ;;  %v2368_v27 = vld [vmem:[%s2746_s14 + $0x40] ss:$16 sps:$4 sm:$0xff]   ;;  %v2369_v28 = vld [vmem:[%s2746_s14 + $0x48] ss:$16 sps:$4 sm:$0xff]  }
  0x42   : > { %v2370_v29 = vld [vmem:[%s2746_s14 + $0x64] ss:$16 sps:$4 sm:$0xff]   ;;  %v2372_v30 = vld [vmem:[%s2746_s14 + $0x6c] ss:$16 sps:$4 sm:$0xff]   ;;  %v2374_v31 = vld [vmem:[%s2746_s14 + $0x60] ss:$16 sps:$4 sm:$0xff]  }
  0x43   : > { %v2375_v32 = vld [vmem:[%s2746_s14 + $0x68] ss:$16 sps:$4 sm:$0xff]   ;;  %v2376_v33 = vld [vmem:[%s2746_s14 + $0x84] ss:$16 sps:$4 sm:$0xff]   ;;  %v2378_v34 = vld [vmem:[%s2746_s14 + $0x8c] ss:$16 sps:$4 sm:$0xff]  }
  0x44   : > { %1309 = vmatpush1.bf16.msra.mxu0 %v2362_v23  ;;  %1455 = vmatpush1.bf16.msra.mxu1 %v2363_v24  ;;  %v2380_v35 = vld [vmem:[%s2746_s14 + $0x80] ss:$16 sps:$4 sm:$0xff]   ;;  %v2381_v36 = vld [vmem:[%s2746_s14 + $0x88] ss:$16 sps:$4 sm:$0xff]   ;;  %v2382_v37 = vld [vmem:[%s2746_s14 + $0xa4] ss:$16 sps:$4 sm:$0xff]  }
  0x45   : > { %1310 = vmatprep.subr.bf16.mxu0 %v2364_v25  ;;  %1456 = vmatprep.subr.bf16.mxu1 %v2366_v26  ;;  %v2384_v38 = vld [vmem:[%s2746_s14 + $0xac] ss:$16 sps:$4 sm:$0xff]   ;;  %v2386_v39 = vld [vmem:[%s2746_s14 + $0xa0] ss:$16 sps:$4 sm:$0xff]   ;;  %v2387_v40 = vld [vmem:[%s2746_s14 + $0xa8] ss:$16 sps:$4 sm:$0xff]  }
  0x46   : > { %v2388_v41 = vld [vmem:[%s2746_s14 + $0xc4] ss:$16 sps:$4 sm:$0xff]   ;;  %v2390_v42 = vld [vmem:[%s2746_s14 + $0xcc] ss:$16 sps:$4 sm:$0xff]   ;;  %v2392_v43 = vld [vmem:[%s2746_s14 + $0xc0] ss:$16 sps:$4 sm:$0xff]  }
  0x47   : > { %v2393_v44 = vld [vmem:[%s2746_s14 + $0xc8] ss:$16 sps:$4 sm:$0xff]   ;;  %v2394_v45 = vld [vmem:[%s2746_s14 + $0xe4] ss:$16 sps:$4 sm:$0xff]   ;;  %v2396_v46 = vld [vmem:[%s2746_s14 + $0xec] ss:$16 sps:$4 sm:$0xff]  }
  0x48   : > { %1311 = vmatpush1.bf16.msra.mxu0 %v2368_v27  ;;  %1457 = vmatpush1.bf16.msra.mxu1 %v2369_v28  ;;  %v2398_v47 = vld [vmem:[%s2746_s14 + $0xe0] ss:$16 sps:$4 sm:$0xff]   ;;  %v2399_v48 = vld [vmem:[%s2746_s14 + $0xe8] ss:$16 sps:$4 sm:$0xff]   ;;  %v2400_v49 = vld [vmem:[%s2746_s14 + $0x104] ss:$16 sps:$4 sm:$0xff]  }
  0x49   : > { %1312 = vmatprep.subr.bf16.mxu0 %v2370_v29  ;;  %1458 = vmatprep.subr.bf16.mxu1 %v2372_v30  ;;  %v2402_v50 = vld [vmem:[%s2746_s14 + $0x10c] ss:$16 sps:$4 sm:$0xff]   ;;  %v2404_v51 = vld [vmem:[%s2746_s14 + $0x100] ss:$16 sps:$4 sm:$0xff]   ;;  %v2405_v52 = vld [vmem:[%s2746_s14 + $0x108] ss:$16 sps:$4 sm:$0xff]  }
  0x4a   : > { %v2406_v53 = vld [vmem:[%s2746_s14 + $0x124] ss:$16 sps:$4 sm:$0xff]   ;;  %v2408_v54 = vld [vmem:[%s2746_s14 + $0x12c] ss:$16 sps:$4 sm:$0xff]   ;;  %v2410_v55 = vld [vmem:[%s2746_s14 + $0x120] ss:$16 sps:$4 sm:$0xff]  }
  0x4b   : > { %v2411_v56 = vld [vmem:[%s2746_s14 + $0x128] ss:$16 sps:$4 sm:$0xff]   ;;  %v2412_v57 = vld [vmem:[%s2746_s14 + $0x144] ss:$16 sps:$4 sm:$0xff]   ;;  %v2414_v58 = vld [vmem:[%s2746_s14 + $0x14c] ss:$16 sps:$4 sm:$0xff]  }
  0x4c   : > { %1313 = vmatpush1.bf16.msra.mxu0 %v2374_v31  ;;  %1459 = vmatpush1.bf16.msra.mxu1 %v2375_v32  ;;  %v2416_v59 = vld [vmem:[%s2746_s14 + $0x140] ss:$16 sps:$4 sm:$0xff]   ;;  %v2417_v60 = vld [vmem:[%s2746_s14 + $0x148] ss:$16 sps:$4 sm:$0xff]   ;;  %v2418_v61 = vld [vmem:[%s2746_s14 + $0x164] ss:$16 sps:$4 sm:$0xff]  }
  0x4d   : > { %1314 = vmatprep.subr.bf16.mxu0 %v2376_v33  ;;  %1460 = vmatprep.subr.bf16.mxu1 %v2378_v34  ;;  %v2420_v62 = vld [vmem:[%s2746_s14 + $0x16c] ss:$16 sps:$4 sm:$0xff]   ;;  %v2422_v63 = vld [vmem:[%s2746_s14 + $0x160] ss:$16 sps:$4 sm:$0xff]   ;;  %v2423_v0 = vld [vmem:[%s2746_s14 + $0x168] ss:$16 sps:$4 sm:$0xff]  }
  0x4e   : > { %v2450_v1 = vld [vmem:[%s2758_s24 + $0x4] ss:$16 sps:$4 sm:$0xff]   ;;  %v2426_v3 = vld [vmem:[%s2746_s14 + $0x18c] ss:$16 sps:$4 sm:$0xff]   ;;  %v2428_v4 = vld [vmem:[%s2746_s14 + $0x180] ss:$16 sps:$4 sm:$0xff]  }
  0x4f   : > { %v2424_v2 = vld [vmem:[%s2746_s14 + $0x184] ss:$16 sps:$4 sm:$0xff]   ;;  %1338 = vmatprep.mubr.bf16.mxu0 %v2450_v1  ;;  %1484 = vmatprep.mubr.bf16.mxu1 %v2450_v1  ;;  %v2429_v5 = vld [vmem:[%s2746_s14 + $0x188] ss:$16 sps:$4 sm:$0xff]   ;;  %v2432_v7 = vld [vmem:[%s2746_s14 + $0x1ac] ss:$16 sps:$4 sm:$0xff]  }
  0x50   : > { %1315 = vmatpush1.bf16.msra.mxu0 %v2380_v35  ;;  %1461 = vmatpush1.bf16.msra.mxu1 %v2381_v36  ;;  %v2430_v6 = vld [vmem:[%s2746_s14 + $0x1a4] ss:$16 sps:$4 sm:$0xff]   ;;  %v2434_v8 = vld [vmem:[%s2746_s14 + $0x1a0] ss:$16 sps:$4 sm:$0xff]   ;;  %v2435_v9 = vld [vmem:[%s2746_s14 + $0x1a8] ss:$16 sps:$4 sm:$0xff]  }
  0x51   : > { %1316 = vmatprep.subr.bf16.mxu0 %v2382_v37  ;;  %1462 = vmatprep.subr.bf16.mxu1 %v2384_v38  ;;  %v2436_v10 = vld [vmem:[%s2746_s14 + $0x1c4] ss:$16 sps:$4 sm:$0xff]   ;;  %v2438_v11 = vld [vmem:[%s2746_s14 + $0x1cc] ss:$16 sps:$4 sm:$0xff]   ;;  %v2440_v12 = vld [vmem:[%s2746_s14 + $0x1c0] ss:$16 sps:$4 sm:$0xff]  }
  0x52   : > { %v2441_v13 = vld [vmem:[%s2746_s14 + $0x1c8] ss:$16 sps:$4 sm:$0xff]   ;;  %v2442_v14 = vld [vmem:[%s2746_s14 + $0x1e4] ss:$16 sps:$4 sm:$0xff]   ;;  %v2444_v15 = vld [vmem:[%s2746_s14 + $0x1ec] ss:$16 sps:$4 sm:$0xff]  }
  0x53   : > { %v2446_v16 = vld [vmem:[%s2746_s14 + $0x1e0] ss:$16 sps:$4 sm:$0xff]   ;;  %v2447_v17 = vld [vmem:[%s2746_s14 + $0x1e8] ss:$16 sps:$4 sm:$0xff]   ;;  %v2453_v18 = vld [vmem:[%s2746_s14 + $0x204] ss:$16 sps:$4 sm:$0xff]  }
  0x54   : > { %1317 = vmatpush1.bf16.msra.mxu0 %v2386_v39  ;;  %1463 = vmatpush1.bf16.msra.mxu1 %v2387_v40  ;;  %v2456_v19 = vld [vmem:[%s2746_s14 + $0x20c] ss:$16 sps:$4 sm:$0xff]   ;;  %v2448_v20 = vld [vmem:[%s2758_s24] ss:$16 sps:$4 sm:$0xff]   ;;  %v2454_v22 = vld [vmem:[%s2746_s14 + $0x208] ss:$16 sps:$4 sm:$0xff]  }
  0x55   : > { %1318 = vmatprep.subr.bf16.mxu0 %v2388_v41  ;;  %1464 = vmatprep.subr.bf16.mxu1 %v2390_v42  ;;  %v2451_v21 = vld [vmem:[%s2746_s14 + $0x200] ss:$16 sps:$4 sm:$0xff]   ;;  %v2459_v23 = vld [vmem:[%s2746_s14 + $0x224] ss:$16 sps:$4 sm:$0xff]   ;;  %v2462_v24 = vld [vmem:[%s2746_s14 + $0x22c] ss:$16 sps:$4 sm:$0xff]  }
  0x56   : > { %v2457_v25 = vld [vmem:[%s2746_s14 + $0x220] ss:$16 sps:$4 sm:$0xff]   ;;  %v2460_v26 = vld [vmem:[%s2746_s14 + $0x228] ss:$16 sps:$4 sm:$0xff]   ;;  %v2465_v27 = vld [vmem:[%s2746_s14 + $0x244] ss:$16 sps:$4 sm:$0xff]  }
  0x57   : > { %v2468_v28 = vld [vmem:[%s2746_s14 + $0x24c] ss:$16 sps:$4 sm:$0xff]   ;;  %v2463_v29 = vld [vmem:[%s2746_s14 + $0x240] ss:$16 sps:$4 sm:$0xff]   ;;  %v2466_v30 = vld [vmem:[%s2746_s14 + $0x248] ss:$16 sps:$4 sm:$0xff]  }
  0x58   : > { %1319 = vmatpush1.bf16.msra.mxu0 %v2392_v43  ;;  %1465 = vmatpush1.bf16.msra.mxu1 %v2393_v44  ;;  %v2511_v31 = vld [vmem:[%s2758_s24 + $0x24] ss:$16 sps:$4 sm:$0xff]   ;;  %v2513_v32 = vld [vmem:[%s2758_s24 + $0x20] ss:$16 sps:$4 sm:$0xff]   ;;  %v2474_v34 = vld [vmem:[%s2746_s14 + $0x26c] ss:$16 sps:$4 sm:$0xff]  }
  0x59   : > { %1320 = vmatprep.subr.bf16.mxu0 %v2394_v45  ;;  %1466 = vmatprep.subr.bf16.mxu1 %v2396_v46  ;;  %v2471_v33 = vld [vmem:[%s2746_s14 + $0x264] ss:$16 sps:$4 sm:$0xff]   ;;  %v2469_v35 = vld [vmem:[%s2746_s14 + $0x260] ss:$16 sps:$4 sm:$0xff]   ;;  %v2472_v36 = vld [vmem:[%s2746_s14 + $0x268] ss:$16 sps:$4 sm:$0xff]  }
  0x5a   : > { %v2477_v37 = vld [vmem:[%s2746_s14 + $0x284] ss:$16 sps:$4 sm:$0xff]   ;;  %v2480_v38 = vld [vmem:[%s2746_s14 + $0x28c] ss:$16 sps:$4 sm:$0xff]   ;;  %v2475_v39 = vld [vmem:[%s2746_s14 + $0x280] ss:$16 sps:$4 sm:$0xff]  }
  0x5b   : > { %v2526_v40 = vld [vmem:[%s2758_s24 + $0x44] ss:$16 sps:$4 sm:$0xff]   ;;  %v2478_v41 = vld [vmem:[%s2746_s14 + $0x288] ss:$16 sps:$4 sm:$0xff]   ;;  %v2528_v42 = vld [vmem:[%s2758_s24 + $0x40] ss:$16 sps:$4 sm:$0xff]  }
  0x5c   : > { %1321 = vmatpush1.bf16.msra.mxu0 %v2398_v47  ;;  %1467 = vmatpush1.bf16.msra.mxu1 %v2399_v48  ;;  %v2483_v43 = vld [vmem:[%s2746_s14 + $0x2a4] ss:$16 sps:$4 sm:$0xff]   ;;  %v2486_v44 = vld [vmem:[%s2746_s14 + $0x2ac] ss:$16 sps:$4 sm:$0xff]   ;;  %v2481_v45 = vld [vmem:[%s2746_s14 + $0x2a0] ss:$16 sps:$4 sm:$0xff]  }
  0x5d   : > { %1322 = vmatprep.subr.bf16.mxu0 %v2400_v49  ;;  %1468 = vmatprep.subr.bf16.mxu1 %v2402_v50  ;;  %v2484_v46 = vld [vmem:[%s2746_s14 + $0x2a8] ss:$16 sps:$4 sm:$0xff]   ;;  %v2489_v47 = vld [vmem:[%s2746_s14 + $0x2c4] ss:$16 sps:$4 sm:$0xff]   ;;  %v2492_v49 = vld [vmem:[%s2746_s14 + $0x2cc] ss:$16 sps:$4 sm:$0xff]  }
  0x5e   : > { %v2541_v48 = vld [vmem:[%s2758_s24 + $0x64] ss:$16 sps:$4 sm:$0xff]   ;;  %v2487_v50 = vld [vmem:[%s2746_s14 + $0x2c0] ss:$16 sps:$4 sm:$0xff]   ;;  %v2508_v1 = vld [vmem:[%s2746_s14 + $0x328] ss:$16 sps:$4 sm:$0xff]  }
  0x5f   : > { %p2256_p13 = scmp.ne.s32.totalorder %s2606_s23, 1 }
  0x60   : > { %1323 = vmatpush1.bf16.msra.mxu0 %v2404_v51  ;;  %1469 = vmatpush1.bf16.msra.mxu1 %v2405_v52  ;;  %v2490_v51 = vld [vmem:[%s2746_s14 + $0x2c8] ss:$16 sps:$4 sm:$0xff]   ;;  %v2543_v52 = vld [vmem:[%s2758_s24 + $0x60] ss:$16 sps:$4 sm:$0xff]  }
  0x61   : > { %1324 = vmatprep.subr.bf16.mxu0 %v2406_v53  ;;  %1470 = vmatprep.subr.bf16.mxu1 %v2408_v54  ;;  %v2495_v53 = vld [vmem:[%s2746_s14 + $0x2e4] ss:$16 sps:$4 sm:$0xff]   ;;  %v2498_v54 = vld [vmem:[%s2746_s14 + $0x2ec] ss:$16 sps:$4 sm:$0xff]  }
  0x64   : > { %1325 = vmatpush1.bf16.msra.mxu0 %v2410_v55  ;;  %1471 = vmatpush1.bf16.msra.mxu1 %v2411_v56  ;;  %v2493_v55 = vld [vmem:[%s2746_s14 + $0x2e0] ss:$16 sps:$4 sm:$0xff]   ;;  %v2496_v56 = vld [vmem:[%s2746_s14 + $0x2e8] ss:$16 sps:$4 sm:$0xff]  }
  0x65   : > { %1326 = vmatprep.subr.bf16.mxu0 %v2412_v57  ;;  %1472 = vmatprep.subr.bf16.mxu1 %v2414_v58  ;;  %v2558_v57 = vld [vmem:[%s2758_s24 + $0xc] ss:$16 sps:$4 sm:$0xff]   ;;  %v2501_v58 = vld [vmem:[%s2746_s14 + $0x304] ss:$16 sps:$4 sm:$0xff]  }
  0x68   : > { %1327 = vmatpush1.bf16.msra.mxu0 %v2416_v59  ;;  %1473 = vmatpush1.bf16.msra.mxu1 %v2417_v60  ;;  %v2504_v59 = vld [vmem:[%s2746_s14 + $0x30c] ss:$16 sps:$4 sm:$0xff]   ;;  %v2499_v60 = vld [vmem:[%s2746_s14 + $0x300] ss:$16 sps:$4 sm:$0xff]  }
  0x69   : > { %1328 = vmatprep.subr.bf16.mxu0 %v2418_v61  ;;  %1474 = vmatprep.subr.bf16.mxu1 %v2420_v62  ;;  %v2502_v61 = vld [vmem:[%s2746_s14 + $0x308] ss:$16 sps:$4 sm:$0xff]   ;;  %v2507_v62 = vld [vmem:[%s2746_s14 + $0x324] ss:$16 sps:$4 sm:$0xff]  }
  0x6c   : > { %1329 = vmatpush1.bf16.msra.mxu0 %v2422_v63  ;;  %1475 = vmatpush1.bf16.msra.mxu1 %v2423_v0  ;;  %v2510_v63 = vld [vmem:[%s2746_s14 + $0x32c] ss:$16 sps:$4 sm:$0xff]   ;;  %v2505_v0 = vld [vmem:[%s2746_s14 + $0x320] ss:$16 sps:$4 sm:$0xff]  }
  0x6d   : > { %1330 = vmatprep.subr.bf16.mxu0 %v2424_v2  ;;  %1476 = vmatprep.subr.bf16.mxu1 %v2426_v3  ;;  %v2516_v2 = vld [vmem:[%s2746_s14 + $0x344] ss:$16 sps:$4 sm:$0xff]   ;;  %v2519_v3 = vld [vmem:[%s2746_s14 + $0x34c] ss:$16 sps:$4 sm:$0xff]  }
  0x70   : > { %1331 = vmatpush1.bf16.msra.mxu0 %v2428_v4  ;;  %1477 = vmatpush1.bf16.msra.mxu1 %v2429_v5  ;;  %v2514_v4 = vld [vmem:[%s2746_s14 + $0x340] ss:$16 sps:$4 sm:$0xff]   ;;  %v2517_v5 = vld [vmem:[%s2746_s14 + $0x348] ss:$16 sps:$4 sm:$0xff]  }
  0x71   : > { %1332 = vmatprep.subr.bf16.mxu0 %v2430_v6  ;;  %1478 = vmatprep.subr.bf16.mxu1 %v2432_v7  ;;  %v2522_v6 = vld [vmem:[%s2746_s14 + $0x364] ss:$16 sps:$4 sm:$0xff]   ;;  %v2525_v7 = vld [vmem:[%s2746_s14 + $0x36c] ss:$16 sps:$4 sm:$0xff]  }
  0x74   : > { %1333 = vmatpush1.bf16.msra.mxu0 %v2434_v8  ;;  %1479 = vmatpush1.bf16.msra.mxu1 %v2435_v9  ;;  %v2520_v8 = vld [vmem:[%s2746_s14 + $0x360] ss:$16 sps:$4 sm:$0xff]   ;;  %v2523_v9 = vld [vmem:[%s2746_s14 + $0x368] ss:$16 sps:$4 sm:$0xff]  }
  0x75   : > { %1334 = vmatprep.subr.bf16.mxu0 %v2436_v10  ;;  %1480 = vmatprep.subr.bf16.mxu1 %v2438_v11  ;;  %v2531_v10 = vld [vmem:[%s2746_s14 + $0x384] ss:$16 sps:$4 sm:$0xff]   ;;  %v2534_v11 = vld [vmem:[%s2746_s14 + $0x38c] ss:$16 sps:$4 sm:$0xff]  }
  0x78   : > { %1335 = vmatpush1.bf16.msra.mxu0 %v2440_v12  ;;  %1481 = vmatpush1.bf16.msra.mxu1 %v2441_v13  ;;  %v2529_v12 = vld [vmem:[%s2746_s14 + $0x380] ss:$16 sps:$4 sm:$0xff]   ;;  %v2532_v13 = vld [vmem:[%s2746_s14 + $0x388] ss:$16 sps:$4 sm:$0xff]  }
  0x79   : > { %1336 = vmatprep.subr.bf16.mxu0 %v2442_v14  ;;  %1482 = vmatprep.subr.bf16.mxu1 %v2444_v15  ;;  %v2537_v14 = vld [vmem:[%s2746_s14 + $0x3a4] ss:$16 sps:$4 sm:$0xff]   ;;  %v2540_v15 = vld [vmem:[%s2746_s14 + $0x3ac] ss:$16 sps:$4 sm:$0xff]  }
  0x7c   : > { %1337 = vmatpush1.bf16.msra.mxu0 %v2446_v16  ;;  %1483 = vmatpush1.bf16.msra.mxu1 %v2447_v17  ;;  %v2535_v16 = vld [vmem:[%s2746_s14 + $0x3a0] ss:$16 sps:$4 sm:$0xff]   ;;  %v2538_v17 = vld [vmem:[%s2746_s14 + $0x3a8] ss:$16 sps:$4 sm:$0xff]  }
  0x7d   : > { %1379 = vmatprep.subr.bf16.mxu0 %v2453_v18  ;;  %1525 = vmatprep.subr.bf16.mxu1 %v2456_v19  ;;  %v2546_v18 = vld [vmem:[%s2746_s14 + $0x3c4] ss:$16 sps:$4 sm:$0xff]   ;;  %v2549_v19 = vld [vmem:[%s2746_s14 + $0x3cc] ss:$16 sps:$4 sm:$0xff]  }
  0x7f   : > { %1339 = vmatmul.mubr.bf16.vlgmr.msra.gmra.mrb[0].mxu0 %v2448_v20  ;;  %1485 = vmatmul.mubr.bf16.vlgmr.msra.gmra.mrb[0].mxu1 %v2448_v20  ;;  %v2544_v20 = vld [vmem:[%s2746_s14 + $0x3c0] ss:$16 sps:$4 sm:$0xff]  }
  0x80   : > { %1380 = vmatpush1.bf16.msra.mxu0 %v2451_v21  ;;  %1526 = vmatpush1.bf16.msra.mxu1 %v2454_v22  ;;  %v2547_v21 = vld [vmem:[%s2746_s14 + $0x3c8] ss:$16 sps:$4 sm:$0xff]   ;;  %v2552_v22 = vld [vmem:[%s2746_s14 + $0x3e4] ss:$16 sps:$4 sm:$0xff]  }
  0x81   : > { %1381 = vmatprep.subr.bf16.mxu0 %v2459_v23  ;;  %1527 = vmatprep.subr.bf16.mxu1 %v2462_v24  ;;  %v2555_v23 = vld [vmem:[%s2746_s14 + $0x3ec] ss:$16 sps:$4 sm:$0xff]   ;;  %v2550_v24 = vld [vmem:[%s2746_s14 + $0x3e0] ss:$16 sps:$4 sm:$0xff]  }
  0x82   : > { %1348 = vmatprep.mubr.bf16.mxu0 %v2511_v31  ;;  %1494 = vmatprep.mubr.bf16.mxu1 %v2511_v31  ;;  %v2565_v31 = vld [vmem:[%s2758_s24 + $0x6c] ss:$16 sps:$4 sm:$0xff]  }
  0x84   : > { %1382 = vmatpush1.bf16.msra.mxu0 %v2457_v25  ;;  %1528 = vmatpush1.bf16.msra.mxu1 %v2460_v26  ;;  %v2553_v25 = vld [vmem:[%s2746_s14 + $0x3e8] ss:$16 sps:$4 sm:$0xff]  }
  0x85   : > { %1383 = vmatprep.subr.bf16.mxu0 %v2465_v27  ;;  %1529 = vmatprep.subr.bf16.mxu1 %v2468_v28  ;;  %v2556_v26 = vld [vmem:[%s2758_s24 + $0x8] ss:$16 sps:$4 sm:$0xff]   ;;  %v2559_v27 = vld [vmem:[%s2758_s24 + $0x2c] ss:$16 sps:$4 sm:$0xff]  }
  0x86   : > { %v2561_v28 = vld [vmem:[%s2758_s24 + $0x28] ss:$16 sps:$4 sm:$0xff]  }
  0x87   : > { %1349 = vmatmul.mubr.bf16.gmra.mrb[4].mxu0 %v2513_v32  ;;  %1495 = vmatmul.mubr.bf16.gmra.mrb[4].mxu1 %v2513_v32  ;;  %v2567_v32 = vld [vmem:[%s2758_s24 + $0x68] ss:$16 sps:$4 sm:$0xff]  }
  0x88   : > { %1384 = vmatpush1.bf16.msra.mxu0 %v2463_v29  ;;  %1530 = vmatpush1.bf16.msra.mxu1 %v2466_v30  ;;  %v2562_v29 = vld [vmem:[%s2758_s24 + $0x4c] ss:$16 sps:$4 sm:$0xff]   ;;  %v2564_v30 = vld [vmem:[%s2758_s24 + $0x48] ss:$16 sps:$4 sm:$0xff]  }
  0x89   : > { %1385 = vmatprep.subr.bf16.mxu0 %v2471_v33  ;;  %1531 = vmatprep.subr.bf16.mxu1 %v2474_v34  ;;  %v410_v33 = vld [vmem:[#allocation2] sm:$0xff]  ;;  %v412_v34 = vld [vmem:[#allocation2 + $0x10] sm:$0xff] }
  0x8a   : > { %1358 = vmatprep.mubr.bf16.mxu0 %v2526_v40  ;;  %1504 = vmatprep.mubr.bf16.mxu1 %v2526_v40  ;;  %v416_v40 = vld [vmem:[#allocation2 + $0x30] sm:$0xff] }
  0x8c   : > { %1386 = vmatpush1.bf16.msra.mxu0 %v2469_v35  ;;  %1532 = vmatpush1.bf16.msra.mxu1 %v2472_v36  ;;  %v411_v35 = vld [vmem:[#allocation2 + $0x8] sm:$0xff]  ;;  %v413_v36 = vld [vmem:[#allocation2 + $0x18] sm:$0xff] }
  0x8d   : > { %1387 = vmatprep.subr.bf16.mxu0 %v2477_v37  ;;  %1533 = vmatprep.subr.bf16.mxu1 %v2480_v38 }
  0x8f   : > { %1359 = vmatmul.mubr.bf16.gmra.mrb[8].mxu0 %v2528_v42  ;;  %1505 = vmatmul.mubr.bf16.gmra.mrb[8].mxu1 %v2528_v42 }
  0x90   : > { %1388 = vmatpush1.bf16.msra.mxu0 %v2475_v39  ;;  %1534 = vmatpush1.bf16.msra.mxu1 %v2478_v41  ;;  %v414_v39 = vld [vmem:[#allocation2 + $0x20] sm:$0xff] }
  0x91   : > { %1389 = vmatprep.subr.bf16.mxu0 %v2483_v43  ;;  %1535 = vmatprep.subr.bf16.mxu1 %v2486_v44 }
  0x92   : > { %1368 = vmatprep.mubr.bf16.mxu0 %v2541_v48  ;;  %1514 = vmatprep.mubr.bf16.mxu1 %v2541_v48 }
  0x94   : > { %1390 = vmatpush1.bf16.msra.mxu0 %v2481_v45  ;;  %1536 = vmatpush1.bf16.msra.mxu1 %v2484_v46  ;;  %v415_v45 = vld [vmem:[#allocation2 + $0x28] sm:$0xff]  ;;  %v417_v46 = vld [vmem:[#allocation2 + $0x38] sm:$0xff] }
  0x95   : > { %1391 = vmatprep.subr.bf16.mxu0 %v2489_v47  ;;  %1537 = vmatprep.subr.bf16.mxu1 %v2492_v49 }
  0x97   : > { %1369 = vmatmul.mubr.bf16.gmra.mrb[12].mxu0 %v2543_v52  ;;  %1515 = vmatmul.mubr.bf16.gmra.mrb[12].mxu1 %v2543_v52 }
  0x98   : > { %1392 = vmatpush1.bf16.msra.mxu0 %v2487_v50  ;;  %1538 = vmatpush1.bf16.msra.mxu1 %v2490_v51 }
  0x99   : > { %1393 = vmatprep.subr.bf16.mxu0 %v2495_v53  ;;  %1539 = vmatprep.subr.bf16.mxu1 %v2498_v54 }
  0x9a   : > { %1411 = vmatprep.mubr.bf16.mxu0 %v2558_v57  ;;  %1557 = vmatprep.mubr.bf16.mxu1 %v2558_v57  ;;  %v418_v57 = vld [vmem:[#allocation2 + $0x40] sm:$0xff] }
  0x9c   : > { %1394 = vmatpush1.bf16.msra.mxu0 %v2493_v55  ;;  %1540 = vmatpush1.bf16.msra.mxu1 %v2496_v56 }
  0x9d   : > { %1395 = vmatprep.subr.bf16.mxu0 %v2501_v58  ;;  %1541 = vmatprep.subr.bf16.mxu1 %v2504_v59  ;;  %v420_v58 = vld [vmem:[#allocation2 + $0x50] sm:$0xff]  ;;  %v419_v59 = vld [vmem:[#allocation2 + $0x48] sm:$0xff] }
  0xa0   : > { %1396 = vmatpush1.bf16.msra.mxu0 %v2499_v60  ;;  %1542 = vmatpush1.bf16.msra.mxu1 %v2502_v61  ;;  %v421_v60 = vld [vmem:[#allocation2 + $0x58] sm:$0xff] }
  0xa1   : > { %1397 = vmatprep.subr.bf16.mxu0 %v2507_v62  ;;  %1543 = vmatprep.subr.bf16.mxu1 %v2510_v63  ;;  %v422_v63 = vld [vmem:[#allocation2 + $0x60] sm:$0xff] }
  0xa4   : > { %1398 = vmatpush1.bf16.msra.mxu0 %v2505_v0  ;;  %1544 = vmatpush1.bf16.msra.mxu1 %v2508_v1  ;;  %v424_v0 = vld [vmem:[#allocation2 + $0x70] sm:$0xff] }
  0xa5   : > { %1399 = vmatprep.subr.bf16.mxu0 %v2516_v2  ;;  %1545 = vmatprep.subr.bf16.mxu1 %v2519_v3 }
  0xa8   : > { %1400 = vmatpush1.bf16.msra.mxu0 %v2514_v4  ;;  %1546 = vmatpush1.bf16.msra.mxu1 %v2517_v5  ;;  %v423_v5 = vld [vmem:[#allocation2 + $0x68] sm:$0xff] }
  0xa9   : > { %1401 = vmatprep.subr.bf16.mxu0 %v2522_v6  ;;  %1547 = vmatprep.subr.bf16.mxu1 %v2525_v7  ;;  %v425_v6 = vld [vmem:[#allocation2 + $0x78] sm:$0xff] }
  0xac   : > { %1402 = vmatpush1.bf16.msra.mxu0 %v2520_v8  ;;  %1548 = vmatpush1.bf16.msra.mxu1 %v2523_v9 }
  0xad   : > { %1403 = vmatprep.subr.bf16.mxu0 %v2531_v10  ;;  %1549 = vmatprep.subr.bf16.mxu1 %v2534_v11 }
  0xb0   : > { %1404 = vmatpush1.bf16.msra.mxu0 %v2529_v12  ;;  %1550 = vmatpush1.bf16.msra.mxu1 %v2532_v13 }
  0xb1   : > { %1405 = vmatprep.subr.bf16.mxu0 %v2537_v14  ;;  %1551 = vmatprep.subr.bf16.mxu1 %v2540_v15 }
  0xb4   : > { %1406 = vmatpush1.bf16.msra.mxu0 %v2535_v16  ;;  %1552 = vmatpush1.bf16.msra.mxu1 %v2538_v17  ;;  %v426_v17 = vld [vmem:[#allocation2 + $0x80] sm:$0xff] }
  0xb5   : > { %1407 = vmatprep.subr.bf16.mxu0 %v2546_v18  ;;  %1553 = vmatprep.subr.bf16.mxu1 %v2549_v19  ;;  %v428_v18 = vld [vmem:[#allocation2 + $0x90] sm:$0xff]  ;;  %v427_v19 = vld [vmem:[#allocation2 + $0x88] sm:$0xff] }
  0xb8   : > { %1408 = vmatpush1.bf16.msra.mxu0 %v2544_v20  ;;  %1554 = vmatpush1.bf16.msra.mxu1 %v2547_v21  ;;  %v429_v20 = vld [vmem:[#allocation2 + $0x98] sm:$0xff] }
  0xb9   : > { %1409 = vmatprep.subr.bf16.mxu0 %v2552_v22  ;;  %1555 = vmatprep.subr.bf16.mxu1 %v2555_v23  ;;  %v430_v23 = vld [vmem:[#allocation2 + $0xa0] sm:$0xff] }
  0xbc   : > { %1410 = vmatpush1.bf16.msra.mxu0 %v2550_v24  ;;  %1556 = vmatpush1.bf16.msra.mxu1 %v2553_v25  ;;  %v432_v24 = vld [vmem:[#allocation2 + $0xb0] sm:$0xff] }
  0xbf   : > { %1412 = vmatmul.mubr.bf16.vlgmr.msra.gmra.mrb[0].mxu0 %v2556_v26  ;;  %1558 = vmatmul.mubr.bf16.vlgmr.msra.gmra.mrb[0].mxu1 %v2556_v26 }
  0xc0   : > { %1421 = vmatprep.mubr.bf16.mxu0 %v2559_v27  ;;  %1567 = vmatprep.mubr.bf16.mxu1 %v2559_v27 }
  0xc7   : > { %1422 = vmatmul.mubr.bf16.gmra.mrb[4].mxu0 %v2561_v28  ;;  %1568 = vmatmul.mubr.bf16.gmra.mrb[4].mxu1 %v2561_v28 }
  0xc8   : > { %1431 = vmatprep.mubr.bf16.mxu0 %v2562_v29  ;;  %1577 = vmatprep.mubr.bf16.mxu1 %v2562_v29  ;;  %v431_v29 = vld [vmem:[#allocation2 + $0xa8] sm:$0xff] }
  0xcf   : > { %1432 = vmatmul.mubr.bf16.gmra.mrb[8].mxu0 %v2564_v30  ;;  %1578 = vmatmul.mubr.bf16.gmra.mrb[8].mxu1 %v2564_v30  ;;  %v433_v30 = vld [vmem:[#allocation2 + $0xb8] sm:$0xff] }
  0xd0   : > { %1441 = vmatprep.mubr.bf16.mxu0 %v2565_v31  ;;  %1587 = vmatprep.mubr.bf16.mxu1 %v2565_v31 }
  0xd7   : > { %1442 = vmatmul.mubr.bf16.gmra.mrb[12].mxu0 %v2567_v32  ;;  %1588 = vmatmul.mubr.bf16.gmra.mrb[12].mxu1 %v2567_v32 }
 0x192   : > { %v1413_v37 = vpop.f32.mrb[0].mxu0  ;;  %v1559_v38 = vpop.f32.mrb[0].mxu1 }
 0x193   : > { %v1598_v41 = vadd.f32 %v1413_v37, %v410_v33  ;;  %v1600_v42 = vadd.f32 %v1559_v38, %v412_v34  ;;  %v1415_v43 = vpop.f32.mrb[1].mxu0  ;;  %v1561_v44 = vpop.f32.mrb[1].mxu1 }
 0x194   : > { %v1599_v47 = vadd.f32 %v1415_v43, %v411_v35  ;;  %v1601_v48 = vadd.f32 %v1561_v44, %v413_v36  ;;  %v1417_v49 = vpop.f32.mrb[2].mxu0  ;;  %v1563_v50 = vpop.f32.mrb[2].mxu1  ;;  %v435_v43 = vld [vmem:[#allocation2 + $0xc8] sm:$0xff]  ;;  %v437_v44 = vld [vmem:[#allocation2 + $0xd8] sm:$0xff] }
 0x195   : > { %1630 = vst [vmem:[#allocation2] sm:$0xff] %v1598_v41  ;;  %1632 = vst [vmem:[#allocation2 + $0x10] sm:$0xff] %v1600_v42  ;;  %v1602_v51 = vadd.f32 %v1417_v49, %v414_v39  ;;  %v1604_v52 = vadd.f32 %v1563_v50, %v416_v40  ;;  %v1419_v53 = vpop.f32.mrb[3].mxu0  ;;  %v1565_v54 = vpop.f32.mrb[3].mxu1  ;;  %v434_v41 = vld [vmem:[#allocation2 + $0xc0] sm:$0xff]  ;;  %v436_v42 = vld [vmem:[#allocation2 + $0xd0] sm:$0xff] }
 0x196   : > { %1631 = vst [vmem:[#allocation2 + $0x8] sm:$0xff] %v1599_v47  ;;  %1633 = vst [vmem:[#allocation2 + $0x18] sm:$0xff] %v1601_v48  ;;  %v1603_v55 = vadd.f32 %v1419_v53, %v415_v45  ;;  %v1605_v56 = vadd.f32 %v1565_v54, %v417_v46  ;;  %v438_v47 = vld [vmem:[#allocation2 + $0xe0] sm:$0xff]  ;;  %v440_v48 = vld [vmem:[#allocation2 + $0xf0] sm:$0xff] }
 0x197   : > { %1634 = vst [vmem:[#allocation2 + $0x20] sm:$0xff] %v1602_v51  ;;  %1636 = vst [vmem:[#allocation2 + $0x30] sm:$0xff] %v1604_v52  ;;  %v439_v53 = vld [vmem:[#allocation2 + $0xe8] sm:$0xff]  ;;  %v441_v54 = vld [vmem:[#allocation2 + $0xf8] sm:$0xff] }
 0x198   : > { %1635 = vst [vmem:[#allocation2 + $0x28] sm:$0xff] %v1603_v55  ;;  %1637 = vst [vmem:[#allocation2 + $0x38] sm:$0xff] %v1605_v56 }
 0x19a   : > { %v1423_v61 = vpop.f32.mrb[4].mxu0  ;;  %v1569_v62 = vpop.f32.mrb[4].mxu1 }
 0x19b   : > { %v1606_v1 = vadd.f32 %v1423_v61, %v418_v57  ;;  %v1608_v2 = vadd.f32 %v1569_v62, %v420_v58  ;;  %v1425_v3 = vpop.f32.mrb[5].mxu0  ;;  %v1571_v4 = vpop.f32.mrb[5].mxu1 }
 0x19c   : > { %v1607_v7 = vadd.f32 %v1425_v3, %v419_v59  ;;  %v1609_v8 = vadd.f32 %v1571_v4, %v421_v60  ;;  %v1427_v9 = vpop.f32.mrb[6].mxu0  ;;  %v1573_v10 = vpop.f32.mrb[6].mxu1  ;;  %v1698_v3 = vld [vmem:[%s3122_s2] sm:$0xf] (!%p2256_p13) }
 0x19d   : > { %1638 = vst [vmem:[#allocation2 + $0x40] sm:$0xff] %v1606_v1  ;;  %1640 = vst [vmem:[#allocation2 + $0x50] sm:$0xff] %v1608_v2  ;;  %v1610_v11 = vadd.f32 %v1427_v9, %v422_v63  ;;  %v1612_v12 = vadd.f32 %v1573_v10, %v424_v0  ;;  %v1429_v13 = vpop.f32.mrb[7].mxu0  ;;  %v1575_v14 = vpop.f32.mrb[7].mxu1  ;;  %v1700_v1 = vlaneseq (!%p2256_p13)  ;;  %v1784_v4 = vld [vmem:[%s3123_s3] sm:$0xf] (!%p2256_p13) }
 0x19e   : > { %1639 = vst [vmem:[#allocation2 + $0x48] sm:$0xff] %v1607_v7  ;;  %1641 = vst [vmem:[#allocation2 + $0x58] sm:$0xff] %v1609_v8  ;;  %v1611_v15 = vadd.f32 %v1429_v13, %v423_v5  ;;  %v1613_v16 = vadd.f32 %v1575_v14, %v425_v6  ;;  %v1838_v5 = vld [vmem:[%s3124_s4] sm:$0xf] (!%p2256_p13) }
 0x19f   : > { %1642 = vst [vmem:[#allocation2 + $0x60] sm:$0xff] %v1610_v11  ;;  %1644 = vst [vmem:[#allocation2 + $0x70] sm:$0xff] %v1612_v12  ;;  %v1701_v2 = vshrl.u32 (!%p2256_p13), %v1700_v1, 7  ;;  %v1666_v10 = vld [vmem:[#allocation2] sm:$0xff] (!%p2256_p13)  ;;  %v1667_v11 = vld [vmem:[#allocation2 + $0x8] sm:$0xff] (!%p2256_p13) }
 0x1a0   : > { %1643 = vst [vmem:[#allocation2 + $0x68] sm:$0xff] %v1611_v15  ;;  %1645 = vst [vmem:[#allocation2 + $0x78] sm:$0xff] %v1613_v16  ;;  %v1668_v16 = vld [vmem:[#allocation2 + $0x10] sm:$0xff] (!%p2256_p13) }
 0x1a1   : > { %v1702_v6 = vsub.s32 (!%p2256_p13), 0, %v1701_v2  ;;  %v1706_v7 = vsub.s32 (!%p2256_p13), 1, %v1701_v2  ;;  %v1710_v8 = vsub.s32 (!%p2256_p13), 2, %v1701_v2  ;;  %v1714_v9 = vsub.s32 (!%p2256_p13), 3, %v1701_v2 }
 0x1a2   : > { %v1433_v21 = vpop.f32.mrb[8].mxu0  ;;  %v1579_v22 = vpop.f32.mrb[8].mxu1 }
 0x1a3   : > { %v1614_v25 = vadd.f32 %v1433_v21, %v426_v17  ;;  %v1616_v26 = vadd.f32 %v1579_v22, %v428_v18  ;;  %v1435_v27 = vpop.f32.mrb[9].mxu0  ;;  %v1581_v28 = vpop.f32.mrb[9].mxu1  ;;  %v2915_v12 = vrot.slane (!%p2256_p13), %v1698_v3, %v1702_v6  ;;  %v2917_v13 = vrot.slane (!%p2256_p13), %v1784_v4, %v1702_v6  ;;  %v1670_v17 = vld [vmem:[#allocation2 + $0x20] sm:$0xff] (!%p2256_p13)  ;;  %v1669_v22 = vld [vmem:[#allocation2 + $0x18] sm:$0xff] (!%p2256_p13) }
 0x1a4   : > { %v1615_v31 = vadd.f32 %v1435_v27, %v427_v19  ;;  %v1617_v32 = vadd.f32 %v1581_v28, %v429_v20  ;;  %v1437_v33 = vpop.f32.mrb[10].mxu0  ;;  %v1583_v34 = vpop.f32.mrb[10].mxu1  ;;  %v2919_v14 = vrot.slane (!%p2256_p13), %v1838_v5, %v1702_v6  ;;  %v2921_v15 = vrot.slane (!%p2256_p13), %v1698_v3, %v1706_v7  ;;  %v1672_v28 = vld [vmem:[#allocation2 + $0x30] sm:$0xff] (!%p2256_p13)  ;;  %v1674_v1 = vld [vmem:[#allocation2 + $0x40] sm:$0xff] (!%p2256_p13) }
 0x1a5   : > { %1646 = vst [vmem:[#allocation2 + $0x80] sm:$0xff] %v1614_v25  ;;  %1648 = vst [vmem:[#allocation2 + $0x90] sm:$0xff] %v1616_v26  ;;  %v1618_v35 = vadd.f32 %v1437_v33, %v430_v23  ;;  %v1620_v36 = vadd.f32 %v1583_v34, %v432_v24  ;;  %v1439_v37 = vpop.f32.mrb[11].mxu0  ;;  %v1585_v38 = vpop.f32.mrb[11].mxu1  ;;  %v2923_v18 = vrot.slane (!%p2256_p13), %v1784_v4, %v1706_v7  ;;  %v1671_v23 = vld [vmem:[#allocation2 + $0x28] sm:$0xff] (!%p2256_p13) }
 0x1a6   : > { %1647 = vst [vmem:[#allocation2 + $0x88] sm:$0xff] %v1615_v31  ;;  %1649 = vst [vmem:[#allocation2 + $0x98] sm:$0xff] %v1617_v32  ;;  %v1619_v39 = vadd.f32 %v1439_v37, %v431_v29  ;;  %v1621_v40 = vadd.f32 %v1585_v38, %v433_v30  ;;  %v2925_v19 = vrot.slane (!%p2256_p13), %v1838_v5, %v1706_v7  ;;  %v1673_v29 = vld [vmem:[#allocation2 + $0x38] sm:$0xff] (!%p2256_p13)  ;;  %v1675_v2 = vld [vmem:[#allocation2 + $0x48] sm:$0xff] (!%p2256_p13) }
 0x1a7   : > { %1650 = vst [vmem:[#allocation2 + $0xa0] sm:$0xff] %v1618_v35  ;;  %1652 = vst [vmem:[#allocation2 + $0xb0] sm:$0xff] %v1620_v36  ;;  %v2927_v20 = vrot.slane (!%p2256_p13), %v1698_v3, %v1710_v8  ;;  %v2929_v21 = vrot.slane (!%p2256_p13), %v1784_v4, %v1710_v8  ;;  %v1720_v24 = vadd.f32 (!%p2256_p13), %v2915_v12, %v1666_v10  ;;  %v1899_v7 = vld [vmem:[%s2751_s18 + $0x38] sm:$0xff] (!%p2256_p13) }
 0x1a8   : > { %1651 = vst [vmem:[#allocation2 + $0xa8] sm:$0xff] %v1619_v39  ;;  %1653 = vst [vmem:[#allocation2 + $0xb8] sm:$0xff] %v1621_v40  ;;  %v1721_v25 = vadd.f32 (!%p2256_p13), %v2921_v15, %v1667_v11  ;;  %v2933_v26 = vrot.slane (!%p2256_p13), %v1838_v5, %v1710_v8  ;;  %v2935_v27 = vrot.slane (!%p2256_p13), %v1698_v3, %v1714_v9  ;;  %v1676_v8 = vld [vmem:[#allocation2 + $0x50] sm:$0xff] (!%p2256_p13) }
 0x1a9   : > { %v1722_v30 = vadd.f32 (!%p2256_p13), %v2927_v20, %v1668_v16  ;;  %v2938_v31 = vrot.slane (!%p2256_p13), %v1784_v4, %v1714_v9  ;;  %v2940_v32 = vrot.slane (!%p2256_p13), %v1838_v5, %v1714_v9  ;;  %v1724_v33 = vadd.f32 (!%p2256_p13), %v2915_v12, %v1670_v17  ;;  %v1677_v9 = vld [vmem:[#allocation2 + $0x58] sm:$0xff] (!%p2256_p13) }
 0x1aa   : > { %v1443_v45 = vpop.f32.mrb[12].mxu0  ;;  %v1589_v46 = vpop.f32.mrb[12].mxu1  ;;  %1665 = sbr.rel (%p2256_p13) target bundleno = 471 (0x1d7), region = 75  ;;  %v1752_v34 = vmax.f32 (!%p2256_p13), %v1720_v24, 0.0  ;;  %v1753_v35 = vmax.f32 (!%p2256_p13), %v1721_v25, 0.0  ;;  %v1723_v36 = vadd.f32 (!%p2256_p13), %v2935_v27, %v1669_v22  ;;  %v1725_v37 = vadd.f32 (!%p2256_p13), %v2921_v15, %v1671_v23  ;;  %v1678_v22 = vld [vmem:[#allocation2 + $0x60] sm:$0xff] (!%p2256_p13) }
 0x1ab   : > { %v1622_v49 = vadd.f32 %v1443_v45, %v434_v41  ;;  %v1624_v50 = vadd.f32 %v1589_v46, %v436_v42  ;;  %v1445_v51 = vpop.f32.mrb[13].mxu0  ;;  %v1591_v52 = vpop.f32.mrb[13].mxu1  ;;  %v1754_v38 = vmax.f32 (!%p2256_p13), %v1722_v30, 0.0  ;;  %v1756_v39 = vmax.f32 (!%p2256_p13), %v1724_v33, 0.0  ;;  %v1892_v46 = vld [vmem:[%s2751_s18] sm:$0xff] (!%p2256_p13)  ;;  %v1679_v23 = vld [vmem:[#allocation2 + $0x68] sm:$0xff] (!%p2256_p13) }
 0x1ac   : > { %v1623_v55 = vadd.f32 %v1445_v51, %v435_v43  ;;  %v1625_v56 = vadd.f32 %v1591_v52, %v437_v44  ;;  %v1447_v57 = vpop.f32.mrb[14].mxu0  ;;  %v1593_v58 = vpop.f32.mrb[14].mxu1  ;;  %v1726_v40 = vadd.f32 (!%p2256_p13), %v2927_v20, %v1672_v28  ;;  %v1727_v41 = vadd.f32 (!%p2256_p13), %v2935_v27, %v1673_v29  ;;  %v1680_v30 = vld [vmem:[#allocation2 + $0x70] sm:$0xff] (!%p2256_p13)  ;;  %v1681_v33 = vld [vmem:[#allocation2 + $0x78] sm:$0xff] (!%p2256_p13) }
 0x1ad   : > { %1654 = vst [vmem:[#allocation2 + $0xc0] sm:$0xff] %v1622_v49  ;;  %1656 = vst [vmem:[#allocation2 + $0xd0] sm:$0xff] %v1624_v50  ;;  %v1626_v59 = vadd.f32 %v1447_v57, %v438_v47  ;;  %v1628_v60 = vadd.f32 %v1593_v58, %v440_v48  ;;  %v1449_v61 = vpop.f32.mrb[15].mxu0  ;;  %v1595_v62 = vpop.f32.mrb[15].mxu1  ;;  %v1806_v42 = vmul.f32 (!%p2256_p13), %v2917_v13, %v1752_v34  ;;  %v1755_v44 = vmax.f32 (!%p2256_p13), %v1723_v36, 0.0  ;;  %v1893_v47 = vld [vmem:[%s2751_s18 + $0x8] sm:$0xff] (!%p2256_p13) }
 0x1ae   : > { %1655 = vst [vmem:[#allocation2 + $0xc8] sm:$0xff] %v1623_v55  ;;  %1657 = vst [vmem:[#allocation2 + $0xd8] sm:$0xff] %v1625_v56  ;;  %v1627_v63 = vadd.f32 %v1449_v61, %v439_v53  ;;  %v1629_v0 = vadd.f32 %v1595_v62, %v441_v54  ;;  %v1807_v43 = vmul.f32 (!%p2256_p13), %v2923_v18, %v1753_v35  ;;  %v1757_v45 = vmax.f32 (!%p2256_p13), %v1725_v37, 0.0  ;;  %v1894_v49 = vld [vmem:[%s2751_s18 + $0x10] sm:$0xff] (!%p2256_p13)  ;;  %v1895_v56 = vld [vmem:[%s2751_s18 + $0x18] sm:$0xff] (!%p2256_p13) }
 0x1af   : > { %1658 = vst [vmem:[#allocation2 + $0xe0] sm:$0xff] %v1626_v59  ;;  %1660 = vst [vmem:[#allocation2 + $0xf0] sm:$0xff] %v1628_v60  ;;  %v1808_v48 = vmul.f32 (!%p2256_p13), %v2929_v21, %v1754_v38  ;;  %v1810_v50 = vmul.f32 (!%p2256_p13), %v2917_v13, %v1756_v39  ;;  %v1758_v51 = vmax.f32 (!%p2256_p13), %v1726_v40, 0.0  ;;  %v1759_v52 = vmax.f32 (!%p2256_p13), %v1727_v41, 0.0  ;;  %v1896_v57 = vld [vmem:[%s2751_s18 + $0x20] sm:$0xff] (!%p2256_p13)  ;;  %v1897_v59 = vld [vmem:[%s2751_s18 + $0x28] sm:$0xff] (!%p2256_p13) }
 0x1b0   : > { %1659 = vst [vmem:[#allocation2 + $0xe8] sm:$0xff] %v1627_v63  ;;  %1661 = vst [vmem:[#allocation2 + $0xf8] sm:$0xff] %v1629_v0  ;;  %v1860_v53 = vadd.f32 (!%p2256_p13), %v2919_v14, %v1806_v42  ;;  %v1861_v54 = vadd.f32 (!%p2256_p13), %v2925_v19, %v1807_v43  ;;  %v1809_v55 = vmul.f32 (!%p2256_p13), %v2938_v31, %v1755_v44  ;;  %v1898_v63 = vld [vmem:[%s2751_s18 + $0x30] sm:$0xff] (!%p2256_p13) }
 0x1b1   : > { %v1811_v58 = vmul.f32 %v2923_v18, %v1757_v45  ;;  %v1862_v60 = vadd.f32 %v2933_v26, %v1808_v48  ;;  %v1864_v61 = vadd.f32 %v2919_v14, %v1810_v50  ;;  %v1812_v62 = vmul.f32 %v2929_v21, %v1758_v51  ;;  %v1900_v50 = vld [vmem:[%s2751_s18 + $0x40] sm:$0xff]  ;;  %v1901_v51 = vld [vmem:[%s2751_s18 + $0x48] sm:$0xff] }
 0x1b2   : > { %v1813_v0 = vmul.f32 %v2938_v31, %v1759_v52  ;;  %v1924_v3 = vadd.f32 %v1892_v46, %v1860_v53  ;;  %v1925_v4 = vadd.f32 %v1893_v47, %v1861_v54  ;;  %v1863_v5 = vadd.f32 %v2940_v32, %v1809_v55  ;;  %v1902_v53 = vld [vmem:[%s2751_s18 + $0x50] sm:$0xff] }
 0x1b3   : > { %v1865_v6 = vadd.f32 %v2925_v19, %v1811_v58  ;;  %v1926_v10 = vadd.f32 %v1894_v49, %v1862_v60  ;;  %v1928_v11 = vadd.f32 %v1896_v57, %v1864_v61  ;;  %v1866_v16 = vadd.f32 %v2933_v26, %v1812_v62  ;;  %v1904_v61 = vld [vmem:[%s2751_s18 + $0x60] sm:$0xff] }
 0x1b4   : > { %v1867_v17 = vadd.f32 %v2940_v32, %v1813_v0  ;;  %1956 = vst [vmem:[%s2756_s20] sm:$0xff] %v1924_v3  ;;  %1957 = vst [vmem:[%s2756_s20 + $0x8] sm:$0xff] %v1925_v4  ;;  %v1927_v24 = vadd.f32 %v1895_v56, %v1863_v5  ;;  %v1728_v28 = vadd.f32 %v2915_v12, %v1674_v1  ;;  %v1906_v3 = vld [vmem:[%s2751_s18 + $0x70] sm:$0xff]  ;;  %v1682_v5 = vld [vmem:[#allocation2 + $0x80] sm:$0xff] }
 0x1b5   : > { %v1929_v25 = vadd.f32 %v1897_v59, %v1865_v6  ;;  %v1729_v29 = vadd.f32 %v2921_v15, %v1675_v2  ;;  %1958 = vst [vmem:[%s2756_s20 + $0x10] sm:$0xff] %v1926_v10  ;;  %1960 = vst [vmem:[%s2756_s20 + $0x20] sm:$0xff] %v1928_v11  ;;  %v1930_v34 = vadd.f32 %v1898_v63, %v1866_v16  ;;  %v1903_v59 = vld [vmem:[%s2751_s18 + $0x58] sm:$0xff]  ;;  %v1905_v63 = vld [vmem:[%s2751_s18 + $0x68] sm:$0xff] }
 0x1b6   : > { %v1931_v35 = vadd.f32 %v1899_v7, %v1867_v17  ;;  %v1730_v36 = vadd.f32 %v2927_v20, %v1676_v8  ;;  %v1731_v37 = vadd.f32 %v2935_v27, %v1677_v9  ;;  %1959 = vst [vmem:[%s2756_s20 + $0x18] sm:$0xff] %v1927_v24  ;;  %v1760_v38 = vmax.f32 %v1728_v28, 0.0  ;;  %v1683_v6 = vld [vmem:[#allocation2 + $0x88] sm:$0xff]  ;;  %v1907_v11 = vld [vmem:[%s2751_s18 + $0x78] sm:$0xff]  ;;  %v1684_v16 = vld [vmem:[#allocation2 + $0x90] sm:$0xff] }
 0x1b7   : > { %1961 = vst [vmem:[%s2756_s20 + $0x28] sm:$0xff] %v1929_v25  ;;  %v1761_v39 = vmax.f32 %v1729_v29, 0.0  ;;  %v1732_v40 = vadd.f32 %v2915_v12, %v1678_v22  ;;  %v1733_v41 = vadd.f32 %v2921_v15, %v1679_v23  ;;  %1962 = vst [vmem:[%s2756_s20 + $0x30] sm:$0xff] %v1930_v34  ;;  %v1734_v44 = vadd.f32 %v2927_v20, %v1680_v30  ;;  %v1685_v17 = vld [vmem:[#allocation2 + $0x98] sm:$0xff]  ;;  %v1686_v28 = vld [vmem:[#allocation2 + $0xa0] sm:$0xff] }
 0x1b8   : > { %1963 = vst [vmem:[%s2756_s20 + $0x38] sm:$0xff] %v1931_v35  ;;  %v1762_v42 = vmax.f32 %v1730_v36, 0.0  ;;  %v1763_v43 = vmax.f32 %v1731_v37, 0.0  ;;  %v1735_v45 = vadd.f32 %v2935_v27, %v1681_v33  ;;  %v1814_v46 = vmul.f32 %v2917_v13, %v1760_v38  ;;  %v1687_v29 = vld [vmem:[#allocation2 + $0xa8] sm:$0xff]  ;;  %v1688_v36 = vld [vmem:[#allocation2 + $0xb0] sm:$0xff]  ;;  %v1689_v37 = vld [vmem:[#allocation2 + $0xb8] sm:$0xff] }
 0x1b9   : > { %v1815_v47 = vmul.f32 %v2923_v18, %v1761_v39  ;;  %v1764_v48 = vmax.f32 %v1732_v40, 0.0  ;;  %v1765_v49 = vmax.f32 %v1733_v41, 0.0  ;;  %v1766_v55 = vmax.f32 %v1734_v44, 0.0 }
 0x1ba   : > { %v1816_v52 = vmul.f32 %v2929_v21, %v1762_v42  ;;  %v1817_v54 = vmul.f32 %v2938_v31, %v1763_v43  ;;  %v1767_v56 = vmax.f32 %v1735_v45, 0.0  ;;  %v1868_v57 = vadd.f32 %v2919_v14, %v1814_v46 }
 0x1bb   : > { %v1869_v58 = vadd.f32 %v2925_v19, %v1815_v47  ;;  %v1818_v60 = vmul.f32 %v2917_v13, %v1764_v48  ;;  %v1819_v62 = vmul.f32 %v2923_v18, %v1765_v49  ;;  %v1820_v2 = vmul.f32 %v2929_v21, %v1766_v55  ;;  %v1909_v55 = vld [vmem:[%s2751_s18 + $0x88] sm:$0xff] }
 0x1bc   : > { %v1870_v0 = vadd.f32 %v2933_v26, %v1816_v52  ;;  %v1871_v1 = vadd.f32 %v2940_v32, %v1817_v54  ;;  %v1821_v4 = vmul.f32 %v2938_v31, %v1767_v56  ;;  %v1932_v7 = vadd.f32 %v1900_v50, %v1868_v57  ;;  %v1908_v54 = vld [vmem:[%s2751_s18 + $0x80] sm:$0xff]  ;;  %v1910_v57 = vld [vmem:[%s2751_s18 + $0x90] sm:$0xff] }
 0x1bd   : > { %v1933_v8 = vadd.f32 %v1901_v51, %v1869_v58  ;;  %v1872_v9 = vadd.f32 %v2919_v14, %v1818_v60  ;;  %v1873_v10 = vadd.f32 %v2925_v19, %v1819_v62  ;;  %v1874_v24 = vadd.f32 %v2933_v26, %v1820_v2 }
 0x1be   : > { %v1934_v22 = vadd.f32 %v1902_v53, %v1870_v0  ;;  %v1935_v23 = vadd.f32 %v1903_v59, %v1871_v1  ;;  %v1875_v25 = vadd.f32 %v2940_v32, %v1821_v4  ;;  %1964 = vst [vmem:[%s2756_s20 + $0x40] sm:$0xff] %v1932_v7  ;;  %v1736_v34 = vadd.f32 %v2915_v12, %v1682_v5  ;;  %v1912_v1 = vld [vmem:[%s2751_s18 + $0xa0] sm:$0xff]  ;;  %v1914_v7 = vld [vmem:[%s2751_s18 + $0xb0] sm:$0xff] }
 0x1bf   : > { %1965 = vst [vmem:[%s2756_s20 + $0x48] sm:$0xff] %v1933_v8  ;;  %v1936_v30 = vadd.f32 %v1904_v61, %v1872_v9  ;;  %v1937_v33 = vadd.f32 %v1905_v63, %v1873_v10  ;;  %v1737_v35 = vadd.f32 %v2921_v15, %v1683_v6  ;;  %v1938_v38 = vadd.f32 %v1906_v3, %v1874_v24  ;;  %v1911_v63 = vld [vmem:[%s2751_s18 + $0x98] sm:$0xff]  ;;  %v1913_v3 = vld [vmem:[%s2751_s18 + $0xa8] sm:$0xff]  ;;  %v1690_v9 = vld [vmem:[#allocation2 + $0xc0] sm:$0xff] }
 0x1c0   : > { %1966 = vst [vmem:[%s2756_s20 + $0x50] sm:$0xff] %v1934_v22  ;;  %1967 = vst [vmem:[%s2756_s20 + $0x58] sm:$0xff] %v1935_v23  ;;  %v1939_v39 = vadd.f32 %v1907_v11, %v1875_v25  ;;  %v1738_v40 = vadd.f32 %v2927_v20, %v1684_v16  ;;  %v1739_v41 = vadd.f32 %v2935_v27, %v1685_v17  ;;  %v1768_v42 = vmax.f32 %v1736_v34, 0.0  ;;  %v1691_v10 = vld [vmem:[#allocation2 + $0xc8] sm:$0xff]  ;;  %v1915_v23 = vld [vmem:[%s2751_s18 + $0xb8] sm:$0xff] }
 0x1c1   : > { %1968 = vst [vmem:[%s2756_s20 + $0x60] sm:$0xff] %v1936_v30  ;;  %1969 = vst [vmem:[%s2756_s20 + $0x68] sm:$0xff] %v1937_v33  ;;  %v1769_v43 = vmax.f32 %v1737_v35, 0.0  ;;  %v1740_v44 = vadd.f32 %v2915_v12, %v1686_v28  ;;  %v1741_v45 = vadd.f32 %v2921_v15, %v1687_v29  ;;  %v1742_v48 = vadd.f32 %v2927_v20, %v1688_v36  ;;  %v1692_v24 = vld [vmem:[#allocation2 + $0xd0] sm:$0xff]  ;;  %v1693_v25 = vld [vmem:[#allocation2 + $0xd8] sm:$0xff] }
 0x1c2   : > { %1970 = vst [vmem:[%s2756_s20 + $0x70] sm:$0xff] %v1938_v38  ;;  %1971 = vst [vmem:[%s2756_s20 + $0x78] sm:$0xff] %v1939_v39  ;;  %v1770_v46 = vmax.f32 %v1738_v40, 0.0  ;;  %v1771_v47 = vmax.f32 %v1739_v41, 0.0  ;;  %v1743_v49 = vadd.f32 %v2935_v27, %v1689_v37  ;;  %v1822_v50 = vmul.f32 %v2917_v13, %v1768_v42  ;;  %v1694_v34 = vld [vmem:[#allocation2 + $0xe0] sm:$0xff]  ;;  %v1695_v35 = vld [vmem:[#allocation2 + $0xe8] sm:$0xff] }
 0x1c3   : > { %v1823_v51 = vmul.f32 %v2923_v18, %v1769_v43  ;;  %v1772_v52 = vmax.f32 %v1740_v44, 0.0  ;;  %v1773_v53 = vmax.f32 %v1741_v45, 0.0  ;;  %v1774_v59 = vmax.f32 %v1742_v48, 0.0  ;;  %v1696_v40 = vld [vmem:[#allocation2 + $0xf0] sm:$0xff]  ;;  %v1697_v41 = vld [vmem:[#allocation2 + $0xf8] sm:$0xff] }
 0x1c4   : > { %v1824_v56 = vmul.f32 %v2929_v21, %v1770_v46  ;;  %v1825_v58 = vmul.f32 %v2938_v31, %v1771_v47  ;;  %v1775_v60 = vmax.f32 %v1743_v49, 0.0  ;;  %v1876_v61 = vadd.f32 %v2919_v14, %v1822_v50 }
 0x1c5   : > { %v1877_v62 = vadd.f32 %v2925_v19, %v1823_v51  ;;  %v1826_v0 = vmul.f32 %v2917_v13, %v1772_v52  ;;  %v1827_v2 = vmul.f32 %v2923_v18, %v1773_v53  ;;  %v1828_v6 = vmul.f32 %v2929_v21, %v1774_v59 }
 0x1c6   : > { %v1878_v4 = vadd.f32 %v2933_v26, %v1824_v56  ;;  %v1879_v5 = vadd.f32 %v2940_v32, %v1825_v58  ;;  %v1829_v8 = vmul.f32 %v2938_v31, %v1775_v60  ;;  %v1940_v11 = vadd.f32 %v1908_v54, %v1876_v61 }
 0x1c7   : > { %v1941_v16 = vadd.f32 %v1909_v55, %v1877_v62  ;;  %v1880_v17 = vadd.f32 %v2919_v14, %v1826_v0  ;;  %v1881_v22 = vadd.f32 %v2925_v19, %v1827_v2  ;;  %v1882_v30 = vadd.f32 %v2933_v26, %v1828_v6  ;;  %v1918_v62 = vld [vmem:[%s2751_s18 + $0xd0] sm:$0xff] }
 0x1c8   : > { %v1942_v28 = vadd.f32 %v1910_v57, %v1878_v4  ;;  %v1943_v29 = vadd.f32 %v1911_v63, %v1879_v5  ;;  %v1883_v33 = vadd.f32 %v2940_v32, %v1829_v8  ;;  %1972 = vst [vmem:[%s2756_s20 + $0x80] sm:$0xff] %v1940_v11  ;;  %v1744_v38 = vadd.f32 %v2915_v12, %v1690_v9  ;;  %v1919_v63 = vld [vmem:[%s2751_s18 + $0xd8] sm:$0xff]  ;;  %v1920_v4 = vld [vmem:[%s2751_s18 + $0xe0] sm:$0xff]  ;;  %v1921_v5 = vld [vmem:[%s2751_s18 + $0xe8] sm:$0xff] }
 0x1c9   : > { %1973 = vst [vmem:[%s2756_s20 + $0x88] sm:$0xff] %v1941_v16  ;;  %v1944_v36 = vadd.f32 %v1912_v1, %v1880_v17  ;;  %v1945_v37 = vadd.f32 %v1913_v3, %v1881_v22  ;;  %v1745_v39 = vadd.f32 %v2921_v15, %v1691_v10  ;;  %v1946_v42 = vadd.f32 %v1914_v7, %v1882_v30  ;;  %v1922_v10 = vld [vmem:[%s2751_s18 + $0xf0] sm:$0xff]  ;;  %v1923_v11 = vld [vmem:[%s2751_s18 + $0xf8] sm:$0xff] }
 0x1ca   : > { %1974 = vst [vmem:[%s2756_s20 + $0x90] sm:$0xff] %v1942_v28  ;;  %1975 = vst [vmem:[%s2756_s20 + $0x98] sm:$0xff] %v1943_v29  ;;  %v1947_v43 = vadd.f32 %v1915_v23, %v1883_v33  ;;  %v1746_v44 = vadd.f32 %v2927_v20, %v1692_v24  ;;  %v1747_v45 = vadd.f32 %v2935_v27, %v1693_v25  ;;  %v1776_v46 = vmax.f32 %v1744_v38, 0.0 }
 0x1cb   : > { %1976 = vst [vmem:[%s2756_s20 + $0xa0] sm:$0xff] %v1944_v36  ;;  %1977 = vst [vmem:[%s2756_s20 + $0xa8] sm:$0xff] %v1945_v37  ;;  %v1777_v47 = vmax.f32 %v1745_v39, 0.0  ;;  %v1748_v48 = vadd.f32 %v2915_v12, %v1694_v34  ;;  %v1749_v49 = vadd.f32 %v2921_v15, %v1695_v35  ;;  %v1750_v52 = vadd.f32 %v2927_v20, %v1696_v40  ;;  %v1916_v12 = vld [vmem:[%s2751_s18 + $0xc0] sm:$0xff]  ;;  %v1917_v15 = vld [vmem:[%s2751_s18 + $0xc8] sm:$0xff] }
 0x1cc   : > { %1978 = vst [vmem:[%s2756_s20 + $0xb0] sm:$0xff] %v1946_v42  ;;  %1979 = vst [vmem:[%s2756_s20 + $0xb8] sm:$0xff] %v1947_v43  ;;  %v1778_v50 = vmax.f32 %v1746_v44, 0.0  ;;  %v1779_v51 = vmax.f32 %v1747_v45, 0.0  ;;  %v1751_v53 = vadd.f32 %v2935_v27, %v1697_v41  ;;  %v1830_v54 = vmul.f32 %v2917_v13, %v1776_v46 }
 0x1cd   : > { %v1831_v55 = vmul.f32 %v2923_v18, %v1777_v47  ;;  %v1780_v56 = vmax.f32 %v1748_v48, 0.0  ;;  %v1781_v57 = vmax.f32 %v1749_v49, 0.0  ;;  %v1782_v60 = vmax.f32 %v1750_v52, 0.0 }
 0x1ce   : > { %v1832_v58 = vmul.f32 %v2929_v21, %v1778_v50  ;;  %v1833_v59 = vmul.f32 %v2938_v31, %v1779_v51  ;;  %v1783_v61 = vmax.f32 %v1751_v53, 0.0  ;;  %v1884_v20 = vadd.f32 %v2919_v14, %v1830_v54 }
 0x1cf   : > { %v1885_v27 = vadd.f32 %v2925_v19, %v1831_v55  ;;  %v1834_v0 = vmul.f32 %v2917_v13, %v1780_v56  ;;  %v1835_v1 = vmul.f32 %v2923_v18, %v1781_v57  ;;  %v1836_v6 = vmul.f32 %v2929_v21, %v1782_v60 }
 0x1d0   : > { %v1886_v2 = vadd.f32 %v2933_v26, %v1832_v58  ;;  %v1887_v3 = vadd.f32 %v2940_v32, %v1833_v59  ;;  %v1837_v7 = vmul.f32 %v2938_v31, %v1783_v61  ;;  %v1948_v8 = vadd.f32 %v1916_v12, %v1884_v20 }
 0x1d1   : > { %v1949_v9 = vadd.f32 %v1917_v15, %v1885_v27  ;;  %v1888_v13 = vadd.f32 %v2919_v14, %v1834_v0  ;;  %v1889_v18 = vadd.f32 %v2925_v19, %v1835_v1  ;;  %v1890_v21 = vadd.f32 %v2933_v26, %v1836_v6 }
 0x1d2   : > { %v1950_v16 = vadd.f32 %v1918_v62, %v1886_v2  ;;  %v1951_v17 = vadd.f32 %v1919_v63, %v1887_v3  ;;  %v1891_v22 = vadd.f32 %v2940_v32, %v1837_v7  ;;  %1980 = vst [vmem:[%s2756_s20 + $0xc0] sm:$0xff] %v1948_v8 }
 0x1d3   : > { %1981 = vst [vmem:[%s2756_s20 + $0xc8] sm:$0xff] %v1949_v9  ;;  %v1952_v31 = vadd.f32 %v1920_v4, %v1888_v13  ;;  %v1953_v23 = vadd.f32 %v1921_v5, %v1889_v18  ;;  %v1954_v14 = vadd.f32 %v1922_v10, %v1890_v21 }
 0x1d4   : > { %1982 = vst [vmem:[%s2756_s20 + $0xd0] sm:$0xff] %v1950_v16  ;;  %1983 = vst [vmem:[%s2756_s20 + $0xd8] sm:$0xff] %v1951_v17  ;;  %v1955_v24 = vadd.f32 %v1923_v11, %v1891_v22 }
 0x1d5   : > { %1984 = vst [vmem:[%s2756_s20 + $0xe0] sm:$0xff] %v1952_v31  ;;  %1985 = vst [vmem:[%s2756_s20 + $0xe8] sm:$0xff] %v1953_v23 }
 0x1d6   : > { %1986 = vst [vmem:[%s2756_s20 + $0xf0] sm:$0xff] %v1954_v14  ;;  %1987 = vst [vmem:[%s2756_s20 + $0xf8] sm:$0xff] %v1955_v24 }
 0x1d7 PF: > { %s16_s27 = sadd.s32 1, %s2622_s27   ;;  %s3127_s21 = smov %s2602_s22 }
 0x1d8   : > { %p13_p0 = scmp.ge.s32.totalorder %s16_s27, 6   ;;  %s3128_s22 = smov %s2711_s10 }
 0x1d9   : > { %s3129_s23 = smov %s2614_s25  ;;  %s3130_s24 = smov %s2618_s26 }
 0x1da   : > { %s3131_s25 = smov %s3134_s28  ;;  %s3132_s26 = smov %s3138_s29 }
 0x1db   :  { %15 = sbr.rel (!%p13_p0) target bundleno = 4 (0x4), region = 116 }

// kernel: tile.102
= control target key start
LH: loop header
LB: loop body
LE: loop exit
PB: predicated region body
PF: predicated region fallthrough
CT: control target
= control target key end

     0   :  { %s22_s0 = inlined_call_operand.vmem [shape: f32[64], index: 0, kind: input, shape index: {}]   ;;  %s23_s1 = inlined_call_operand.vmem [shape: f32[4,64], index: 1, kind: output, shape index: {}]  }
   0x1   :  { %v4_v0 = vld [vmem:[%s22_s0] ss:$0 sm:$0xff] }
   0x2   :  { %5 = vst [vmem:[%s23_s1] sm:$0xf] %v4_v0 }

// kernel: tile.103
= control target key start
LH: loop header
LB: loop body
LE: loop exit
PB: predicated region body
PF: predicated region fallthrough
CT: control target
= control target key end

     0   :  { %s6_s8 = smov 3  ;;  %vm8_vm0 = vcmask 523264   ;;  %s30_s9 = smov 64   ;;  %vm15_vm1 = vcmask 1048064   ;;  %s50_s0 = inlined_call_operand.vmem [shape: f32[4,64], index: 0, kind: input, shape index: {}]   ;;  %s51_s1 = inlined_call_operand.vmem [shape: f32[1,256], index: 1, kind: output, shape index: {}]  }
   0x1   :  { %v4_v0 = vld [vmem:[%s50_s0] sm:$0xf]  ;;  %s11_s0 = smov 3 }
   0x2   :  { %5 = vst [vmem:[#allocation1] sm:$0xf] %v4_v0 }
   0x9   :  { %v12_v1 = vld [vmem:[#allocation1 + $0x1] ss:$2 sm:%s11_s0]   ;;  %v7_v2 = vld [vmem:[#allocation1] ss:$2 sm:%s6_s8]  }
   0xa   :  { %13 = vrot.lane.b32.xlu0 %v12_v1, %s30_s9  ;;  %9 = vst.msk [vmem:[#allocation0] ss:$8 sm:$0x3] %vm8_vm0, %v7_v2  }
  0x7c   :  { %v14_v3 = vpop.permute.xlu0 %13  }
  0x7d   :  { %16 = vst.msk [vmem:[#allocation0] ss:$8 sm:$0x3] %vm15_vm1, %v14_v3  }
  0x84   :  { %v20_v4 = vld [vmem:[#allocation0] sm:$0x1]  ;;  %v24_v5 = vld [vmem:[#allocation0 + $0x8] sm:$0x1] }
  0x85   :  { %22 = vst [vmem:[%s51_s1] sm:$0x1] %v20_v4  ;;  %28 = vst [vmem:[%s51_s1 + $0x1] sm:$0x1] %v24_v5 }

// kernel: fcn_forward.9
= control target key start
LH: loop header
LB: loop body
LE: loop exit
PB: predicated region body
PF: predicated region fallthrough
CT: control target
= control target key end

     0   :  { %s2890_s21 = smov 0   ;;  %s2892_s22 = smov 0   ;;  %s3537_s0 = inlined_call_operand.vmem [shape: bf16[512,512], index: 0, kind: input, shape index: {}]   ;;  %s3538_s1 = inlined_call_operand.vmem [shape: bf16[512,256], index: 1, kind: input, shape index: {}]   ;;  %s3539_s2 = inlined_call_operand.vmem [shape: f32[1,256], index: 2, kind: input, shape index: {}]   ;;  %s3540_s3 = inlined_call_operand.vmem [shape: f32[1,256], index: 3, kind: input, shape index: {}]   ;;  %s3541_s4 = inlined_call_operand.vmem [shape: f32[1,256], index: 4, kind: input, shape index: {}]   ;;  %s3542_s5 = inlined_call_operand.vmem [shape: f32[512,256], index: 5, kind: input, shape index: {}]   ;;  %s3543_s6 = inlined_call_operand.vmem [shape: f32[512,256], index: 6, kind: output, shape index: {}]  }
   0x1   :  { %s2894_s23 = smov 0  }
   0x2 LB: > { %s28_s24 = sadd.s32 1, %s2849_s22  ;;  %p2408_p0 = scmp.ge.s32.totalorder %s2853_s23, 1  ;;  %s2853_s23 = sphi %s2894_s23, %s16_s23   ;;  %s2849_s22 = sphi %s2892_s22, %s3545_s22   ;;  %s2845_s21 = sphi %s2890_s21, %s3544_s21  }
   0x3   : > { %p30_p1 = scmp.ge.s32.totalorder %s28_s24, 2  ;;  %p257_p2 = scmp.lt.s32.totalorder %s2853_s23, 3 }
   0x5   : > { %s3547_s24 = smov (%p30_p1, %s28_s24), 0  ;;  %p258_p3 = pnand %p2408_p0, %p257_p2 }
   0x6   : > { %v2639_v0 = vld [vmem:[%s3538_s1 + $0x4] ss:$8 sps:$4 sm:$0xff] (!%p258_p3)   ;;  %v2643_v2 = vld [vmem:[%s3538_s1] ss:$8 sps:$4 sm:$0xff] (!%p258_p3)   ;;  %v2645_v4 = vld [vmem:[%s3538_s1 + $0x14] ss:$8 sps:$4 sm:$0xff] (!%p258_p3)  }
   0x7   : > { %261 = sbr.rel (%p258_p3) target bundleno = 420 (0x1a4), region = 44  ;;  %v2641_v1 = vld [vmem:[%s3538_s1 + $0x104] ss:$8 sps:$4 sm:$0xff] (!%p258_p3)   ;;  %1238 = vmatprep.subr.bf16.mxu1 (!%p258_p3), %v2639_v0  ;;  %v2644_v3 = vld [vmem:[%s3538_s1 + $0x100] ss:$8 sps:$4 sm:$0xff] (!%p258_p3)   ;;  %s2409_s25 = sshll.u32 (!%p258_p3), %s2845_s21, 5 }
   0x8   : > { %1431 = vmatprep.subr.bf16.mxu0 (!%p258_p3), %v2641_v1  ;;  %1239 = vmatpush1.bf16.msra.mxu1 (!%p258_p3), %v2643_v2  ;;  %v2647_v5 = vld [vmem:[%s3538_s1 + $0x114] ss:$8 sps:$4 sm:$0xff] (!%p258_p3)   ;;  %v2649_v6 = vld [vmem:[%s3538_s1 + $0x10] ss:$8 sps:$4 sm:$0xff] (!%p258_p3)   ;;  %v2651_v8 = vld [vmem:[%s3538_s1 + $0x24] ss:$8 sps:$4 sm:$0xff] (!%p258_p3)  }
   0x9   : > { %1432 = vmatpush1.bf16.msra.mxu0 (!%p258_p3), %v2644_v3  ;;  %1240 = vmatprep.subr.bf16.mxu1 (!%p258_p3), %v2645_v4  ;;  %v2650_v7 = vld [vmem:[%s3538_s1 + $0x110] ss:$8 sps:$4 sm:$0xff] (!%p258_p3)   ;;  %v2653_v9 = vld [vmem:[%s3538_s1 + $0x124] ss:$8 sps:$4 sm:$0xff] (!%p258_p3)   ;;  %v2655_v10 = vld [vmem:[%s3538_s1 + $0x20] ss:$8 sps:$4 sm:$0xff] (!%p258_p3)  }
   0xa   : > { %1433 = vmatprep.subr.bf16.mxu0 (!%p258_p3), %v2647_v5  ;;  %v2656_v11 = vld [vmem:[%s3538_s1 + $0x120] ss:$8 sps:$4 sm:$0xff] (!%p258_p3)   ;;  %v2657_v12 = vld [vmem:[%s3538_s1 + $0x34] ss:$8 sps:$4 sm:$0xff] (!%p258_p3)   ;;  %v2661_v14 = vld [vmem:[%s3538_s1 + $0x30] ss:$8 sps:$4 sm:$0xff] (!%p258_p3)  }
   0xb   : > { %v2659_v13 = vld [vmem:[%s3538_s1 + $0x134] ss:$8 sps:$4 sm:$0xff] (!%p258_p3)   ;;  %v2662_v15 = vld [vmem:[%s3538_s1 + $0x130] ss:$8 sps:$4 sm:$0xff] (!%p258_p3)   ;;  %v2663_v16 = vld [vmem:[%s3538_s1 + $0x44] ss:$8 sps:$4 sm:$0xff] (!%p258_p3)  }
   0xc   : > { %1241 = vmatpush1.bf16.msra.mxu1 (!%p258_p3), %v2649_v6  ;;  %v2665_v17 = vld [vmem:[%s3538_s1 + $0x144] ss:$8 sps:$4 sm:$0xff] (!%p258_p3)   ;;  %v2667_v18 = vld [vmem:[%s3538_s1 + $0x40] ss:$8 sps:$4 sm:$0xff] (!%p258_p3)   ;;  %v2669_v20 = vld [vmem:[%s3538_s1 + $0x54] ss:$8 sps:$4 sm:$0xff] (!%p258_p3)  }
   0xd   : > { %1434 = vmatpush1.bf16.msra.mxu0 (!%p258_p3), %v2650_v7  ;;  %1242 = vmatprep.subr.bf16.mxu1 (!%p258_p3), %v2651_v8  ;;  %v2668_v19 = vld [vmem:[%s3538_s1 + $0x140] ss:$8 sps:$4 sm:$0xff] (!%p258_p3)   ;;  %v2671_v21 = vld [vmem:[%s3538_s1 + $0x154] ss:$8 sps:$4 sm:$0xff] (!%p258_p3)   ;;  %v2673_v22 = vld [vmem:[%s3538_s1 + $0x50] ss:$8 sps:$4 sm:$0xff] (!%p258_p3)  }
   0xe   : > { %1435 = vmatprep.subr.bf16.mxu0 %v2653_v9  ;;  %v2674_v23 = vld [vmem:[%s3538_s1 + $0x150] ss:$8 sps:$4 sm:$0xff]   ;;  %v2675_v24 = vld [vmem:[%s3538_s1 + $0x64] ss:$8 sps:$4 sm:$0xff]   ;;  %v2679_v26 = vld [vmem:[%s3538_s1 + $0x60] ss:$8 sps:$4 sm:$0xff]  }
   0xf   : > { %v2677_v25 = vld [vmem:[%s3538_s1 + $0x164] ss:$8 sps:$4 sm:$0xff]   ;;  %v2680_v27 = vld [vmem:[%s3538_s1 + $0x160] ss:$8 sps:$4 sm:$0xff]   ;;  %v2681_v28 = vld [vmem:[%s3538_s1 + $0x74] ss:$8 sps:$4 sm:$0xff]  }
  0x10   : > { %1243 = vmatpush1.bf16.msra.mxu1 %v2655_v10  ;;  %v2683_v29 = vld [vmem:[%s3538_s1 + $0x174] ss:$8 sps:$4 sm:$0xff]   ;;  %v2685_v30 = vld [vmem:[%s3538_s1 + $0x70] ss:$8 sps:$4 sm:$0xff]   ;;  %v2687_v32 = vld [vmem:[%s3538_s1 + $0x84] ss:$8 sps:$4 sm:$0xff]  }
  0x11   : > { %1436 = vmatpush1.bf16.msra.mxu0 %v2656_v11  ;;  %1244 = vmatprep.subr.bf16.mxu1 %v2657_v12  ;;  %v2686_v31 = vld [vmem:[%s3538_s1 + $0x170] ss:$8 sps:$4 sm:$0xff]   ;;  %v2689_v33 = vld [vmem:[%s3538_s1 + $0x184] ss:$8 sps:$4 sm:$0xff]   ;;  %p307_p4 = scmp.lt.s32.totalorder %s2409_s25, 63 }
  0x12   : > { %1437 = vmatprep.subr.bf16.mxu0 %v2659_v13  ;;  %v2691_v34 = vld [vmem:[%s3538_s1 + $0x80] ss:$8 sps:$4 sm:$0xff]   ;;  %v2693_v36 = vld [vmem:[%s3538_s1 + $0x94] ss:$8 sps:$4 sm:$0xff]   ;;  %v2697_v38 = vld [vmem:[%s3538_s1 + $0x90] ss:$8 sps:$4 sm:$0xff]  }
  0x13   : > { %v2692_v35 = vld [vmem:[%s3538_s1 + $0x180] ss:$8 sps:$4 sm:$0xff]   ;;  %v2695_v37 = vld [vmem:[%s3538_s1 + $0x194] ss:$8 sps:$4 sm:$0xff]   ;;  %s3549_s25 = smov (!%p307_p4, %s2409_s25), 63 }
  0x14   : > { %1245 = vmatpush1.bf16.msra.mxu1 %v2661_v14  ;;  %v2698_v39 = vld [vmem:[%s3538_s1 + $0x190] ss:$8 sps:$4 sm:$0xff]   ;;  %v2699_v40 = vld [vmem:[%s3538_s1 + $0xa4] ss:$8 sps:$4 sm:$0xff]   ;;  %s3037_s30 = sshll.u32 %s3549_s25, 4 }
  0x15   : > { %1438 = vmatpush1.bf16.msra.mxu0 %v2662_v15  ;;  %1246 = vmatprep.subr.bf16.mxu1 %v2663_v16  ;;  %v2701_v41 = vld [vmem:[%s3538_s1 + $0x1a4] ss:$8 sps:$4 sm:$0xff]   ;;  %v2703_v42 = vld [vmem:[%s3538_s1 + $0xa0] ss:$8 sps:$4 sm:$0xff]   ;;  %v2705_v44 = vld [vmem:[%s3538_s1 + $0xb4] ss:$8 sps:$4 sm:$0xff]   ;;  %s3052_s25 = scalar_lea.vmem %s3537_s0, %s3037_s30  ;;  %s3198_s26 = scalar_lea.vmem %s3542_s5, %s3037_s30 }
  0x16   : > { %1439 = vmatprep.subr.bf16.mxu0 %v2665_v17  ;;  %v2704_v43 = vld [vmem:[%s3538_s1 + $0x1a0] ss:$8 sps:$4 sm:$0xff]   ;;  %v2707_v45 = vld [vmem:[%s3538_s1 + $0x1b4] ss:$8 sps:$4 sm:$0xff]   ;;  %v2709_v46 = vld [vmem:[%s3538_s1 + $0xb0] ss:$8 sps:$4 sm:$0xff]   ;;  %s3216_s29 = scalar_lea.vmem %s3543_s6, %s3037_s30 }
  0x17   : > { %v2710_v47 = vld [vmem:[%s3538_s1 + $0x1b0] ss:$8 sps:$4 sm:$0xff]   ;;  %v2711_v48 = vld [vmem:[%s3538_s1 + $0xc4] ss:$8 sps:$4 sm:$0xff]   ;;  %v2715_v52 = vld [vmem:[%s3538_s1 + $0xc0] ss:$8 sps:$4 sm:$0xff]  }
  0x18   : > { %1247 = vmatpush1.bf16.msra.mxu1 %v2667_v18  ;;  %v2737_v49 = vld [vmem:[%s3052_s25 + $0x4] ss:$16 sps:$4 sm:$0xff]   ;;  %v2740_v51 = vld [vmem:[%s3052_s25 + $0xc] ss:$16 sps:$4 sm:$0xff]   ;;  %v2716_v53 = vld [vmem:[%s3538_s1 + $0x1c0] ss:$8 sps:$4 sm:$0xff]  }
  0x19   : > { %1440 = vmatpush1.bf16.msra.mxu0 %v2668_v19  ;;  %1248 = vmatprep.subr.bf16.mxu1 %v2669_v20  ;;  %v2713_v50 = vld [vmem:[%s3538_s1 + $0x1c4] ss:$8 sps:$4 sm:$0xff]   ;;  %v2717_v54 = vld [vmem:[%s3538_s1 + $0xd4] ss:$8 sps:$4 sm:$0xff]   ;;  %v2721_v56 = vld [vmem:[%s3538_s1 + $0xd0] ss:$8 sps:$4 sm:$0xff]  }
  0x1a   : > { %1441 = vmatprep.subr.bf16.mxu0 %v2671_v21  ;;  %1270 = vmatprep.mubr.bf16.mxu1 %v2737_v49  ;;  %v2719_v55 = vld [vmem:[%s3538_s1 + $0x1d4] ss:$8 sps:$4 sm:$0xff]   ;;  %v2722_v57 = vld [vmem:[%s3538_s1 + $0x1d0] ss:$8 sps:$4 sm:$0xff]   ;;  %v2723_v58 = vld [vmem:[%s3538_s1 + $0xe4] ss:$8 sps:$4 sm:$0xff]  }
  0x1b   : > { %1463 = vmatprep.mubr.bf16.mxu0 %v2740_v51  ;;  %v2725_v59 = vld [vmem:[%s3538_s1 + $0x1e4] ss:$8 sps:$4 sm:$0xff]   ;;  %v2727_v60 = vld [vmem:[%s3538_s1 + $0xe0] ss:$8 sps:$4 sm:$0xff]   ;;  %v2729_v62 = vld [vmem:[%s3538_s1 + $0xf4] ss:$8 sps:$4 sm:$0xff]  }
  0x1c   : > { %1249 = vmatpush1.bf16.msra.mxu1 %v2673_v22  ;;  %v2728_v61 = vld [vmem:[%s3538_s1 + $0x1e0] ss:$8 sps:$4 sm:$0xff]   ;;  %v2731_v63 = vld [vmem:[%s3538_s1 + $0x1f4] ss:$8 sps:$4 sm:$0xff]   ;;  %v2733_v0 = vld [vmem:[%s3538_s1 + $0xf0] ss:$8 sps:$4 sm:$0xff]  }
  0x1d   : > { %1442 = vmatpush1.bf16.msra.mxu0 %v2674_v23  ;;  %1250 = vmatprep.subr.bf16.mxu1 %v2675_v24  ;;  %v2734_v1 = vld [vmem:[%s3538_s1 + $0x1f0] ss:$8 sps:$4 sm:$0xff]   ;;  %v2741_v4 = vld [vmem:[%s3052_s25 + $0x24] ss:$16 sps:$4 sm:$0xff]   ;;  %v2743_v5 = vld [vmem:[%s3052_s25 + $0x2c] ss:$16 sps:$4 sm:$0xff]  }
  0x1e   : > { %1443 = vmatprep.subr.bf16.mxu0 %v2677_v25  ;;  %v2735_v2 = vld [vmem:[%s3052_s25] ss:$16 sps:$4 sm:$0xff]   ;;  %v2738_v3 = vld [vmem:[%s3052_s25 + $0x8] ss:$16 sps:$4 sm:$0xff]   ;;  %v2747_v8 = vld [vmem:[%s3052_s25 + $0x44] ss:$16 sps:$4 sm:$0xff]  }
  0x1f   : > { %v2745_v6 = vld [vmem:[%s3052_s25 + $0x20] ss:$16 sps:$4 sm:$0xff]   ;;  %v2746_v7 = vld [vmem:[%s3052_s25 + $0x28] ss:$16 sps:$4 sm:$0xff]   ;;  %v2749_v9 = vld [vmem:[%s3052_s25 + $0x4c] ss:$16 sps:$4 sm:$0xff]  }
  0x20   : > { %1251 = vmatpush1.bf16.msra.mxu1 %v2679_v26  ;;  %v2751_v10 = vld [vmem:[%s3052_s25 + $0x40] ss:$16 sps:$4 sm:$0xff]   ;;  %v2752_v11 = vld [vmem:[%s3052_s25 + $0x48] ss:$16 sps:$4 sm:$0xff]   ;;  %v2753_v12 = vld [vmem:[%s3052_s25 + $0x64] ss:$16 sps:$4 sm:$0xff]  }
  0x21   : > { %1444 = vmatpush1.bf16.msra.mxu0 %v2680_v27  ;;  %1252 = vmatprep.subr.bf16.mxu1 %v2681_v28  ;;  %v2755_v13 = vld [vmem:[%s3052_s25 + $0x6c] ss:$16 sps:$4 sm:$0xff]   ;;  %v2757_v14 = vld [vmem:[%s3052_s25 + $0x60] ss:$16 sps:$4 sm:$0xff]   ;;  %v2758_v15 = vld [vmem:[%s3052_s25 + $0x68] ss:$16 sps:$4 sm:$0xff]  }
  0x22   : > { %1445 = vmatprep.subr.bf16.mxu0 %v2683_v29  ;;  %v2759_v16 = vld [vmem:[%s3052_s25 + $0x84] ss:$16 sps:$4 sm:$0xff]   ;;  %v2761_v17 = vld [vmem:[%s3052_s25 + $0x8c] ss:$16 sps:$4 sm:$0xff]   ;;  %v2763_v18 = vld [vmem:[%s3052_s25 + $0x80] ss:$16 sps:$4 sm:$0xff]  }
  0x23   : > { %v2764_v19 = vld [vmem:[%s3052_s25 + $0x88] ss:$16 sps:$4 sm:$0xff]   ;;  %v2765_v20 = vld [vmem:[%s3052_s25 + $0xa4] ss:$16 sps:$4 sm:$0xff]   ;;  %v2767_v21 = vld [vmem:[%s3052_s25 + $0xac] ss:$16 sps:$4 sm:$0xff]  }
  0x24   : > { %1253 = vmatpush1.bf16.msra.mxu1 %v2685_v30  ;;  %v2769_v22 = vld [vmem:[%s3052_s25 + $0xa0] ss:$16 sps:$4 sm:$0xff]   ;;  %v2770_v23 = vld [vmem:[%s3052_s25 + $0xa8] ss:$16 sps:$4 sm:$0xff]   ;;  %v2771_v24 = vld [vmem:[%s3052_s25 + $0xc4] ss:$16 sps:$4 sm:$0xff]  }
  0x25   : > { %1446 = vmatpush1.bf16.msra.mxu0 %v2686_v31  ;;  %1254 = vmatprep.subr.bf16.mxu1 %v2687_v32  ;;  %v2773_v25 = vld [vmem:[%s3052_s25 + $0xcc] ss:$16 sps:$4 sm:$0xff]   ;;  %v2775_v26 = vld [vmem:[%s3052_s25 + $0xc0] ss:$16 sps:$4 sm:$0xff]   ;;  %v2776_v27 = vld [vmem:[%s3052_s25 + $0xc8] ss:$16 sps:$4 sm:$0xff]  }
  0x26   : > { %1447 = vmatprep.subr.bf16.mxu0 %v2689_v33  ;;  %v2777_v28 = vld [vmem:[%s3052_s25 + $0xe4] ss:$16 sps:$4 sm:$0xff]   ;;  %v2779_v29 = vld [vmem:[%s3052_s25 + $0xec] ss:$16 sps:$4 sm:$0xff]   ;;  %v2781_v30 = vld [vmem:[%s3052_s25 + $0xe0] ss:$16 sps:$4 sm:$0xff]  }
  0x27   : > { %v2782_v31 = vld [vmem:[%s3052_s25 + $0xe8] ss:$16 sps:$4 sm:$0xff]   ;;  %v2783_v32 = vld [vmem:[%s3052_s25 + $0x104] ss:$16 sps:$4 sm:$0xff]   ;;  %v2785_v33 = vld [vmem:[%s3052_s25 + $0x10c] ss:$16 sps:$4 sm:$0xff]  }
  0x28   : > { %1255 = vmatpush1.bf16.msra.mxu1 %v2691_v34  ;;  %v2787_v34 = vld [vmem:[%s3052_s25 + $0x100] ss:$16 sps:$4 sm:$0xff]   ;;  %v2809_v49 = vld [vmem:[%s3052_s25 + $0x18c] ss:$16 sps:$4 sm:$0xff]   ;;  %v2812_v51 = vld [vmem:[%s3052_s25 + $0x188] ss:$16 sps:$4 sm:$0xff]  }
  0x29   : > { %1448 = vmatpush1.bf16.msra.mxu0 %v2692_v35  ;;  %1256 = vmatprep.subr.bf16.mxu1 %v2693_v36  ;;  %v2788_v35 = vld [vmem:[%s3052_s25 + $0x108] ss:$16 sps:$4 sm:$0xff]   ;;  %v2789_v36 = vld [vmem:[%s3052_s25 + $0x124] ss:$16 sps:$4 sm:$0xff]  }
  0x2a   : > { %1449 = vmatprep.subr.bf16.mxu0 %v2695_v37  ;;  %v2791_v37 = vld [vmem:[%s3052_s25 + $0x12c] ss:$16 sps:$4 sm:$0xff]  }
  0x2c   : > { %1257 = vmatpush1.bf16.msra.mxu1 %v2697_v38  ;;  %v2793_v38 = vld [vmem:[%s3052_s25 + $0x120] ss:$16 sps:$4 sm:$0xff]  }
  0x2d   : > { %1450 = vmatpush1.bf16.msra.mxu0 %v2698_v39  ;;  %1258 = vmatprep.subr.bf16.mxu1 %v2699_v40  ;;  %v2794_v39 = vld [vmem:[%s3052_s25 + $0x128] ss:$16 sps:$4 sm:$0xff]   ;;  %v2795_v40 = vld [vmem:[%s3052_s25 + $0x144] ss:$16 sps:$4 sm:$0xff]  }
  0x2e   : > { %1451 = vmatprep.subr.bf16.mxu0 %v2701_v41  ;;  %v2797_v41 = vld [vmem:[%s3052_s25 + $0x14c] ss:$16 sps:$4 sm:$0xff]  }
  0x30   : > { %1259 = vmatpush1.bf16.msra.mxu1 %v2703_v42  ;;  %v2799_v42 = vld [vmem:[%s3052_s25 + $0x140] ss:$16 sps:$4 sm:$0xff]  }
  0x31   : > { %1452 = vmatpush1.bf16.msra.mxu0 %v2704_v43  ;;  %1260 = vmatprep.subr.bf16.mxu1 %v2705_v44  ;;  %v2800_v43 = vld [vmem:[%s3052_s25 + $0x148] ss:$16 sps:$4 sm:$0xff]   ;;  %v2801_v44 = vld [vmem:[%s3052_s25 + $0x164] ss:$16 sps:$4 sm:$0xff]  }
  0x32   : > { %1453 = vmatprep.subr.bf16.mxu0 %v2707_v45  ;;  %v2803_v45 = vld [vmem:[%s3052_s25 + $0x16c] ss:$16 sps:$4 sm:$0xff]  }
  0x34   : > { %1261 = vmatpush1.bf16.msra.mxu1 %v2709_v46  ;;  %v2805_v46 = vld [vmem:[%s3052_s25 + $0x160] ss:$16 sps:$4 sm:$0xff]  }
  0x35   : > { %1454 = vmatpush1.bf16.msra.mxu0 %v2710_v47  ;;  %1262 = vmatprep.subr.bf16.mxu1 %v2711_v48  ;;  %v2806_v47 = vld [vmem:[%s3052_s25 + $0x168] ss:$16 sps:$4 sm:$0xff]   ;;  %v2807_v48 = vld [vmem:[%s3052_s25 + $0x184] ss:$16 sps:$4 sm:$0xff]  }
  0x36   : > { %1455 = vmatprep.subr.bf16.mxu0 %v2713_v50  ;;  %v2811_v50 = vld [vmem:[%s3052_s25 + $0x180] ss:$16 sps:$4 sm:$0xff]  }
  0x38   : > { %1263 = vmatpush1.bf16.msra.mxu1 %v2715_v52  ;;  %v2813_v52 = vld [vmem:[%s3052_s25 + $0x1a4] ss:$16 sps:$4 sm:$0xff]  }
  0x39   : > { %1456 = vmatpush1.bf16.msra.mxu0 %v2716_v53  ;;  %1264 = vmatprep.subr.bf16.mxu1 %v2717_v54  ;;  %v2815_v53 = vld [vmem:[%s3052_s25 + $0x1ac] ss:$16 sps:$4 sm:$0xff]   ;;  %v2817_v54 = vld [vmem:[%s3052_s25 + $0x1a0] ss:$16 sps:$4 sm:$0xff]  }
  0x3a   : > { %1457 = vmatprep.subr.bf16.mxu0 %v2719_v55  ;;  %v2818_v55 = vld [vmem:[%s3052_s25 + $0x1a8] ss:$16 sps:$4 sm:$0xff]  }
  0x3c   : > { %1265 = vmatpush1.bf16.msra.mxu1 %v2721_v56  ;;  %v2819_v56 = vld [vmem:[%s3052_s25 + $0x1c4] ss:$16 sps:$4 sm:$0xff]  }
  0x3d   : > { %1458 = vmatpush1.bf16.msra.mxu0 %v2722_v57  ;;  %1266 = vmatprep.subr.bf16.mxu1 %v2723_v58  ;;  %v2821_v57 = vld [vmem:[%s3052_s25 + $0x1cc] ss:$16 sps:$4 sm:$0xff]   ;;  %v2823_v58 = vld [vmem:[%s3052_s25 + $0x1c0] ss:$16 sps:$4 sm:$0xff]  }
  0x3e   : > { %1459 = vmatprep.subr.bf16.mxu0 %v2725_v59  ;;  %v2824_v59 = vld [vmem:[%s3052_s25 + $0x1c8] ss:$16 sps:$4 sm:$0xff]  }
  0x40   : > { %1267 = vmatpush1.bf16.msra.mxu1 %v2727_v60  ;;  %v2825_v60 = vld [vmem:[%s3052_s25 + $0x1e4] ss:$16 sps:$4 sm:$0xff]  }
  0x41   : > { %1460 = vmatpush1.bf16.msra.mxu0 %v2728_v61  ;;  %1268 = vmatprep.subr.bf16.mxu1 %v2729_v62  ;;  %v2827_v61 = vld [vmem:[%s3052_s25 + $0x1ec] ss:$16 sps:$4 sm:$0xff]   ;;  %v2829_v62 = vld [vmem:[%s3052_s25 + $0x1e0] ss:$16 sps:$4 sm:$0xff]  }
  0x42   : > { %1461 = vmatprep.subr.bf16.mxu0 %v2731_v63  ;;  %v2830_v63 = vld [vmem:[%s3052_s25 + $0x1e8] ss:$16 sps:$4 sm:$0xff]  }
  0x44   : > { %1269 = vmatpush1.bf16.msra.mxu1 %v2733_v0  ;;  %v1821_v0 = vlaneseq }
  0x45   : > { %1462 = vmatpush1.bf16.msra.mxu0 %v2734_v1 }
  0x46   : > { %v1822_v1 = vshrl.u32 %v1821_v0, 7 }
  0x47   : > { %1271 = vmatmul.mubr.bf16.vlgmr.msra.gmra.mrb[0].mxu1 %v2735_v2 }
  0x48   : > { %1464 = vmatmul.mubr.bf16.vlgmr.msra.gmra.mrb[0].mxu0 %v2738_v3  ;;  %1280 = vmatprep.mubr.bf16.mxu1 %v2741_v4  ;;  %v1823_v2 = vsub.s32 0, %v1822_v1  ;;  %v1819_v3 = vld [vmem:[%s3539_s2] sm:$0x3]  ;;  %v1827_v4 = vsub.s32 1, %v1822_v1 }
  0x49   : > { %1473 = vmatprep.mubr.bf16.mxu0 %v2743_v5 }
  0x4a   : > { %v3178_v5 = vrot.slane %v1819_v3, %v1823_v2 }
  0x4f   : > { %1281 = vmatmul.mubr.bf16.gmra.mrb[4].mxu1 %v2745_v6 }
  0x50   : > { %1474 = vmatmul.mubr.bf16.gmra.mrb[4].mxu0 %v2746_v7  ;;  %1290 = vmatprep.mubr.bf16.mxu1 %v2747_v8  ;;  %v1959_v8 = vld [vmem:[%s3540_s3] sm:$0x3] }
  0x51   : > { %1483 = vmatprep.mubr.bf16.mxu0 %v2749_v9  ;;  %v3183_v9 = vrot.slane %v1819_v3, %v1827_v4 }
  0x57   : > { %1291 = vmatmul.mubr.bf16.gmra.mrb[8].mxu1 %v2751_v10 }
  0x58   : > { %1484 = vmatmul.mubr.bf16.gmra.mrb[8].mxu0 %v2752_v11  ;;  %1300 = vmatprep.mubr.bf16.mxu1 %v2753_v12 }
  0x59   : > { %1493 = vmatprep.mubr.bf16.mxu0 %v2755_v13  ;;  %v2035_v13 = vld [vmem:[%s3541_s4] sm:$0x3] }
  0x5f   : > { %1301 = vmatmul.mubr.bf16.gmra.mrb[12].mxu1 %v2757_v14 }
  0x60   : > { %1494 = vmatmul.mubr.bf16.gmra.mrb[12].mxu0 %v2758_v15  ;;  %1310 = vmatprep.mubr.bf16.mxu1 %v2759_v16 }
  0x61   : > { %1503 = vmatprep.mubr.bf16.mxu0 %v2761_v17 }
  0x67   : > { %1311 = vmatmul.mubr.bf16.gmra.mrb[16].mxu1 %v2763_v18  ;;  %v3189_v18 = vrot.slane %v1959_v8, %v1823_v2 }
  0x68   : > { %1504 = vmatmul.mubr.bf16.gmra.mrb[16].mxu0 %v2764_v19  ;;  %1320 = vmatprep.mubr.bf16.mxu1 %v2765_v20 }
  0x69   : > { %1513 = vmatprep.mubr.bf16.mxu0 %v2767_v21 }
  0x6f   : > { %1321 = vmatmul.mubr.bf16.gmra.mrb[20].mxu1 %v2769_v22 }
  0x70   : > { %1514 = vmatmul.mubr.bf16.gmra.mrb[20].mxu0 %v2770_v23  ;;  %1330 = vmatprep.mubr.bf16.mxu1 %v2771_v24  ;;  %v3192_v23 = vrot.slane %v1959_v8, %v1827_v4 }
  0x71   : > { %1523 = vmatprep.mubr.bf16.mxu0 %v2773_v25 }
  0x77   : > { %1331 = vmatmul.mubr.bf16.gmra.mrb[24].mxu1 %v2775_v26  ;;  %v3200_v26 = vrot.slane %v2035_v13, %v1823_v2 }
  0x78   : > { %1524 = vmatmul.mubr.bf16.gmra.mrb[24].mxu0 %v2776_v27  ;;  %1340 = vmatprep.mubr.bf16.mxu1 %v2777_v28 }
  0x79   : > { %1533 = vmatprep.mubr.bf16.mxu0 %v2779_v29  ;;  %v3203_v29 = vrot.slane %v2035_v13, %v1827_v4  ;;  %v2116_v13 = vld [vmem:[%s3198_s26 + $0x28] sm:$0xff] }
  0x7f   : > { %1341 = vmatmul.mubr.bf16.gmra.mrb[28].mxu1 %v2781_v30 }
  0x80   : > { %1534 = vmatmul.mubr.bf16.gmra.mrb[28].mxu0 %v2782_v31  ;;  %1350 = vmatprep.mubr.bf16.mxu1 %v2783_v32 }
  0x81   : > { %1543 = vmatprep.mubr.bf16.mxu0 %v2785_v33  ;;  %v2111_v33 = vld [vmem:[%s3198_s26] sm:$0xff] }
  0x87   : > { %1351 = vmatmul.mubr.bf16.gmra.mrb[32].mxu1 %v2787_v34 }
  0x88   : > { %1544 = vmatmul.mubr.bf16.gmra.mrb[32].mxu0 %v2788_v35  ;;  %1360 = vmatprep.mubr.bf16.mxu1 %v2789_v36 }
  0x89   : > { %1553 = vmatprep.mubr.bf16.mxu0 %v2791_v37 }
  0x8f   : > { %1361 = vmatmul.mubr.bf16.gmra.mrb[36].mxu1 %v2793_v38 }
  0x90   : > { %1554 = vmatmul.mubr.bf16.gmra.mrb[36].mxu0 %v2794_v39  ;;  %1370 = vmatprep.mubr.bf16.mxu1 %v2795_v40  ;;  %v2112_v39 = vld [vmem:[%s3198_s26 + $0x8] sm:$0xff] }
  0x91   : > { %1563 = vmatprep.mubr.bf16.mxu0 %v2797_v41 }
  0x97   : > { %1371 = vmatmul.mubr.bf16.gmra.mrb[40].mxu1 %v2799_v42 }
  0x98   : > { %1564 = vmatmul.mubr.bf16.gmra.mrb[40].mxu0 %v2800_v43  ;;  %1380 = vmatprep.mubr.bf16.mxu1 %v2801_v44 }
  0x99   : > { %1573 = vmatprep.mubr.bf16.mxu0 %v2803_v45  ;;  %v2113_v45 = vld [vmem:[%s3198_s26 + $0x10] sm:$0xff] }
  0x9f   : > { %1381 = vmatmul.mubr.bf16.gmra.mrb[44].mxu1 %v2805_v46 }
  0xa0   : > { %1574 = vmatmul.mubr.bf16.gmra.mrb[44].mxu0 %v2806_v47  ;;  %1390 = vmatprep.mubr.bf16.mxu1 %v2807_v48 }
  0xa1   : > { %1583 = vmatprep.mubr.bf16.mxu0 %v2809_v49 }
  0xa7   : > { %1391 = vmatmul.mubr.bf16.gmra.mrb[48].mxu1 %v2811_v50 }
  0xa8   : > { %1584 = vmatmul.mubr.bf16.gmra.mrb[48].mxu0 %v2812_v51  ;;  %1400 = vmatprep.mubr.bf16.mxu1 %v2813_v52  ;;  %v2114_v52 = vld [vmem:[%s3198_s26 + $0x18] sm:$0xff] }
  0xa9   : > { %1593 = vmatprep.mubr.bf16.mxu0 %v2815_v53 }
  0xaf   : > { %1401 = vmatmul.mubr.bf16.gmra.mrb[52].mxu1 %v2817_v54 }
  0xb0   : > { %1594 = vmatmul.mubr.bf16.gmra.mrb[52].mxu0 %v2818_v55  ;;  %1410 = vmatprep.mubr.bf16.mxu1 %v2819_v56 }
  0xb1   : > { %1603 = vmatprep.mubr.bf16.mxu0 %v2821_v57 }
  0xb7   : > { %1411 = vmatmul.mubr.bf16.gmra.mrb[56].mxu1 %v2823_v58 }
  0xb8   : > { %1604 = vmatmul.mubr.bf16.gmra.mrb[56].mxu0 %v2824_v59  ;;  %1420 = vmatprep.mubr.bf16.mxu1 %v2825_v60 }
  0xb9   : > { %1613 = vmatprep.mubr.bf16.mxu0 %v2827_v61 }
  0xbf   : > { %1421 = vmatmul.mubr.bf16.gmra.mrb[60].mxu1 %v2829_v62 }
  0xc0   : > { %1614 = vmatmul.mubr.bf16.gmra.mrb[60].mxu0 %v2830_v63 }
 0x11a   : > { %v1272_v6 = vpop.f32.mrb[0].mxu1 }
 0x11b   : > { %v1465_v7 = vpop.f32.mrb[0].mxu0  ;;  %v1274_v11 = vpop.f32.mrb[1].mxu1 }
 0x11c   : > { %v1466_v10 = vadd.f32 %v1465_v7, %v1272_v6  ;;  %v1467_v12 = vpop.f32.mrb[1].mxu0  ;;  %v1276_v15 = vpop.f32.mrb[2].mxu1  ;;  %v2115_v6 = vld [vmem:[%s3198_s26 + $0x20] sm:$0xff] }
 0x11d   : > { %v1468_v14 = vadd.f32 %v1467_v12, %v1274_v11  ;;  %v1469_v16 = vpop.f32.mrb[2].mxu0  ;;  %v1278_v20 = vpop.f32.mrb[3].mxu1 }
 0x11e   : > { %v1831_v17 = vadd.f32 %v3178_v5, %v1466_v10  ;;  %v1470_v19 = vadd.f32 %v1469_v16, %v1276_v15  ;;  %v1471_v21 = vpop.f32.mrb[3].mxu0 }
 0x11f   : > { %v1832_v22 = vadd.f32 %v3183_v9, %v1468_v14  ;;  %v1472_v24 = vadd.f32 %v1471_v21, %v1278_v20  ;;  %v2117_v20 = vld [vmem:[%s3198_s26 + $0x30] sm:$0xff] }
 0x120   : > { %v1895_v25 = vmax.f32 %v1831_v17, 0.0  ;;  %v1833_v27 = vadd.f32 %v3178_v5, %v1470_v19 }
 0x121   : > { %v1896_v28 = vmax.f32 %v1832_v22, 0.0  ;;  %v1834_v30 = vadd.f32 %v3183_v9, %v1472_v24 }
 0x122   : > { %v1971_v31 = vmul.f32 %v3189_v18, %v1895_v25  ;;  %v1897_v32 = vmax.f32 %v1833_v27, 0.0  ;;  %v1282_v36 = vpop.f32.mrb[4].mxu1 }
 0x123   : > { %v1972_v34 = vmul.f32 %v3192_v23, %v1896_v28  ;;  %v1898_v35 = vmax.f32 %v1834_v30, 0.0  ;;  %v1475_v37 = vpop.f32.mrb[4].mxu0  ;;  %v1284_v42 = vpop.f32.mrb[5].mxu1  ;;  %v2118_v30 = vld [vmem:[%s3198_s26 + $0x38] sm:$0xff] }
 0x124   : > { %v2047_v38 = vadd.f32 %v3200_v26, %v1971_v31  ;;  %v1973_v40 = vmul.f32 %v3189_v18, %v1897_v32  ;;  %v1476_v41 = vadd.f32 %v1475_v37, %v1282_v36  ;;  %v1477_v43 = vpop.f32.mrb[5].mxu0  ;;  %v1286_v48 = vpop.f32.mrb[6].mxu1 }
 0x125   : > { %v2048_v44 = vadd.f32 %v3203_v29, %v1972_v34  ;;  %v1974_v46 = vmul.f32 %v3192_v23, %v1898_v35  ;;  %v1478_v47 = vadd.f32 %v1477_v43, %v1284_v42  ;;  %v1479_v49 = vpop.f32.mrb[6].mxu0  ;;  %v1288_v55 = vpop.f32.mrb[7].mxu1 }
 0x126   : > { %v2175_v50 = vadd.f32 %v2111_v33, %v2047_v38  ;;  %v2049_v51 = vadd.f32 %v3200_v26, %v1973_v40  ;;  %v1835_v53 = vadd.f32 %v3178_v5, %v1476_v41  ;;  %v1480_v54 = vadd.f32 %v1479_v49, %v1286_v48  ;;  %v1481_v56 = vpop.f32.mrb[7].mxu0 }
 0x127   : > { %v2176_v57 = vadd.f32 %v2112_v39, %v2048_v44  ;;  %v2050_v58 = vadd.f32 %v3203_v29, %v1974_v46  ;;  %v1836_v59 = vadd.f32 %v3183_v9, %v1478_v47  ;;  %v1482_v60 = vadd.f32 %v1481_v56, %v1288_v55  ;;  %v2119_v47 = vld [vmem:[%s3198_s26 + $0x40] sm:$0xff] }
 0x128   : > { %2239 = vst [vmem:[%s3216_s29] sm:$0xff] %v2175_v50  ;;  %v2177_v61 = vadd.f32 %v2113_v45, %v2049_v51  ;;  %v1899_v62 = vmax.f32 %v1835_v53, 0.0  ;;  %v1837_v63 = vadd.f32 %v3178_v5, %v1480_v54  ;;  %v2120_v53 = vld [vmem:[%s3198_s26 + $0x48] sm:$0xff] }
 0x129   : > { %2240 = vst [vmem:[%s3216_s29 + $0x8] sm:$0xff] %v2176_v57  ;;  %v2178_v0 = vadd.f32 %v2114_v52, %v2050_v58  ;;  %v1900_v1 = vmax.f32 %v1836_v59, 0.0  ;;  %v1838_v2 = vadd.f32 %v3183_v9, %v1482_v60  ;;  %v2121_v59 = vld [vmem:[%s3198_s26 + $0x50] sm:$0xff] }
 0x12a   : > { %2241 = vst [vmem:[%s3216_s29 + $0x10] sm:$0xff] %v2177_v61  ;;  %v1975_v3 = vmul.f32 %v3189_v18, %v1899_v62  ;;  %v1901_v4 = vmax.f32 %v1837_v63, 0.0  ;;  %v1292_v10 = vpop.f32.mrb[8].mxu1 }
 0x12b   : > { %2242 = vst [vmem:[%s3216_s29 + $0x18] sm:$0xff] %v2178_v0  ;;  %v1976_v7 = vmul.f32 %v3192_v23, %v1900_v1  ;;  %v1902_v8 = vmax.f32 %v1838_v2, 0.0  ;;  %v1485_v11 = vpop.f32.mrb[8].mxu0  ;;  %v1294_v16 = vpop.f32.mrb[9].mxu1  ;;  %v2122_v2 = vld [vmem:[%s3198_s26 + $0x58] sm:$0xff] }
 0x12c   : > { %v2051_v12 = vadd.f32 %v3200_v26, %v1975_v3  ;;  %v1977_v14 = vmul.f32 %v3189_v18, %v1901_v4  ;;  %v1486_v15 = vadd.f32 %v1485_v11, %v1292_v10  ;;  %v1487_v17 = vpop.f32.mrb[9].mxu0  ;;  %v1296_v24 = vpop.f32.mrb[10].mxu1 }
 0x12d   : > { %v2052_v19 = vadd.f32 %v3203_v29, %v1976_v7  ;;  %v1978_v21 = vmul.f32 %v3192_v23, %v1902_v8  ;;  %v1488_v22 = vadd.f32 %v1487_v17, %v1294_v16  ;;  %v1489_v25 = vpop.f32.mrb[10].mxu0  ;;  %v1298_v33 = vpop.f32.mrb[11].mxu1 }
 0x12e   : > { %v2179_v27 = vadd.f32 %v2115_v6, %v2051_v12  ;;  %v2053_v28 = vadd.f32 %v3200_v26, %v1977_v14  ;;  %v1839_v31 = vadd.f32 %v3178_v5, %v1486_v15  ;;  %v1490_v32 = vadd.f32 %v1489_v25, %v1296_v24  ;;  %v1491_v34 = vpop.f32.mrb[11].mxu0 }
 0x12f   : > { %v2180_v35 = vadd.f32 %v2116_v13, %v2052_v19  ;;  %v2054_v36 = vadd.f32 %v3203_v29, %v1978_v21  ;;  %v1840_v37 = vadd.f32 %v3183_v9, %v1488_v22  ;;  %v1492_v38 = vadd.f32 %v1491_v34, %v1298_v33  ;;  %v2123_v22 = vld [vmem:[%s3198_s26 + $0x60] sm:$0xff] }
 0x130   : > { %2243 = vst [vmem:[%s3216_s29 + $0x20] sm:$0xff] %v2179_v27  ;;  %v2181_v39 = vadd.f32 %v2117_v20, %v2053_v28  ;;  %v1903_v40 = vmax.f32 %v1839_v31, 0.0  ;;  %v1841_v41 = vadd.f32 %v3178_v5, %v1490_v32  ;;  %v2124_v31 = vld [vmem:[%s3198_s26 + $0x68] sm:$0xff] }
 0x131   : > { %2244 = vst [vmem:[%s3216_s29 + $0x28] sm:$0xff] %v2180_v35  ;;  %v2182_v42 = vadd.f32 %v2118_v30, %v2054_v36  ;;  %v1904_v43 = vmax.f32 %v1840_v37, 0.0  ;;  %v1842_v44 = vadd.f32 %v3183_v9, %v1492_v38  ;;  %v2125_v37 = vld [vmem:[%s3198_s26 + $0x70] sm:$0xff] }
 0x132   : > { %2245 = vst [vmem:[%s3216_s29 + $0x30] sm:$0xff] %v2181_v39  ;;  %v1979_v45 = vmul.f32 %v3189_v18, %v1903_v40  ;;  %v1905_v46 = vmax.f32 %v1841_v41, 0.0  ;;  %v1302_v50 = vpop.f32.mrb[12].mxu1 }
 0x133   : > { %2246 = vst [vmem:[%s3216_s29 + $0x38] sm:$0xff] %v2182_v42  ;;  %v1980_v48 = vmul.f32 %v3192_v23, %v1904_v43  ;;  %v1906_v49 = vmax.f32 %v1842_v44, 0.0  ;;  %v1495_v51 = vpop.f32.mrb[12].mxu0  ;;  %v1304_v56 = vpop.f32.mrb[13].mxu1  ;;  %v2126_v44 = vld [vmem:[%s3198_s26 + $0x78] sm:$0xff] }
 0x134   : > { %v2055_v52 = vadd.f32 %v3200_v26, %v1979_v45  ;;  %v1981_v54 = vmul.f32 %v3189_v18, %v1905_v46  ;;  %v1496_v55 = vadd.f32 %v1495_v51, %v1302_v50  ;;  %v1497_v57 = vpop.f32.mrb[13].mxu0  ;;  %v1306_v62 = vpop.f32.mrb[14].mxu1 }
 0x135   : > { %v2056_v58 = vadd.f32 %v3203_v29, %v1980_v48  ;;  %v1982_v60 = vmul.f32 %v3192_v23, %v1906_v49  ;;  %v1498_v61 = vadd.f32 %v1497_v57, %v1304_v56  ;;  %v1499_v63 = vpop.f32.mrb[14].mxu0  ;;  %v1308_v6 = vpop.f32.mrb[15].mxu1 }
 0x136   : > { %v2183_v0 = vadd.f32 %v2119_v47, %v2055_v52  ;;  %v2057_v1 = vadd.f32 %v3200_v26, %v1981_v54  ;;  %v1843_v3 = vadd.f32 %v3178_v5, %v1496_v55  ;;  %v1500_v4 = vadd.f32 %v1499_v63, %v1306_v62  ;;  %v1501_v7 = vpop.f32.mrb[15].mxu0 }
 0x137   : > { %v2184_v8 = vadd.f32 %v2120_v53, %v2056_v58  ;;  %v2058_v10 = vadd.f32 %v3203_v29, %v1982_v60  ;;  %v1844_v11 = vadd.f32 %v3183_v9, %v1498_v61  ;;  %v1502_v12 = vadd.f32 %v1501_v7, %v1308_v6  ;;  %v2127_v61 = vld [vmem:[%s3198_s26 + $0x80] sm:$0xff] }
 0x138   : > { %2247 = vst [vmem:[%s3216_s29 + $0x40] sm:$0xff] %v2183_v0  ;;  %v2185_v13 = vadd.f32 %v2121_v59, %v2057_v1  ;;  %v1907_v14 = vmax.f32 %v1843_v3, 0.0  ;;  %v1845_v15 = vadd.f32 %v3178_v5, %v1500_v4  ;;  %v2128_v3 = vld [vmem:[%s3198_s26 + $0x88] sm:$0xff] }
 0x139   : > { %2248 = vst [vmem:[%s3216_s29 + $0x48] sm:$0xff] %v2184_v8  ;;  %v2186_v16 = vadd.f32 %v2122_v2, %v2058_v10  ;;  %v1908_v17 = vmax.f32 %v1844_v11, 0.0  ;;  %v1846_v19 = vadd.f32 %v3183_v9, %v1502_v12  ;;  %v2129_v11 = vld [vmem:[%s3198_s26 + $0x90] sm:$0xff] }
 0x13a   : > { %2249 = vst [vmem:[%s3216_s29 + $0x50] sm:$0xff] %v2185_v13  ;;  %v1983_v20 = vmul.f32 %v3189_v18, %v1907_v14  ;;  %v1909_v21 = vmax.f32 %v1845_v15, 0.0  ;;  %v1312_v27 = vpop.f32.mrb[16].mxu1 }
 0x13b   : > { %2250 = vst [vmem:[%s3216_s29 + $0x58] sm:$0xff] %v2186_v16  ;;  %v1984_v24 = vmul.f32 %v3192_v23, %v1908_v17  ;;  %v1910_v25 = vmax.f32 %v1846_v19, 0.0  ;;  %v1505_v28 = vpop.f32.mrb[16].mxu0  ;;  %v1314_v34 = vpop.f32.mrb[17].mxu1  ;;  %v2130_v19 = vld [vmem:[%s3198_s26 + $0x98] sm:$0xff] }
 0x13c   : > { %v2059_v30 = vadd.f32 %v3200_v26, %v1983_v20  ;;  %v1985_v32 = vmul.f32 %v3189_v18, %v1909_v21  ;;  %v1506_v33 = vadd.f32 %v1505_v28, %v1312_v27  ;;  %v1507_v35 = vpop.f32.mrb[17].mxu0  ;;  %v1316_v40 = vpop.f32.mrb[18].mxu1 }
 0x13d   : > { %v2060_v36 = vadd.f32 %v3203_v29, %v1984_v24  ;;  %v1986_v38 = vmul.f32 %v3192_v23, %v1910_v25  ;;  %v1508_v39 = vadd.f32 %v1507_v35, %v1314_v34  ;;  %v1509_v41 = vpop.f32.mrb[18].mxu0  ;;  %v1318_v47 = vpop.f32.mrb[19].mxu1 }
 0x13e   : > { %v2187_v42 = vadd.f32 %v2123_v22, %v2059_v30  ;;  %v2061_v43 = vadd.f32 %v3200_v26, %v1985_v32  ;;  %v1847_v45 = vadd.f32 %v3178_v5, %v1506_v33  ;;  %v1510_v46 = vadd.f32 %v1509_v41, %v1316_v40  ;;  %v1511_v48 = vpop.f32.mrb[19].mxu0 }
 0x13f   : > { %v2188_v49 = vadd.f32 %v2124_v31, %v2060_v36  ;;  %v2062_v50 = vadd.f32 %v3203_v29, %v1986_v38  ;;  %v1848_v51 = vadd.f32 %v3183_v9, %v1508_v39  ;;  %v1512_v52 = vadd.f32 %v1511_v48, %v1318_v47  ;;  %v2131_v39 = vld [vmem:[%s3198_s26 + $0xa0] sm:$0xff] }
 0x140   : > { %2251 = vst [vmem:[%s3216_s29 + $0x60] sm:$0xff] %v2187_v42  ;;  %v2189_v53 = vadd.f32 %v2125_v37, %v2061_v43  ;;  %v1911_v54 = vmax.f32 %v1847_v45, 0.0  ;;  %v1849_v55 = vadd.f32 %v3178_v5, %v1510_v46  ;;  %v2132_v45 = vld [vmem:[%s3198_s26 + $0xa8] sm:$0xff] }
 0x141   : > { %2252 = vst [vmem:[%s3216_s29 + $0x68] sm:$0xff] %v2188_v49  ;;  %v2190_v56 = vadd.f32 %v2126_v44, %v2062_v50  ;;  %v1912_v57 = vmax.f32 %v1848_v51, 0.0  ;;  %v1850_v58 = vadd.f32 %v3183_v9, %v1512_v52  ;;  %v2133_v51 = vld [vmem:[%s3198_s26 + $0xb0] sm:$0xff] }
 0x142   : > { %2253 = vst [vmem:[%s3216_s29 + $0x70] sm:$0xff] %v2189_v53  ;;  %v1987_v59 = vmul.f32 %v3189_v18, %v1911_v54  ;;  %v1913_v60 = vmax.f32 %v1849_v55, 0.0  ;;  %v1322_v0 = vpop.f32.mrb[20].mxu1 }
 0x143   : > { %2254 = vst [vmem:[%s3216_s29 + $0x78] sm:$0xff] %v2190_v56  ;;  %v1988_v62 = vmul.f32 %v3192_v23, %v1912_v57  ;;  %v1914_v63 = vmax.f32 %v1850_v58, 0.0  ;;  %v1515_v1 = vpop.f32.mrb[20].mxu0  ;;  %v1324_v7 = vpop.f32.mrb[21].mxu1  ;;  %v2134_v58 = vld [vmem:[%s3198_s26 + $0xb8] sm:$0xff] }
 0x144   : > { %v2063_v2 = vadd.f32 %v3200_v26, %v1987_v59  ;;  %v1989_v4 = vmul.f32 %v3189_v18, %v1913_v60  ;;  %v1516_v6 = vadd.f32 %v1515_v1, %v1322_v0  ;;  %v1517_v8 = vpop.f32.mrb[21].mxu0  ;;  %v1326_v14 = vpop.f32.mrb[22].mxu1 }
 0x145   : > { %v2064_v10 = vadd.f32 %v3203_v29, %v1988_v62  ;;  %v1990_v12 = vmul.f32 %v3192_v23, %v1914_v63  ;;  %v1518_v13 = vadd.f32 %v1517_v8, %v1324_v7  ;;  %v1519_v15 = vpop.f32.mrb[22].mxu0  ;;  %v1328_v22 = vpop.f32.mrb[23].mxu1 }
 0x146   : > { %v2191_v16 = vadd.f32 %v2127_v61, %v2063_v2  ;;  %v2065_v17 = vadd.f32 %v3200_v26, %v1989_v4  ;;  %v1851_v20 = vadd.f32 %v3178_v5, %v1516_v6  ;;  %v1520_v21 = vadd.f32 %v1519_v15, %v1326_v14  ;;  %v1521_v24 = vpop.f32.mrb[23].mxu0 }
 0x147   : > { %v2192_v25 = vadd.f32 %v2128_v3, %v2064_v10  ;;  %v2066_v27 = vadd.f32 %v3203_v29, %v1990_v12  ;;  %v1852_v28 = vadd.f32 %v3183_v9, %v1518_v13  ;;  %v1522_v30 = vadd.f32 %v1521_v24, %v1328_v22  ;;  %v2135_v13 = vld [vmem:[%s3198_s26 + $0xc0] sm:$0xff] }
 0x148   : > { %2255 = vst [vmem:[%s3216_s29 + $0x80] sm:$0xff] %v2191_v16  ;;  %v2193_v31 = vadd.f32 %v2129_v11, %v2065_v17  ;;  %v1915_v32 = vmax.f32 %v1851_v20, 0.0  ;;  %v1853_v33 = vadd.f32 %v3178_v5, %v1520_v21  ;;  %v2136_v20 = vld [vmem:[%s3198_s26 + $0xc8] sm:$0xff] }
 0x149   : > { %2256 = vst [vmem:[%s3216_s29 + $0x88] sm:$0xff] %v2192_v25  ;;  %v2194_v34 = vadd.f32 %v2130_v19, %v2066_v27  ;;  %v1916_v35 = vmax.f32 %v1852_v28, 0.0  ;;  %v1854_v36 = vadd.f32 %v3183_v9, %v1522_v30  ;;  %v2137_v28 = vld [vmem:[%s3198_s26 + $0xd0] sm:$0xff] }
 0x14a   : > { %2257 = vst [vmem:[%s3216_s29 + $0x90] sm:$0xff] %v2193_v31  ;;  %v1991_v37 = vmul.f32 %v3189_v18, %v1915_v32  ;;  %v1917_v38 = vmax.f32 %v1853_v33, 0.0  ;;  %v1332_v42 = vpop.f32.mrb[24].mxu1 }
 0x14b   : > { %2258 = vst [vmem:[%s3216_s29 + $0x98] sm:$0xff] %v2194_v34  ;;  %v1992_v40 = vmul.f32 %v3192_v23, %v1916_v35  ;;  %v1918_v41 = vmax.f32 %v1854_v36, 0.0  ;;  %v1525_v43 = vpop.f32.mrb[24].mxu0  ;;  %v1334_v48 = vpop.f32.mrb[25].mxu1  ;;  %v2138_v36 = vld [vmem:[%s3198_s26 + $0xd8] sm:$0xff] }
 0x14c   : > { %v2067_v44 = vadd.f32 %v3200_v26, %v1991_v37  ;;  %v1993_v46 = vmul.f32 %v3189_v18, %v1917_v38  ;;  %v1526_v47 = vadd.f32 %v1525_v43, %v1332_v42  ;;  %v1527_v49 = vpop.f32.mrb[25].mxu0  ;;  %v1336_v54 = vpop.f32.mrb[26].mxu1 }
 0x14d   : > { %v2068_v50 = vadd.f32 %v3203_v29, %v1992_v40  ;;  %v1994_v52 = vmul.f32 %v3192_v23, %v1918_v41  ;;  %v1528_v53 = vadd.f32 %v1527_v49, %v1334_v48  ;;  %v1529_v55 = vpop.f32.mrb[26].mxu0  ;;  %v1338_v61 = vpop.f32.mrb[27].mxu1 }
 0x14e   : > { %v2195_v56 = vadd.f32 %v2131_v39, %v2067_v44  ;;  %v2069_v57 = vadd.f32 %v3200_v26, %v1993_v46  ;;  %v1855_v59 = vadd.f32 %v3178_v5, %v1526_v47  ;;  %v1530_v60 = vadd.f32 %v1529_v55, %v1336_v54  ;;  %v1531_v62 = vpop.f32.mrb[27].mxu0 }
 0x14f   : > { %v2196_v63 = vadd.f32 %v2132_v45, %v2068_v50  ;;  %v2070_v0 = vadd.f32 %v3203_v29, %v1994_v52  ;;  %v1856_v1 = vadd.f32 %v3183_v9, %v1528_v53  ;;  %v1532_v2 = vadd.f32 %v1531_v62, %v1338_v61  ;;  %v2139_v53 = vld [vmem:[%s3198_s26 + $0xe0] sm:$0xff] }
 0x150   : > { %2259 = vst [vmem:[%s3216_s29 + $0xa0] sm:$0xff] %v2195_v56  ;;  %v2197_v3 = vadd.f32 %v2133_v51, %v2069_v57  ;;  %v1919_v4 = vmax.f32 %v1855_v59, 0.0  ;;  %v1857_v6 = vadd.f32 %v3178_v5, %v1530_v60  ;;  %v2140_v59 = vld [vmem:[%s3198_s26 + $0xe8] sm:$0xff] }
 0x151   : > { %2260 = vst [vmem:[%s3216_s29 + $0xa8] sm:$0xff] %v2196_v63  ;;  %v2198_v7 = vadd.f32 %v2134_v58, %v2070_v0  ;;  %v1920_v8 = vmax.f32 %v1856_v1, 0.0  ;;  %v1858_v10 = vadd.f32 %v3183_v9, %v1532_v2  ;;  %v2141_v1 = vld [vmem:[%s3198_s26 + $0xf0] sm:$0xff] }
 0x152   : > { %2261 = vst [vmem:[%s3216_s29 + $0xb0] sm:$0xff] %v2197_v3  ;;  %v1995_v11 = vmul.f32 %v3189_v18, %v1919_v4  ;;  %v1921_v12 = vmax.f32 %v1857_v6, 0.0  ;;  %v1342_v16 = vpop.f32.mrb[28].mxu1 }
 0x153   : > { %2262 = vst [vmem:[%s3216_s29 + $0xb8] sm:$0xff] %v2198_v7  ;;  %v1996_v14 = vmul.f32 %v3192_v23, %v1920_v8  ;;  %v1922_v15 = vmax.f32 %v1858_v10, 0.0  ;;  %v1535_v17 = vpop.f32.mrb[28].mxu0  ;;  %v1344_v24 = vpop.f32.mrb[29].mxu1  ;;  %v2142_v10 = vld [vmem:[%s3198_s26 + $0xf8] sm:$0xff] }
 0x154   : > { %v2071_v19 = vadd.f32 %v3200_v26, %v1995_v11  ;;  %v1997_v21 = vmul.f32 %v3189_v18, %v1921_v12  ;;  %v1536_v22 = vadd.f32 %v1535_v17, %v1342_v16  ;;  %v1537_v25 = vpop.f32.mrb[29].mxu0  ;;  %v1346_v32 = vpop.f32.mrb[30].mxu1 }
 0x155   : > { %v2072_v27 = vadd.f32 %v3203_v29, %v1996_v14  ;;  %v1998_v30 = vmul.f32 %v3192_v23, %v1922_v15  ;;  %v1538_v31 = vadd.f32 %v1537_v25, %v1344_v24  ;;  %v1539_v33 = vpop.f32.mrb[30].mxu0  ;;  %v1348_v39 = vpop.f32.mrb[31].mxu1 }
 0x156   : > { %v2199_v34 = vadd.f32 %v2135_v13, %v2071_v19  ;;  %v2073_v35 = vadd.f32 %v3200_v26, %v1997_v21  ;;  %v1859_v37 = vadd.f32 %v3178_v5, %v1536_v22  ;;  %v1540_v38 = vadd.f32 %v1539_v33, %v1346_v32  ;;  %v1541_v40 = vpop.f32.mrb[31].mxu0 }
 0x157   : > { %v2200_v41 = vadd.f32 %v2136_v20, %v2072_v27  ;;  %v2074_v42 = vadd.f32 %v3203_v29, %v1998_v30  ;;  %v1860_v43 = vadd.f32 %v3183_v9, %v1538_v31  ;;  %v1542_v44 = vadd.f32 %v1541_v40, %v1348_v39  ;;  %v2143_v31 = vld [vmem:[%s3198_s26 + $0x100] sm:$0xff] }
 0x158   : > { %2263 = vst [vmem:[%s3216_s29 + $0xc0] sm:$0xff] %v2199_v34  ;;  %v2201_v45 = vadd.f32 %v2137_v28, %v2073_v35  ;;  %v1923_v46 = vmax.f32 %v1859_v37, 0.0  ;;  %v1861_v47 = vadd.f32 %v3178_v5, %v1540_v38  ;;  %v2144_v37 = vld [vmem:[%s3198_s26 + $0x108] sm:$0xff] }
 0x159   : > { %2264 = vst [vmem:[%s3216_s29 + $0xc8] sm:$0xff] %v2200_v41  ;;  %v2202_v48 = vadd.f32 %v2138_v36, %v2074_v42  ;;  %v1924_v49 = vmax.f32 %v1860_v43, 0.0  ;;  %v1862_v50 = vadd.f32 %v3183_v9, %v1542_v44  ;;  %v2145_v43 = vld [vmem:[%s3198_s26 + $0x110] sm:$0xff] }
 0x15a   : > { %2265 = vst [vmem:[%s3216_s29 + $0xd0] sm:$0xff] %v2201_v45  ;;  %v1999_v51 = vmul.f32 %v3189_v18, %v1923_v46  ;;  %v1925_v52 = vmax.f32 %v1861_v47, 0.0  ;;  %v1352_v56 = vpop.f32.mrb[32].mxu1 }
 0x15b   : > { %2266 = vst [vmem:[%s3216_s29 + $0xd8] sm:$0xff] %v2202_v48  ;;  %v2000_v54 = vmul.f32 %v3192_v23, %v1924_v49  ;;  %v1926_v55 = vmax.f32 %v1862_v50, 0.0  ;;  %v1545_v57 = vpop.f32.mrb[32].mxu0  ;;  %v1354_v62 = vpop.f32.mrb[33].mxu1  ;;  %v2146_v50 = vld [vmem:[%s3198_s26 + $0x118] sm:$0xff] }
 0x15c   : > { %v2075_v58 = vadd.f32 %v3200_v26, %v1999_v51  ;;  %v2001_v60 = vmul.f32 %v3189_v18, %v1925_v52  ;;  %v1546_v61 = vadd.f32 %v1545_v57, %v1352_v56  ;;  %v1547_v63 = vpop.f32.mrb[33].mxu0  ;;  %v1356_v4 = vpop.f32.mrb[34].mxu1 }
 0x15d   : > { %v2076_v0 = vadd.f32 %v3203_v29, %v2000_v54  ;;  %v2002_v2 = vmul.f32 %v3192_v23, %v1926_v55  ;;  %v1548_v3 = vadd.f32 %v1547_v63, %v1354_v62  ;;  %v1549_v6 = vpop.f32.mrb[34].mxu0  ;;  %v1358_v13 = vpop.f32.mrb[35].mxu1 }
 0x15e   : > { %v2203_v7 = vadd.f32 %v2139_v53, %v2075_v58  ;;  %v2077_v8 = vadd.f32 %v3200_v26, %v2001_v60  ;;  %v1863_v11 = vadd.f32 %v3178_v5, %v1546_v61  ;;  %v1550_v12 = vadd.f32 %v1549_v6, %v1356_v4  ;;  %v1551_v14 = vpop.f32.mrb[35].mxu0 }
 0x15f   : > { %v2204_v15 = vadd.f32 %v2140_v59, %v2076_v0  ;;  %v2078_v16 = vadd.f32 %v3203_v29, %v2002_v2  ;;  %v1864_v17 = vadd.f32 %v3183_v9, %v1548_v3  ;;  %v1552_v19 = vadd.f32 %v1551_v14, %v1358_v13  ;;  %v2147_v3 = vld [vmem:[%s3198_s26 + $0x120] sm:$0xff] }
 0x160   : > { %2267 = vst [vmem:[%s3216_s29 + $0xe0] sm:$0xff] %v2203_v7  ;;  %v2205_v20 = vadd.f32 %v2141_v1, %v2077_v8  ;;  %v1927_v21 = vmax.f32 %v1863_v11, 0.0  ;;  %v1865_v22 = vadd.f32 %v3178_v5, %v1550_v12  ;;  %v2148_v11 = vld [vmem:[%s3198_s26 + $0x128] sm:$0xff] }
 0x161   : > { %2268 = vst [vmem:[%s3216_s29 + $0xe8] sm:$0xff] %v2204_v15  ;;  %v2206_v24 = vadd.f32 %v2142_v10, %v2078_v16  ;;  %v1928_v25 = vmax.f32 %v1864_v17, 0.0  ;;  %v1866_v27 = vadd.f32 %v3183_v9, %v1552_v19  ;;  %v2149_v17 = vld [vmem:[%s3198_s26 + $0x130] sm:$0xff] }
 0x162   : > { %2269 = vst [vmem:[%s3216_s29 + $0xf0] sm:$0xff] %v2205_v20  ;;  %v2003_v28 = vmul.f32 %v3189_v18, %v1927_v21  ;;  %v1929_v30 = vmax.f32 %v1865_v22, 0.0  ;;  %v1362_v34 = vpop.f32.mrb[36].mxu1 }
 0x163   : > { %2270 = vst [vmem:[%s3216_s29 + $0xf8] sm:$0xff] %v2206_v24  ;;  %v2004_v32 = vmul.f32 %v3192_v23, %v1928_v25  ;;  %v1930_v33 = vmax.f32 %v1866_v27, 0.0  ;;  %v1555_v35 = vpop.f32.mrb[36].mxu0  ;;  %v1364_v40 = vpop.f32.mrb[37].mxu1  ;;  %v2150_v27 = vld [vmem:[%s3198_s26 + $0x138] sm:$0xff] }
 0x164   : > { %v2079_v36 = vadd.f32 %v3200_v26, %v2003_v28  ;;  %v2005_v38 = vmul.f32 %v3189_v18, %v1929_v30  ;;  %v1556_v39 = vadd.f32 %v1555_v35, %v1362_v34  ;;  %v1557_v41 = vpop.f32.mrb[37].mxu0  ;;  %v1366_v46 = vpop.f32.mrb[38].mxu1 }
 0x165   : > { %v2080_v42 = vadd.f32 %v3203_v29, %v2004_v32  ;;  %v2006_v44 = vmul.f32 %v3192_v23, %v1930_v33  ;;  %v1558_v45 = vadd.f32 %v1557_v41, %v1364_v40  ;;  %v1559_v47 = vpop.f32.mrb[38].mxu0  ;;  %v1368_v53 = vpop.f32.mrb[39].mxu1 }
 0x166   : > { %v2207_v48 = vadd.f32 %v2143_v31, %v2079_v36  ;;  %v2081_v49 = vadd.f32 %v3200_v26, %v2005_v38  ;;  %v1867_v51 = vadd.f32 %v3178_v5, %v1556_v39  ;;  %v1560_v52 = vadd.f32 %v1559_v47, %v1366_v46  ;;  %v1561_v54 = vpop.f32.mrb[39].mxu0 }
 0x167   : > { %v2208_v55 = vadd.f32 %v2144_v37, %v2080_v42  ;;  %v2082_v56 = vadd.f32 %v3203_v29, %v2006_v44  ;;  %v1868_v57 = vadd.f32 %v3183_v9, %v1558_v45  ;;  %v1562_v58 = vadd.f32 %v1561_v54, %v1368_v53  ;;  %v2151_v45 = vld [vmem:[%s3198_s26 + $0x140] sm:$0xff] }
 0x168   : > { %2271 = vst [vmem:[%s3216_s29 + $0x100] sm:$0xff] %v2207_v48  ;;  %v2209_v59 = vadd.f32 %v2145_v43, %v2081_v49  ;;  %v1931_v60 = vmax.f32 %v1867_v51, 0.0  ;;  %v1869_v61 = vadd.f32 %v3178_v5, %v1560_v52  ;;  %v2152_v51 = vld [vmem:[%s3198_s26 + $0x148] sm:$0xff] }
 0x169   : > { %2272 = vst [vmem:[%s3216_s29 + $0x108] sm:$0xff] %v2208_v55  ;;  %v2210_v62 = vadd.f32 %v2146_v50, %v2082_v56  ;;  %v1932_v63 = vmax.f32 %v1868_v57, 0.0  ;;  %v1870_v0 = vadd.f32 %v3183_v9, %v1562_v58  ;;  %v2153_v57 = vld [vmem:[%s3198_s26 + $0x150] sm:$0xff] }
 0x16a   : > { %2273 = vst [vmem:[%s3216_s29 + $0x110] sm:$0xff] %v2209_v59  ;;  %v2007_v1 = vmul.f32 %v3189_v18, %v1931_v60  ;;  %v1933_v2 = vmax.f32 %v1869_v61, 0.0  ;;  %v1372_v7 = vpop.f32.mrb[40].mxu1 }
 0x16b   : > { %2274 = vst [vmem:[%s3216_s29 + $0x118] sm:$0xff] %v2210_v62  ;;  %v2008_v4 = vmul.f32 %v3192_v23, %v1932_v63  ;;  %v1934_v6 = vmax.f32 %v1870_v0, 0.0  ;;  %v1565_v8 = vpop.f32.mrb[40].mxu0  ;;  %v1374_v14 = vpop.f32.mrb[41].mxu1  ;;  %v2154_v0 = vld [vmem:[%s3198_s26 + $0x158] sm:$0xff] }
 0x16c   : > { %v2083_v10 = vadd.f32 %v3200_v26, %v2007_v1  ;;  %v2009_v12 = vmul.f32 %v3189_v18, %v1933_v2  ;;  %v1566_v13 = vadd.f32 %v1565_v8, %v1372_v7  ;;  %v1567_v15 = vpop.f32.mrb[41].mxu0  ;;  %v1376_v21 = vpop.f32.mrb[42].mxu1 }
 0x16d   : > { %v2084_v16 = vadd.f32 %v3203_v29, %v2008_v4  ;;  %v2010_v19 = vmul.f32 %v3192_v23, %v1934_v6  ;;  %v1568_v20 = vadd.f32 %v1567_v15, %v1374_v14  ;;  %v1569_v22 = vpop.f32.mrb[42].mxu0  ;;  %v1378_v31 = vpop.f32.mrb[43].mxu1 }
 0x16e   : > { %v2211_v24 = vadd.f32 %v2147_v3, %v2083_v10  ;;  %v2085_v25 = vadd.f32 %v3200_v26, %v2009_v12  ;;  %v1871_v28 = vadd.f32 %v3178_v5, %v1566_v13  ;;  %v1570_v30 = vadd.f32 %v1569_v22, %v1376_v21  ;;  %v1571_v32 = vpop.f32.mrb[43].mxu0 }
 0x16f   : > { %v2212_v33 = vadd.f32 %v2148_v11, %v2084_v16  ;;  %v2086_v34 = vadd.f32 %v3203_v29, %v2010_v19  ;;  %v1872_v35 = vadd.f32 %v3183_v9, %v1568_v20  ;;  %v1572_v36 = vadd.f32 %v1571_v32, %v1378_v31  ;;  %v2155_v20 = vld [vmem:[%s3198_s26 + $0x160] sm:$0xff] }
 0x170   : > { %2275 = vst [vmem:[%s3216_s29 + $0x120] sm:$0xff] %v2211_v24  ;;  %v2213_v37 = vadd.f32 %v2149_v17, %v2085_v25  ;;  %v1935_v38 = vmax.f32 %v1871_v28, 0.0  ;;  %v1873_v39 = vadd.f32 %v3178_v5, %v1570_v30  ;;  %v2156_v28 = vld [vmem:[%s3198_s26 + $0x168] sm:$0xff] }
 0x171   : > { %2276 = vst [vmem:[%s3216_s29 + $0x128] sm:$0xff] %v2212_v33  ;;  %v2214_v40 = vadd.f32 %v2150_v27, %v2086_v34  ;;  %v1936_v41 = vmax.f32 %v1872_v35, 0.0  ;;  %v1874_v42 = vadd.f32 %v3183_v9, %v1572_v36  ;;  %v2157_v35 = vld [vmem:[%s3198_s26 + $0x170] sm:$0xff] }
 0x172   : > { %2277 = vst [vmem:[%s3216_s29 + $0x130] sm:$0xff] %v2213_v37  ;;  %v2011_v43 = vmul.f32 %v3189_v18, %v1935_v38  ;;  %v1937_v44 = vmax.f32 %v1873_v39, 0.0  ;;  %v1382_v48 = vpop.f32.mrb[44].mxu1 }
 0x173   : > { %2278 = vst [vmem:[%s3216_s29 + $0x138] sm:$0xff] %v2214_v40  ;;  %v2012_v46 = vmul.f32 %v3192_v23, %v1936_v41  ;;  %v1938_v47 = vmax.f32 %v1874_v42, 0.0  ;;  %v1575_v49 = vpop.f32.mrb[44].mxu0  ;;  %v1384_v54 = vpop.f32.mrb[45].mxu1  ;;  %v2158_v42 = vld [vmem:[%s3198_s26 + $0x178] sm:$0xff] }
 0x174   : > { %v2087_v50 = vadd.f32 %v3200_v26, %v2011_v43  ;;  %v2013_v52 = vmul.f32 %v3189_v18, %v1937_v44  ;;  %v1576_v53 = vadd.f32 %v1575_v49, %v1382_v48  ;;  %v1577_v55 = vpop.f32.mrb[45].mxu0  ;;  %v1386_v60 = vpop.f32.mrb[46].mxu1 }
 0x175   : > { %v2088_v56 = vadd.f32 %v3203_v29, %v2012_v46  ;;  %v2014_v58 = vmul.f32 %v3192_v23, %v1938_v47  ;;  %v1578_v59 = vadd.f32 %v1577_v55, %v1384_v54  ;;  %v1579_v61 = vpop.f32.mrb[46].mxu0  ;;  %v1388_v3 = vpop.f32.mrb[47].mxu1 }
 0x176   : > { %v2215_v62 = vadd.f32 %v2151_v45, %v2087_v50  ;;  %v2089_v63 = vadd.f32 %v3200_v26, %v2013_v52  ;;  %v1875_v1 = vadd.f32 %v3178_v5, %v1576_v53  ;;  %v1580_v2 = vadd.f32 %v1579_v61, %v1386_v60  ;;  %v1581_v4 = vpop.f32.mrb[47].mxu0 }
 0x177   : > { %v2216_v6 = vadd.f32 %v2152_v51, %v2088_v56  ;;  %v2090_v7 = vadd.f32 %v3203_v29, %v2014_v58  ;;  %v1876_v8 = vadd.f32 %v3183_v9, %v1578_v59  ;;  %v1582_v10 = vadd.f32 %v1581_v4, %v1388_v3  ;;  %v2159_v59 = vld [vmem:[%s3198_s26 + $0x180] sm:$0xff] }
 0x178   : > { %2279 = vst [vmem:[%s3216_s29 + $0x140] sm:$0xff] %v2215_v62  ;;  %v2217_v11 = vadd.f32 %v2153_v57, %v2089_v63  ;;  %v1939_v12 = vmax.f32 %v1875_v1, 0.0  ;;  %v1877_v13 = vadd.f32 %v3178_v5, %v1580_v2  ;;  %v2160_v1 = vld [vmem:[%s3198_s26 + $0x188] sm:$0xff] }
 0x179   : > { %2280 = vst [vmem:[%s3216_s29 + $0x148] sm:$0xff] %v2216_v6  ;;  %v2218_v14 = vadd.f32 %v2154_v0, %v2090_v7  ;;  %v1940_v15 = vmax.f32 %v1876_v8, 0.0  ;;  %v1878_v16 = vadd.f32 %v3183_v9, %v1582_v10  ;;  %v2161_v8 = vld [vmem:[%s3198_s26 + $0x190] sm:$0xff] }
 0x17a   : > { %2281 = vst [vmem:[%s3216_s29 + $0x150] sm:$0xff] %v2217_v11  ;;  %v2015_v17 = vmul.f32 %v3189_v18, %v1939_v12  ;;  %v1941_v19 = vmax.f32 %v1877_v13, 0.0  ;;  %v1392_v24 = vpop.f32.mrb[48].mxu1 }
 0x17b   : > { %2282 = vst [vmem:[%s3216_s29 + $0x158] sm:$0xff] %v2218_v14  ;;  %v2016_v21 = vmul.f32 %v3192_v23, %v1940_v15  ;;  %v1942_v22 = vmax.f32 %v1878_v16, 0.0  ;;  %v1585_v25 = vpop.f32.mrb[48].mxu0  ;;  %v1394_v32 = vpop.f32.mrb[49].mxu1  ;;  %v2162_v16 = vld [vmem:[%s3198_s26 + $0x198] sm:$0xff] }
 0x17c   : > { %v2091_v27 = vadd.f32 %v3200_v26, %v2015_v17  ;;  %v2017_v30 = vmul.f32 %v3189_v18, %v1941_v19  ;;  %v1586_v31 = vadd.f32 %v1585_v25, %v1392_v24  ;;  %v1587_v33 = vpop.f32.mrb[49].mxu0  ;;  %v1396_v38 = vpop.f32.mrb[50].mxu1 }
 0x17d   : > { %v2092_v34 = vadd.f32 %v3203_v29, %v2016_v21  ;;  %v2018_v36 = vmul.f32 %v3192_v23, %v1942_v22  ;;  %v1588_v37 = vadd.f32 %v1587_v33, %v1394_v32  ;;  %v1589_v39 = vpop.f32.mrb[50].mxu0  ;;  %v1398_v45 = vpop.f32.mrb[51].mxu1 }
 0x17e   : > { %v2219_v40 = vadd.f32 %v2155_v20, %v2091_v27  ;;  %v2093_v41 = vadd.f32 %v3200_v26, %v2017_v30  ;;  %v1879_v43 = vadd.f32 %v3178_v5, %v1586_v31  ;;  %v1590_v44 = vadd.f32 %v1589_v39, %v1396_v38  ;;  %v1591_v46 = vpop.f32.mrb[51].mxu0 }
 0x17f   : > { %v2220_v47 = vadd.f32 %v2156_v28, %v2092_v34  ;;  %v2094_v48 = vadd.f32 %v3203_v29, %v2018_v36  ;;  %v1880_v49 = vadd.f32 %v3183_v9, %v1588_v37  ;;  %v1592_v50 = vadd.f32 %v1591_v46, %v1398_v45  ;;  %v2163_v37 = vld [vmem:[%s3198_s26 + $0x1a0] sm:$0xff] }
 0x180   : > { %2283 = vst [vmem:[%s3216_s29 + $0x160] sm:$0xff] %v2219_v40  ;;  %v2221_v51 = vadd.f32 %v2157_v35, %v2093_v41  ;;  %v1943_v52 = vmax.f32 %v1879_v43, 0.0  ;;  %v1881_v53 = vadd.f32 %v3178_v5, %v1590_v44  ;;  %v2164_v43 = vld [vmem:[%s3198_s26 + $0x1a8] sm:$0xff] }
 0x181   : > { %2284 = vst [vmem:[%s3216_s29 + $0x168] sm:$0xff] %v2220_v47  ;;  %v2222_v54 = vadd.f32 %v2158_v42, %v2094_v48  ;;  %v1944_v55 = vmax.f32 %v1880_v49, 0.0  ;;  %v1882_v56 = vadd.f32 %v3183_v9, %v1592_v50  ;;  %v2165_v49 = vld [vmem:[%s3198_s26 + $0x1b0] sm:$0xff] }
 0x182   : > { %2285 = vst [vmem:[%s3216_s29 + $0x170] sm:$0xff] %v2221_v51  ;;  %v2019_v57 = vmul.f32 %v3189_v18, %v1943_v52  ;;  %v1945_v58 = vmax.f32 %v1881_v53, 0.0  ;;  %v1402_v62 = vpop.f32.mrb[52].mxu1 }
 0x183   : > { %2286 = vst [vmem:[%s3216_s29 + $0x178] sm:$0xff] %v2222_v54  ;;  %v2020_v60 = vmul.f32 %v3192_v23, %v1944_v55  ;;  %v1946_v61 = vmax.f32 %v1882_v56, 0.0  ;;  %v1595_v63 = vpop.f32.mrb[52].mxu0  ;;  %v1404_v4 = vpop.f32.mrb[53].mxu1  ;;  %v2166_v56 = vld [vmem:[%s3198_s26 + $0x1b8] sm:$0xff] }
 0x184   : > { %v2095_v0 = vadd.f32 %v3200_v26, %v2019_v57  ;;  %v2021_v2 = vmul.f32 %v3189_v18, %v1945_v58  ;;  %v1596_v3 = vadd.f32 %v1595_v63, %v1402_v62  ;;  %v1597_v6 = vpop.f32.mrb[53].mxu0  ;;  %v1406_v12 = vpop.f32.mrb[54].mxu1 }
 0x185   : > { %v2096_v7 = vadd.f32 %v3203_v29, %v2020_v60  ;;  %v2022_v10 = vmul.f32 %v3192_v23, %v1946_v61  ;;  %v1598_v11 = vadd.f32 %v1597_v6, %v1404_v4  ;;  %v1599_v13 = vpop.f32.mrb[54].mxu0  ;;  %v1408_v20 = vpop.f32.mrb[55].mxu1 }
 0x186   : > { %v2223_v14 = vadd.f32 %v2159_v59, %v2095_v0  ;;  %v2097_v15 = vadd.f32 %v3200_v26, %v2021_v2  ;;  %v1883_v17 = vadd.f32 %v3178_v5, %v1596_v3  ;;  %v1600_v19 = vadd.f32 %v1599_v13, %v1406_v12  ;;  %v1601_v21 = vpop.f32.mrb[55].mxu0 }
 0x187   : > { %v2224_v22 = vadd.f32 %v2160_v1, %v2096_v7  ;;  %v2098_v24 = vadd.f32 %v3203_v29, %v2022_v10  ;;  %v1884_v25 = vadd.f32 %v3183_v9, %v1598_v11  ;;  %v1602_v27 = vadd.f32 %v1601_v21, %v1408_v20  ;;  %v2167_v11 = vld [vmem:[%s3198_s26 + $0x1c0] sm:$0xff] }
 0x188   : > { %2287 = vst [vmem:[%s3216_s29 + $0x180] sm:$0xff] %v2223_v14  ;;  %v2225_v28 = vadd.f32 %v2161_v8, %v2097_v15  ;;  %v1947_v30 = vmax.f32 %v1883_v17, 0.0  ;;  %v1885_v31 = vadd.f32 %v3178_v5, %v1600_v19  ;;  %v2168_v17 = vld [vmem:[%s3198_s26 + $0x1c8] sm:$0xff] }
 0x189   : > { %2288 = vst [vmem:[%s3216_s29 + $0x188] sm:$0xff] %v2224_v22  ;;  %v2226_v32 = vadd.f32 %v2162_v16, %v2098_v24  ;;  %v1948_v33 = vmax.f32 %v1884_v25, 0.0  ;;  %v1886_v34 = vadd.f32 %v3183_v9, %v1602_v27  ;;  %v2169_v25 = vld [vmem:[%s3198_s26 + $0x1d0] sm:$0xff] }
 0x18a   : > { %2289 = vst [vmem:[%s3216_s29 + $0x190] sm:$0xff] %v2225_v28  ;;  %v2023_v35 = vmul.f32 %v3189_v18, %v1947_v30  ;;  %v1949_v36 = vmax.f32 %v1885_v31, 0.0  ;;  %v1412_v40 = vpop.f32.mrb[56].mxu1 }
 0x18b   : > { %2290 = vst [vmem:[%s3216_s29 + $0x198] sm:$0xff] %v2226_v32  ;;  %v2024_v38 = vmul.f32 %v3192_v23, %v1948_v33  ;;  %v1950_v39 = vmax.f32 %v1886_v34, 0.0  ;;  %v1605_v41 = vpop.f32.mrb[56].mxu0  ;;  %v1414_v46 = vpop.f32.mrb[57].mxu1  ;;  %v2170_v34 = vld [vmem:[%s3198_s26 + $0x1d8] sm:$0xff] }
 0x18c   : > { %v2099_v42 = vadd.f32 %v3200_v26, %v2023_v35  ;;  %v2025_v44 = vmul.f32 %v3189_v18, %v1949_v36  ;;  %v1606_v45 = vadd.f32 %v1605_v41, %v1412_v40  ;;  %v1607_v47 = vpop.f32.mrb[57].mxu0  ;;  %v1416_v52 = vpop.f32.mrb[58].mxu1 }
 0x18d   : > { %v2100_v48 = vadd.f32 %v3203_v29, %v2024_v38  ;;  %v2026_v50 = vmul.f32 %v3192_v23, %v1950_v39  ;;  %v1608_v51 = vadd.f32 %v1607_v47, %v1414_v46  ;;  %v1609_v53 = vpop.f32.mrb[58].mxu0  ;;  %v1418_v59 = vpop.f32.mrb[59].mxu1 }
 0x18e   : > { %v2227_v54 = vadd.f32 %v2163_v37, %v2099_v42  ;;  %v2101_v55 = vadd.f32 %v3200_v26, %v2025_v44  ;;  %v1887_v57 = vadd.f32 %v3178_v5, %v1606_v45  ;;  %v1610_v58 = vadd.f32 %v1609_v53, %v1416_v52  ;;  %v1611_v60 = vpop.f32.mrb[59].mxu0 }
 0x18f   : > { %v2228_v61 = vadd.f32 %v2164_v43, %v2100_v48  ;;  %v2102_v62 = vadd.f32 %v3203_v29, %v2026_v50  ;;  %v1888_v63 = vadd.f32 %v3183_v9, %v1608_v51  ;;  %v1612_v0 = vadd.f32 %v1611_v60, %v1418_v59  ;;  %v2171_v51 = vld [vmem:[%s3198_s26 + $0x1e0] sm:$0xff]  ;;  %v2174_v60 = vld [vmem:[%s3198_s26 + $0x1f8] sm:$0xff] }
 0x190   : > { %2291 = vst [vmem:[%s3216_s29 + $0x1a0] sm:$0xff] %v2227_v54  ;;  %v2229_v1 = vadd.f32 %v2165_v49, %v2101_v55  ;;  %v1951_v2 = vmax.f32 %v1887_v57, 0.0  ;;  %v1889_v3 = vadd.f32 %v3178_v5, %v1610_v58  ;;  %v2172_v54 = vld [vmem:[%s3198_s26 + $0x1e8] sm:$0xff] }
 0x191   : > { %2292 = vst [vmem:[%s3216_s29 + $0x1a8] sm:$0xff] %v2228_v61  ;;  %v2230_v4 = vadd.f32 %v2166_v56, %v2102_v62  ;;  %v1952_v6 = vmax.f32 %v1888_v63, 0.0  ;;  %v1890_v7 = vadd.f32 %v3183_v9, %v1612_v0  ;;  %v2173_v56 = vld [vmem:[%s3198_s26 + $0x1f0] sm:$0xff] }
 0x192   : > { %2293 = vst [vmem:[%s3216_s29 + $0x1b0] sm:$0xff] %v2229_v1  ;;  %v2027_v8 = vmul.f32 %v3189_v18, %v1951_v2  ;;  %v1953_v10 = vmax.f32 %v1889_v3, 0.0  ;;  %v1422_v14 = vpop.f32.mrb[60].mxu1 }
 0x193   : > { %2294 = vst [vmem:[%s3216_s29 + $0x1b8] sm:$0xff] %v2230_v4  ;;  %v2028_v12 = vmul.f32 %v3192_v23, %v1952_v6  ;;  %v1954_v13 = vmax.f32 %v1890_v7, 0.0  ;;  %v1615_v15 = vpop.f32.mrb[60].mxu0  ;;  %v1424_v21 = vpop.f32.mrb[61].mxu1 }
 0x194   : > { %v2103_v16 = vadd.f32 %v3200_v26, %v2027_v8  ;;  %v2029_v19 = vmul.f32 %v3189_v18, %v1953_v10  ;;  %v1616_v20 = vadd.f32 %v1615_v15, %v1422_v14  ;;  %v1617_v22 = vpop.f32.mrb[61].mxu0  ;;  %v1426_v30 = vpop.f32.mrb[62].mxu1 }
 0x195   : > { %v2104_v24 = vadd.f32 %v3203_v29, %v2028_v12  ;;  %v2030_v27 = vmul.f32 %v3192_v23, %v1954_v13  ;;  %v1618_v28 = vadd.f32 %v1617_v22, %v1424_v21  ;;  %v1619_v31 = vpop.f32.mrb[62].mxu0  ;;  %v1428_v37 = vpop.f32.mrb[63].mxu1 }
 0x196   : > { %v2231_v32 = vadd.f32 %v2167_v11, %v2103_v16  ;;  %v2105_v33 = vadd.f32 %v3200_v26, %v2029_v19  ;;  %v1891_v35 = vadd.f32 %v3178_v5, %v1616_v20  ;;  %v1620_v36 = vadd.f32 %v1619_v31, %v1426_v30  ;;  %v1621_v38 = vpop.f32.mrb[63].mxu0 }
 0x197   : > { %v2232_v39 = vadd.f32 %v2168_v17, %v2104_v24  ;;  %v2106_v40 = vadd.f32 %v3203_v29, %v2030_v27  ;;  %v1892_v41 = vadd.f32 %v3183_v9, %v1618_v28  ;;  %v1622_v42 = vadd.f32 %v1621_v38, %v1428_v37 }
 0x198   : > { %2295 = vst [vmem:[%s3216_s29 + $0x1c0] sm:$0xff] %v2231_v32  ;;  %v2233_v43 = vadd.f32 %v2169_v25, %v2105_v33  ;;  %v1955_v44 = vmax.f32 %v1891_v35, 0.0  ;;  %v1893_v45 = vadd.f32 %v3178_v5, %v1620_v36 }
 0x199   : > { %2296 = vst [vmem:[%s3216_s29 + $0x1c8] sm:$0xff] %v2232_v39  ;;  %v2234_v46 = vadd.f32 %v2170_v34, %v2106_v40  ;;  %v1956_v47 = vmax.f32 %v1892_v41, 0.0  ;;  %v1894_v48 = vadd.f32 %v3183_v9, %v1622_v42 }
 0x19a   : > { %2297 = vst [vmem:[%s3216_s29 + $0x1d0] sm:$0xff] %v2233_v43  ;;  %v2031_v49 = vmul.f32 %v3189_v18, %v1955_v44  ;;  %v1957_v50 = vmax.f32 %v1893_v45, 0.0 }
 0x19b   : > { %2298 = vst [vmem:[%s3216_s29 + $0x1d8] sm:$0xff] %v2234_v46  ;;  %v2032_v52 = vmul.f32 %v3192_v23, %v1956_v47  ;;  %v1958_v53 = vmax.f32 %v1894_v48, 0.0 }
 0x19c   : > { %v2107_v5 = vadd.f32 %v3200_v26, %v2031_v49  ;;  %v2033_v55 = vmul.f32 %v3189_v18, %v1957_v50 }
 0x19d   : > { %v2108_v9 = vadd.f32 %v3203_v29, %v2032_v52  ;;  %v2034_v57 = vmul.f32 %v3192_v23, %v1958_v53 }
 0x19e   : > { %v2235_v58 = vadd.f32 %v2171_v51, %v2107_v5  ;;  %v2109_v59 = vadd.f32 %v3200_v26, %v2033_v55 }
 0x19f   : > { %v2236_v61 = vadd.f32 %v2172_v54, %v2108_v9  ;;  %v2110_v62 = vadd.f32 %v3203_v29, %v2034_v57 }
 0x1a0   : > { %2299 = vst [vmem:[%s3216_s29 + $0x1e0] sm:$0xff] %v2235_v58  ;;  %v2237_v63 = vadd.f32 %v2173_v56, %v2109_v59 }
 0x1a1   : > { %2300 = vst [vmem:[%s3216_s29 + $0x1e8] sm:$0xff] %v2236_v61  ;;  %v2238_v0 = vadd.f32 %v2174_v60, %v2110_v62 }
 0x1a2   : > { %2301 = vst [vmem:[%s3216_s29 + $0x1f0] sm:$0xff] %v2237_v63 }
 0x1a3   : > { %2302 = vst [vmem:[%s3216_s29 + $0x1f8] sm:$0xff] %v2238_v0 }
 0x1a4 PF: > { %s16_s23 = sadd.s32 1, %s2853_s23   ;;  %s3544_s21 = smov %s2849_s22 }
 0x1a5   : > { %p13_p5 = scmp.ge.s32.totalorder %s16_s23, 4   ;;  %s3545_s22 = smov %s3547_s24 }
 0x1a7   :  { %15 = sbr.rel (!%p13_p5) target bundleno = 2 (0x2), region = 88 }

// kernel: tile.114
= control target key start
LH: loop header
LB: loop body
LE: loop exit
PB: predicated region body
PF: predicated region fallthrough
CT: control target
= control target key end

     0   :  { %s22_s0 = inlined_call_operand.vmem [shape: f32[32], index: 0, kind: input, shape index: {}]   ;;  %s23_s1 = inlined_call_operand.vmem [shape: f32[4,32], index: 1, kind: output, shape index: {}]  }
   0x1   :  { %v4_v0 = vld [vmem:[%s22_s0] ss:$0 sm:$0xff] }
   0x2   :  { %5 = vst [vmem:[%s23_s1] sm:$0xf] %v4_v0 }

// kernel: tile.115
= control target key start
LH: loop header
LB: loop body
LE: loop exit
PB: predicated region body
PF: predicated region fallthrough
CT: control target
= control target key end

     0   :  { %vm7_vm0 = vcmask 261120   ;;  %s37_s8 = smov 32   ;;  %s38_s9 = smov 64   ;;  %vm13_vm1 = vcmask 1048320   ;;  %vm19_vm2 = vcmask 785920   ;;  %vm25_vm3 = vcmask 523520   ;;  %s55_s0 = inlined_call_operand.vmem [shape: f32[4,32], index: 0, kind: input, shape index: {}]   ;;  %s56_s1 = inlined_call_operand.vmem [shape: f32[1,128], index: 1, kind: output, shape index: {}]  }
   0x1   :  { %v4_v0 = vld [vmem:[%s55_s0] sm:$0xf]  ;;  %s36_s0 = smov 96  }
   0x2   :  { %5 = vst [vmem:[#allocation1] sm:$0xf] %v4_v0 }
   0x9   :  { %v10_v1 = vld [vmem:[#allocation1 + $0x3] sm:$0x1]   ;;  %v22_v2 = vld [vmem:[#allocation1 + $0x1] sm:$0x1]   ;;  %v6_v3 = vld [vmem:[#allocation1] sm:$0x1]  }
   0xa   :  { %11 = vrot.lane.b32.xlu0 %v10_v1, %s36_s0  ;;  %23 = vrot.lane.b32.xlu1 %v22_v2, %s37_s8  ;;  %v16_v4 = vld [vmem:[#allocation1 + $0x2] sm:$0x1]   ;;  %8 = vst.msk [vmem:[#allocation0] sm:$0x1] %vm7_vm0, %v6_v3  }
   0xe   :  { %17 = vrot.lane.b32.xlu0 %v16_v4, %s38_s9 }
  0x7c   :  { %v12_v5 = vpop.permute.xlu0 %11   ;;  %v24_v6 = vpop.permute.xlu1 %23  }
  0x7d   :  { %14 = vst.msk [vmem:[#allocation0] sm:$0x1] %vm13_vm1, %v12_v5  }
  0x80   :  { %v18_v7 = vpop.permute.xlu0 %17  }
  0x81   :  { %20 = vst.msk [vmem:[#allocation0] sm:$0x1] %vm19_vm2, %v18_v7  }
  0x82   :  { %26 = vst.msk [vmem:[#allocation0] sm:$0x1] %vm25_vm3, %v24_v6  }
  0x89   :  { %v30_v8 = vld [vmem:[#allocation0] sm:$0x1] }
  0x8a   :  { %32 = vst [vmem:[%s56_s1] sm:$0x1] %v30_v8 }

// kernel: fcn_forward.10
= control target key start
LH: loop header
LB: loop body
LE: loop exit
PB: predicated region body
PF: predicated region fallthrough
CT: control target
= control target key end

     0   :  { %s4799_s24 = smov 0   ;;  %s4801_s25 = smov 0   ;;  %s6018_s0 = inlined_call_operand.vmem [shape: bf16[2048,256], index: 0, kind: input, shape index: {}]   ;;  %s6019_s1 = inlined_call_operand.vmem [shape: bf16[256,128], index: 1, kind: input, shape index: {}]   ;;  %s6020_s2 = inlined_call_operand.vmem [shape: f32[1,128], index: 2, kind: input, shape index: {}]   ;;  %s6021_s3 = inlined_call_operand.vmem [shape: f32[1,128], index: 3, kind: input, shape index: {}]   ;;  %s6022_s4 = inlined_call_operand.vmem [shape: f32[1,128], index: 4, kind: input, shape index: {}]   ;;  %s6023_s5 = inlined_call_operand.vmem [shape: f32[128,4], index: 5, kind: input, shape index: {}]   ;;  %s6024_s6 = inlined_call_operand.vmem [shape: f32[1,4], index: 6, kind: input, shape index: {}]   ;;  %s6025_s7 = inlined_call_operand.vmem [shape: f32[2048,4], index: 7, kind: output, shape index: {}]  }
   0x1   :  { %s4803_s26 = smov 0  }
   0x2 LB: > { %s29_s27 = sadd.s32 1, %s4752_s25  ;;  %p3905_p0 = scmp.ge.s32.totalorder %s4756_s26, 1  ;;  %s4756_s26 = sphi %s4803_s26, %s17_s26   ;;  %s4752_s25 = sphi %s4801_s25, %s6027_s25   ;;  %s4748_s24 = sphi %s4799_s24, %s6026_s24  }
   0x3   : > { %p31_p1 = scmp.ge.s32.totalorder %s29_s27, 2  ;;  %p269_p2 = scmp.lt.s32.totalorder %s4756_s26, 3 }
   0x5   : > { %s6029_s27 = smov (%p31_p1, %s29_s27), 0  ;;  %p270_p3 = pnand %p3905_p0, %p269_p2 }
   0x6   : > { %v4519_v0 = vld [vmem:[%s6019_s1] sm:$0xff] (!%p270_p3)   ;;  %v4758_v1 = vmov (!%p270_p3), 0   ;;  %s3906_s30 = sshll.u32 (!%p270_p3), %s4748_s24, 7  ;;  %v4520_v2 = vld [vmem:[%s6019_s1 + $0x8] sm:$0xff] (!%p270_p3)   ;;  %v4521_v3 = vld [vmem:[%s6019_s1 + $0x10] sm:$0xff] (!%p270_p3)   ;;  %vm3685_vm0 = vcmask (!%p270_p3), 31744  }
   0x7   : > { %273 = sbr.rel (%p270_p3) target bundleno = 949 (0x3b5), region = 48  ;;  %1492 = vmatprep.subr.bf16.mxu0 (!%p270_p3), %v4758_v1  ;;  %4462 = vmatprep.subr.bf16.mxu1 (!%p270_p3), %v4758_v1  ;;  %p313_p4 = scmp.lt.s32.totalorder (!%p270_p3), %s3906_s30, 255  ;;  %v4522_v4 = vld [vmem:[%s6019_s1 + $0x18] sm:$0xff] (!%p270_p3)   ;;  %v4523_v5 = vld [vmem:[%s6019_s1 + $0x20] sm:$0xff] (!%p270_p3)   ;;  %v4524_v7 = vld [vmem:[%s6019_s1 + $0x28] sm:$0xff] (!%p270_p3)  }
   0x8   : > { %1493 = vmatpush1.bf16.msra.mxu0 (!%p270_p3), %v4519_v0  ;;  %4478 = vmatpush1.bf16.msra.mxu1 (!%p270_p3), %v4519_v0  ;;  %v4525_v8 = vld [vmem:[%s6019_s1 + $0x30] sm:$0xff] (!%p270_p3)   ;;  %v4526_v9 = vld [vmem:[%s6019_s1 + $0x38] sm:$0xff] (!%p270_p3)   ;;  %v4527_v10 = vld [vmem:[%s6019_s1 + $0x40] sm:$0xff] (!%p270_p3)  }
   0x9   : > { %1494 = vmatprep.subr.bf16.mxu0 (!%p270_p3), %v4758_v1  ;;  %4463 = vmatprep.subr.bf16.mxu1 (!%p270_p3), %v4758_v1  ;;  %v4528_v12 = vld [vmem:[%s6019_s1 + $0x48] sm:$0xff] (!%p270_p3)   ;;  %v4529_v13 = vld [vmem:[%s6019_s1 + $0x50] sm:$0xff] (!%p270_p3)   ;;  %v4530_v14 = vld [vmem:[%s6019_s1 + $0x58] sm:$0xff] (!%p270_p3)  }
   0xa   : > { %v4531_v15 = vld [vmem:[%s6019_s1 + $0x60] sm:$0xff] (!%p270_p3)   ;;  %v4532_v16 = vld [vmem:[%s6019_s1 + $0x68] sm:$0xff] (!%p270_p3)   ;;  %v4533_v17 = vld [vmem:[%s6019_s1 + $0x70] sm:$0xff] (!%p270_p3)  }
   0xb   : > { %v4534_v18 = vld [vmem:[%s6019_s1 + $0x78] sm:$0xff] (!%p270_p3)   ;;  %v2957_v51 = vld [vmem:[%s6023_s5] sm:$0xff] (!%p270_p3)  ;;  %v2958_v52 = vld [vmem:[%s6023_s5 + $0x8] sm:$0xff] (!%p270_p3) }
   0xc   : > { %1495 = vmatpush1.bf16.msra.mxu0 (!%p270_p3), %v4520_v2  ;;  %4479 = vmatpush1.bf16.msra.mxu1 (!%p270_p3), %v4520_v2  ;;  %v4430_v53 = vpack.c.bf16 (!%p270_p3), %v2958_v52, %v2957_v51  ;;  %v2959_v58 = vld [vmem:[%s6023_s5 + $0x10] sm:$0xff] (!%p270_p3)  ;;  %v2960_v59 = vld [vmem:[%s6023_s5 + $0x18] sm:$0xff] (!%p270_p3)  ;;  %v2961_v61 = vld [vmem:[%s6023_s5 + $0x20] sm:$0xff] (!%p270_p3) }
   0xd   : > { %1496 = vmatprep.subr.bf16.mxu0 (!%p270_p3), %v4758_v1  ;;  %4464 = vmatprep.subr.bf16.mxu1 (!%p270_p3), %v4758_v1  ;;  %v4434_v60 = vpack.c.bf16 (!%p270_p3), %v2960_v59, %v2959_v58  ;;  %v2962_v62 = vld [vmem:[%s6023_s5 + $0x28] sm:$0xff] (!%p270_p3) }
   0xe   : > { %s6031_s30 = smov (!%p313_p4, %s3906_s30), 255  ;;  %v4438_v63 = vpack.c.bf16 %v2962_v62, %v2961_v61 }
   0xf   : > { %s4061_s14 = sshll.u32 %s6031_s30, 3 }
  0x10   : > { %1497 = vmatpush1.bf16.msra.mxu0 %v4521_v3  ;;  %4480 = vmatpush1.bf16.msra.mxu1 %v4521_v3  ;;  %s4848_s19 = scalar_lea.vmem %s6018_s0, %s4061_s14  ;;  %s5352_s21 = scalar_lea.vmem %s6025_s7, %s4061_s14 }
  0x11   : > { %1498 = vmatprep.subr.bf16.mxu0 %v4758_v1  ;;  %4465 = vmatprep.subr.bf16.mxu1 %v4758_v1  ;;  %v4537_v6 = vld [vmem:[%s4848_s19 + $0x4] ss:$8 sps:$4 sm:$0xff]   ;;  %v4535_v19 = vld [vmem:[%s4848_s19] ss:$8 sps:$4 sm:$0xff]   ;;  %v4538_v21 = vld [vmem:[%s4848_s19 + $0x14] ss:$8 sps:$4 sm:$0xff]  }
  0x12   : > { %1524 = vmatprep.mubr.bf16.mxu0 %v4537_v6  ;;  %v4573_v11 = vld [vmem:[%s4848_s19 + $0x304] ss:$8 sps:$4 sm:$0xff]   ;;  %v4571_v20 = vld [vmem:[%s4848_s19 + $0x300] ss:$8 sps:$4 sm:$0xff]   ;;  %v4577_v22 = vld [vmem:[%s4848_s19 + $0x314] ss:$8 sps:$4 sm:$0xff]  }
  0x13   : > { %1908 = vmatprep.mubr.bf16.mxu1 %v4573_v11  ;;  %v4540_v23 = vld [vmem:[%s4848_s19 + $0x10] ss:$8 sps:$4 sm:$0xff]   ;;  %v4541_v25 = vld [vmem:[%s4848_s19 + $0x24] ss:$8 sps:$4 sm:$0xff]   ;;  %v4543_v27 = vld [vmem:[%s4848_s19 + $0x20] ss:$8 sps:$4 sm:$0xff]  }
  0x14   : > { %1499 = vmatpush1.bf16.msra.mxu0 %v4522_v4  ;;  %4481 = vmatpush1.bf16.msra.mxu1 %v4522_v4  ;;  %v4579_v24 = vld [vmem:[%s4848_s19 + $0x310] ss:$8 sps:$4 sm:$0xff]   ;;  %v4583_v26 = vld [vmem:[%s4848_s19 + $0x324] ss:$8 sps:$4 sm:$0xff]   ;;  %v4585_v28 = vld [vmem:[%s4848_s19 + $0x320] ss:$8 sps:$4 sm:$0xff]  }
  0x15   : > { %1500 = vmatprep.subr.bf16.mxu0 %v4758_v1  ;;  %4466 = vmatprep.subr.bf16.mxu1 %v4758_v1  ;;  %v4544_v29 = vld [vmem:[%s4848_s19 + $0x34] ss:$8 sps:$4 sm:$0xff]   ;;  %v4546_v31 = vld [vmem:[%s4848_s19 + $0x30] ss:$8 sps:$4 sm:$0xff]   ;;  %v4547_v33 = vld [vmem:[%s4848_s19 + $0x44] ss:$8 sps:$4 sm:$0xff]  }
  0x16   : > { %v4589_v30 = vld [vmem:[%s4848_s19 + $0x334] ss:$8 sps:$4 sm:$0xff]   ;;  %v4591_v32 = vld [vmem:[%s4848_s19 + $0x330] ss:$8 sps:$4 sm:$0xff]   ;;  %v4595_v34 = vld [vmem:[%s4848_s19 + $0x344] ss:$8 sps:$4 sm:$0xff]  }
  0x17   : > { %v4549_v35 = vld [vmem:[%s4848_s19 + $0x40] ss:$8 sps:$4 sm:$0xff]   ;;  %v4550_v37 = vld [vmem:[%s4848_s19 + $0x54] ss:$8 sps:$4 sm:$0xff]   ;;  %v4552_v39 = vld [vmem:[%s4848_s19 + $0x50] ss:$8 sps:$4 sm:$0xff]  }
  0x18   : > { %1501 = vmatpush1.bf16.msra.mxu0 %v4523_v5  ;;  %4482 = vmatpush1.bf16.msra.mxu1 %v4523_v5  ;;  %v4597_v36 = vld [vmem:[%s4848_s19 + $0x340] ss:$8 sps:$4 sm:$0xff]   ;;  %v4601_v38 = vld [vmem:[%s4848_s19 + $0x354] ss:$8 sps:$4 sm:$0xff]   ;;  %v4603_v40 = vld [vmem:[%s4848_s19 + $0x350] ss:$8 sps:$4 sm:$0xff]  }
  0x19   : > { %1502 = vmatprep.subr.bf16.mxu0 %v4758_v1  ;;  %4467 = vmatprep.subr.bf16.mxu1 %v4758_v1  ;;  %v4553_v41 = vld [vmem:[%s4848_s19 + $0x64] ss:$8 sps:$4 sm:$0xff]   ;;  %v4555_v43 = vld [vmem:[%s4848_s19 + $0x60] ss:$8 sps:$4 sm:$0xff]   ;;  %v4556_v45 = vld [vmem:[%s4848_s19 + $0x74] ss:$8 sps:$4 sm:$0xff]  }
  0x1a   : > { %v4607_v42 = vld [vmem:[%s4848_s19 + $0x364] ss:$8 sps:$4 sm:$0xff]   ;;  %v4609_v44 = vld [vmem:[%s4848_s19 + $0x360] ss:$8 sps:$4 sm:$0xff]   ;;  %v4613_v46 = vld [vmem:[%s4848_s19 + $0x374] ss:$8 sps:$4 sm:$0xff]  }
  0x1b   : > { %v4558_v47 = vld [vmem:[%s4848_s19 + $0x70] ss:$8 sps:$4 sm:$0xff]   ;;  %v4559_v49 = vld [vmem:[%s4848_s19 + $0x84] ss:$8 sps:$4 sm:$0xff]   ;;  %v4561_v54 = vld [vmem:[%s4848_s19 + $0x80] ss:$8 sps:$4 sm:$0xff]  }
  0x1c   : > { %1503 = vmatpush1.bf16.msra.mxu0 %v4524_v7  ;;  %4483 = vmatpush1.bf16.msra.mxu1 %v4524_v7  ;;  %v4615_v48 = vld [vmem:[%s4848_s19 + $0x370] ss:$8 sps:$4 sm:$0xff]   ;;  %v4619_v50 = vld [vmem:[%s4848_s19 + $0x384] ss:$8 sps:$4 sm:$0xff]   ;;  %v4621_v55 = vld [vmem:[%s4848_s19 + $0x380] ss:$8 sps:$4 sm:$0xff]  }
  0x1d   : > { %1504 = vmatprep.subr.bf16.mxu0 %v4758_v1  ;;  %4468 = vmatprep.subr.bf16.mxu1 %v4758_v1  ;;  %v4562_v56 = vld [vmem:[%s4848_s19 + $0x94] ss:$8 sps:$4 sm:$0xff]   ;;  %v4564_v0 = vld [vmem:[%s4848_s19 + $0x90] ss:$8 sps:$4 sm:$0xff]   ;;  %v4565_v2 = vld [vmem:[%s4848_s19 + $0xa4] ss:$8 sps:$4 sm:$0xff]  }
  0x1e   : > { %v4625_v57 = vld [vmem:[%s4848_s19 + $0x394] ss:$8 sps:$4 sm:$0xff]   ;;  %v4631_v3 = vld [vmem:[%s4848_s19 + $0x3a4] ss:$8 sps:$4 sm:$0xff]   ;;  %v4633_v11 = vld [vmem:[%s4848_s19 + $0x3a0] ss:$8 sps:$4 sm:$0xff]  }
  0x1f   : > { %v2963_v4 = vld [vmem:[%s6023_s5 + $0x30] sm:$0xff]  ;;  %v2964_v5 = vld [vmem:[%s6023_s5 + $0x38] sm:$0xff]  ;;  %v2965_v7 = vld [vmem:[%s6023_s5 + $0x40] sm:$0xff] }
  0x20   : > { %1505 = vmatpush1.bf16.msra.mxu0 %v4525_v8  ;;  %4484 = vmatpush1.bf16.msra.mxu1 %v4525_v8  ;;  %v4442_v6 = vpack.c.bf16 %v2964_v5, %v2963_v4  ;;  %v2966_v8 = vld [vmem:[%s6023_s5 + $0x48] sm:$0xff]  ;;  %v4628_v51 = vld [vmem:[%s4848_s19 + $0x154] ss:$8 sps:$4 sm:$0xff]   ;;  %v4630_v52 = vld [vmem:[%s4848_s19 + $0x150] ss:$8 sps:$4 sm:$0xff]  }
  0x21   : > { %1506 = vmatprep.subr.bf16.mxu0 %v4758_v1  ;;  %4469 = vmatprep.subr.bf16.mxu1 %v4758_v1  ;;  %v4648_v58 = vld [vmem:[%s4848_s19 + $0x180] ss:$8 sps:$4 sm:$0xff]   ;;  %v4652_v59 = vld [vmem:[%s4848_s19 + $0x194] ss:$8 sps:$4 sm:$0xff]   ;;  %v4658_v61 = vld [vmem:[%s4848_s19 + $0x1a4] ss:$8 sps:$4 sm:$0xff]  }
  0x22   : > { %v4660_v62 = vld [vmem:[%s4848_s19 + $0x1a0] ss:$8 sps:$4 sm:$0xff]   ;;  %v4666_v4 = vld [vmem:[%s4848_s19 + $0x1b0] ss:$8 sps:$4 sm:$0xff]  }
  0x23   : > { %v5052_v5 = vld [vmem:[%s6021_s3] ss:$0 sm:$0xff] }
  0x24   : > { %1507 = vmatpush1.bf16.msra.mxu0 %v4526_v9  ;;  %4485 = vmatpush1.bf16.msra.mxu1 %v4526_v9  ;;  %v4446_v9 = vpack.c.bf16 %v2966_v8, %v2965_v7  ;;  %v4667_v7 = vld [vmem:[%s4848_s19 + $0x1c4] ss:$8 sps:$4 sm:$0xff]  }
  0x25   : > { %1508 = vmatprep.subr.bf16.mxu0 %v4758_v1  ;;  %4470 = vmatprep.subr.bf16.mxu1 %v4758_v1 }
  0x28   : > { %1509 = vmatpush1.bf16.msra.mxu0 %v4527_v10  ;;  %4486 = vmatpush1.bf16.msra.mxu1 %v4527_v10  ;;  %v4567_v10 = vld [vmem:[%s4848_s19 + $0xa0] ss:$8 sps:$4 sm:$0xff]  }
  0x29   : > { %1510 = vmatprep.subr.bf16.mxu0 %v4758_v1  ;;  %4471 = vmatprep.subr.bf16.mxu1 %v4758_v1 }
  0x2c   : > { %1511 = vmatpush1.bf16.msra.mxu0 %v4528_v12  ;;  %4487 = vmatpush1.bf16.msra.mxu1 %v4528_v12  ;;  %v4568_v12 = vld [vmem:[%s4848_s19 + $0xb4] ss:$8 sps:$4 sm:$0xff]  }
  0x2d   : > { %1512 = vmatprep.subr.bf16.mxu0 %v4758_v1  ;;  %4472 = vmatprep.subr.bf16.mxu1 %v4758_v1 }
  0x30   : > { %1513 = vmatpush1.bf16.msra.mxu0 %v4529_v13  ;;  %4488 = vmatpush1.bf16.msra.mxu1 %v4529_v13  ;;  %v4637_v13 = vld [vmem:[%s4848_s19 + $0x3b4] ss:$8 sps:$4 sm:$0xff]  }
  0x31   : > { %1514 = vmatprep.subr.bf16.mxu0 %v4758_v1  ;;  %4473 = vmatprep.subr.bf16.mxu1 %v4758_v1 }
  0x34   : > { %1515 = vmatpush1.bf16.msra.mxu0 %v4530_v14  ;;  %4489 = vmatpush1.bf16.msra.mxu1 %v4530_v14  ;;  %v2967_v14 = vld [vmem:[%s6023_s5 + $0x50] sm:$0xff] }
  0x35   : > { %1516 = vmatprep.subr.bf16.mxu0 %v4758_v1  ;;  %4474 = vmatprep.subr.bf16.mxu1 %v4758_v1 }
  0x38   : > { %1517 = vmatpush1.bf16.msra.mxu0 %v4531_v15  ;;  %4490 = vmatpush1.bf16.msra.mxu1 %v4531_v15  ;;  %v2968_v15 = vld [vmem:[%s6023_s5 + $0x58] sm:$0xff] }
  0x39   : > { %1518 = vmatprep.subr.bf16.mxu0 %v4758_v1  ;;  %4475 = vmatprep.subr.bf16.mxu1 %v4758_v1 }
  0x3c   : > { %1519 = vmatpush1.bf16.msra.mxu0 %v4532_v16  ;;  %4491 = vmatpush1.bf16.msra.mxu1 %v4532_v16  ;;  %v4450_v16 = vpack.c.bf16 %v2968_v15, %v2967_v14 }
  0x3d   : > { %1520 = vmatprep.subr.bf16.mxu0 %v4758_v1  ;;  %4476 = vmatprep.subr.bf16.mxu1 %v4758_v1 }
  0x40   : > { %1521 = vmatpush1.bf16.msra.mxu0 %v4533_v17  ;;  %4492 = vmatpush1.bf16.msra.mxu1 %v4533_v17  ;;  %v2969_v17 = vld [vmem:[%s6023_s5 + $0x60] sm:$0xff] }
  0x41   : > { %1522 = vmatprep.subr.bf16.mxu0 %v4758_v1  ;;  %4477 = vmatprep.subr.bf16.mxu1 %v4758_v1  ;;  %v4627_v1 = vld [vmem:[%s4848_s19 + $0x390] ss:$8 sps:$4 sm:$0xff]  }
  0x44   : > { %1523 = vmatpush1.bf16.msra.mxu0 %v4534_v18  ;;  %4493 = vmatpush1.bf16.msra.mxu1 %v4534_v18  ;;  %v4570_v18 = vld [vmem:[%s4848_s19 + $0xb0] ss:$8 sps:$4 sm:$0xff]  }
  0x45   : > { %4431 = vmatprep.subr.bf16.mxu1 %v4430_v53 }
  0x47   : > { %1525 = vmatmul.mubr.bf16.vlgmr.msra.gmra.mrb[0].mxu0 %v4535_v19  ;;  %1909 = vmatmul.mubr.bf16.vlgmr.msra.gmra.mrb[0].mxu1 %v4571_v20  ;;  %v4639_v19 = vld [vmem:[%s4848_s19 + $0x3b0] ss:$8 sps:$4 sm:$0xff]   ;;  %v2970_v20 = vld [vmem:[%s6023_s5 + $0x68] sm:$0xff] }
  0x48   : > { %1532 = vmatprep.mubr.bf16.mxu0 %v4538_v21  ;;  %1916 = vmatprep.mubr.bf16.mxu1 %v4577_v22  ;;  %v4574_v21 = vld [vmem:[%s4848_s19 + $0xc4] ss:$8 sps:$4 sm:$0xff]  }
  0x49   : > { %4433 = vmatpush3.bf16.msra.mxu1 %v4430_v53  ;;  %v4643_v22 = vld [vmem:[%s4848_s19 + $0x3c4] ss:$8 sps:$4 sm:$0xff]  }
  0x4a   : > { %4435 = vmatprep.subr.bf16.mxu1 %v4434_v60  ;;  %v4634_v53 = vld [vmem:[%s4848_s19 + $0x164] ss:$8 sps:$4 sm:$0xff]  }
  0x4d   : > { %4437 = vmatpush3.bf16.msra.mxu1 %v4434_v60  ;;  %v4654_v60 = vld [vmem:[%s4848_s19 + $0x190] ss:$8 sps:$4 sm:$0xff]  }
  0x4e   : > { %4439 = vmatprep.subr.bf16.mxu1 %v4438_v63 }
  0x4f   : > { %1533 = vmatmul.mubr.bf16.gmra.mrb[4].mxu0 %v4540_v23  ;;  %1917 = vmatmul.mubr.bf16.gmra.mrb[4].mxu1 %v4579_v24  ;;  %v4454_v23 = vpack.c.bf16 %v2970_v20, %v2969_v17  ;;  %v2971_v24 = vld [vmem:[%s6023_s5 + $0x70] sm:$0xff]  ;;  %v4669_v20 = vld [vmem:[%s4848_s19 + $0x1c0] ss:$8 sps:$4 sm:$0xff]  }
  0x50   : > { %1540 = vmatprep.mubr.bf16.mxu0 %v4541_v25  ;;  %1924 = vmatprep.mubr.bf16.mxu1 %v4583_v26  ;;  %v2972_v25 = vld [vmem:[%s6023_s5 + $0x78] sm:$0xff] }
  0x51   : > { %4441 = vmatpush3.bf16.msra.mxu1 %v4438_v63  ;;  %v4458_v26 = vpack.c.bf16 %v2972_v25, %v2971_v24  ;;  %v4664_v63 = vld [vmem:[%s4848_s19 + $0x1b4] ss:$8 sps:$4 sm:$0xff]  }
  0x52   : > { %4443 = vmatprep.subr.bf16.mxu1 %v4442_v6 }
  0x55   : > { %4445 = vmatpush3.bf16.msra.mxu1 %v4442_v6 }
  0x56   : > { %4447 = vmatprep.subr.bf16.mxu1 %v4446_v9 }
  0x57   : > { %1541 = vmatmul.mubr.bf16.gmra.mrb[8].mxu0 %v4543_v27  ;;  %1925 = vmatmul.mubr.bf16.gmra.mrb[8].mxu1 %v4585_v28  ;;  %v4576_v27 = vld [vmem:[%s4848_s19 + $0xc0] ss:$8 sps:$4 sm:$0xff]  }
  0x58   : > { %1548 = vmatprep.mubr.bf16.mxu0 %v4544_v29  ;;  %1932 = vmatprep.mubr.bf16.mxu1 %v4589_v30  ;;  %v4645_v28 = vld [vmem:[%s4848_s19 + $0x3c0] ss:$8 sps:$4 sm:$0xff]   ;;  %v4580_v29 = vld [vmem:[%s4848_s19 + $0xd4] ss:$8 sps:$4 sm:$0xff]  }
  0x59   : > { %4449 = vmatpush3.bf16.msra.mxu1 %v4446_v9  ;;  %v4649_v30 = vld [vmem:[%s4848_s19 + $0x3d4] ss:$8 sps:$4 sm:$0xff]  }
  0x5a   : > { %4451 = vmatprep.subr.bf16.mxu1 %v4450_v16 }
  0x5d   : > { %4453 = vmatpush3.bf16.msra.mxu1 %v4450_v16 }
  0x5e   : > { %4455 = vmatprep.subr.bf16.mxu1 %v4454_v23 }
  0x5f   : > { %1549 = vmatmul.mubr.bf16.gmra.mrb[12].mxu0 %v4546_v31  ;;  %1933 = vmatmul.mubr.bf16.gmra.mrb[12].mxu1 %v4591_v32  ;;  %v4582_v31 = vld [vmem:[%s4848_s19 + $0xd0] ss:$8 sps:$4 sm:$0xff]  }
  0x60   : > { %1556 = vmatprep.mubr.bf16.mxu0 %v4547_v33  ;;  %1940 = vmatprep.mubr.bf16.mxu1 %v4595_v34  ;;  %v4651_v32 = vld [vmem:[%s4848_s19 + $0x3d0] ss:$8 sps:$4 sm:$0xff]   ;;  %v4586_v33 = vld [vmem:[%s4848_s19 + $0xe4] ss:$8 sps:$4 sm:$0xff]  }
  0x61   : > { %4457 = vmatpush3.bf16.msra.mxu1 %v4454_v23  ;;  %v4655_v34 = vld [vmem:[%s4848_s19 + $0x3e4] ss:$8 sps:$4 sm:$0xff]  }
  0x62   : > { %4459 = vmatprep.subr.bf16.mxu1 %v4458_v26 }
  0x65   : > { %4461 = vmatpush3.bf16.msra.mxu1 %v4458_v26 }
  0x67   : > { %1557 = vmatmul.mubr.bf16.gmra.mrb[16].mxu0 %v4549_v35  ;;  %1941 = vmatmul.mubr.bf16.gmra.mrb[16].mxu1 %v4597_v36  ;;  %v4588_v35 = vld [vmem:[%s4848_s19 + $0xe0] ss:$8 sps:$4 sm:$0xff]  }
  0x68   : > { %1564 = vmatprep.mubr.bf16.mxu0 %v4550_v37  ;;  %1948 = vmatprep.mubr.bf16.mxu1 %v4601_v38  ;;  %v4657_v36 = vld [vmem:[%s4848_s19 + $0x3e0] ss:$8 sps:$4 sm:$0xff]   ;;  %v4592_v37 = vld [vmem:[%s4848_s19 + $0xf4] ss:$8 sps:$4 sm:$0xff]  }
  0x69   : > { %v4661_v38 = vld [vmem:[%s4848_s19 + $0x3f4] ss:$8 sps:$4 sm:$0xff]  }
  0x6f   : > { %1565 = vmatmul.mubr.bf16.gmra.mrb[20].mxu0 %v4552_v39  ;;  %1949 = vmatmul.mubr.bf16.gmra.mrb[20].mxu1 %v4603_v40  ;;  %v4594_v39 = vld [vmem:[%s4848_s19 + $0xf0] ss:$8 sps:$4 sm:$0xff]  }
  0x70   : > { %1572 = vmatprep.mubr.bf16.mxu0 %v4553_v41  ;;  %1956 = vmatprep.mubr.bf16.mxu1 %v4607_v42  ;;  %v4663_v40 = vld [vmem:[%s4848_s19 + $0x3f0] ss:$8 sps:$4 sm:$0xff]   ;;  %v4598_v41 = vld [vmem:[%s4848_s19 + $0x104] ss:$8 sps:$4 sm:$0xff]   ;;  %v4600_v42 = vld [vmem:[%s4848_s19 + $0x100] ss:$8 sps:$4 sm:$0xff]  }
  0x77   : > { %1573 = vmatmul.mubr.bf16.gmra.mrb[24].mxu0 %v4555_v43  ;;  %1957 = vmatmul.mubr.bf16.gmra.mrb[24].mxu1 %v4609_v44  ;;  %v4604_v43 = vld [vmem:[%s4848_s19 + $0x114] ss:$8 sps:$4 sm:$0xff]   ;;  %v4606_v44 = vld [vmem:[%s4848_s19 + $0x110] ss:$8 sps:$4 sm:$0xff]  }
  0x78   : > { %1580 = vmatprep.mubr.bf16.mxu0 %v4556_v45  ;;  %1964 = vmatprep.mubr.bf16.mxu1 %v4613_v46  ;;  %v4610_v45 = vld [vmem:[%s4848_s19 + $0x124] ss:$8 sps:$4 sm:$0xff]   ;;  %v4612_v46 = vld [vmem:[%s4848_s19 + $0x120] ss:$8 sps:$4 sm:$0xff]  }
  0x7f   : > { %1581 = vmatmul.mubr.bf16.gmra.mrb[28].mxu0 %v4558_v47  ;;  %1965 = vmatmul.mubr.bf16.gmra.mrb[28].mxu1 %v4615_v48  ;;  %v4616_v47 = vld [vmem:[%s4848_s19 + $0x134] ss:$8 sps:$4 sm:$0xff]   ;;  %v4618_v48 = vld [vmem:[%s4848_s19 + $0x130] ss:$8 sps:$4 sm:$0xff]  }
  0x80   : > { %1588 = vmatprep.mubr.bf16.mxu0 %v4559_v49  ;;  %1972 = vmatprep.mubr.bf16.mxu1 %v4619_v50  ;;  %v4622_v49 = vld [vmem:[%s4848_s19 + $0x144] ss:$8 sps:$4 sm:$0xff]   ;;  %v4624_v50 = vld [vmem:[%s4848_s19 + $0x140] ss:$8 sps:$4 sm:$0xff]  }
  0x87   : > { %1589 = vmatmul.mubr.bf16.gmra.mrb[32].mxu0 %v4561_v54  ;;  %1973 = vmatmul.mubr.bf16.gmra.mrb[32].mxu1 %v4621_v55  ;;  %v4636_v54 = vld [vmem:[%s4848_s19 + $0x160] ss:$8 sps:$4 sm:$0xff]   ;;  %v4640_v55 = vld [vmem:[%s4848_s19 + $0x174] ss:$8 sps:$4 sm:$0xff]  }
  0x88   : > { %1596 = vmatprep.mubr.bf16.mxu0 %v4562_v56  ;;  %1980 = vmatprep.mubr.bf16.mxu1 %v4625_v57  ;;  %v4642_v56 = vld [vmem:[%s4848_s19 + $0x170] ss:$8 sps:$4 sm:$0xff]   ;;  %v4646_v57 = vld [vmem:[%s4848_s19 + $0x184] ss:$8 sps:$4 sm:$0xff]  }
  0x8f   : > { %1597 = vmatmul.mubr.bf16.gmra.mrb[36].mxu0 %v4564_v0  ;;  %1981 = vmatmul.mubr.bf16.gmra.mrb[36].mxu1 %v4627_v1  ;;  %v5045_v0 = vld [vmem:[%s6020_s2] ss:$0 sm:$0xff] }
  0x90   : > { %1604 = vmatprep.mubr.bf16.mxu0 %v4565_v2  ;;  %1988 = vmatprep.mubr.bf16.mxu1 %v4631_v3 }
  0x97   : > { %1605 = vmatmul.mubr.bf16.gmra.mrb[40].mxu0 %v4567_v10  ;;  %1989 = vmatmul.mubr.bf16.gmra.mrb[40].mxu1 %v4633_v11  ;;  %v5059_v11 = vld [vmem:[%s6022_s4] ss:$0 sm:$0xff] }
  0x98   : > { %1612 = vmatprep.mubr.bf16.mxu0 %v4568_v12  ;;  %1996 = vmatprep.mubr.bf16.mxu1 %v4637_v13 }
  0x9f   : > { %1613 = vmatmul.mubr.bf16.gmra.mrb[44].mxu0 %v4570_v18  ;;  %1997 = vmatmul.mubr.bf16.gmra.mrb[44].mxu1 %v4639_v19 }
  0xa0   : > { %1620 = vmatprep.mubr.bf16.mxu0 %v4574_v21  ;;  %2004 = vmatprep.mubr.bf16.mxu1 %v4643_v22  ;;  %v4670_v22 = vld [vmem:[%s4848_s19 + $0x1d4] ss:$8 sps:$4 sm:$0xff]  }
  0xa7   : > { %1621 = vmatmul.mubr.bf16.gmra.mrb[48].mxu0 %v4576_v27  ;;  %2005 = vmatmul.mubr.bf16.gmra.mrb[48].mxu1 %v4645_v28 }
  0xa8   : > { %1628 = vmatprep.mubr.bf16.mxu0 %v4580_v29  ;;  %2012 = vmatprep.mubr.bf16.mxu1 %v4649_v30 }
  0xaf   : > { %1629 = vmatmul.mubr.bf16.gmra.mrb[52].mxu0 %v4582_v31  ;;  %2013 = vmatmul.mubr.bf16.gmra.mrb[52].mxu1 %v4651_v32 }
  0xb0   : > { %1636 = vmatprep.mubr.bf16.mxu0 %v4586_v33  ;;  %2020 = vmatprep.mubr.bf16.mxu1 %v4655_v34  ;;  %v4672_v34 = vld [vmem:[%s4848_s19 + $0x1d0] ss:$8 sps:$4 sm:$0xff]  }
  0xb7   : > { %1637 = vmatmul.mubr.bf16.gmra.mrb[56].mxu0 %v4588_v35  ;;  %2021 = vmatmul.mubr.bf16.gmra.mrb[56].mxu1 %v4657_v36  ;;  %v4673_v36 = vld [vmem:[%s4848_s19 + $0x1e4] ss:$8 sps:$4 sm:$0xff]  }
  0xb8   : > { %1644 = vmatprep.mubr.bf16.mxu0 %v4592_v37  ;;  %2028 = vmatprep.mubr.bf16.mxu1 %v4661_v38 }
  0xbf   : > { %1645 = vmatmul.mubr.bf16.gmra.mrb[60].mxu0 %v4594_v39  ;;  %2029 = vmatmul.mubr.bf16.gmra.mrb[60].mxu1 %v4663_v40 }
  0xc0   : > { %1652 = vmatprep.mubr.bf16.mxu0 %v4598_v41 }
  0xc7   : > { %1653 = vmatmul.mubr.bf16.gmra.mrb[64].mxu0 %v4600_v42 }
  0xc8   : > { %1660 = vmatprep.mubr.bf16.mxu0 %v4604_v43 }
  0xcf   : > { %1661 = vmatmul.mubr.bf16.gmra.mrb[68].mxu0 %v4606_v44 }
  0xd0   : > { %1668 = vmatprep.mubr.bf16.mxu0 %v4610_v45 }
  0xd7   : > { %1669 = vmatmul.mubr.bf16.gmra.mrb[72].mxu0 %v4612_v46 }
  0xd8   : > { %1676 = vmatprep.mubr.bf16.mxu0 %v4616_v47 }
  0xdf   : > { %1677 = vmatmul.mubr.bf16.gmra.mrb[76].mxu0 %v4618_v48  ;;  %v4675_v48 = vld [vmem:[%s4848_s19 + $0x1e0] ss:$8 sps:$4 sm:$0xff]  }
  0xe0   : > { %1684 = vmatprep.mubr.bf16.mxu0 %v4622_v49 }
  0xe7   : > { %1685 = vmatmul.mubr.bf16.gmra.mrb[80].mxu0 %v4624_v50  ;;  %v4676_v50 = vld [vmem:[%s4848_s19 + $0x1f4] ss:$8 sps:$4 sm:$0xff]  }
  0xe8   : > { %1692 = vmatprep.mubr.bf16.mxu0 %v4628_v51 }
  0xef   : > { %1693 = vmatmul.mubr.bf16.gmra.mrb[84].mxu0 %v4630_v52 }
  0xf0   : > { %1700 = vmatprep.mubr.bf16.mxu0 %v4634_v53 }
  0xf7   : > { %1701 = vmatmul.mubr.bf16.gmra.mrb[88].mxu0 %v4636_v54 }
  0xf8   : > { %1708 = vmatprep.mubr.bf16.mxu0 %v4640_v55 }
  0xff   : > { %1709 = vmatmul.mubr.bf16.gmra.mrb[92].mxu0 %v4642_v56 }
 0x100   : > { %1716 = vmatprep.mubr.bf16.mxu0 %v4646_v57 }
 0x107   : > { %1717 = vmatmul.mubr.bf16.gmra.mrb[96].mxu0 %v4648_v58 }
 0x108   : > { %1724 = vmatprep.mubr.bf16.mxu0 %v4652_v59 }
 0x10f   : > { %1725 = vmatmul.mubr.bf16.gmra.mrb[100].mxu0 %v4654_v60 }
 0x110   : > { %1732 = vmatprep.mubr.bf16.mxu0 %v4658_v61 }
 0x117   : > { %1733 = vmatmul.mubr.bf16.gmra.mrb[104].mxu0 %v4660_v62 }
 0x118   : > { %1740 = vmatprep.mubr.bf16.mxu0 %v4664_v63 }
 0x11a   : > { %v1526_v1 = vpop.f32.mrb[0].mxu0  ;;  %v5086_v56 = vpop.f32.mrb[0].mxu1 }
 0x11b   : > { %v2431_v2 = vadd.f32 %v5045_v0, %v1526_v1  ;;  %v1528_v3 = vpop.f32.mrb[1].mxu0  ;;  %v1912_v59 = vpop.f32.mrb[1].mxu1 }
 0x11c   : > { %v1529_v6 = vpop.f32.mrb[2].mxu0  ;;  %v5090_v61 = vpop.f32.mrb[2].mxu1 }
 0x11d   : > { %v2559_v8 = vmax.f32 %v2431_v2, 0.0  ;;  %v2432_v9 = vadd.f32 %v5045_v0, %v1529_v6  ;;  %v1531_v10 = vpop.f32.mrb[3].mxu0  ;;  %v4678_v2 = vld [vmem:[%s4848_s19 + $0x1f0] ss:$8 sps:$4 sm:$0xff]   ;;  %v1915_v3 = vpop.f32.mrb[3].mxu1 }
 0x11e   : > { %v4679_v6 = vld [vmem:[%s4848_s19 + $0x204] ss:$8 sps:$4 sm:$0xff]  }
 0x11f   : > { %v2694_v12 = vmul.f32 %v5052_v5, %v2559_v8  ;;  %v2560_v13 = vmax.f32 %v2432_v9, 0.0  ;;  %1741 = vmatmul.mubr.bf16.gmra.mrb[108].mxu0 %v4666_v4 }
 0x120   : > { %1748 = vmatprep.mubr.bf16.mxu0 %v4667_v7 }
 0x121   : > { %v2695_v14 = vmul.f32 %v5052_v5, %v2560_v13  ;;  %v2829_v15 = vadd.f32 %v5059_v11, %v2694_v12 }
 0x122   : > { %v1534_v16 = vpop.f32.mrb[4].mxu0  ;;  %v5096_v7 = vpop.f32.mrb[4].mxu1 }
 0x123   : > { %v2830_v17 = vadd.f32 %v5059_v11, %v2695_v14  ;;  %v2433_v18 = vadd.f32 %v5045_v0, %v1534_v16  ;;  %v1536_v19 = vpop.f32.mrb[5].mxu0  ;;  %4238 = vmatprep.mubr.f32.mxu1 %v2829_v15  ;;  %v1920_v12 = vpop.f32.mrb[5].mxu1 }
 0x124   : > { %v1537_v21 = vpop.f32.mrb[6].mxu0  ;;  %v5099_v13 = vpop.f32.mrb[6].mxu1  ;;  %v4687_v12 = vld [vmem:[%s4848_s19 + $0x220] ss:$8 sps:$4 sm:$0xff]  }
 0x125   : > { %v2561_v23 = vmax.f32 %v2433_v18, 0.0  ;;  %v2434_v24 = vadd.f32 %v5045_v0, %v1537_v21  ;;  %v1539_v25 = vpop.f32.mrb[7].mxu0  ;;  %4239 = vmatmul.mubr.f32.vlgmr.msra.gmra.mrb[64].mxu1 %v2830_v17  ;;  %v1923_v16 = vpop.f32.mrb[7].mxu1 }
 0x126   : > { %v4688_v16 = vld [vmem:[%s4848_s19 + $0x234] ss:$8 sps:$4 sm:$0xff]  }
 0x127   : > { %v2696_v26 = vmul.f32 %v5052_v5, %v2561_v23  ;;  %v2562_v27 = vmax.f32 %v2434_v24, 0.0  ;;  %1749 = vmatmul.mubr.bf16.gmra.mrb[112].mxu0 %v4669_v20 }
 0x128   : > { %1756 = vmatprep.mubr.bf16.mxu0 %v4670_v22 }
 0x129   : > { %v2697_v28 = vmul.f32 %v5052_v5, %v2562_v27  ;;  %v2831_v29 = vadd.f32 %v5059_v11, %v2696_v26  ;;  %v4681_v26 = vld [vmem:[%s4848_s19 + $0x200] ss:$8 sps:$4 sm:$0xff]  }
 0x12a   : > { %v1542_v30 = vpop.f32.mrb[8].mxu0  ;;  %v5102_v17 = vpop.f32.mrb[8].mxu1 }
 0x12b   : > { %v2435_v31 = vadd.f32 %v5045_v0, %v1542_v30  ;;  %v1544_v32 = vpop.f32.mrb[9].mxu0  ;;  %4241 = vmatprep.mubr.f32.mxu1 %v2831_v29  ;;  %v2832_v33 = vadd.f32 %v5059_v11, %v2697_v28  ;;  %v1928_v20 = vpop.f32.mrb[9].mxu1  ;;  %v4682_v29 = vld [vmem:[%s4848_s19 + $0x214] ss:$8 sps:$4 sm:$0xff]  }
 0x12c   : > { %v1545_v35 = vpop.f32.mrb[10].mxu0  ;;  %v5106_v22 = vpop.f32.mrb[10].mxu1 }
 0x12d   : > { %v2563_v37 = vmax.f32 %v2435_v31, 0.0  ;;  %v2436_v38 = vadd.f32 %v5045_v0, %v1545_v35  ;;  %v1547_v39 = vpop.f32.mrb[11].mxu0  ;;  %4242 = vmatmul.mubr.f32.gmra.mrb[66].mxu1 %v2832_v33  ;;  %v1931_v27 = vpop.f32.mrb[11].mxu1 }
 0x12f   : > { %v2698_v40 = vmul.f32 %v5052_v5, %v2563_v37  ;;  %v2564_v41 = vmax.f32 %v2436_v38, 0.0  ;;  %1757 = vmatmul.mubr.bf16.gmra.mrb[116].mxu0 %v4672_v34 }
 0x130   : > { %1764 = vmatprep.mubr.bf16.mxu0 %v4673_v36 }
 0x131   : > { %v2699_v42 = vmul.f32 %v5052_v5, %v2564_v41  ;;  %v2833_v43 = vadd.f32 %v5059_v11, %v2698_v40 }
 0x132   : > { %v1550_v44 = vpop.f32.mrb[12].mxu0  ;;  %v5112_v30 = vpop.f32.mrb[12].mxu1 }
 0x133   : > { %v2437_v45 = vadd.f32 %v5045_v0, %v1550_v44  ;;  %v1552_v46 = vpop.f32.mrb[13].mxu0  ;;  %4244 = vmatprep.mubr.f32.mxu1 %v2833_v43  ;;  %v2834_v47 = vadd.f32 %v5059_v11, %v2699_v42  ;;  %v1936_v34 = vpop.f32.mrb[13].mxu1 }
 0x134   : > { %v1553_v49 = vpop.f32.mrb[14].mxu0  ;;  %v5115_v35 = vpop.f32.mrb[14].mxu1 }
 0x135   : > { %v2565_v51 = vmax.f32 %v2437_v45, 0.0  ;;  %v2438_v52 = vadd.f32 %v5045_v0, %v1553_v49  ;;  %v1555_v53 = vpop.f32.mrb[15].mxu0  ;;  %4245 = vmatmul.mubr.f32.gmra.mrb[68].mxu1 %v2834_v47  ;;  %v1939_v38 = vpop.f32.mrb[15].mxu1 }
 0x137   : > { %v2700_v54 = vmul.f32 %v5052_v5, %v2565_v51  ;;  %v2566_v55 = vmax.f32 %v2438_v52, 0.0  ;;  %1765 = vmatmul.mubr.bf16.gmra.mrb[120].mxu0 %v4675_v48  ;;  %v4684_v48 = vld [vmem:[%s4848_s19 + $0x210] ss:$8 sps:$4 sm:$0xff]   ;;  %v4685_v51 = vld [vmem:[%s4848_s19 + $0x224] ss:$8 sps:$4 sm:$0xff]  }
 0x138   : > { %1772 = vmatprep.mubr.bf16.mxu0 %v4676_v50 }
 0x139   : > { %v2701_v57 = vmul.f32 %v5052_v5, %v2566_v55  ;;  %v2835_v58 = vadd.f32 %v5059_v11, %v2700_v54 }
 0x13a   : > { %v1558_v60 = vpop.f32.mrb[16].mxu0  ;;  %v5118_v39 = vpop.f32.mrb[16].mxu1 }
 0x13b   : > { %v2439_v62 = vadd.f32 %v5045_v0, %v1558_v60  ;;  %v1560_v63 = vpop.f32.mrb[17].mxu0  ;;  %4247 = vmatprep.mubr.f32.mxu1 %v2835_v58  ;;  %v2836_v1 = vadd.f32 %v5059_v11, %v2701_v57  ;;  %v1944_v42 = vpop.f32.mrb[17].mxu1 }
 0x13c   : > { %v1561_v4 = vpop.f32.mrb[18].mxu0  ;;  %v5122_v44 = vpop.f32.mrb[18].mxu1 }
 0x13d   : > { %v2567_v8 = vmax.f32 %v2439_v62, 0.0  ;;  %v2440_v9 = vadd.f32 %v5045_v0, %v1561_v4  ;;  %v1563_v10 = vpop.f32.mrb[19].mxu0  ;;  %4248 = vmatmul.mubr.f32.gmra.mrb[70].mxu1 %v2836_v1  ;;  %v1947_v49 = vpop.f32.mrb[19].mxu1 }
 0x13f   : > { %v2702_v14 = vmul.f32 %v5052_v5, %v2567_v8  ;;  %v2568_v15 = vmax.f32 %v2440_v9, 0.0  ;;  %1773 = vmatmul.mubr.bf16.gmra.mrb[124].mxu0 %v4678_v2 }
 0x140   : > { %1780 = vmatprep.mubr.bf16.mxu0 %v4679_v6 }
 0x141   : > { %v2703_v18 = vmul.f32 %v5052_v5, %v2568_v15  ;;  %v2837_v19 = vadd.f32 %v5059_v11, %v2702_v14 }
 0x142   : > { %v1566_v21 = vpop.f32.mrb[20].mxu0  ;;  %v5128_v52 = vpop.f32.mrb[20].mxu1 }
 0x143   : > { %v2441_v23 = vadd.f32 %v5045_v0, %v1566_v21  ;;  %v1568_v24 = vpop.f32.mrb[21].mxu0  ;;  %4250 = vmatprep.mubr.f32.mxu1 %v2837_v19  ;;  %v2838_v25 = vadd.f32 %v5059_v11, %v2703_v18  ;;  %v1952_v57 = vpop.f32.mrb[21].mxu1 }
 0x144   : > { %v1569_v28 = vpop.f32.mrb[22].mxu0  ;;  %v5131_v58 = vpop.f32.mrb[22].mxu1 }
 0x145   : > { %v2569_v31 = vmax.f32 %v2441_v23, 0.0  ;;  %v2442_v32 = vadd.f32 %v5045_v0, %v1569_v28  ;;  %v1571_v33 = vpop.f32.mrb[23].mxu0  ;;  %4251 = vmatmul.mubr.f32.gmra.mrb[72].mxu1 %v2838_v25  ;;  %v1955_v62 = vpop.f32.mrb[23].mxu1 }
 0x147   : > { %v2704_v36 = vmul.f32 %v5052_v5, %v2569_v31  ;;  %v2570_v37 = vmax.f32 %v2442_v32, 0.0  ;;  %1781 = vmatmul.mubr.bf16.gmra.mrb[128].mxu0 %v4681_v26 }
 0x148   : > { %1788 = vmatprep.mubr.bf16.mxu0 %v4682_v29 }
 0x149   : > { %v2705_v40 = vmul.f32 %v5052_v5, %v2570_v37  ;;  %v2839_v41 = vadd.f32 %v5059_v11, %v2704_v36  ;;  %v4690_v37 = vld [vmem:[%s4848_s19 + $0x230] ss:$8 sps:$4 sm:$0xff]  }
 0x14a   : > { %v1574_v43 = vpop.f32.mrb[24].mxu0  ;;  %v5134_v63 = vpop.f32.mrb[24].mxu1 }
 0x14b   : > { %v2443_v45 = vadd.f32 %v5045_v0, %v1574_v43  ;;  %v1576_v46 = vpop.f32.mrb[25].mxu0  ;;  %4253 = vmatprep.mubr.f32.mxu1 %v2839_v41  ;;  %v2840_v47 = vadd.f32 %v5059_v11, %v2705_v40  ;;  %v1960_v3 = vpop.f32.mrb[25].mxu1  ;;  %v4691_v41 = vld [vmem:[%s4848_s19 + $0x244] ss:$8 sps:$4 sm:$0xff]  }
 0x14c   : > { %v1577_v50 = vpop.f32.mrb[26].mxu0  ;;  %v5138_v6 = vpop.f32.mrb[26].mxu1 }
 0x14d   : > { %v2571_v53 = vmax.f32 %v2443_v45, 0.0  ;;  %v2444_v54 = vadd.f32 %v5045_v0, %v1577_v50  ;;  %v1579_v55 = vpop.f32.mrb[27].mxu0  ;;  %4254 = vmatmul.mubr.f32.gmra.mrb[74].mxu1 %v2840_v47  ;;  %v1963_v14 = vpop.f32.mrb[27].mxu1 }
 0x14f   : > { %v2706_v59 = vmul.f32 %v5052_v5, %v2571_v53  ;;  %v2572_v60 = vmax.f32 %v2444_v54, 0.0  ;;  %1789 = vmatmul.mubr.bf16.gmra.mrb[132].mxu0 %v4684_v48 }
 0x150   : > { %1796 = vmatprep.mubr.bf16.mxu0 %v4685_v51 }
 0x151   : > { %v2707_v1 = vmul.f32 %v5052_v5, %v2572_v60  ;;  %v2841_v2 = vadd.f32 %v5059_v11, %v2706_v59  ;;  %v4693_v60 = vld [vmem:[%s4848_s19 + $0x240] ss:$8 sps:$4 sm:$0xff]  }
 0x152   : > { %v1582_v4 = vpop.f32.mrb[28].mxu0  ;;  %v5144_v18 = vpop.f32.mrb[28].mxu1 }
 0x153   : > { %v2445_v8 = vadd.f32 %v5045_v0, %v1582_v4  ;;  %v1584_v9 = vpop.f32.mrb[29].mxu0  ;;  %4256 = vmatprep.mubr.f32.mxu1 %v2841_v2  ;;  %v2842_v10 = vadd.f32 %v5059_v11, %v2707_v1  ;;  %v1968_v23 = vpop.f32.mrb[29].mxu1  ;;  %v4694_v2 = vld [vmem:[%s4848_s19 + $0x254] ss:$8 sps:$4 sm:$0xff]  }
 0x154   : > { %v1585_v15 = vpop.f32.mrb[30].mxu0  ;;  %v5147_v24 = vpop.f32.mrb[30].mxu1 }
 0x155   : > { %v2573_v19 = vmax.f32 %v2445_v8, 0.0  ;;  %v2446_v20 = vadd.f32 %v5045_v0, %v1585_v15  ;;  %v1587_v21 = vpop.f32.mrb[31].mxu0  ;;  %4257 = vmatmul.mubr.f32.gmra.mrb[76].mxu1 %v2842_v10  ;;  %v1971_v27 = vpop.f32.mrb[31].mxu1 }
 0x157   : > { %v2708_v25 = vmul.f32 %v5052_v5, %v2573_v19  ;;  %v2574_v26 = vmax.f32 %v2446_v20, 0.0  ;;  %1797 = vmatmul.mubr.bf16.gmra.mrb[136].mxu0 %v4687_v12 }
 0x158   : > { %1804 = vmatprep.mubr.bf16.mxu0 %v4688_v16 }
 0x159   : > { %v2709_v28 = vmul.f32 %v5052_v5, %v2574_v26  ;;  %v2843_v29 = vadd.f32 %v5059_v11, %v2708_v25  ;;  %v4696_v26 = vld [vmem:[%s4848_s19 + $0x250] ss:$8 sps:$4 sm:$0xff]  }
 0x15a   : > { %v1590_v31 = vpop.f32.mrb[32].mxu0  ;;  %v5152_v32 = vpop.f32.mrb[32].mxu1 }
 0x15b   : > { %v2447_v33 = vadd.f32 %v5045_v0, %v1590_v31  ;;  %v1592_v34 = vpop.f32.mrb[33].mxu0  ;;  %4259 = vmatprep.mubr.f32.mxu1 %v2843_v29  ;;  %v2844_v36 = vadd.f32 %v5059_v11, %v2709_v28  ;;  %v1976_v38 = vpop.f32.mrb[33].mxu1  ;;  %v4697_v29 = vld [vmem:[%s4848_s19 + $0x264] ss:$8 sps:$4 sm:$0xff]  }
 0x15c   : > { %v1593_v40 = vpop.f32.mrb[34].mxu0  ;;  %v5158_v42 = vpop.f32.mrb[34].mxu1 }
 0x15d   : > { %v2575_v43 = vmax.f32 %v2447_v33, 0.0  ;;  %v2448_v45 = vadd.f32 %v5045_v0, %v1593_v40  ;;  %v1595_v46 = vpop.f32.mrb[35].mxu0  ;;  %4260 = vmatmul.mubr.f32.gmra.mrb[78].mxu1 %v2844_v36  ;;  %v1979_v47 = vpop.f32.mrb[35].mxu1 }
 0x15f   : > { %v2710_v48 = vmul.f32 %v5052_v5, %v2575_v43  ;;  %v2576_v49 = vmax.f32 %v2448_v45, 0.0  ;;  %1805 = vmatmul.mubr.bf16.gmra.mrb[140].mxu0 %v4690_v37 }
 0x160   : > { %1812 = vmatprep.mubr.bf16.mxu0 %v4691_v41 }
 0x161   : > { %v2711_v50 = vmul.f32 %v5052_v5, %v2576_v49  ;;  %v2845_v51 = vadd.f32 %v5059_v11, %v2710_v48 }
 0x162   : > { %v1598_v53 = vpop.f32.mrb[36].mxu0  ;;  %v5164_v54 = vpop.f32.mrb[36].mxu1 }
 0x163   : > { %v2449_v55 = vadd.f32 %v5045_v0, %v1598_v53  ;;  %v1600_v57 = vpop.f32.mrb[37].mxu0  ;;  %4262 = vmatprep.mubr.f32.mxu1 %v2845_v51  ;;  %v2846_v59 = vadd.f32 %v5059_v11, %v2711_v50  ;;  %v1984_v62 = vpop.f32.mrb[37].mxu1  ;;  %v4699_v50 = vld [vmem:[%s4848_s19 + $0x260] ss:$8 sps:$4 sm:$0xff]  }
 0x164   : > { %v1601_v1 = vpop.f32.mrb[38].mxu0  ;;  %v5170_v3 = vpop.f32.mrb[38].mxu1 }
 0x165   : > { %v2577_v4 = vmax.f32 %v2449_v55, 0.0  ;;  %v2450_v8 = vadd.f32 %v5045_v0, %v1601_v1  ;;  %v1603_v9 = vpop.f32.mrb[39].mxu0  ;;  %4263 = vmatmul.mubr.f32.gmra.mrb[80].mxu1 %v2846_v59  ;;  %v1987_v10 = vpop.f32.mrb[39].mxu1  ;;  %v4700_v55 = vld [vmem:[%s4848_s19 + $0x274] ss:$8 sps:$4 sm:$0xff]  }
 0x167   : > { %v2712_v12 = vmul.f32 %v5052_v5, %v2577_v4  ;;  %v2578_v14 = vmax.f32 %v2450_v8, 0.0  ;;  %1813 = vmatmul.mubr.bf16.gmra.mrb[144].mxu0 %v4693_v60 }
 0x168   : > { %1820 = vmatprep.mubr.bf16.mxu0 %v4694_v2 }
 0x169   : > { %v2713_v15 = vmul.f32 %v5052_v5, %v2578_v14  ;;  %v2847_v16 = vadd.f32 %v5059_v11, %v2712_v12 }
 0x16a   : > { %v1606_v19 = vpop.f32.mrb[40].mxu0  ;;  %v5176_v20 = vpop.f32.mrb[40].mxu1 }
 0x16b   : > { %v2451_v21 = vadd.f32 %v5045_v0, %v1606_v19  ;;  %v1608_v23 = vpop.f32.mrb[41].mxu0  ;;  %4265 = vmatprep.mubr.f32.mxu1 %v2847_v16  ;;  %v2848_v25 = vadd.f32 %v5059_v11, %v2713_v15  ;;  %v1992_v27 = vpop.f32.mrb[41].mxu1  ;;  %v4702_v19 = vld [vmem:[%s4848_s19 + $0x270] ss:$8 sps:$4 sm:$0xff]  }
 0x16c   : > { %v1609_v28 = vpop.f32.mrb[42].mxu0  ;;  %v5182_v31 = vpop.f32.mrb[42].mxu1 }
 0x16d   : > { %v2579_v33 = vmax.f32 %v2451_v21, 0.0  ;;  %v2452_v34 = vadd.f32 %v5045_v0, %v1609_v28  ;;  %v1611_v36 = vpop.f32.mrb[43].mxu0  ;;  %4266 = vmatmul.mubr.f32.gmra.mrb[82].mxu1 %v2848_v25  ;;  %v1995_v37 = vpop.f32.mrb[43].mxu1  ;;  %v4703_v25 = vld [vmem:[%s4848_s19 + $0x284] ss:$8 sps:$4 sm:$0xff]  }
 0x16f   : > { %v2714_v38 = vmul.f32 %v5052_v5, %v2579_v33  ;;  %v2580_v40 = vmax.f32 %v2452_v34, 0.0  ;;  %1821 = vmatmul.mubr.bf16.gmra.mrb[148].mxu0 %v4696_v26 }
 0x170   : > { %1828 = vmatprep.mubr.bf16.mxu0 %v4697_v29 }
 0x171   : > { %v2715_v41 = vmul.f32 %v5052_v5, %v2580_v40  ;;  %v2849_v43 = vadd.f32 %v5059_v11, %v2714_v38 }
 0x172   : > { %v1614_v45 = vpop.f32.mrb[44].mxu0  ;;  %v5188_v46 = vpop.f32.mrb[44].mxu1 }
 0x173   : > { %v2453_v47 = vadd.f32 %v5045_v0, %v1614_v45  ;;  %v1616_v48 = vpop.f32.mrb[45].mxu0  ;;  %4268 = vmatprep.mubr.f32.mxu1 %v2849_v43  ;;  %v2850_v49 = vadd.f32 %v5059_v11, %v2715_v41  ;;  %v2000_v51 = vpop.f32.mrb[45].mxu1 }
 0x174   : > { %v1617_v53 = vpop.f32.mrb[46].mxu0  ;;  %v5194_v57 = vpop.f32.mrb[46].mxu1  ;;  %v4705_v48 = vld [vmem:[%s4848_s19 + $0x280] ss:$8 sps:$4 sm:$0xff]   ;;  %v4706_v51 = vld [vmem:[%s4848_s19 + $0x294] ss:$8 sps:$4 sm:$0xff]  }
 0x175   : > { %v2581_v59 = vmax.f32 %v2453_v47, 0.0  ;;  %v2454_v60 = vadd.f32 %v5045_v0, %v1617_v53  ;;  %v1619_v62 = vpop.f32.mrb[47].mxu0  ;;  %4269 = vmatmul.mubr.f32.gmra.mrb[84].mxu1 %v2850_v49  ;;  %v2003_v1 = vpop.f32.mrb[47].mxu1 }
 0x177   : > { %v2716_v2 = vmul.f32 %v5052_v5, %v2581_v59  ;;  %v2582_v4 = vmax.f32 %v2454_v60, 0.0  ;;  %1829 = vmatmul.mubr.bf16.gmra.mrb[152].mxu0 %v4699_v50 }
 0x178   : > { %1836 = vmatprep.mubr.bf16.mxu0 %v4700_v55 }
 0x179   : > { %v2717_v8 = vmul.f32 %v5052_v5, %v2582_v4  ;;  %v2851_v9 = vadd.f32 %v5059_v11, %v2716_v2 }
 0x17a   : > { %v1622_v10 = vpop.f32.mrb[48].mxu0  ;;  %v5200_v12 = vpop.f32.mrb[48].mxu1 }
 0x17b   : > { %v2455_v14 = vadd.f32 %v5045_v0, %v1622_v10  ;;  %v1624_v15 = vpop.f32.mrb[49].mxu0  ;;  %4271 = vmatprep.mubr.f32.mxu1 %v2851_v9  ;;  %v2852_v16 = vadd.f32 %v5059_v11, %v2717_v8  ;;  %v2008_v21 = vpop.f32.mrb[49].mxu1 }
 0x17c   : > { %v1625_v23 = vpop.f32.mrb[50].mxu0  ;;  %v5206_v26 = vpop.f32.mrb[50].mxu1 }
 0x17d   : > { %v2583_v27 = vmax.f32 %v2455_v14, 0.0  ;;  %v2456_v28 = vadd.f32 %v5045_v0, %v1625_v23  ;;  %v1627_v29 = vpop.f32.mrb[51].mxu0  ;;  %4272 = vmatmul.mubr.f32.gmra.mrb[86].mxu1 %v2852_v16  ;;  %v2011_v33 = vpop.f32.mrb[51].mxu1 }
 0x17f   : > { %v2718_v34 = vmul.f32 %v5052_v5, %v2583_v27  ;;  %v2584_v36 = vmax.f32 %v2456_v28, 0.0  ;;  %1837 = vmatmul.mubr.bf16.gmra.mrb[156].mxu0 %v4702_v19  ;;  %v4708_v19 = vld [vmem:[%s4848_s19 + $0x290] ss:$8 sps:$4 sm:$0xff]  }
 0x180   : > { %1844 = vmatprep.mubr.bf16.mxu0 %v4703_v25  ;;  %v4709_v25 = vld [vmem:[%s4848_s19 + $0x2a4] ss:$8 sps:$4 sm:$0xff]  }
 0x181   : > { %v2719_v37 = vmul.f32 %v5052_v5, %v2584_v36  ;;  %v2853_v38 = vadd.f32 %v5059_v11, %v2718_v34 }
 0x182   : > { %v1630_v40 = vpop.f32.mrb[52].mxu0  ;;  %v5212_v41 = vpop.f32.mrb[52].mxu1 }
 0x183   : > { %v2457_v43 = vadd.f32 %v5045_v0, %v1630_v40  ;;  %v1632_v45 = vpop.f32.mrb[53].mxu0  ;;  %4274 = vmatprep.mubr.f32.mxu1 %v2853_v38  ;;  %v2854_v47 = vadd.f32 %v5059_v11, %v2719_v37  ;;  %v2016_v49 = vpop.f32.mrb[53].mxu1 }
 0x184   : > { %v1633_v50 = vpop.f32.mrb[54].mxu0  ;;  %v5218_v53 = vpop.f32.mrb[54].mxu1 }
 0x185   : > { %v2585_v55 = vmax.f32 %v2457_v43, 0.0  ;;  %v2458_v59 = vadd.f32 %v5045_v0, %v1633_v50  ;;  %v1635_v60 = vpop.f32.mrb[55].mxu0  ;;  %4275 = vmatmul.mubr.f32.gmra.mrb[88].mxu1 %v2854_v47  ;;  %v2019_v62 = vpop.f32.mrb[55].mxu1  ;;  %v4711_v50 = vld [vmem:[%s4848_s19 + $0x2a0] ss:$8 sps:$4 sm:$0xff]  }
 0x187   : > { %v2720_v1 = vmul.f32 %v5052_v5, %v2585_v55  ;;  %v2586_v2 = vmax.f32 %v2458_v59, 0.0  ;;  %1845 = vmatmul.mubr.bf16.gmra.mrb[160].mxu0 %v4705_v48  ;;  %v4712_v59 = vld [vmem:[%s4848_s19 + $0x2b4] ss:$8 sps:$4 sm:$0xff]  }
 0x188   : > { %1852 = vmatprep.mubr.bf16.mxu0 %v4706_v51 }
 0x189   : > { %v2721_v4 = vmul.f32 %v5052_v5, %v2586_v2  ;;  %v2855_v8 = vadd.f32 %v5059_v11, %v2720_v1 }
 0x18a   : > { %v1638_v9 = vpop.f32.mrb[56].mxu0  ;;  %v5224_v10 = vpop.f32.mrb[56].mxu1 }
 0x18b   : > { %v2459_v14 = vadd.f32 %v5045_v0, %v1638_v9  ;;  %v1640_v15 = vpop.f32.mrb[57].mxu0  ;;  %4277 = vmatprep.mubr.f32.mxu1 %v2855_v8  ;;  %v2856_v16 = vadd.f32 %v5059_v11, %v2721_v4  ;;  %v2024_v21 = vpop.f32.mrb[57].mxu1 }
 0x18c   : > { %v1641_v23 = vpop.f32.mrb[58].mxu0  ;;  %v5230_v27 = vpop.f32.mrb[58].mxu1 }
 0x18d   : > { %v2587_v28 = vmax.f32 %v2459_v14, 0.0  ;;  %v2460_v29 = vadd.f32 %v5045_v0, %v1641_v23  ;;  %v1643_v33 = vpop.f32.mrb[59].mxu0  ;;  %4278 = vmatmul.mubr.f32.gmra.mrb[90].mxu1 %v2856_v16  ;;  %v2027_v34 = vpop.f32.mrb[59].mxu1 }
 0x18f   : > { %v2722_v36 = vmul.f32 %v5052_v5, %v2587_v28  ;;  %v2588_v37 = vmax.f32 %v2460_v29, 0.0  ;;  %1853 = vmatmul.mubr.bf16.gmra.mrb[164].mxu0 %v4708_v19  ;;  %v4715_v29 = vld [vmem:[%s4848_s19 + $0x2c4] ss:$8 sps:$4 sm:$0xff]  }
 0x190   : > { %1860 = vmatprep.mubr.bf16.mxu0 %v4709_v25  ;;  %v4714_v25 = vld [vmem:[%s4848_s19 + $0x2b0] ss:$8 sps:$4 sm:$0xff]  }
 0x191   : > { %v2723_v38 = vmul.f32 %v5052_v5, %v2588_v37  ;;  %v2857_v40 = vadd.f32 %v5059_v11, %v2722_v36 }
 0x192   : > { %v1646_v43 = vpop.f32.mrb[60].mxu0  ;;  %v5236_v45 = vpop.f32.mrb[60].mxu1 }
 0x193   : > { %v2461_v47 = vadd.f32 %v5045_v0, %v1646_v43  ;;  %v1648_v48 = vpop.f32.mrb[61].mxu0  ;;  %4280 = vmatprep.mubr.f32.mxu1 %v2857_v40  ;;  %v2858_v49 = vadd.f32 %v5059_v11, %v2723_v38  ;;  %v2032_v51 = vpop.f32.mrb[61].mxu1 }
 0x194   : > { %v1649_v55 = vpop.f32.mrb[62].mxu0  ;;  %v5242_v60 = vpop.f32.mrb[62].mxu1  ;;  %v4717_v51 = vld [vmem:[%s4848_s19 + $0x2c0] ss:$8 sps:$4 sm:$0xff]  }
 0x195   : > { %v2589_v62 = vmax.f32 %v2461_v47, 0.0  ;;  %v2462_v1 = vadd.f32 %v5045_v0, %v1649_v55  ;;  %v1651_v2 = vpop.f32.mrb[63].mxu0  ;;  %4281 = vmatmul.mubr.f32.gmra.mrb[92].mxu1 %v2858_v49  ;;  %v2035_v4 = vpop.f32.mrb[63].mxu1 }
 0x197   : > { %v2724_v8 = vmul.f32 %v5052_v5, %v2589_v62  ;;  %v2590_v9 = vmax.f32 %v2462_v1, 0.0  ;;  %1861 = vmatmul.mubr.bf16.gmra.mrb[168].mxu0 %v4711_v50 }
 0x198   : > { %1868 = vmatprep.mubr.bf16.mxu0 %v4712_v59  ;;  %v4718_v59 = vld [vmem:[%s4848_s19 + $0x2d4] ss:$8 sps:$4 sm:$0xff]  }
 0x199   : > { %v2725_v14 = vmul.f32 %v5052_v5, %v2590_v9  ;;  %v2859_v15 = vadd.f32 %v5059_v11, %v2724_v8 }
 0x19a   : > { %v1654_v16 = vpop.f32.mrb[64].mxu0 }
 0x19b   : > { %v2463_v19 = vadd.f32 %v5045_v0, %v1654_v16  ;;  %v1656_v21 = vpop.f32.mrb[65].mxu0  ;;  %4283 = vmatprep.mubr.f32.mxu1 %v2859_v15  ;;  %v2860_v23 = vadd.f32 %v5059_v11, %v2725_v14 }
 0x19c   : > { %v1657_v28 = vpop.f32.mrb[66].mxu0 }
 0x19d   : > { %v2591_v33 = vmax.f32 %v2463_v19, 0.0  ;;  %v2464_v34 = vadd.f32 %v5045_v0, %v1657_v28  ;;  %v1659_v36 = vpop.f32.mrb[67].mxu0  ;;  %4284 = vmatmul.mubr.f32.gmra.mrb[94].mxu1 %v2860_v23  ;;  %v4720_v23 = vld [vmem:[%s4848_s19 + $0x2d0] ss:$8 sps:$4 sm:$0xff]   ;;  %v4721_v28 = vld [vmem:[%s4848_s19 + $0x2e4] ss:$8 sps:$4 sm:$0xff]  }
 0x19f   : > { %v2726_v37 = vmul.f32 %v5052_v5, %v2591_v33  ;;  %v2592_v38 = vmax.f32 %v2464_v34, 0.0  ;;  %1869 = vmatmul.mubr.bf16.gmra.mrb[172].mxu0 %v4714_v25 }
 0x1a0   : > { %1876 = vmatprep.mubr.bf16.mxu0 %v4715_v29 }
 0x1a1   : > { %v2727_v40 = vmul.f32 %v5052_v5, %v2592_v38  ;;  %v2861_v43 = vadd.f32 %v5059_v11, %v2726_v37 }
 0x1a2   : > { %v1662_v47 = vpop.f32.mrb[68].mxu0 }
 0x1a3   : > { %v2465_v48 = vadd.f32 %v5045_v0, %v1662_v47  ;;  %v1664_v49 = vpop.f32.mrb[69].mxu0  ;;  %4286 = vmatprep.mubr.f32.mxu1 %v2861_v43  ;;  %v2862_v50 = vadd.f32 %v5059_v11, %v2727_v40 }
 0x1a4   : > { %v1665_v55 = vpop.f32.mrb[70].mxu0 }
 0x1a5   : > { %v2593_v62 = vmax.f32 %v2465_v48, 0.0  ;;  %v2466_v1 = vadd.f32 %v5045_v0, %v1665_v55  ;;  %v1667_v2 = vpop.f32.mrb[71].mxu0  ;;  %4287 = vmatmul.mubr.f32.gmra.mrb[96].mxu1 %v2862_v50  ;;  %v4723_v50 = vld [vmem:[%s4848_s19 + $0x2e0] ss:$8 sps:$4 sm:$0xff]   ;;  %v4724_v55 = vld [vmem:[%s4848_s19 + $0x2f4] ss:$8 sps:$4 sm:$0xff]  }
 0x1a7   : > { %v2728_v4 = vmul.f32 %v5052_v5, %v2593_v62  ;;  %v2594_v8 = vmax.f32 %v2466_v1, 0.0  ;;  %1877 = vmatmul.mubr.bf16.gmra.mrb[176].mxu0 %v4717_v51 }
 0x1a8   : > { %1884 = vmatprep.mubr.bf16.mxu0 %v4718_v59 }
 0x1a9   : > { %v2729_v9 = vmul.f32 %v5052_v5, %v2594_v8  ;;  %v2863_v14 = vadd.f32 %v5059_v11, %v2728_v4 }
 0x1aa   : > { %v1670_v15 = vpop.f32.mrb[72].mxu0 }
 0x1ab   : > { %v2467_v16 = vadd.f32 %v5045_v0, %v1670_v15  ;;  %v1672_v19 = vpop.f32.mrb[73].mxu0  ;;  %4289 = vmatprep.mubr.f32.mxu1 %v2863_v14  ;;  %v2864_v21 = vadd.f32 %v5059_v11, %v2729_v9 }
 0x1ac   : > { %v1673_v25 = vpop.f32.mrb[74].mxu0 }
 0x1ad   : > { %v2595_v29 = vmax.f32 %v2467_v16, 0.0  ;;  %v2468_v33 = vadd.f32 %v5045_v0, %v1673_v25  ;;  %v1675_v34 = vpop.f32.mrb[75].mxu0  ;;  %4290 = vmatmul.mubr.f32.gmra.mrb[98].mxu1 %v2864_v21  ;;  %v4726_v21 = vld [vmem:[%s4848_s19 + $0x2f0] ss:$8 sps:$4 sm:$0xff]  }
 0x1af   : > { %v2730_v36 = vmul.f32 %v5052_v5, %v2595_v29  ;;  %v2596_v37 = vmax.f32 %v2468_v33, 0.0  ;;  %1885 = vmatmul.mubr.bf16.gmra.mrb[180].mxu0 %v4720_v23 }
 0x1b0   : > { %1892 = vmatprep.mubr.bf16.mxu0 %v4721_v28 }
 0x1b1   : > { %v2731_v38 = vmul.f32 %v5052_v5, %v2596_v37  ;;  %v2865_v40 = vadd.f32 %v5059_v11, %v2730_v36 }
 0x1b2   : > { %v1678_v43 = vpop.f32.mrb[76].mxu0 }
 0x1b3   : > { %v2469_v47 = vadd.f32 %v5045_v0, %v1678_v43  ;;  %v1680_v48 = vpop.f32.mrb[77].mxu0  ;;  %4292 = vmatprep.mubr.f32.mxu1 %v2865_v40  ;;  %v2866_v49 = vadd.f32 %v5059_v11, %v2731_v38 }
 0x1b4   : > { %v1681_v51 = vpop.f32.mrb[78].mxu0 }
 0x1b5   : > { %v2597_v59 = vmax.f32 %v2469_v47, 0.0  ;;  %v2470_v62 = vadd.f32 %v5045_v0, %v1681_v51  ;;  %v1683_v1 = vpop.f32.mrb[79].mxu0  ;;  %4293 = vmatmul.mubr.f32.gmra.mrb[100].mxu1 %v2866_v49 }
 0x1b7   : > { %v2732_v2 = vmul.f32 %v5052_v5, %v2597_v59  ;;  %v2598_v4 = vmax.f32 %v2470_v62, 0.0  ;;  %1893 = vmatmul.mubr.bf16.gmra.mrb[184].mxu0 %v4723_v50 }
 0x1b8   : > { %1900 = vmatprep.mubr.bf16.mxu0 %v4724_v55 }
 0x1b9   : > { %v2733_v8 = vmul.f32 %v5052_v5, %v2598_v4  ;;  %v2867_v9 = vadd.f32 %v5059_v11, %v2732_v2 }
 0x1ba   : > { %v1686_v14 = vpop.f32.mrb[80].mxu0 }
 0x1bb   : > { %v2471_v15 = vadd.f32 %v5045_v0, %v1686_v14  ;;  %v1688_v16 = vpop.f32.mrb[81].mxu0  ;;  %4295 = vmatprep.mubr.f32.mxu1 %v2867_v9  ;;  %v2868_v19 = vadd.f32 %v5059_v11, %v2733_v8 }
 0x1bc   : > { %v1689_v23 = vpop.f32.mrb[82].mxu0 }
 0x1bd   : > { %v2599_v25 = vmax.f32 %v2471_v15, 0.0  ;;  %v2472_v28 = vadd.f32 %v5045_v0, %v1689_v23  ;;  %v1691_v29 = vpop.f32.mrb[83].mxu0  ;;  %4296 = vmatmul.mubr.f32.gmra.mrb[102].mxu1 %v2868_v19 }
 0x1bf   : > { %v2734_v33 = vmul.f32 %v5052_v5, %v2599_v25  ;;  %v2600_v34 = vmax.f32 %v2472_v28, 0.0  ;;  %1901 = vmatmul.mubr.bf16.gmra.mrb[188].mxu0 %v4726_v21 }
 0x1c1   : > { %v2735_v36 = vmul.f32 %v5052_v5, %v2600_v34  ;;  %v2869_v37 = vadd.f32 %v5059_v11, %v2734_v33 }
 0x1c2   : > { %v1694_v38 = vpop.f32.mrb[84].mxu0 }
 0x1c3   : > { %v2473_v40 = vadd.f32 %v5045_v0, %v1694_v38  ;;  %v1696_v43 = vpop.f32.mrb[85].mxu0  ;;  %4298 = vmatprep.mubr.f32.mxu1 %v2869_v37  ;;  %v2870_v47 = vadd.f32 %v5059_v11, %v2735_v36 }
 0x1c4   : > { %v1697_v48 = vpop.f32.mrb[86].mxu0 }
 0x1c5   : > { %v2601_v49 = vmax.f32 %v2473_v40, 0.0  ;;  %v2474_v50 = vadd.f32 %v5045_v0, %v1697_v48  ;;  %v1699_v51 = vpop.f32.mrb[87].mxu0  ;;  %4299 = vmatmul.mubr.f32.gmra.mrb[104].mxu1 %v2870_v47 }
 0x1c7   : > { %v2736_v55 = vmul.f32 %v5052_v5, %v2601_v49  ;;  %v2602_v59 = vmax.f32 %v2474_v50, 0.0 }
 0x1c9   : > { %v2737_v62 = vmul.f32 %v5052_v5, %v2602_v59  ;;  %v2871_v1 = vadd.f32 %v5059_v11, %v2736_v55 }
 0x1ca   : > { %v1702_v2 = vpop.f32.mrb[88].mxu0 }
 0x1cb   : > { %v2475_v4 = vadd.f32 %v5045_v0, %v1702_v2  ;;  %v1704_v8 = vpop.f32.mrb[89].mxu0  ;;  %4301 = vmatprep.mubr.f32.mxu1 %v2871_v1  ;;  %v2872_v9 = vadd.f32 %v5059_v11, %v2737_v62 }
 0x1cc   : > { %v1705_v14 = vpop.f32.mrb[90].mxu0 }
 0x1cd   : > { %v2603_v15 = vmax.f32 %v2475_v4, 0.0  ;;  %v2476_v16 = vadd.f32 %v5045_v0, %v1705_v14  ;;  %v1707_v19 = vpop.f32.mrb[91].mxu0  ;;  %4302 = vmatmul.mubr.f32.gmra.mrb[106].mxu1 %v2872_v9 }
 0x1cf   : > { %v2738_v21 = vmul.f32 %v5052_v5, %v2603_v15  ;;  %v2604_v23 = vmax.f32 %v2476_v16, 0.0 }
 0x1d1   : > { %v2739_v25 = vmul.f32 %v5052_v5, %v2604_v23  ;;  %v2873_v28 = vadd.f32 %v5059_v11, %v2738_v21 }
 0x1d2   : > { %v1710_v29 = vpop.f32.mrb[92].mxu0 }
 0x1d3   : > { %v2477_v33 = vadd.f32 %v5045_v0, %v1710_v29  ;;  %v1712_v34 = vpop.f32.mrb[93].mxu0  ;;  %4304 = vmatprep.mubr.f32.mxu1 %v2873_v28  ;;  %v2874_v36 = vadd.f32 %v5059_v11, %v2739_v25 }
 0x1d4   : > { %v1713_v37 = vpop.f32.mrb[94].mxu0 }
 0x1d5   : > { %v2605_v38 = vmax.f32 %v2477_v33, 0.0  ;;  %v2478_v40 = vadd.f32 %v5045_v0, %v1713_v37  ;;  %v1715_v43 = vpop.f32.mrb[95].mxu0  ;;  %4305 = vmatmul.mubr.f32.gmra.mrb[108].mxu1 %v2874_v36 }
 0x1d7   : > { %v2740_v47 = vmul.f32 %v5052_v5, %v2605_v38  ;;  %v2606_v48 = vmax.f32 %v2478_v40, 0.0 }
 0x1d9   : > { %v2741_v49 = vmul.f32 %v5052_v5, %v2606_v48  ;;  %v2875_v50 = vadd.f32 %v5059_v11, %v2740_v47  ;;  %v5320_v47 = vld [vmem:[%s6020_s2] ss:$0 sm:$0xff] }
 0x1da   : > { %v1718_v51 = vpop.f32.mrb[96].mxu0 }
 0x1db   : > { %v2479_v55 = vadd.f32 %v5045_v0, %v1718_v51  ;;  %v1720_v59 = vpop.f32.mrb[97].mxu0  ;;  %4307 = vmatprep.mubr.f32.mxu1 %v2875_v50  ;;  %v2876_v62 = vadd.f32 %v5059_v11, %v2741_v49 }
 0x1dc   : > { %v1721_v1 = vpop.f32.mrb[98].mxu0 }
 0x1dd   : > { %v2607_v2 = vmax.f32 %v2479_v55, 0.0  ;;  %v2480_v4 = vadd.f32 %v5045_v0, %v1721_v1  ;;  %v1723_v8 = vpop.f32.mrb[99].mxu0  ;;  %4308 = vmatmul.mubr.f32.gmra.mrb[110].mxu1 %v2876_v62 }
 0x1df   : > { %v2742_v9 = vmul.f32 %v5052_v5, %v2607_v2  ;;  %v2608_v14 = vmax.f32 %v2480_v4, 0.0 }
 0x1e1   : > { %v2743_v15 = vmul.f32 %v5052_v5, %v2608_v14  ;;  %v2877_v16 = vadd.f32 %v5059_v11, %v2742_v9 }
 0x1e2   : > { %v1726_v19 = vpop.f32.mrb[100].mxu0 }
 0x1e3   : > { %v2481_v21 = vadd.f32 %v5045_v0, %v1726_v19  ;;  %v1728_v23 = vpop.f32.mrb[101].mxu0  ;;  %4310 = vmatprep.mubr.f32.mxu1 %v2877_v16  ;;  %v2878_v25 = vadd.f32 %v5059_v11, %v2743_v15 }
 0x1e4   : > { %v1729_v28 = vpop.f32.mrb[102].mxu0 }
 0x1e5   : > { %v2609_v29 = vmax.f32 %v2481_v21, 0.0  ;;  %v2482_v33 = vadd.f32 %v5045_v0, %v1729_v28  ;;  %v1731_v34 = vpop.f32.mrb[103].mxu0  ;;  %4311 = vmatmul.mubr.f32.gmra.mrb[112].mxu1 %v2878_v25  ;;  %v5344_v25 = vld [vmem:[%s6024_s6] ss:$0 sm:$0xff] }
 0x1e7   : > { %v2744_v36 = vmul.f32 %v5052_v5, %v2609_v29  ;;  %v2610_v37 = vmax.f32 %v2482_v33, 0.0 }
 0x1e9   : > { %v2745_v38 = vmul.f32 %v5052_v5, %v2610_v37  ;;  %v2879_v40 = vadd.f32 %v5059_v11, %v2744_v36  ;;  %v5328_v5 = vld [vmem:[%s6021_s3] ss:$0 sm:$0xff] }
 0x1ea   : > { %v1734_v43 = vpop.f32.mrb[104].mxu0 }
 0x1eb   : > { %v2483_v48 = vadd.f32 %v5320_v47, %v1734_v43  ;;  %v1736_v49 = vpop.f32.mrb[105].mxu0  ;;  %4313 = vmatprep.mubr.f32.mxu1 %v2879_v40  ;;  %v2880_v0 = vadd.f32 %v5059_v11, %v2745_v38  ;;  %v5335_v11 = vld [vmem:[%s6022_s4] ss:$0 sm:$0xff] }
 0x1ec   : > { %v1737_v50 = vpop.f32.mrb[106].mxu0 }
 0x1ed   : > { %v2611_v51 = vmax.f32 %v2483_v48, 0.0  ;;  %v2484_v55 = vadd.f32 %v5320_v47, %v1737_v50  ;;  %v1739_v59 = vpop.f32.mrb[107].mxu0  ;;  %4314 = vmatmul.mubr.f32.gmra.mrb[114].mxu1 %v2880_v0 }
 0x1ef   : > { %v2746_v62 = vmul.f32 %v5328_v5, %v2611_v51  ;;  %v2612_v1 = vmax.f32 %v2484_v55, 0.0 }
 0x1f1   : > { %v2747_v2 = vmul.f32 %v5328_v5, %v2612_v1  ;;  %v2881_v4 = vadd.f32 %v5335_v11, %v2746_v62 }
 0x1f2   : > { %v1742_v8 = vpop.f32.mrb[108].mxu0 }
 0x1f3   : > { %v2485_v9 = vadd.f32 %v5320_v47, %v1742_v8  ;;  %v1744_v14 = vpop.f32.mrb[109].mxu0  ;;  %4316 = vmatprep.mubr.f32.mxu1 %v2881_v4  ;;  %v2882_v15 = vadd.f32 %v5335_v11, %v2747_v2 }
 0x1f4   : > { %v1745_v16 = vpop.f32.mrb[110].mxu0 }
 0x1f5   : > { %v2613_v19 = vmax.f32 %v2485_v9, 0.0  ;;  %v2486_v21 = vadd.f32 %v5320_v47, %v1745_v16  ;;  %v1747_v23 = vpop.f32.mrb[111].mxu0  ;;  %4317 = vmatmul.mubr.f32.gmra.mrb[116].mxu1 %v2882_v15 }
 0x1f7   : > { %v2748_v28 = vmul.f32 %v5328_v5, %v2613_v19  ;;  %v2614_v29 = vmax.f32 %v2486_v21, 0.0 }
 0x1f8   : > { %v4240_v33 = vpop.f32.mrb[64].mxu1 }
 0x1f9   : > { %v2749_v34 = vmul.f32 %v5328_v5, %v2614_v29  ;;  %v3052_v36 = vadd.f32 %v4240_v33, %v5344_v25  ;;  %v3046_v37 = vpop.f32.mrb[65].mxu1  ;;  %v2883_v38 = vadd.f32 %v5335_v11, %v2748_v28 }
 0x1fa   : > { %v3047_v40 = vadd.f32 %v5344_v25, %v3046_v37  ;;  %v1750_v43 = vpop.f32.mrb[112].mxu0 }
 0x1fb   : > { %3687 = vst.msk [vmem:[%s5352_s21 + $0x8] sm:$0xff] %vm3685_vm0, %v3052_v36  ;;  %v2487_v48 = vadd.f32 %v5320_v47, %v1750_v43  ;;  %v1752_v49 = vpop.f32.mrb[113].mxu0  ;;  %4319 = vmatprep.mubr.f32.mxu1 %v2883_v38  ;;  %v2884_v0 = vadd.f32 %v5335_v11, %v2749_v34 }
 0x1fc   : > { %3686 = vst.msk [vmem:[%s5352_s21] sm:$0xff] %vm3685_vm0, %v3047_v40  ;;  %v1753_v50 = vpop.f32.mrb[114].mxu0 }
 0x1fd   : > { %v2615_v51 = vmax.f32 %v2487_v48, 0.0  ;;  %v2488_v55 = vadd.f32 %v5320_v47, %v1753_v50  ;;  %v1755_v59 = vpop.f32.mrb[115].mxu0  ;;  %4320 = vmatmul.mubr.f32.gmra.mrb[118].mxu1 %v2884_v0 }
 0x1ff   : > { %v2750_v62 = vmul.f32 %v5328_v5, %v2615_v51  ;;  %v2616_v1 = vmax.f32 %v2488_v55, 0.0 }
 0x200   : > { %v4243_v2 = vpop.f32.mrb[66].mxu1 }
 0x201   : > { %v2751_v4 = vmul.f32 %v5328_v5, %v2616_v1  ;;  %v3062_v8 = vadd.f32 %v4243_v2, %v5344_v25  ;;  %v3056_v9 = vpop.f32.mrb[67].mxu1  ;;  %v2885_v14 = vadd.f32 %v5335_v11, %v2750_v62 }
 0x202   : > { %v3057_v15 = vadd.f32 %v5344_v25, %v3056_v9  ;;  %v1758_v16 = vpop.f32.mrb[116].mxu0 }
 0x203   : > { %3689 = vst.msk [vmem:[%s5352_s21 + $0x18] sm:$0xff] %vm3685_vm0, %v3062_v8  ;;  %v2489_v19 = vadd.f32 %v5320_v47, %v1758_v16  ;;  %v1760_v21 = vpop.f32.mrb[117].mxu0  ;;  %4322 = vmatprep.mubr.f32.mxu1 %v2885_v14  ;;  %v2886_v23 = vadd.f32 %v5335_v11, %v2751_v4 }
 0x204   : > { %3688 = vst.msk [vmem:[%s5352_s21 + $0x10] sm:$0xff] %vm3685_vm0, %v3057_v15  ;;  %v1761_v28 = vpop.f32.mrb[118].mxu0 }
 0x205   : > { %v2617_v29 = vmax.f32 %v2489_v19, 0.0  ;;  %v2490_v33 = vadd.f32 %v5320_v47, %v1761_v28  ;;  %v1763_v34 = vpop.f32.mrb[119].mxu0  ;;  %4323 = vmatmul.mubr.f32.gmra.mrb[120].mxu1 %v2886_v23 }
 0x207   : > { %v2752_v36 = vmul.f32 %v5328_v5, %v2617_v29  ;;  %v2618_v37 = vmax.f32 %v2490_v33, 0.0 }
 0x208   : > { %v4246_v38 = vpop.f32.mrb[68].mxu1 }
 0x209   : > { %v2753_v40 = vmul.f32 %v5328_v5, %v2618_v37  ;;  %v3072_v43 = vadd.f32 %v4246_v38, %v5344_v25  ;;  %v3066_v48 = vpop.f32.mrb[69].mxu1  ;;  %v2887_v49 = vadd.f32 %v5335_v11, %v2752_v36 }
 0x20a   : > { %v3067_v0 = vadd.f32 %v5344_v25, %v3066_v48  ;;  %v1766_v50 = vpop.f32.mrb[120].mxu0 }
 0x20b   : > { %3691 = vst.msk [vmem:[%s5352_s21 + $0x28] sm:$0xff] %vm3685_vm0, %v3072_v43  ;;  %v2491_v51 = vadd.f32 %v5320_v47, %v1766_v50  ;;  %v1768_v55 = vpop.f32.mrb[121].mxu0  ;;  %4325 = vmatprep.mubr.f32.mxu1 %v2887_v49  ;;  %v2888_v59 = vadd.f32 %v5335_v11, %v2753_v40 }
 0x20c   : > { %3690 = vst.msk [vmem:[%s5352_s21 + $0x20] sm:$0xff] %vm3685_vm0, %v3067_v0  ;;  %v1769_v62 = vpop.f32.mrb[122].mxu0 }
 0x20d   : > { %v2619_v1 = vmax.f32 %v2491_v51, 0.0  ;;  %v2492_v2 = vadd.f32 %v5320_v47, %v1769_v62  ;;  %v1771_v4 = vpop.f32.mrb[123].mxu0  ;;  %4326 = vmatmul.mubr.f32.gmra.mrb[122].mxu1 %v2888_v59 }
 0x20f   : > { %v2754_v8 = vmul.f32 %v5328_v5, %v2619_v1  ;;  %v2620_v9 = vmax.f32 %v2492_v2, 0.0 }
 0x210   : > { %v4249_v14 = vpop.f32.mrb[70].mxu1 }
 0x211   : > { %v2755_v15 = vmul.f32 %v5328_v5, %v2620_v9  ;;  %v3082_v16 = vadd.f32 %v4249_v14, %v5344_v25  ;;  %v3076_v19 = vpop.f32.mrb[71].mxu1  ;;  %v2889_v21 = vadd.f32 %v5335_v11, %v2754_v8 }
 0x212   : > { %v3077_v23 = vadd.f32 %v5344_v25, %v3076_v19  ;;  %v1774_v28 = vpop.f32.mrb[124].mxu0 }
 0x213   : > { %3693 = vst.msk [vmem:[%s5352_s21 + $0x38] sm:$0xff] %vm3685_vm0, %v3082_v16  ;;  %v2493_v29 = vadd.f32 %v5320_v47, %v1774_v28  ;;  %v1776_v33 = vpop.f32.mrb[125].mxu0  ;;  %4328 = vmatprep.mubr.f32.mxu1 %v2889_v21  ;;  %v2890_v34 = vadd.f32 %v5335_v11, %v2755_v15 }
 0x214   : > { %3692 = vst.msk [vmem:[%s5352_s21 + $0x30] sm:$0xff] %vm3685_vm0, %v3077_v23  ;;  %v1777_v36 = vpop.f32.mrb[126].mxu0 }
 0x215   : > { %v2621_v37 = vmax.f32 %v2493_v29, 0.0  ;;  %v2494_v38 = vadd.f32 %v5320_v47, %v1777_v36  ;;  %v1779_v40 = vpop.f32.mrb[127].mxu0  ;;  %4329 = vmatmul.mubr.f32.gmra.mrb[124].mxu1 %v2890_v34 }
 0x217   : > { %v2756_v43 = vmul.f32 %v5328_v5, %v2621_v37  ;;  %v2622_v48 = vmax.f32 %v2494_v38, 0.0 }
 0x218   : > { %v4252_v49 = vpop.f32.mrb[72].mxu1 }
 0x219   : > { %v2757_v0 = vmul.f32 %v5328_v5, %v2622_v48  ;;  %v3092_v50 = vadd.f32 %v4252_v49, %v5344_v25  ;;  %v3086_v51 = vpop.f32.mrb[73].mxu1  ;;  %v2891_v55 = vadd.f32 %v5335_v11, %v2756_v43 }
 0x21a   : > { %v3087_v59 = vadd.f32 %v5344_v25, %v3086_v51  ;;  %v1782_v62 = vpop.f32.mrb[128].mxu0 }
 0x21b   : > { %3695 = vst.msk [vmem:[%s5352_s21 + $0x48] sm:$0xff] %vm3685_vm0, %v3092_v50  ;;  %v2495_v1 = vadd.f32 %v5320_v47, %v1782_v62  ;;  %v1784_v2 = vpop.f32.mrb[129].mxu0  ;;  %4331 = vmatprep.mubr.f32.mxu1 %v2891_v55  ;;  %v2892_v4 = vadd.f32 %v5335_v11, %v2757_v0 }
 0x21c   : > { %3694 = vst.msk [vmem:[%s5352_s21 + $0x40] sm:$0xff] %vm3685_vm0, %v3087_v59  ;;  %v1785_v8 = vpop.f32.mrb[130].mxu0 }
 0x21d   : > { %v2623_v9 = vmax.f32 %v2495_v1, 0.0  ;;  %v2496_v14 = vadd.f32 %v5320_v47, %v1785_v8  ;;  %v1787_v15 = vpop.f32.mrb[131].mxu0  ;;  %4332 = vmatmul.mubr.f32.gmra.mrb[126].mxu1 %v2892_v4 }
 0x21f   : > { %v2758_v16 = vmul.f32 %v5328_v5, %v2623_v9  ;;  %v2624_v19 = vmax.f32 %v2496_v14, 0.0 }
 0x220   : > { %v4255_v21 = vpop.f32.mrb[74].mxu1 }
 0x221   : > { %v2759_v23 = vmul.f32 %v5328_v5, %v2624_v19  ;;  %v3102_v28 = vadd.f32 %v4255_v21, %v5344_v25  ;;  %v3096_v29 = vpop.f32.mrb[75].mxu1  ;;  %v2893_v33 = vadd.f32 %v5335_v11, %v2758_v16 }
 0x222   : > { %v3097_v34 = vadd.f32 %v5344_v25, %v3096_v29  ;;  %v1790_v36 = vpop.f32.mrb[132].mxu0 }
 0x223   : > { %3697 = vst.msk [vmem:[%s5352_s21 + $0x58] sm:$0xff] %vm3685_vm0, %v3102_v28  ;;  %v2497_v37 = vadd.f32 %v5320_v47, %v1790_v36  ;;  %v1792_v38 = vpop.f32.mrb[133].mxu0  ;;  %4334 = vmatprep.mubr.f32.mxu1 %v2893_v33  ;;  %v2894_v40 = vadd.f32 %v5335_v11, %v2759_v23 }
 0x224   : > { %3696 = vst.msk [vmem:[%s5352_s21 + $0x50] sm:$0xff] %vm3685_vm0, %v3097_v34  ;;  %v1793_v43 = vpop.f32.mrb[134].mxu0 }
 0x225   : > { %v2625_v48 = vmax.f32 %v2497_v37, 0.0  ;;  %v2498_v49 = vadd.f32 %v5320_v47, %v1793_v43  ;;  %v1795_v0 = vpop.f32.mrb[135].mxu0  ;;  %4335 = vmatmul.mubr.f32.gmra.mrb[128].mxu1 %v2894_v40 }
 0x227   : > { %v2760_v50 = vmul.f32 %v5328_v5, %v2625_v48  ;;  %v2626_v51 = vmax.f32 %v2498_v49, 0.0 }
 0x228   : > { %v4258_v55 = vpop.f32.mrb[76].mxu1 }
 0x229   : > { %v2761_v59 = vmul.f32 %v5328_v5, %v2626_v51  ;;  %v3112_v62 = vadd.f32 %v4258_v55, %v5344_v25  ;;  %v3106_v1 = vpop.f32.mrb[77].mxu1  ;;  %v2895_v2 = vadd.f32 %v5335_v11, %v2760_v50 }
 0x22a   : > { %v3107_v4 = vadd.f32 %v5344_v25, %v3106_v1  ;;  %v1798_v8 = vpop.f32.mrb[136].mxu0 }
 0x22b   : > { %3699 = vst.msk [vmem:[%s5352_s21 + $0x68] sm:$0xff] %vm3685_vm0, %v3112_v62  ;;  %v2499_v9 = vadd.f32 %v5320_v47, %v1798_v8  ;;  %v1800_v14 = vpop.f32.mrb[137].mxu0  ;;  %4337 = vmatprep.mubr.f32.mxu1 %v2895_v2  ;;  %v2896_v15 = vadd.f32 %v5335_v11, %v2761_v59 }
 0x22c   : > { %3698 = vst.msk [vmem:[%s5352_s21 + $0x60] sm:$0xff] %vm3685_vm0, %v3107_v4  ;;  %v1801_v16 = vpop.f32.mrb[138].mxu0 }
 0x22d   : > { %v2627_v19 = vmax.f32 %v2499_v9, 0.0  ;;  %v2500_v21 = vadd.f32 %v5320_v47, %v1801_v16  ;;  %v1803_v23 = vpop.f32.mrb[139].mxu0  ;;  %4338 = vmatmul.mubr.f32.gmra.mrb[130].mxu1 %v2896_v15 }
 0x22f   : > { %v2762_v28 = vmul.f32 %v5328_v5, %v2627_v19  ;;  %v2628_v29 = vmax.f32 %v2500_v21, 0.0 }
 0x230   : > { %v4261_v33 = vpop.f32.mrb[78].mxu1 }
 0x231   : > { %v2763_v34 = vmul.f32 %v5328_v5, %v2628_v29  ;;  %v3122_v36 = vadd.f32 %v4261_v33, %v5344_v25  ;;  %v3116_v37 = vpop.f32.mrb[79].mxu1  ;;  %v2897_v38 = vadd.f32 %v5335_v11, %v2762_v28 }
 0x232   : > { %v3117_v40 = vadd.f32 %v5344_v25, %v3116_v37  ;;  %v1806_v43 = vpop.f32.mrb[140].mxu0 }
 0x233   : > { %3701 = vst.msk [vmem:[%s5352_s21 + $0x78] sm:$0xff] %vm3685_vm0, %v3122_v36  ;;  %v2501_v48 = vadd.f32 %v5320_v47, %v1806_v43  ;;  %v1808_v49 = vpop.f32.mrb[141].mxu0  ;;  %4340 = vmatprep.mubr.f32.mxu1 %v2897_v38  ;;  %v2898_v0 = vadd.f32 %v5335_v11, %v2763_v34 }
 0x234   : > { %3700 = vst.msk [vmem:[%s5352_s21 + $0x70] sm:$0xff] %vm3685_vm0, %v3117_v40  ;;  %v1809_v50 = vpop.f32.mrb[142].mxu0 }
 0x235   : > { %v2629_v51 = vmax.f32 %v2501_v48, 0.0  ;;  %v2502_v55 = vadd.f32 %v5320_v47, %v1809_v50  ;;  %v1811_v59 = vpop.f32.mrb[143].mxu0  ;;  %4341 = vmatmul.mubr.f32.gmra.mrb[132].mxu1 %v2898_v0 }
 0x237   : > { %v2764_v62 = vmul.f32 %v5328_v5, %v2629_v51  ;;  %v2630_v1 = vmax.f32 %v2502_v55, 0.0 }
 0x238   : > { %v4264_v2 = vpop.f32.mrb[80].mxu1 }
 0x239   : > { %v2765_v4 = vmul.f32 %v5328_v5, %v2630_v1  ;;  %v3132_v8 = vadd.f32 %v4264_v2, %v5344_v25  ;;  %v3126_v9 = vpop.f32.mrb[81].mxu1  ;;  %v2899_v14 = vadd.f32 %v5335_v11, %v2764_v62 }
 0x23a   : > { %v3127_v15 = vadd.f32 %v5344_v25, %v3126_v9  ;;  %v1814_v16 = vpop.f32.mrb[144].mxu0 }
 0x23b   : > { %3703 = vst.msk [vmem:[%s5352_s21 + $0x88] sm:$0xff] %vm3685_vm0, %v3132_v8  ;;  %v2503_v19 = vadd.f32 %v5320_v47, %v1814_v16  ;;  %v1816_v21 = vpop.f32.mrb[145].mxu0  ;;  %4343 = vmatprep.mubr.f32.mxu1 %v2899_v14  ;;  %v2900_v23 = vadd.f32 %v5335_v11, %v2765_v4 }
 0x23c   : > { %3702 = vst.msk [vmem:[%s5352_s21 + $0x80] sm:$0xff] %vm3685_vm0, %v3127_v15  ;;  %v1817_v28 = vpop.f32.mrb[146].mxu0 }
 0x23d   : > { %v2631_v29 = vmax.f32 %v2503_v19, 0.0  ;;  %v2504_v33 = vadd.f32 %v5320_v47, %v1817_v28  ;;  %v1819_v34 = vpop.f32.mrb[147].mxu0  ;;  %4344 = vmatmul.mubr.f32.gmra.mrb[134].mxu1 %v2900_v23 }
 0x23f   : > { %v2766_v36 = vmul.f32 %v5328_v5, %v2631_v29  ;;  %v2632_v37 = vmax.f32 %v2504_v33, 0.0 }
 0x240   : > { %v4267_v38 = vpop.f32.mrb[82].mxu1 }
 0x241   : > { %v2767_v40 = vmul.f32 %v5328_v5, %v2632_v37  ;;  %v3142_v43 = vadd.f32 %v4267_v38, %v5344_v25  ;;  %v3136_v48 = vpop.f32.mrb[83].mxu1  ;;  %v2901_v49 = vadd.f32 %v5335_v11, %v2766_v36 }
 0x242   : > { %v3137_v0 = vadd.f32 %v5344_v25, %v3136_v48  ;;  %v1822_v50 = vpop.f32.mrb[148].mxu0 }
 0x243   : > { %3705 = vst.msk [vmem:[%s5352_s21 + $0x98] sm:$0xff] %vm3685_vm0, %v3142_v43  ;;  %v2505_v51 = vadd.f32 %v5320_v47, %v1822_v50  ;;  %v1824_v55 = vpop.f32.mrb[149].mxu0  ;;  %4346 = vmatprep.mubr.f32.mxu1 %v2901_v49  ;;  %v2902_v59 = vadd.f32 %v5335_v11, %v2767_v40 }
 0x244   : > { %3704 = vst.msk [vmem:[%s5352_s21 + $0x90] sm:$0xff] %vm3685_vm0, %v3137_v0  ;;  %v1825_v62 = vpop.f32.mrb[150].mxu0 }
 0x245   : > { %v2633_v1 = vmax.f32 %v2505_v51, 0.0  ;;  %v2506_v2 = vadd.f32 %v5320_v47, %v1825_v62  ;;  %v1827_v4 = vpop.f32.mrb[151].mxu0  ;;  %4347 = vmatmul.mubr.f32.gmra.mrb[136].mxu1 %v2902_v59 }
 0x247   : > { %v2768_v8 = vmul.f32 %v5328_v5, %v2633_v1  ;;  %v2634_v9 = vmax.f32 %v2506_v2, 0.0 }
 0x248   : > { %v4270_v14 = vpop.f32.mrb[84].mxu1 }
 0x249   : > { %v2769_v15 = vmul.f32 %v5328_v5, %v2634_v9  ;;  %v3152_v16 = vadd.f32 %v4270_v14, %v5344_v25  ;;  %v3146_v19 = vpop.f32.mrb[85].mxu1  ;;  %v2903_v21 = vadd.f32 %v5335_v11, %v2768_v8 }
 0x24a   : > { %v3147_v23 = vadd.f32 %v5344_v25, %v3146_v19  ;;  %v1830_v28 = vpop.f32.mrb[152].mxu0 }
 0x24b   : > { %3707 = vst.msk [vmem:[%s5352_s21 + $0xa8] sm:$0xff] %vm3685_vm0, %v3152_v16  ;;  %v2507_v29 = vadd.f32 %v5320_v47, %v1830_v28  ;;  %v1832_v33 = vpop.f32.mrb[153].mxu0  ;;  %4349 = vmatprep.mubr.f32.mxu1 %v2903_v21  ;;  %v2904_v34 = vadd.f32 %v5335_v11, %v2769_v15 }
 0x24c   : > { %3706 = vst.msk [vmem:[%s5352_s21 + $0xa0] sm:$0xff] %vm3685_vm0, %v3147_v23  ;;  %v1833_v36 = vpop.f32.mrb[154].mxu0 }
 0x24d   : > { %v2635_v37 = vmax.f32 %v2507_v29, 0.0  ;;  %v2508_v38 = vadd.f32 %v5320_v47, %v1833_v36  ;;  %v1835_v40 = vpop.f32.mrb[155].mxu0  ;;  %4350 = vmatmul.mubr.f32.gmra.mrb[138].mxu1 %v2904_v34 }
 0x24f   : > { %v2770_v43 = vmul.f32 %v5328_v5, %v2635_v37  ;;  %v2636_v48 = vmax.f32 %v2508_v38, 0.0 }
 0x250   : > { %v4273_v49 = vpop.f32.mrb[86].mxu1 }
 0x251   : > { %v2771_v0 = vmul.f32 %v5328_v5, %v2636_v48  ;;  %v3162_v50 = vadd.f32 %v4273_v49, %v5344_v25  ;;  %v3156_v51 = vpop.f32.mrb[87].mxu1  ;;  %v2905_v55 = vadd.f32 %v5335_v11, %v2770_v43 }
 0x252   : > { %v3157_v59 = vadd.f32 %v5344_v25, %v3156_v51  ;;  %v1838_v62 = vpop.f32.mrb[156].mxu0 }
 0x253   : > { %3709 = vst.msk [vmem:[%s5352_s21 + $0xb8] sm:$0xff] %vm3685_vm0, %v3162_v50  ;;  %v2509_v1 = vadd.f32 %v5320_v47, %v1838_v62  ;;  %v1840_v2 = vpop.f32.mrb[157].mxu0  ;;  %4352 = vmatprep.mubr.f32.mxu1 %v2905_v55  ;;  %v2906_v4 = vadd.f32 %v5335_v11, %v2771_v0 }
 0x254   : > { %3708 = vst.msk [vmem:[%s5352_s21 + $0xb0] sm:$0xff] %vm3685_vm0, %v3157_v59  ;;  %v1841_v8 = vpop.f32.mrb[158].mxu0 }
 0x255   : > { %v2637_v9 = vmax.f32 %v2509_v1, 0.0  ;;  %v2510_v14 = vadd.f32 %v5320_v47, %v1841_v8  ;;  %v1843_v15 = vpop.f32.mrb[159].mxu0  ;;  %4353 = vmatmul.mubr.f32.gmra.mrb[140].mxu1 %v2906_v4 }
 0x257   : > { %v2772_v16 = vmul.f32 %v5328_v5, %v2637_v9  ;;  %v2638_v19 = vmax.f32 %v2510_v14, 0.0 }
 0x258   : > { %v4276_v21 = vpop.f32.mrb[88].mxu1 }
 0x259   : > { %v2773_v23 = vmul.f32 %v5328_v5, %v2638_v19  ;;  %v3172_v28 = vadd.f32 %v4276_v21, %v5344_v25  ;;  %v3166_v29 = vpop.f32.mrb[89].mxu1  ;;  %v2907_v33 = vadd.f32 %v5335_v11, %v2772_v16 }
 0x25a   : > { %v3167_v34 = vadd.f32 %v5344_v25, %v3166_v29  ;;  %v1846_v36 = vpop.f32.mrb[160].mxu0 }
 0x25b   : > { %3711 = vst.msk [vmem:[%s5352_s21 + $0xc8] sm:$0xff] %vm3685_vm0, %v3172_v28  ;;  %v2511_v37 = vadd.f32 %v5320_v47, %v1846_v36  ;;  %v1848_v38 = vpop.f32.mrb[161].mxu0  ;;  %4355 = vmatprep.mubr.f32.mxu1 %v2907_v33  ;;  %v2908_v40 = vadd.f32 %v5335_v11, %v2773_v23 }
 0x25c   : > { %3710 = vst.msk [vmem:[%s5352_s21 + $0xc0] sm:$0xff] %vm3685_vm0, %v3167_v34  ;;  %v1849_v43 = vpop.f32.mrb[162].mxu0 }
 0x25d   : > { %v2639_v48 = vmax.f32 %v2511_v37, 0.0  ;;  %v2512_v49 = vadd.f32 %v5320_v47, %v1849_v43  ;;  %v1851_v0 = vpop.f32.mrb[163].mxu0  ;;  %4356 = vmatmul.mubr.f32.gmra.mrb[142].mxu1 %v2908_v40 }
 0x25f   : > { %v2774_v50 = vmul.f32 %v5328_v5, %v2639_v48  ;;  %v2640_v51 = vmax.f32 %v2512_v49, 0.0 }
 0x260   : > { %v4279_v55 = vpop.f32.mrb[90].mxu1 }
 0x261   : > { %v2775_v59 = vmul.f32 %v5328_v5, %v2640_v51  ;;  %v3182_v62 = vadd.f32 %v4279_v55, %v5344_v25  ;;  %v3176_v1 = vpop.f32.mrb[91].mxu1  ;;  %v2909_v2 = vadd.f32 %v5335_v11, %v2774_v50 }
 0x262   : > { %v3177_v4 = vadd.f32 %v5344_v25, %v3176_v1  ;;  %v1854_v8 = vpop.f32.mrb[164].mxu0 }
 0x263   : > { %3713 = vst.msk [vmem:[%s5352_s21 + $0xd8] sm:$0xff] %vm3685_vm0, %v3182_v62  ;;  %v2513_v9 = vadd.f32 %v5320_v47, %v1854_v8  ;;  %v1856_v14 = vpop.f32.mrb[165].mxu0  ;;  %4358 = vmatprep.mubr.f32.mxu1 %v2909_v2  ;;  %v2910_v15 = vadd.f32 %v5335_v11, %v2775_v59 }
 0x264   : > { %3712 = vst.msk [vmem:[%s5352_s21 + $0xd0] sm:$0xff] %vm3685_vm0, %v3177_v4  ;;  %v1857_v16 = vpop.f32.mrb[166].mxu0 }
 0x265   : > { %v2641_v19 = vmax.f32 %v2513_v9, 0.0  ;;  %v2514_v21 = vadd.f32 %v5320_v47, %v1857_v16  ;;  %v1859_v23 = vpop.f32.mrb[167].mxu0  ;;  %4359 = vmatmul.mubr.f32.gmra.mrb[144].mxu1 %v2910_v15 }
 0x267   : > { %v2776_v28 = vmul.f32 %v5328_v5, %v2641_v19  ;;  %v2642_v29 = vmax.f32 %v2514_v21, 0.0 }
 0x268   : > { %v4282_v33 = vpop.f32.mrb[92].mxu1 }
 0x269   : > { %v2777_v34 = vmul.f32 %v5328_v5, %v2642_v29  ;;  %v3192_v36 = vadd.f32 %v4282_v33, %v5344_v25  ;;  %v3186_v37 = vpop.f32.mrb[93].mxu1  ;;  %v2911_v38 = vadd.f32 %v5335_v11, %v2776_v28 }
 0x26a   : > { %v3187_v40 = vadd.f32 %v5344_v25, %v3186_v37  ;;  %v1862_v43 = vpop.f32.mrb[168].mxu0 }
 0x26b   : > { %3715 = vst.msk [vmem:[%s5352_s21 + $0xe8] sm:$0xff] %vm3685_vm0, %v3192_v36  ;;  %v2515_v48 = vadd.f32 %v5320_v47, %v1862_v43  ;;  %v1864_v49 = vpop.f32.mrb[169].mxu0  ;;  %4361 = vmatprep.mubr.f32.mxu1 %v2911_v38  ;;  %v2912_v0 = vadd.f32 %v5335_v11, %v2777_v34 }
 0x26c   : > { %3714 = vst.msk [vmem:[%s5352_s21 + $0xe0] sm:$0xff] %vm3685_vm0, %v3187_v40  ;;  %v1865_v50 = vpop.f32.mrb[170].mxu0 }
 0x26d   : > { %v2643_v51 = vmax.f32 %v2515_v48, 0.0  ;;  %v2516_v55 = vadd.f32 %v5320_v47, %v1865_v50  ;;  %v1867_v59 = vpop.f32.mrb[171].mxu0  ;;  %4362 = vmatmul.mubr.f32.gmra.mrb[146].mxu1 %v2912_v0 }
 0x26f   : > { %v2778_v62 = vmul.f32 %v5328_v5, %v2643_v51  ;;  %v2644_v1 = vmax.f32 %v2516_v55, 0.0 }
 0x270   : > { %v4285_v2 = vpop.f32.mrb[94].mxu1 }
 0x271   : > { %v2779_v4 = vmul.f32 %v5328_v5, %v2644_v1  ;;  %v3202_v8 = vadd.f32 %v4285_v2, %v5344_v25  ;;  %v3196_v9 = vpop.f32.mrb[95].mxu1  ;;  %v2913_v14 = vadd.f32 %v5335_v11, %v2778_v62 }
 0x272   : > { %v3197_v15 = vadd.f32 %v5344_v25, %v3196_v9  ;;  %v1870_v16 = vpop.f32.mrb[172].mxu0 }
 0x273   : > { %3717 = vst.msk [vmem:[%s5352_s21 + $0xf8] sm:$0xff] %vm3685_vm0, %v3202_v8  ;;  %v2517_v19 = vadd.f32 %v5320_v47, %v1870_v16  ;;  %v1872_v21 = vpop.f32.mrb[173].mxu0  ;;  %4364 = vmatprep.mubr.f32.mxu1 %v2913_v14  ;;  %v2914_v23 = vadd.f32 %v5335_v11, %v2779_v4 }
 0x274   : > { %3716 = vst.msk [vmem:[%s5352_s21 + $0xf0] sm:$0xff] %vm3685_vm0, %v3197_v15  ;;  %v1873_v28 = vpop.f32.mrb[174].mxu0 }
 0x275   : > { %v2645_v29 = vmax.f32 %v2517_v19, 0.0  ;;  %v2518_v33 = vadd.f32 %v5320_v47, %v1873_v28  ;;  %v1875_v34 = vpop.f32.mrb[175].mxu0  ;;  %4365 = vmatmul.mubr.f32.gmra.mrb[148].mxu1 %v2914_v23 }
 0x277   : > { %v2780_v36 = vmul.f32 %v5328_v5, %v2645_v29  ;;  %v2646_v37 = vmax.f32 %v2518_v33, 0.0 }
 0x278   : > { %v4288_v38 = vpop.f32.mrb[96].mxu1 }
 0x279   : > { %v2781_v40 = vmul.f32 %v5328_v5, %v2646_v37  ;;  %v3212_v43 = vadd.f32 %v4288_v38, %v5344_v25  ;;  %v3206_v48 = vpop.f32.mrb[97].mxu1  ;;  %v2915_v49 = vadd.f32 %v5335_v11, %v2780_v36 }
 0x27a   : > { %v3207_v0 = vadd.f32 %v5344_v25, %v3206_v48  ;;  %v1878_v50 = vpop.f32.mrb[176].mxu0 }
 0x27b   : > { %3719 = vst.msk [vmem:[%s5352_s21 + $0x108] sm:$0xff] %vm3685_vm0, %v3212_v43  ;;  %v2519_v51 = vadd.f32 %v5320_v47, %v1878_v50  ;;  %v1880_v55 = vpop.f32.mrb[177].mxu0  ;;  %4367 = vmatprep.mubr.f32.mxu1 %v2915_v49  ;;  %v2916_v59 = vadd.f32 %v5335_v11, %v2781_v40 }
 0x27c   : > { %3718 = vst.msk [vmem:[%s5352_s21 + $0x100] sm:$0xff] %vm3685_vm0, %v3207_v0  ;;  %v1881_v62 = vpop.f32.mrb[178].mxu0 }
 0x27d   : > { %v2647_v1 = vmax.f32 %v2519_v51, 0.0  ;;  %v2520_v2 = vadd.f32 %v5320_v47, %v1881_v62  ;;  %v1883_v4 = vpop.f32.mrb[179].mxu0  ;;  %4368 = vmatmul.mubr.f32.gmra.mrb[150].mxu1 %v2916_v59 }
 0x27f   : > { %v2782_v8 = vmul.f32 %v5328_v5, %v2647_v1  ;;  %v2648_v9 = vmax.f32 %v2520_v2, 0.0 }
 0x280   : > { %v4291_v14 = vpop.f32.mrb[98].mxu1 }
 0x281   : > { %v2783_v15 = vmul.f32 %v5328_v5, %v2648_v9  ;;  %v3222_v16 = vadd.f32 %v4291_v14, %v5344_v25  ;;  %v3216_v19 = vpop.f32.mrb[99].mxu1  ;;  %v2917_v21 = vadd.f32 %v5335_v11, %v2782_v8 }
 0x282   : > { %v3217_v23 = vadd.f32 %v5344_v25, %v3216_v19  ;;  %v1886_v28 = vpop.f32.mrb[180].mxu0 }
 0x283   : > { %3721 = vst.msk [vmem:[%s5352_s21 + $0x118] sm:$0xff] %vm3685_vm0, %v3222_v16  ;;  %v2521_v29 = vadd.f32 %v5320_v47, %v1886_v28  ;;  %v1888_v33 = vpop.f32.mrb[181].mxu0  ;;  %4370 = vmatprep.mubr.f32.mxu1 %v2917_v21  ;;  %v2918_v34 = vadd.f32 %v5335_v11, %v2783_v15  ;;  %v2527_v21 = vadd.f32 %v5320_v47, %v5086_v56 }
 0x284   : > { %3720 = vst.msk [vmem:[%s5352_s21 + $0x110] sm:$0xff] %vm3685_vm0, %v3217_v23  ;;  %v1889_v36 = vpop.f32.mrb[182].mxu0 }
 0x285   : > { %v2649_v37 = vmax.f32 %v2521_v29, 0.0  ;;  %v2522_v38 = vadd.f32 %v5320_v47, %v1889_v36  ;;  %v1891_v40 = vpop.f32.mrb[183].mxu0  ;;  %4371 = vmatmul.mubr.f32.gmra.mrb[152].mxu1 %v2918_v34 }
 0x287   : > { %v2784_v43 = vmul.f32 %v5328_v5, %v2649_v37  ;;  %v2650_v48 = vmax.f32 %v2522_v38, 0.0  ;;  %v2528_v38 = vadd.f32 %v5320_v47, %v5090_v61 }
 0x288   : > { %v4294_v49 = vpop.f32.mrb[100].mxu1 }
 0x289   : > { %v2785_v0 = vmul.f32 %v5328_v5, %v2650_v48  ;;  %v3232_v50 = vadd.f32 %v4294_v49, %v5344_v25  ;;  %v3226_v51 = vpop.f32.mrb[101].mxu1  ;;  %v2919_v55 = vadd.f32 %v5335_v11, %v2784_v43  ;;  %v2655_v48 = vmax.f32 %v2527_v21, 0.0 }
 0x28a   : > { %v3227_v59 = vadd.f32 %v5344_v25, %v3226_v51  ;;  %v1894_v62 = vpop.f32.mrb[184].mxu0  ;;  %v2529_v49 = vadd.f32 %v5320_v47, %v5096_v7  ;;  %v2656_v61 = vmax.f32 %v2528_v38, 0.0  ;;  %v2531_v7 = vadd.f32 %v5320_v47, %v5102_v17 }
 0x28b   : > { %3723 = vst.msk [vmem:[%s5352_s21 + $0x128] sm:$0xff] %vm3685_vm0, %v3232_v50  ;;  %v2523_v1 = vadd.f32 %v5320_v47, %v1894_v62  ;;  %v1896_v2 = vpop.f32.mrb[185].mxu0  ;;  %4373 = vmatprep.mubr.f32.mxu1 %v2919_v55  ;;  %v2920_v4 = vadd.f32 %v5335_v11, %v2785_v0 }
 0x28c   : > { %3722 = vst.msk [vmem:[%s5352_s21 + $0x120] sm:$0xff] %vm3685_vm0, %v3227_v59  ;;  %v1897_v8 = vpop.f32.mrb[186].mxu0  ;;  %v2530_v59 = vadd.f32 %v5320_v47, %v5099_v13  ;;  %v2790_v2 = vmul.f32 %v5328_v5, %v2655_v48 }
 0x28d   : > { %v2651_v9 = vmax.f32 %v2523_v1, 0.0  ;;  %v2524_v14 = vadd.f32 %v5320_v47, %v1897_v8  ;;  %v1899_v15 = vpop.f32.mrb[187].mxu0  ;;  %4374 = vmatmul.mubr.f32.gmra.mrb[154].mxu1 %v2920_v4  ;;  %v2657_v4 = vmax.f32 %v2529_v49, 0.0 }
 0x28e   : > { %v2658_v21 = vmax.f32 %v2530_v59, 0.0 }
 0x28f   : > { %v2786_v16 = vmul.f32 %v5328_v5, %v2651_v9  ;;  %v2652_v19 = vmax.f32 %v2524_v14, 0.0 }
 0x290   : > { %v4297_v23 = vpop.f32.mrb[102].mxu1 }
 0x291   : > { %v2787_v28 = vmul.f32 %v5328_v5, %v2652_v19  ;;  %v3242_v29 = vadd.f32 %v4297_v23, %v5344_v25  ;;  %v3236_v33 = vpop.f32.mrb[103].mxu1  ;;  %v2921_v34 = vadd.f32 %v5335_v11, %v2786_v16  ;;  %v2791_v19 = vmul.f32 %v5328_v5, %v2656_v61 }
 0x292   : > { %v3237_v36 = vadd.f32 %v5344_v25, %v3236_v33  ;;  %v1902_v37 = vpop.f32.mrb[188].mxu0  ;;  %v2532_v23 = vadd.f32 %v5320_v47, %v5106_v22  ;;  %v2533_v33 = vadd.f32 %v5320_v47, %v5112_v30  ;;  %v2535_v30 = vadd.f32 %v5320_v47, %v5118_v39 }
 0x293   : > { %3725 = vst.msk [vmem:[%s5352_s21 + $0x138] sm:$0xff] %vm3685_vm0, %v3242_v29  ;;  %v2525_v40 = vadd.f32 %v5320_v47, %v1902_v37  ;;  %v1904_v56 = vpop.f32.mrb[189].mxu0  ;;  %4376 = vmatprep.mubr.f32.mxu1 %v2921_v34  ;;  %v2922_v43 = vadd.f32 %v5335_v11, %v2787_v28  ;;  %v2792_v28 = vmul.f32 %v5328_v5, %v2657_v4  ;;  %v2659_v29 = vmax.f32 %v2531_v7, 0.0 }
 0x294   : > { %3724 = vst.msk [vmem:[%s5352_s21 + $0x130] sm:$0xff] %vm3685_vm0, %v3237_v36  ;;  %v1905_v0 = vpop.f32.mrb[190].mxu0  ;;  %v2925_v34 = vadd.f32 %v5335_v11, %v2790_v2  ;;  %v2793_v36 = vmul.f32 %v5328_v5, %v2658_v21  ;;  %v2660_v22 = vmax.f32 %v2532_v23, 0.0  ;;  %v2534_v37 = vadd.f32 %v5320_v47, %v5115_v35 }
 0x295   : > { %v2653_v50 = vmax.f32 %v2525_v40, 0.0  ;;  %v2526_v51 = vadd.f32 %v5320_v47, %v1905_v0  ;;  %v1907_v55 = vpop.f32.mrb[191].mxu0  ;;  %4377 = vmatmul.mubr.f32.gmra.mrb[156].mxu1 %v2922_v43  ;;  %v2926_v38 = vadd.f32 %v5335_v11, %v2791_v19  ;;  %v2794_v40 = vmul.f32 %v5328_v5, %v2659_v29 }
 0x296   : > { %v2661_v56 = vmax.f32 %v2533_v33, 0.0  ;;  %v2927_v48 = vadd.f32 %v5335_v11, %v2792_v28  ;;  %v2795_v35 = vmul.f32 %v5328_v5, %v2660_v22  ;;  %v2536_v55 = vadd.f32 %v5320_v47, %v5122_v44 }
 0x297   : > { %v2788_v62 = vmul.f32 %v5328_v5, %v2653_v50  ;;  %v2654_v1 = vmax.f32 %v2526_v51, 0.0  ;;  %v2662_v51 = vmax.f32 %v2534_v37, 0.0  ;;  %v2928_v39 = vadd.f32 %v5335_v11, %v2793_v36 }
 0x298   : > { %v4300_v8 = vpop.f32.mrb[104].mxu1  ;;  %v2796_v61 = vmul.f32 %v5328_v5, %v2661_v56  ;;  %v2663_v59 = vmax.f32 %v2535_v30, 0.0  ;;  %v2664_v4 = vmax.f32 %v2536_v55, 0.0  ;;  %v2538_v44 = vadd.f32 %v5320_v47, %v5131_v58 }
 0x299   : > { %v2789_v9 = vmul.f32 %v5328_v5, %v2654_v1  ;;  %v3252_v14 = vadd.f32 %v4300_v8, %v5344_v25  ;;  %v3246_v15 = vpop.f32.mrb[105].mxu1  ;;  %v2923_v16 = vadd.f32 %v5335_v11, %v2788_v62  ;;  %v2537_v62 = vadd.f32 %v5320_v47, %v5128_v52 }
 0x29a   : > { %v3247_v13 = vadd.f32 %v5344_v25, %v3246_v15  ;;  %v2929_v1 = vadd.f32 %v5335_v11, %v2794_v40  ;;  %v2797_v2 = vmul.f32 %v5328_v5, %v2662_v51  ;;  %v2930_v7 = vadd.f32 %v5335_v11, %v2795_v35 }
 0x29b   : > { %3727 = vst.msk [vmem:[%s5352_s21 + $0x148] sm:$0xff] %vm3685_vm0, %v3252_v14  ;;  %4379 = vmatprep.mubr.f32.mxu1 %v2923_v16  ;;  %v2924_v17 = vadd.f32 %v5335_v11, %v2789_v9  ;;  %v2798_v8 = vmul.f32 %v5328_v5, %v2663_v59  ;;  %v2665_v9 = vmax.f32 %v2537_v62, 0.0  ;;  %v2539_v52 = vadd.f32 %v5320_v47, %v5134_v63 }
 0x29c   : > { %3726 = vst.msk [vmem:[%s5352_s21 + $0x140] sm:$0xff] %vm3685_vm0, %v3247_v13  ;;  %v2931_v15 = vadd.f32 %v5335_v11, %v2796_v61  ;;  %v2799_v58 = vmul.f32 %v5328_v5, %v2664_v4  ;;  %v2666_v21 = vmax.f32 %v2538_v44, 0.0  ;;  %v2540_v23 = vadd.f32 %v5320_v47, %v5138_v6  ;;  %v5713_v4 = vld [vmem:[%s6024_s6] ss:$0 sm:$0xff] }
 0x29d   : > { %4380 = vmatmul.mubr.f32.gmra.mrb[158].mxu1 %v2924_v17  ;;  %v2932_v63 = vadd.f32 %v5335_v11, %v2797_v2  ;;  %v2800_v17 = vmul.f32 %v5328_v5, %v2665_v9  ;;  %v2667_v28 = vmax.f32 %v2539_v52, 0.0  ;;  %v2541_v29 = vadd.f32 %v5320_v47, %v5144_v18  ;;  %v5673_v18 = vld [vmem:[%s6020_s2] ss:$0 sm:$0xff] }
 0x29e   : > { %4382 = vmatprep.mubr.f32.mxu1 %v2925_v34  ;;  %v2933_v33 = vadd.f32 %v5335_v11, %v2798_v8  ;;  %v2801_v34 = vmul.f32 %v5328_v5, %v2666_v21  ;;  %v2668_v36 = vmax.f32 %v2540_v23, 0.0  ;;  %v2542_v6 = vadd.f32 %v5320_v47, %v5147_v24 }
 0x29f   : > { %v2934_v22 = vadd.f32 %v5335_v11, %v2799_v58  ;;  %v2802_v37 = vmul.f32 %v5328_v5, %v2667_v28  ;;  %v2543_v40 = vadd.f32 %v5673_v18, %v5152_v32  ;;  %v2935_v30 = vadd.f32 %v5335_v11, %v2800_v17  ;;  %v5683_v5 = vld [vmem:[%s6021_s3] ss:$0 sm:$0xff] }
 0x2a0   : > { %v4303_v43 = vpop.f32.mrb[106].mxu1  ;;  %v2544_v32 = vadd.f32 %v5673_v18, %v5158_v42  ;;  %v5693_v11 = vld [vmem:[%s6022_s4] ss:$0 sm:$0xff]  ;;  %v2545_v35 = vadd.f32 %v5673_v18, %v5164_v54  ;;  %v2547_v54 = vadd.f32 %v5673_v18, %v5176_v20  ;;  %v2548_v20 = vadd.f32 %v5673_v18, %v5182_v31 }
 0x2a1   : > { %v3262_v49 = vadd.f32 %v4303_v43, %v5344_v25  ;;  %v3256_v0 = vpop.f32.mrb[107].mxu1  ;;  %4383 = vmatmul.mubr.f32.gmra.mrb[160].mxu1 %v2926_v38  ;;  %v2669_v38 = vmax.f32 %v2541_v29, 0.0  ;;  %v2937_v51 = vadd.f32 %v5693_v11, %v2802_v37  ;;  %v2550_v31 = vadd.f32 %v5673_v18, %v5194_v57 }
 0x2a2   : > { %v3257_v50 = vadd.f32 %v5344_v25, %v3256_v0  ;;  %4385 = vmatprep.mubr.f32.mxu1 %v2927_v48  ;;  %v2803_v48 = vmul.f32 %v5683_v5, %v2668_v36  ;;  %v2672_v55 = vmax.f32 %v2544_v32, 0.0  ;;  %v2673_v62 = vmax.f32 %v2545_v35, 0.0 }
 0x2a3   : > { %3729 = vst.msk [vmem:[%s5352_s21 + $0x158] sm:$0xff] %vm3685_vm0, %v3262_v49  ;;  %v2670_v49 = vmax.f32 %v2542_v6, 0.0  ;;  %v2804_v0 = vmul.f32 %v5683_v5, %v2669_v38  ;;  %v2676_v58 = vmax.f32 %v2548_v20, 0.0  ;;  %v2678_v36 = vmax.f32 %v2550_v31, 0.0 }
 0x2a4   : > { %3728 = vst.msk [vmem:[%s5352_s21 + $0x150] sm:$0xff] %vm3685_vm0, %v3257_v50  ;;  %v2671_v50 = vmax.f32 %v2543_v40, 0.0  ;;  %v2938_v61 = vadd.f32 %v5693_v11, %v2803_v48  ;;  %v2807_v8 = vmul.f32 %v5683_v5, %v2672_v55  ;;  %v2552_v6 = vadd.f32 %v5673_v18, %v5206_v26 }
 0x2a5   : > { %4386 = vmatmul.mubr.f32.gmra.mrb[162].mxu1 %v2928_v39  ;;  %v2805_v42 = vmul.f32 %v5683_v5, %v2670_v49  ;;  %v2546_v39 = vadd.f32 %v5673_v18, %v5170_v3  ;;  %v2939_v2 = vadd.f32 %v5693_v11, %v2804_v0  ;;  %v2811_v57 = vmul.f32 %v5683_v5, %v2676_v58 }
 0x2a6   : > { %4388 = vmatprep.mubr.f32.mxu1 %v2929_v1  ;;  %v2806_v59 = vmul.f32 %v5683_v5, %v2671_v50  ;;  %v2942_v21 = vadd.f32 %v5693_v11, %v2807_v8  ;;  %v2553_v38 = vadd.f32 %v5673_v18, %v5212_v41  ;;  %v2554_v26 = vadd.f32 %v5673_v18, %v5218_v53 }
 0x2a7   : > { %v2674_v9 = vmax.f32 %v2546_v39, 0.0  ;;  %v2940_v52 = vadd.f32 %v5693_v11, %v2805_v42  ;;  %v2555_v41 = vadd.f32 %v5673_v18, %v5224_v10  ;;  %v2556_v35 = vadd.f32 %v5673_v18, %v5230_v27 }
 0x2a8   : > { %v4306_v14 = vpop.f32.mrb[108].mxu1  ;;  %v2682_v50 = vmax.f32 %v2554_v26, 0.0  ;;  %v2557_v55 = vadd.f32 %v5673_v18, %v5236_v45 }
 0x2a9   : > { %v3272_v16 = vadd.f32 %v4306_v14, %v5344_v25  ;;  %v3266_v13 = vpop.f32.mrb[109].mxu1  ;;  %4389 = vmatmul.mubr.f32.gmra.mrb[164].mxu1 %v2930_v7  ;;  %v2808_v14 = vmul.f32 %v5683_v5, %v2673_v62  ;;  %v2683_v42 = vmax.f32 %v2555_v41, 0.0  ;;  %v2684_v27 = vmax.f32 %v2556_v35, 0.0 }
 0x2aa   : > { %v3267_v19 = vadd.f32 %v5344_v25, %v3266_v13  ;;  %4391 = vmatprep.mubr.f32.mxu1 %v2931_v15  ;;  %v2675_v15 = vmax.f32 %v2547_v54, 0.0  ;;  %v2941_v13 = vadd.f32 %v5693_v11, %v2806_v59  ;;  %v2558_v59 = vadd.f32 %v5673_v18, %v5242_v60 }
 0x2ab   : > { %3731 = vst.msk [vmem:[%s5352_s21 + $0x168] sm:$0xff] %vm3685_vm0, %v3272_v16  ;;  %v2549_v16 = vadd.f32 %v5673_v18, %v5188_v46  ;;  %v2551_v46 = vadd.f32 %v5673_v18, %v5200_v12  ;;  %v2943_v28 = vadd.f32 %v5693_v11, %v2808_v14  ;;  %v2818_v54 = vmul.f32 %v5683_v5, %v2683_v42 }
 0x2ac   : > { %3730 = vst.msk [vmem:[%s5352_s21 + $0x160] sm:$0xff] %vm3685_vm0, %v3267_v19  ;;  %v2809_v19 = vmul.f32 %v5683_v5, %v2674_v9  ;;  %v2810_v23 = vmul.f32 %v5683_v5, %v2675_v15  ;;  %v2819_v8 = vmul.f32 %v5683_v5, %v2684_v27  ;;  %v2686_v9 = vmax.f32 %v2558_v59, 0.0 }
 0x2ad   : > { %4392 = vmatmul.mubr.f32.gmra.mrb[166].mxu1 %v2932_v63  ;;  %v2677_v63 = vmax.f32 %v2549_v16, 0.0  ;;  %v2679_v37 = vmax.f32 %v2551_v46, 0.0  ;;  %v2953_v20 = vadd.f32 %v5693_v11, %v2818_v54 }
 0x2ae   : > { %4394 = vmatprep.mubr.f32.mxu1 %v2933_v33  ;;  %v2944_v12 = vadd.f32 %v5693_v11, %v2809_v19  ;;  %v2945_v40 = vadd.f32 %v5693_v11, %v2810_v23  ;;  %v2954_v14 = vadd.f32 %v5693_v11, %v2819_v8 }
 0x2b0   : > { %v4309_v56 = vpop.f32.mrb[110].mxu1 }
 0x2b1   : > { %v3282_v24 = vadd.f32 %v4309_v56, %v5344_v25  ;;  %v3276_v47 = vpop.f32.mrb[111].mxu1  ;;  %4395 = vmatmul.mubr.f32.gmra.mrb[168].mxu1 %v2934_v22  ;;  %v2812_v22 = vmul.f32 %v5683_v5, %v2677_v63  ;;  %v2813_v56 = vmul.f32 %v5683_v5, %v2678_v36 }
 0x2b2   : > { %v3277_v43 = vadd.f32 %v5344_v25, %v3276_v47  ;;  %4397 = vmatprep.mubr.f32.mxu1 %v2935_v30  ;;  %v2936_v25 = vadd.f32 %v5693_v11, %v2801_v34  ;;  %v2680_v30 = vmax.f32 %v2552_v6, 0.0  ;;  %v2814_v47 = vmul.f32 %v5683_v5, %v2679_v37 }
 0x2b3   : > { %3733 = vst.msk [vmem:[%s5352_s21 + $0x178] sm:$0xff] %vm3685_vm0, %v3282_v24  ;;  %v2946_v24 = vadd.f32 %v5693_v11, %v2811_v57  ;;  %v2947_v49 = vadd.f32 %v5693_v11, %v2812_v22  ;;  %v2948_v10 = vadd.f32 %v5693_v11, %v2813_v56 }
 0x2b4   : > { %3732 = vst.msk [vmem:[%s5352_s21 + $0x170] sm:$0xff] %vm3685_vm0, %v3277_v43  ;;  %v2681_v43 = vmax.f32 %v2553_v38, 0.0  ;;  %v2815_v53 = vmul.f32 %v5683_v5, %v2680_v30  ;;  %v2949_v39 = vadd.f32 %v5693_v11, %v2814_v47 }
 0x2b5   : > { %4398 = vmatmul.mubr.f32.gmra.mrb[170].mxu1 %v2936_v25 }
 0x2b6   : > { %4400 = vmatprep.mubr.f32.mxu1 %v2937_v51  ;;  %v2816_v51 = vmul.f32 %v5683_v5, %v2681_v43  ;;  %v2950_v62 = vadd.f32 %v5693_v11, %v2815_v53 }
 0x2b8   : > { %v4312_v1 = vpop.f32.mrb[112].mxu1 }
 0x2b9   : > { %v3292_v3 = vadd.f32 %v5713_v4, %v4312_v1  ;;  %v3286_v44 = vpop.f32.mrb[113].mxu1  ;;  %4401 = vmatmul.mubr.f32.gmra.mrb[172].mxu1 %v2938_v61  ;;  %v2817_v61 = vmul.f32 %v5683_v5, %v2682_v50  ;;  %v2685_v1 = vmax.f32 %v2557_v55, 0.0 }
 0x2ba   : > { %v3287_v7 = vadd.f32 %v5713_v4, %v3286_v44  ;;  %4403 = vmatprep.mubr.f32.mxu1 %v2939_v2  ;;  %v2951_v2 = vadd.f32 %v5693_v11, %v2816_v51 }
 0x2bb   : > { %3735 = vst.msk [vmem:[%s5352_s21 + $0x188] sm:$0xff] %vm3685_vm0, %v3292_v3  ;;  %v2952_v60 = vadd.f32 %v5693_v11, %v2817_v61  ;;  %v2820_v18 = vmul.f32 %v5683_v5, %v2685_v1 }
 0x2bc   : > { %3734 = vst.msk [vmem:[%s5352_s21 + $0x180] sm:$0xff] %vm3685_vm0, %v3287_v7 }
 0x2bd   : > { %4404 = vmatmul.mubr.f32.gmra.mrb[174].mxu1 %v2940_v52  ;;  %v2821_v52 = vmul.f32 %v5683_v5, %v2686_v9  ;;  %v2955_v16 = vadd.f32 %v5693_v11, %v2820_v18 }
 0x2be   : > { %4406 = vmatprep.mubr.f32.mxu1 %v2941_v13 }
 0x2bf   : > { %v2956_v5 = vadd.f32 %v5693_v11, %v2821_v52 }
 0x2c0   : > { %v4315_v17 = vpop.f32.mrb[114].mxu1 }
 0x2c1   : > { %v3302_v29 = vadd.f32 %v5713_v4, %v4315_v17  ;;  %v3296_v33 = vpop.f32.mrb[115].mxu1  ;;  %4407 = vmatmul.mubr.f32.gmra.mrb[176].mxu1 %v2942_v21 }
 0x2c2   : > { %v3297_v34 = vadd.f32 %v5713_v4, %v3296_v33  ;;  %4409 = vmatprep.mubr.f32.mxu1 %v2943_v28 }
 0x2c3   : > { %3737 = vst.msk [vmem:[%s5352_s21 + $0x198] sm:$0xff] %vm3685_vm0, %v3302_v29 }
 0x2c4   : > { %3736 = vst.msk [vmem:[%s5352_s21 + $0x190] sm:$0xff] %vm3685_vm0, %v3297_v34 }
 0x2c5   : > { %4410 = vmatmul.mubr.f32.gmra.mrb[178].mxu1 %v2944_v12 }
 0x2c6   : > { %4412 = vmatprep.mubr.f32.mxu1 %v2945_v40 }
 0x2c8   : > { %v4318_v48 = vpop.f32.mrb[116].mxu1 }
 0x2c9   : > { %v3312_v32 = vadd.f32 %v5713_v4, %v4318_v48  ;;  %v3306_v25 = vpop.f32.mrb[117].mxu1  ;;  %4413 = vmatmul.mubr.f32.gmra.mrb[180].mxu1 %v2946_v24 }
 0x2ca   : > { %v3307_v0 = vadd.f32 %v5713_v4, %v3306_v25  ;;  %4415 = vmatprep.mubr.f32.mxu1 %v2947_v49 }
 0x2cb   : > { %3739 = vst.msk [vmem:[%s5352_s21 + $0x1a8] sm:$0xff] %vm3685_vm0, %v3312_v32 }
 0x2cc   : > { %3738 = vst.msk [vmem:[%s5352_s21 + $0x1a0] sm:$0xff] %vm3685_vm0, %v3307_v0 }
 0x2cd   : > { %4416 = vmatmul.mubr.f32.gmra.mrb[182].mxu1 %v2948_v10 }
 0x2ce   : > { %4418 = vmatprep.mubr.f32.mxu1 %v2949_v39 }
 0x2d0   : > { %v4321_v45 = vpop.f32.mrb[118].mxu1 }
 0x2d1   : > { %v3322_v3 = vadd.f32 %v5713_v4, %v4321_v45  ;;  %v3316_v44 = vpop.f32.mrb[119].mxu1  ;;  %4419 = vmatmul.mubr.f32.gmra.mrb[184].mxu1 %v2950_v62 }
 0x2d2   : > { %v3317_v7 = vadd.f32 %v5713_v4, %v3316_v44  ;;  %4421 = vmatprep.mubr.f32.mxu1 %v2951_v2 }
 0x2d3   : > { %3741 = vst.msk [vmem:[%s5352_s21 + $0x1b8] sm:$0xff] %vm3685_vm0, %v3322_v3 }
 0x2d4   : > { %3740 = vst.msk [vmem:[%s5352_s21 + $0x1b0] sm:$0xff] %vm3685_vm0, %v3317_v7 }
 0x2d5   : > { %4422 = vmatmul.mubr.f32.gmra.mrb[186].mxu1 %v2952_v60 }
 0x2d6   : > { %4424 = vmatprep.mubr.f32.mxu1 %v2953_v20 }
 0x2d8   : > { %v4324_v15 = vpop.f32.mrb[120].mxu1 }
 0x2d9   : > { %v3332_v13 = vadd.f32 %v5713_v4, %v4324_v15  ;;  %v3326_v19 = vpop.f32.mrb[121].mxu1  ;;  %4425 = vmatmul.mubr.f32.gmra.mrb[188].mxu1 %v2954_v14 }
 0x2da   : > { %v3327_v58 = vadd.f32 %v5713_v4, %v3326_v19  ;;  %4427 = vmatprep.mubr.f32.mxu1 %v2955_v16 }
 0x2db   : > { %3743 = vst.msk [vmem:[%s5352_s21 + $0x1c8] sm:$0xff] %vm3685_vm0, %v3332_v13 }
 0x2dc   : > { %3742 = vst.msk [vmem:[%s5352_s21 + $0x1c0] sm:$0xff] %vm3685_vm0, %v3327_v58 }
 0x2dd   : > { %4428 = vmatmul.mubr.f32.gmra.mrb[190].mxu1 %v2956_v5 }
 0x2e0   : > { %v4327_v31 = vpop.f32.mrb[122].mxu1 }
 0x2e1   : > { %v3342_v21 = vadd.f32 %v5713_v4, %v4327_v31  ;;  %v3336_v23 = vpop.f32.mrb[123].mxu1 }
 0x2e2   : > { %v3337_v63 = vadd.f32 %v5713_v4, %v3336_v23 }
 0x2e3   : > { %3745 = vst.msk [vmem:[%s5352_s21 + $0x1d8] sm:$0xff] %vm3685_vm0, %v3342_v21 }
 0x2e4   : > { %3744 = vst.msk [vmem:[%s5352_s21 + $0x1d0] sm:$0xff] %vm3685_vm0, %v3337_v63 }
 0x2e8   : > { %v4330_v46 = vpop.f32.mrb[124].mxu1 }
 0x2e9   : > { %v3352_v17 = vadd.f32 %v5713_v4, %v4330_v46  ;;  %v3346_v11 = vpop.f32.mrb[125].mxu1 }
 0x2ea   : > { %v3347_v28 = vadd.f32 %v5713_v4, %v3346_v11 }
 0x2eb   : > { %3747 = vst.msk [vmem:[%s5352_s21 + $0x1e8] sm:$0xff] %vm3685_vm0, %v3352_v17 }
 0x2ec   : > { %3746 = vst.msk [vmem:[%s5352_s21 + $0x1e0] sm:$0xff] %vm3685_vm0, %v3347_v28 }
 0x2f0   : > { %v4333_v29 = vpop.f32.mrb[126].mxu1 }
 0x2f1   : > { %v3362_v33 = vadd.f32 %v5713_v4, %v4333_v29  ;;  %v3356_v34 = vpop.f32.mrb[127].mxu1 }
 0x2f2   : > { %v3357_v57 = vadd.f32 %v5713_v4, %v3356_v34 }
 0x2f3   : > { %3749 = vst.msk [vmem:[%s5352_s21 + $0x1f8] sm:$0xff] %vm3685_vm0, %v3362_v33 }
 0x2f4   : > { %3748 = vst.msk [vmem:[%s5352_s21 + $0x1f0] sm:$0xff] %vm3685_vm0, %v3357_v57 }
 0x2f8   : > { %v4336_v36 = vpop.f32.mrb[128].mxu1 }
 0x2f9   : > { %v3372_v6 = vadd.f32 %v5713_v4, %v4336_v36  ;;  %v3366_v12 = vpop.f32.mrb[129].mxu1 }
 0x2fa   : > { %v3367_v22 = vadd.f32 %v5713_v4, %v3366_v12 }
 0x2fb   : > { %3751 = vst.msk [vmem:[%s5352_s21 + $0x208] sm:$0xff] %vm3685_vm0, %v3372_v6 }
 0x2fc   : > { %3750 = vst.msk [vmem:[%s5352_s21 + $0x200] sm:$0xff] %vm3685_vm0, %v3367_v22 }
 0x300   : > { %v4339_v37 = vpop.f32.mrb[130].mxu1 }
 0x301   : > { %v3382_v38 = vadd.f32 %v5713_v4, %v4339_v37  ;;  %v3376_v40 = vpop.f32.mrb[131].mxu1 }
 0x302   : > { %v3377_v56 = vadd.f32 %v5713_v4, %v3376_v40 }
 0x303   : > { %3753 = vst.msk [vmem:[%s5352_s21 + $0x218] sm:$0xff] %vm3685_vm0, %v3382_v38 }
 0x304   : > { %3752 = vst.msk [vmem:[%s5352_s21 + $0x210] sm:$0xff] %vm3685_vm0, %v3377_v56 }
 0x308   : > { %v4342_v30 = vpop.f32.mrb[132].mxu1 }
 0x309   : > { %v3392_v26 = vadd.f32 %v5713_v4, %v4342_v30  ;;  %v3386_v24 = vpop.f32.mrb[133].mxu1 }
 0x30a   : > { %v3387_v47 = vadd.f32 %v5713_v4, %v3386_v24 }
 0x30b   : > { %3755 = vst.msk [vmem:[%s5352_s21 + $0x228] sm:$0xff] %vm3685_vm0, %v3392_v26 }
 0x30c   : > { %3754 = vst.msk [vmem:[%s5352_s21 + $0x220] sm:$0xff] %vm3685_vm0, %v3387_v47 }
 0x310   : > { %v4345_v43 = vpop.f32.mrb[134].mxu1 }
 0x311   : > { %v3402_v41 = vadd.f32 %v5713_v4, %v4345_v43  ;;  %v3396_v48 = vpop.f32.mrb[135].mxu1 }
 0x312   : > { %v3397_v49 = vadd.f32 %v5713_v4, %v3396_v48 }
 0x313   : > { %3757 = vst.msk [vmem:[%s5352_s21 + $0x238] sm:$0xff] %vm3685_vm0, %v3402_v41 }
 0x314   : > { %3756 = vst.msk [vmem:[%s5352_s21 + $0x230] sm:$0xff] %vm3685_vm0, %v3397_v49 }
 0x318   : > { %v4348_v32 = vpop.f32.mrb[136].mxu1 }
 0x319   : > { %v3412_v25 = vadd.f32 %v5713_v4, %v4348_v32  ;;  %v3406_v0 = vpop.f32.mrb[137].mxu1 }
 0x31a   : > { %v3407_v53 = vadd.f32 %v5713_v4, %v3406_v0 }
 0x31b   : > { %3759 = vst.msk [vmem:[%s5352_s21 + $0x248] sm:$0xff] %vm3685_vm0, %v3412_v25 }
 0x31c   : > { %3758 = vst.msk [vmem:[%s5352_s21 + $0x240] sm:$0xff] %vm3685_vm0, %v3407_v53 }
 0x320   : > { %v4351_v50 = vpop.f32.mrb[138].mxu1 }
 0x321   : > { %v3422_v35 = vadd.f32 %v5713_v4, %v4351_v50  ;;  %v3416_v10 = vpop.f32.mrb[139].mxu1 }
 0x322   : > { %v3417_v51 = vadd.f32 %v5713_v4, %v3416_v10 }
 0x323   : > { %3761 = vst.msk [vmem:[%s5352_s21 + $0x258] sm:$0xff] %vm3685_vm0, %v3422_v35 }
 0x324   : > { %3760 = vst.msk [vmem:[%s5352_s21 + $0x250] sm:$0xff] %vm3685_vm0, %v3417_v51 }
 0x328   : > { %v4354_v42 = vpop.f32.mrb[140].mxu1 }
 0x329   : > { %v3432_v55 = vadd.f32 %v5713_v4, %v4354_v42  ;;  %v3426_v39 = vpop.f32.mrb[141].mxu1 }
 0x32a   : > { %v3427_v61 = vadd.f32 %v5713_v4, %v3426_v39 }
 0x32b   : > { %3763 = vst.msk [vmem:[%s5352_s21 + $0x268] sm:$0xff] %vm3685_vm0, %v3432_v55 }
 0x32c   : > { %3762 = vst.msk [vmem:[%s5352_s21 + $0x260] sm:$0xff] %vm3685_vm0, %v3427_v61 }
 0x330   : > { %v4357_v27 = vpop.f32.mrb[142].mxu1 }
 0x331   : > { %v3442_v59 = vadd.f32 %v5713_v4, %v4357_v27  ;;  %v3436_v62 = vpop.f32.mrb[143].mxu1 }
 0x332   : > { %v3437_v54 = vadd.f32 %v5713_v4, %v3436_v62 }
 0x333   : > { %3765 = vst.msk [vmem:[%s5352_s21 + $0x278] sm:$0xff] %vm3685_vm0, %v3442_v59 }
 0x334   : > { %3764 = vst.msk [vmem:[%s5352_s21 + $0x270] sm:$0xff] %vm3685_vm0, %v3437_v54 }
 0x338   : > { %v4360_v1 = vpop.f32.mrb[144].mxu1 }
 0x339   : > { %v3452_v45 = vadd.f32 %v5713_v4, %v4360_v1  ;;  %v3446_v2 = vpop.f32.mrb[145].mxu1 }
 0x33a   : > { %v3447_v3 = vadd.f32 %v5713_v4, %v3446_v2 }
 0x33b   : > { %3767 = vst.msk [vmem:[%s5352_s21 + $0x288] sm:$0xff] %vm3685_vm0, %v3452_v45 }
 0x33c   : > { %3766 = vst.msk [vmem:[%s5352_s21 + $0x280] sm:$0xff] %vm3685_vm0, %v3447_v3 }
 0x340   : > { %v4363_v44 = vpop.f32.mrb[146].mxu1 }
 0x341   : > { %v3462_v7 = vadd.f32 %v5713_v4, %v4363_v44  ;;  %v3456_v8 = vpop.f32.mrb[147].mxu1 }
 0x342   : > { %v3457_v9 = vadd.f32 %v5713_v4, %v3456_v8 }
 0x343   : > { %3769 = vst.msk [vmem:[%s5352_s21 + $0x298] sm:$0xff] %vm3685_vm0, %v3462_v7 }
 0x344   : > { %3768 = vst.msk [vmem:[%s5352_s21 + $0x290] sm:$0xff] %vm3685_vm0, %v3457_v9 }
 0x348   : > { %v4366_v60 = vpop.f32.mrb[148].mxu1 }
 0x349   : > { %v3472_v18 = vadd.f32 %v5713_v4, %v4366_v60  ;;  %v3466_v20 = vpop.f32.mrb[149].mxu1 }
 0x34a   : > { %v3467_v52 = vadd.f32 %v5713_v4, %v3466_v20 }
 0x34b   : > { %3771 = vst.msk [vmem:[%s5352_s21 + $0x2a8] sm:$0xff] %vm3685_vm0, %v3472_v18 }
 0x34c   : > { %3770 = vst.msk [vmem:[%s5352_s21 + $0x2a0] sm:$0xff] %vm3685_vm0, %v3467_v52 }
 0x350   : > { %v4369_v14 = vpop.f32.mrb[150].mxu1 }
 0x351   : > { %v3482_v15 = vadd.f32 %v5713_v4, %v4369_v14  ;;  %v3476_v16 = vpop.f32.mrb[151].mxu1 }
 0x352   : > { %v3477_v13 = vadd.f32 %v5713_v4, %v3476_v16 }
 0x353   : > { %3773 = vst.msk [vmem:[%s5352_s21 + $0x2b8] sm:$0xff] %vm3685_vm0, %v3482_v15 }
 0x354   : > { %3772 = vst.msk [vmem:[%s5352_s21 + $0x2b0] sm:$0xff] %vm3685_vm0, %v3477_v13 }
 0x358   : > { %v4372_v19 = vpop.f32.mrb[152].mxu1 }
 0x359   : > { %v3492_v58 = vadd.f32 %v5713_v4, %v4372_v19  ;;  %v3486_v5 = vpop.f32.mrb[153].mxu1 }
 0x35a   : > { %v3487_v31 = vadd.f32 %v5713_v4, %v3486_v5 }
 0x35b   : > { %3775 = vst.msk [vmem:[%s5352_s21 + $0x2c8] sm:$0xff] %vm3685_vm0, %v3492_v58 }
 0x35c   : > { %3774 = vst.msk [vmem:[%s5352_s21 + $0x2c0] sm:$0xff] %vm3685_vm0, %v3487_v31 }
 0x360   : > { %v4375_v21 = vpop.f32.mrb[154].mxu1 }
 0x361   : > { %v3502_v23 = vadd.f32 %v5713_v4, %v4375_v21  ;;  %v3496_v63 = vpop.f32.mrb[155].mxu1 }
 0x362   : > { %v3497_v46 = vadd.f32 %v5713_v4, %v3496_v63 }
 0x363   : > { %3777 = vst.msk [vmem:[%s5352_s21 + $0x2d8] sm:$0xff] %vm3685_vm0, %v3502_v23 }
 0x364   : > { %3776 = vst.msk [vmem:[%s5352_s21 + $0x2d0] sm:$0xff] %vm3685_vm0, %v3497_v46 }
 0x368   : > { %v4378_v17 = vpop.f32.mrb[156].mxu1 }
 0x369   : > { %v3512_v11 = vadd.f32 %v5713_v4, %v4378_v17  ;;  %v3506_v28 = vpop.f32.mrb[157].mxu1 }
 0x36a   : > { %v3507_v29 = vadd.f32 %v5713_v4, %v3506_v28 }
 0x36b   : > { %3779 = vst.msk [vmem:[%s5352_s21 + $0x2e8] sm:$0xff] %vm3685_vm0, %v3512_v11 }
 0x36c   : > { %3778 = vst.msk [vmem:[%s5352_s21 + $0x2e0] sm:$0xff] %vm3685_vm0, %v3507_v29 }
 0x370   : > { %v4381_v33 = vpop.f32.mrb[158].mxu1 }
 0x371   : > { %v3522_v34 = vadd.f32 %v5713_v4, %v4381_v33  ;;  %v3516_v57 = vpop.f32.mrb[159].mxu1 }
 0x372   : > { %v3517_v36 = vadd.f32 %v5713_v4, %v3516_v57 }
 0x373   : > { %3781 = vst.msk [vmem:[%s5352_s21 + $0x2f8] sm:$0xff] %vm3685_vm0, %v3522_v34 }
 0x374   : > { %3780 = vst.msk [vmem:[%s5352_s21 + $0x2f0] sm:$0xff] %vm3685_vm0, %v3517_v36  ;;  %v4384_v6 = vpop.f32.mrb[160].mxu1 }
 0x375   : > { %v3532_v12 = vadd.f32 %v5713_v4, %v4384_v6  ;;  %v3526_v22 = vpop.f32.mrb[161].mxu1 }
 0x376   : > { %v3527_v37 = vadd.f32 %v5713_v4, %v3526_v22 }
 0x377   : > { %3783 = vst.msk [vmem:[%s5352_s21 + $0x308] sm:$0xff] %vm3685_vm0, %v3532_v12 }
 0x378   : > { %3782 = vst.msk [vmem:[%s5352_s21 + $0x300] sm:$0xff] %vm3685_vm0, %v3527_v37  ;;  %v4387_v38 = vpop.f32.mrb[162].mxu1 }
 0x379   : > { %v3542_v40 = vadd.f32 %v5713_v4, %v4387_v38  ;;  %v3536_v56 = vpop.f32.mrb[163].mxu1 }
 0x37a   : > { %v3537_v30 = vadd.f32 %v5713_v4, %v3536_v56 }
 0x37b   : > { %3785 = vst.msk [vmem:[%s5352_s21 + $0x318] sm:$0xff] %vm3685_vm0, %v3542_v40 }
 0x37c   : > { %3784 = vst.msk [vmem:[%s5352_s21 + $0x310] sm:$0xff] %vm3685_vm0, %v3537_v30  ;;  %v4390_v26 = vpop.f32.mrb[164].mxu1 }
 0x37d   : > { %v3552_v24 = vadd.f32 %v5713_v4, %v4390_v26  ;;  %v3546_v47 = vpop.f32.mrb[165].mxu1 }
 0x37e   : > { %v3547_v43 = vadd.f32 %v5713_v4, %v3546_v47 }
 0x37f   : > { %3787 = vst.msk [vmem:[%s5352_s21 + $0x328] sm:$0xff] %vm3685_vm0, %v3552_v24 }
 0x380   : > { %3786 = vst.msk [vmem:[%s5352_s21 + $0x320] sm:$0xff] %vm3685_vm0, %v3547_v43  ;;  %v4393_v41 = vpop.f32.mrb[166].mxu1 }
 0x381   : > { %v3562_v48 = vadd.f32 %v5713_v4, %v4393_v41  ;;  %v3556_v49 = vpop.f32.mrb[167].mxu1 }
 0x382   : > { %v3557_v32 = vadd.f32 %v5713_v4, %v3556_v49 }
 0x383   : > { %3789 = vst.msk [vmem:[%s5352_s21 + $0x338] sm:$0xff] %vm3685_vm0, %v3562_v48 }
 0x384   : > { %3788 = vst.msk [vmem:[%s5352_s21 + $0x330] sm:$0xff] %vm3685_vm0, %v3557_v32  ;;  %v4396_v25 = vpop.f32.mrb[168].mxu1 }
 0x385   : > { %v3572_v0 = vadd.f32 %v5713_v4, %v4396_v25  ;;  %v3566_v53 = vpop.f32.mrb[169].mxu1 }
 0x386   : > { %v3567_v50 = vadd.f32 %v5713_v4, %v3566_v53 }
 0x387   : > { %3791 = vst.msk [vmem:[%s5352_s21 + $0x348] sm:$0xff] %vm3685_vm0, %v3572_v0 }
 0x388   : > { %3790 = vst.msk [vmem:[%s5352_s21 + $0x340] sm:$0xff] %vm3685_vm0, %v3567_v50  ;;  %v4399_v35 = vpop.f32.mrb[170].mxu1 }
 0x389   : > { %v3582_v10 = vadd.f32 %v5713_v4, %v4399_v35  ;;  %v3576_v51 = vpop.f32.mrb[171].mxu1 }
 0x38a   : > { %v3577_v42 = vadd.f32 %v5713_v4, %v3576_v51 }
 0x38b   : > { %3793 = vst.msk [vmem:[%s5352_s21 + $0x358] sm:$0xff] %vm3685_vm0, %v3582_v10 }
 0x38c   : > { %3792 = vst.msk [vmem:[%s5352_s21 + $0x350] sm:$0xff] %vm3685_vm0, %v3577_v42  ;;  %v4402_v55 = vpop.f32.mrb[172].mxu1 }
 0x38d   : > { %v3592_v39 = vadd.f32 %v5713_v4, %v4402_v55  ;;  %v3586_v61 = vpop.f32.mrb[173].mxu1 }
 0x38e   : > { %v3587_v27 = vadd.f32 %v5713_v4, %v3586_v61 }
 0x38f   : > { %3795 = vst.msk [vmem:[%s5352_s21 + $0x368] sm:$0xff] %vm3685_vm0, %v3592_v39 }
 0x390   : > { %3794 = vst.msk [vmem:[%s5352_s21 + $0x360] sm:$0xff] %vm3685_vm0, %v3587_v27  ;;  %v4405_v59 = vpop.f32.mrb[174].mxu1 }
 0x391   : > { %v3602_v62 = vadd.f32 %v5713_v4, %v4405_v59  ;;  %v3596_v54 = vpop.f32.mrb[175].mxu1 }
 0x392   : > { %v3597_v1 = vadd.f32 %v5713_v4, %v3596_v54 }
 0x393   : > { %3797 = vst.msk [vmem:[%s5352_s21 + $0x378] sm:$0xff] %vm3685_vm0, %v3602_v62 }
 0x394   : > { %3796 = vst.msk [vmem:[%s5352_s21 + $0x370] sm:$0xff] %vm3685_vm0, %v3597_v1  ;;  %v4408_v45 = vpop.f32.mrb[176].mxu1 }
 0x395   : > { %v3612_v2 = vadd.f32 %v5713_v4, %v4408_v45  ;;  %v3606_v3 = vpop.f32.mrb[177].mxu1 }
 0x396   : > { %v3607_v44 = vadd.f32 %v5713_v4, %v3606_v3 }
 0x397   : > { %3799 = vst.msk [vmem:[%s5352_s21 + $0x388] sm:$0xff] %vm3685_vm0, %v3612_v2 }
 0x398   : > { %3798 = vst.msk [vmem:[%s5352_s21 + $0x380] sm:$0xff] %vm3685_vm0, %v3607_v44  ;;  %v4411_v7 = vpop.f32.mrb[178].mxu1 }
 0x399   : > { %v3622_v8 = vadd.f32 %v5713_v4, %v4411_v7  ;;  %v3616_v9 = vpop.f32.mrb[179].mxu1 }
 0x39a   : > { %v3617_v60 = vadd.f32 %v5713_v4, %v3616_v9 }
 0x39b   : > { %3801 = vst.msk [vmem:[%s5352_s21 + $0x398] sm:$0xff] %vm3685_vm0, %v3622_v8 }
 0x39c   : > { %3800 = vst.msk [vmem:[%s5352_s21 + $0x390] sm:$0xff] %vm3685_vm0, %v3617_v60  ;;  %v4414_v18 = vpop.f32.mrb[180].mxu1 }
 0x39d   : > { %v3632_v20 = vadd.f32 %v5713_v4, %v4414_v18  ;;  %v3626_v52 = vpop.f32.mrb[181].mxu1 }
 0x39e   : > { %v3627_v14 = vadd.f32 %v5713_v4, %v3626_v52 }
 0x39f   : > { %3803 = vst.msk [vmem:[%s5352_s21 + $0x3a8] sm:$0xff] %vm3685_vm0, %v3632_v20 }
 0x3a0   : > { %3802 = vst.msk [vmem:[%s5352_s21 + $0x3a0] sm:$0xff] %vm3685_vm0, %v3627_v14  ;;  %v4417_v15 = vpop.f32.mrb[182].mxu1 }
 0x3a1   : > { %v3642_v16 = vadd.f32 %v5713_v4, %v4417_v15  ;;  %v3636_v13 = vpop.f32.mrb[183].mxu1 }
 0x3a2   : > { %v3637_v19 = vadd.f32 %v5713_v4, %v3636_v13 }
 0x3a3   : > { %3805 = vst.msk [vmem:[%s5352_s21 + $0x3b8] sm:$0xff] %vm3685_vm0, %v3642_v16 }
 0x3a4   : > { %3804 = vst.msk [vmem:[%s5352_s21 + $0x3b0] sm:$0xff] %vm3685_vm0, %v3637_v19  ;;  %v4420_v58 = vpop.f32.mrb[184].mxu1 }
 0x3a5   : > { %v3652_v5 = vadd.f32 %v5713_v4, %v4420_v58  ;;  %v3646_v31 = vpop.f32.mrb[185].mxu1 }
 0x3a6   : > { %v3647_v21 = vadd.f32 %v5713_v4, %v3646_v31 }
 0x3a7   : > { %3807 = vst.msk [vmem:[%s5352_s21 + $0x3c8] sm:$0xff] %vm3685_vm0, %v3652_v5 }
 0x3a8   : > { %3806 = vst.msk [vmem:[%s5352_s21 + $0x3c0] sm:$0xff] %vm3685_vm0, %v3647_v21  ;;  %v4423_v23 = vpop.f32.mrb[186].mxu1 }
 0x3a9   : > { %v3662_v63 = vadd.f32 %v5713_v4, %v4423_v23  ;;  %v3656_v46 = vpop.f32.mrb[187].mxu1 }
 0x3aa   : > { %v3657_v17 = vadd.f32 %v5713_v4, %v3656_v46 }
 0x3ab   : > { %3809 = vst.msk [vmem:[%s5352_s21 + $0x3d8] sm:$0xff] %vm3685_vm0, %v3662_v63 }
 0x3ac   : > { %3808 = vst.msk [vmem:[%s5352_s21 + $0x3d0] sm:$0xff] %vm3685_vm0, %v3657_v17  ;;  %v4426_v11 = vpop.f32.mrb[188].mxu1 }
 0x3ad   : > { %v3672_v28 = vadd.f32 %v5713_v4, %v4426_v11  ;;  %v3666_v29 = vpop.f32.mrb[189].mxu1 }
 0x3ae   : > { %v3667_v33 = vadd.f32 %v5713_v4, %v3666_v29 }
 0x3af   : > { %3811 = vst.msk [vmem:[%s5352_s21 + $0x3e8] sm:$0xff] %vm3685_vm0, %v3672_v28 }
 0x3b0   : > { %3810 = vst.msk [vmem:[%s5352_s21 + $0x3e0] sm:$0xff] %vm3685_vm0, %v3667_v33  ;;  %v4429_v34 = vpop.f32.mrb[190].mxu1 }
 0x3b1   : > { %v3682_v57 = vadd.f32 %v5713_v4, %v4429_v34  ;;  %v3676_v36 = vpop.f32.mrb[191].mxu1 }
 0x3b2   : > { %v3677_v6 = vadd.f32 %v5713_v4, %v3676_v36 }
 0x3b3   : > { %3813 = vst.msk [vmem:[%s5352_s21 + $0x3f8] sm:$0xff] %vm3685_vm0, %v3682_v57 }
 0x3b4   : > { %3812 = vst.msk [vmem:[%s5352_s21 + $0x3f0] sm:$0xff] %vm3685_vm0, %v3677_v6 }
 0x3b5 PF: > { %s17_s26 = sadd.s32 1, %s4756_s26   ;;  %s6026_s24 = smov %s4752_s25 }
 0x3b6   : > { %p14_p5 = scmp.ge.s32.totalorder %s17_s26, 4   ;;  %s6027_s25 = smov %s6029_s27 }
 0x3b8   :  { %16 = sbr.rel (!%p14_p5) target bundleno = 2 (0x2), region = 89 }

// kernel: fcn_forward.11
= control target key start
LH: loop header
LB: loop body
LE: loop exit
PB: predicated region body
PF: predicated region fallthrough
CT: control target
= control target key end

     0   :  { %s631_s0 = inlined_call_operand.vmem [shape: f32[128,64], index: 0, kind: input, shape index: {}]   ;;  %s632_s1 = inlined_call_operand.vmem [shape: f32[1,64], index: 1, kind: input, shape index: {}]   ;;  %s633_s2 = inlined_call_operand.<no memory space> [shape: f32[1,1], index: 2, kind: input, shape index: {}]   ;;  %s634_s3 = inlined_call_operand.hbm [shape: f32[2,1,64], index: 3, kind: output, shape index: {}]  }
   0x1   :  { %v8_v0 = vstv %s633_s2 }
   0x2   :  { %9 = vst [vmem:[#allocation2] sm:$0x1] %v8_v0 }
   0x3   :  { %10 = vsyncpa [#allocation4], 0 }
   0x4   :  { %12 = vsyncpa [#allocation4 + $0x1], 0  ;;  %s529_s14 = smov 0   ;;  %s531_s15 = smov 0  }
   0x5   :  { %s533_s16 = smov 0   ;;  %s535_s17 = smov 0  }
   0x6 LB: > { %s550_s2 = sadd.s32 4294967295, %s499_s17   ;;  %s343_s18 = sadd.s32 4294967294, %s499_s17   ;;  %s499_s17 = sphi %s535_s17, %s640_s17   ;;  %s495_s16 = sphi %s533_s16, %s639_s16   ;;  %s491_s15 = sphi %s531_s15, %s638_s15   ;;  %s487_s14 = sphi %s529_s14, %s637_s14  }
   0x7   : > { %s554_s19 = sadd.s32 1, %s499_s17   ;;  %s93_s20 = sadd.s32 1, %s495_s16 }
   0x8   : > { %s90_s21 = ssub.s32 %s499_s17, %s554_s19  ;;  %p103_p0 = scmp.ne.s32.totalorder %s495_s16, %s491_s15 }
   0x9   : > { %p91_p1 = scmp.eq.s32.totalorder %s90_s21, 0  ;;  %p104_p2 = scmp.eq.s32.totalorder %s550_s2, 1 }
   0xa   : > { %p109_p3 = scmp.ne.s32.totalorder %s491_s15, %s487_s14  ;;  %p110_p4 = scmp.eq.s32.totalorder %s343_s18, 1 }
   0xb   : > { %s565_s22 = scalar_select %p91_p1, %s495_s16, %s93_s20  }
   0xc   : > { %p567_p5 = por %p104_p2, %p103_p0  ;;  %p571_p6 = por %p110_p4, %p109_p3 }
   0xd   : > { %p346_p7 = scmp.ge.s32.totalorder %s499_s17, 1  ;;  %p143_p8 = scmp.lt.s32.totalorder %s499_s17, 3 }
   0xf   : > { %p144_p9 = pnand %p346_p7, %p143_p8 }
  0x10   : > { %s347_s25 = sshll.u32 (!%p144_p9), %s550_s2, 3  ;;  %v501_v1 = vmov (!%p144_p9), 0.0|0.0   ;;  %vm502_vm0 = vmmov (!%p144_p9), 0   ;;  %v503_v2 = vmov (!%p144_p9), 0.0   ;;  %v189_v3 = vld [vmem:[#allocation2] sm:$0x1] (!%p144_p9)  ;;  %v195_v26 = vlaneseq (!%p144_p9) }
  0x11   : > { %147 = sbr.rel (%p144_p9) target bundleno = 275 (0x113), region = 32  ;;  %381 = vmatprep.subr.bf16.mxu0 (!%p144_p9), %v501_v1  ;;  %p167_p10 = scmp.lt.s32.totalorder (!%p144_p9), %s347_s25, 15  ;;  %378 = vmatprep.mubr.msk.f32.mxu0 (!%p144_p9), %vm502_vm0, %v503_v2  ;;  %v504_v4 = vmov (!%p144_p9), 0   ;;  %v188_v25 = vld [vmem:[%s632_s1] sm:$0x1] (!%p144_p9)  ;;  %vm199_vm1 = vcmask (!%p144_p9), 523264  }
  0x12   : > { %436 = vset.pattern.permute.xlu0 (!%p144_p9), %v504_v4  ;;  %v196_v27 = vshrl.u32 (!%p144_p9), %v195_v26, 7  ;;  %s164_s5 = sand.u32 (!%p144_p9), 1, %s491_s15   ;;  %s350_s6 = sshll.u32 (!%p144_p9), %s550_s2, 4  ;;  %vm273_vm2 = vcmask (!%p144_p9), 516096  }
  0x13   : > { %192 = vperm.xlu0 (!%p144_p9), %436, %v189_v3   ;;  %s165_s7 = scalar_lea.vmem (!%p144_p9), [#allocation3], %s164_s5  ;;  %s589_s11 = scalar_lea.hbm (!%p144_p9), %s634_s3, %s350_s6 }
  0x14   : > { %v197_v28 = vsub.s32 (!%p144_p9), 0, %v196_v27  ;;  %s288_s8 = sshll.u32 (!%p144_p9), %s165_s7, 4  ;;  %s276_s12 = scalar_lea.sflag (!%p144_p9), [#allocation4], %s164_s5  ;;  %s591_s8 = int_to_ptr.vmem [resolvable:$true] %s288_s8 }
  0x15   : > { %s437_s13 = scalar_lea.vmem (!%p144_p9), %s591_s8, 16  ;;  %s505_s2 = smov (!%p144_p9), [#allocation3]  }
  0x16   : > { %p438_p11 = scmp.ne.s32.totalorder (!%p144_p9), %s591_s8, %s437_s13  ;;  %s441_s18 = sshll.u32 (!%p144_p9), %s505_s2, 4  ;;  %s442_s18 = int_to_ptr.vmem [resolvable:$false] %s441_s18 }
  0x17   : > { %s443_s20 = scalar_lea.vmem (!%p144_p9), %s442_s18, 32  ;;  %p444_p0 = scmp.lt.s32.totalorder (!%p144_p9), %s591_s8, %s442_s18 }
  0x18   : > { %s642_s25 = smov (!%p167_p10, %s347_s25), 15  ;;  %p439_p12 = pnand %p438_p11, %p567_p5 }
  0x19   : > { %s348_s26 = sshll.u32 %s642_s25, 3  ;;  %p445_p1 = scmp.lt.s32.totalorder %s443_s20, %s437_s13 }
  0x1a   : > { %s170_s29 = scalar_lea.vmem %s631_s0, %s348_s26  ;;  %p440_p13 = pneg %p439_p12 }
  0x1b   : > { %v172_v5 = vld [vmem:[%s170_s29] sm:$0xff]  ;;  %v173_v6 = vld [vmem:[%s170_s29 + $0x8] sm:$0xff]  ;;  %v174_v7 = vld [vmem:[%s170_s29 + $0x10] sm:$0xff]  ;;  %p446_p2 = por %p445_p1, %p444_p0 }
  0x1c   : > { %v180_v8 = vmax.f32 %v172_v5, 0.0  ;;  %v181_v9 = vmax.f32 %v173_v6, 0.0  ;;  %v175_v10 = vld [vmem:[%s170_s29 + $0x18] sm:$0xff]  ;;  %v182_v11 = vmax.f32 %v174_v7, 0.0  ;;  %v176_v13 = vld [vmem:[%s170_s29 + $0x20] sm:$0xff]  ;;  %v177_v14 = vld [vmem:[%s170_s29 + $0x28] sm:$0xff] }
  0x1d   : > { %v183_v12 = vmax.f32 %v175_v10, 0.0  ;;  %v184_v17 = vmax.f32 %v176_v13, 0.0  ;;  %v185_v18 = vmax.f32 %v177_v14, 0.0  ;;  %v178_v19 = vld [vmem:[%s170_s29 + $0x30] sm:$0xff]  ;;  %v179_v20 = vld [vmem:[%s170_s29 + $0x38] sm:$0xff]  ;;  %p447_p3 = pnand %p446_p2, %p440_p13 }
  0x1e   : > { %v382_v15 = vpack.c.bf16 %v181_v9, %v180_v8  ;;  %v186_v22 = vmax.f32 %v178_v19, 0.0  ;;  %v187_v23 = vmax.f32 %v179_v20, 0.0 }
  0x1f   : > { %v385_v16 = vpack.c.bf16 %v183_v12, %v182_v11  ;;  %v388_v21 = vpack.c.bf16 %v185_v18, %v184_v17 }
  0x20   : > { %383 = vmatpush3.bf16.msra.mxu0 %v382_v15  ;;  %v391_v24 = vpack.c.bf16 %v187_v23, %v186_v22 }
  0x21   : > { %384 = vmatprep.subr.bf16.mxu0 %v501_v1 }
  0x24   : > { %386 = vmatpush3.bf16.msra.mxu0 %v385_v16 }
  0x25   : > { %387 = vmatprep.subr.bf16.mxu0 %v501_v1 }
  0x28   : > { %389 = vmatpush3.bf16.msra.mxu0 %v388_v21 }
  0x29   : > { %390 = vmatprep.subr.bf16.mxu0 %v501_v1 }
  0x2c   : > { %392 = vmatpush3.bf16.msra.mxu0 %v391_v24 }
  0x2f   : > { %379 = vmatmul.mubr.msk.f32.vlgmr.msra.gmra.mrb[0].mxu0 %vm199_vm1, %v188_v25 }
  0x92   : > { %v193_v29 = vpop.permute.xlu0 %192 }
  0x93   : > { %v198_v30 = vrot.slane %v193_v29, %v197_v28 }
 0x102   : > { %v269_v31 = vpop.f32.mrb[0].mxu0 }
 0x103   : > { %v270_v32 = vadd.f32 %v269_v31, %v198_v30  ;;  %v380_v33 = vpop.f32.mrb[1].mxu0 }
 0x105   : > { %274 = vst.msk [vmem:[%s165_s7] sm:$0x1] %vm273_vm2, %v270_v32 }
 0x106   : > { %450 = shalt.err (!%p447_p3)
}
 0x107   : > { %s451_s21 = scalar_lea.hbm %s589_s11, 16  ;;  %s455_s27 = scalar_lea.hbm %s634_s3, 32 }
 0x108   : > { %p452_p4 = scmp.ne.s32.totalorder %s589_s11, %s451_s21  ;;  %p456_p9 = scmp.lt.u32.totalorder %s589_s11, %s634_s3 }
 0x109   : > { %p457_p10 = scmp.lt.u32.totalorder %s455_s27, %s451_s21  ;;  %p459_p12 = scmp.lt.u32.totalorder %s451_s21, %s589_s11 }
 0x10a   : > { %p453_p7 = pnand %p452_p4, %p567_p5 }
 0x10b   : > { %p458_p11 = por %p457_p10, %p456_p9 }
 0x10c   : > { %p454_p8 = pneg %p453_p7 }
 0x10d   : > { %p460_p13 = por %p459_p12, %p458_p11 }
 0x10f   : > { %p461_p0 = pnand %p460_p13, %p454_p8 }
 0x111   : > { %464 = shalt.err (!%p461_p0)
}
 0x112   : > { %393 = dma.vmem_to_hbm [thread:$0]  (%p567_p5), %s591_s8, 16, %s589_s11, %s276_s12  }
 0x113 PF: > { %p399_p1 = scmp.ge.s32.totalorder %s499_s17, 2  ;;  %s300_s30 = sand.u32 1, %s487_s14  }
 0x114   : > { %s301_s4 = scalar_lea.sflag [#allocation4], %s300_s30 }
 0x115   : > { %p396_p2 = pnand %p399_p1, %p571_p6 }
 0x117   : > { %482 = dma.done.wait (!%p396_p2), %s301_s4, 16  }
 0x118   : > { %484 = vsyncadd (!%p396_p2), %s301_s4, 4294967280  ;;  %p15_p3 = scmp.ge.s32.totalorder %s554_s19, 4   ;;  %s637_s14 = smov %s491_s15 }
 0x119   : > { %s638_s15 = smov %s495_s16  ;;  %s639_s16 = smov %s565_s22 }
 0x11a   : > { %s640_s17 = smov %s554_s19  ;;  %17 = sbr.rel (!%p15_p3) target bundleno = 6 (0x6), region = 67 }
 0x121   :  { %305 = vsyncpa [#allocation4], 1 }
 0x122   :  { %307 = vsyncpa [#allocation4 + $0x1], 1 }

</bundles_post_ra>
